<compile_context>
chip_gen: v5e
topology: v5e:2x2
jax: 0.10.0
libtpu: 0.0.40
codegen_flags: <defaults>
</compile_context>

<pallas_src>
import jax
import jax.numpy as jnp
from jax import lax
from jax.experimental import pallas as pl
from jax.experimental.pallas import tpu as pltpu


def temporal_predictor_kernel(
    # inputs
    x_ref,        # (TT, NP, PE)   packed [input_dec | input_enc] time chunk
    spkr_b_ref,   # (NP, 4Hp)      spkr@Wih0_spk + b_ih0 + b_hh0 + b_pre-fold (time-invariant)
    w_pack_ref,   # (PE, 4Hp + P)  [x_dec|x_enc] -> [layer-0 gate inputs | enc->out]
    w_hh0_ref,    # (Hp, 4Hp)      layer-0 recurrent weight (reordered, padded)
    w_hh1_ref,    # (Hp, 4Hp)      layer-1 recurrent weight
    w_ih1_ref,    # (Hp, 4Hp)      layer-1 input-to-hidden (acts on h0)
    b1_ref,       # (1, 4Hp)       b_ih1 + b_hh1
    w_outh_ref,   # (Hp, P)        out_linear, lstm-output part
    b_out_ref,    # (1, P)
    # output
    out_ref,      # (TT, NP, P)
    # scratch (persistent across grid steps)
    h0_ref, h1_ref, c0_ref, c1_ref,   # (NP, Hp) LSTM state
    g0_ref,       # (TT, NP, 4Hp)  precomputed layer-0 gate inputs
    h1buf_ref,    # (TT, NP, Hp)   per-step layer-1 hidden outputs
):
    f32 = jnp.float32
    TT, NP, PE = x_ref.shape
    P = out_ref.shape[-1]
    Hp = c0_ref.shape[-1]
    G = 4 * Hp

    # Null initial state (reset_states -> hidden is None), first chunk only.
    @pl.when(pl.program_id(0) == 0)
    def _():
        h0_ref[...] = jnp.zeros_like(h0_ref)
        h1_ref[...] = jnp.zeros_like(h1_ref)
        c0_ref[...] = jnp.zeros_like(c0_ref)
        c1_ref[...] = jnp.zeros_like(c1_ref)

    # --- Hoisted, batched non-recurrent work: one matmul over TT*NP rows gives
    # both the layer-0 gate inputs and the enc contribution to out_linear. ---
    x = x_ref[...].reshape(TT * NP, PE)
    proj = jnp.dot(x, w_pack_ref[...], preferred_element_type=f32)       # (TT*NP, G+P)
    g0_ref[...] = proj[:, :G].reshape(TT, NP, G) + spkr_b_ref[...][None, :, :]
    out_ref[...] = (proj[:, G:] + b_out_ref[...]).reshape(TT, NP, P)

    w_hh0 = w_hh0_ref[...]
    w_hh1 = w_hh1_ref[...]
    w_ih1 = w_ih1_ref[...]
    b1 = b1_ref[...]

    # --- Serial recurrence. Gate order (repacked wrapper-side): i, f, o, g.
    # sigmoid on the contiguous [:3Hp] slab, tanh on [3Hp:]. All slices are
    # 128-lane aligned because Hp is a multiple of 128. ---
    def step(t, carry):
        h0, h1, c0, c1 = carry

        gates0 = g0_ref[t] + jnp.dot(h0, w_hh0, preferred_element_type=f32)
        s0 = jax.nn.sigmoid(gates0[:, :3 * Hp])
        g0t = jnp.tanh(gates0[:, 3 * Hp:])
        c0n = s0[:, Hp:2 * Hp] * c0 + s0[:, :Hp] * g0t
        h0n = s0[:, 2 * Hp:3 * Hp] * jnp.tanh(c0n)

        gates1 = (jnp.dot(h0n, w_ih1, preferred_element_type=f32)
                  + jnp.dot(h1, w_hh1, preferred_element_type=f32) + b1)
        s1 = jax.nn.sigmoid(gates1[:, :3 * Hp])
        g1t = jnp.tanh(gates1[:, 3 * Hp:])
        c1n = s1[:, Hp:2 * Hp] * c1 + s1[:, :Hp] * g1t
        h1n = s1[:, 2 * Hp:3 * Hp] * jnp.tanh(c1n)

        h1buf_ref[t] = h1n
        return h0n, h1n, c0n, c1n

    carry0 = (h0_ref[...], h1_ref[...], c0_ref[...], c1_ref[...])
    h0f, h1f, c0f, c1f = lax.fori_loop(0, TT, step, carry0, unroll=min(TT, 8))
    h0_ref[...] = h0f
    h1_ref[...] = h1f
    c0_ref[...] = c0f
    c1_ref[...] = c1f

    # --- Deferred out_linear (recurrent part): one batched matmul + one add. ---
    out_rec = jnp.dot(h1buf_ref[...].reshape(TT * NP, Hp), w_outh_ref[...],
                      preferred_element_type=f32)
    out_ref[...] = out_ref[...] + out_rec.reshape(TT, NP, P)


def temporal_predictor_rnn(input_enc, input_dec, spkr_vec, params, *, time_block=128):
    """input_enc: (N, T, E); input_dec: (N, T, P); spkr_vec: (N, 1, S) -> (N, T, P)."""
    f32 = jnp.float32
    N, T, E = input_enc.shape
    P = input_dec.shape[-1]
    S = spkr_vec.shape[-1]
    H = params["w_hh0"].shape[-1]

    Hp = ((H + 127) // 128) * 128            # lane-align each gate / state slab
    G = 4 * Hp
    NP = max(8, ((N + 7) // 8) * 8)          # pad batch to the f32 sublane tile
    TT = max(1, min(time_block, T))          # time chunk per grid step
    T_pad = ((T + TT - 1) // TT) * TT
    PE = P + E

    # --- wrapper-side weight re-packing (all exact; prenet has no nonlinearity) ---
    def gates_reorder_pad(w):                # (4H, K): i,f,g,o -> (4Hp, K): i,f,o,g
        i, f, g, o = w[:H], w[H:2 * H], w[2 * H:3 * H], w[3 * H:]
        pad = lambda x: jnp.pad(x, ((0, Hp - H), (0, 0)))
        return jnp.concatenate([pad(i), pad(f), pad(o), pad(g)], axis=0).astype(f32)

    def bias_reorder_pad(b):                 # (4H,) -> (4Hp,)
        i, f, g, o = b[:H], b[H:2 * H], b[2 * H:3 * H], b[3 * H:]
        pad = lambda x: jnp.pad(x, (0, Hp - H))
        return jnp.concatenate([pad(i), pad(f), pad(o), pad(g)], axis=0).astype(f32)

    w_ih0 = params["w_ih0"].astype(f32)
    w_out = params["w_out"].astype(f32)
    w_pre = params["w_pre"].astype(f32)                 # (H, P)
    b_pre = params["b_pre"].astype(f32)                 # (H,)

    w_ih0_pre = gates_reorder_pad(w_ih0[:, :H])         # (4Hp, H)  acts on prenet out
    w_ih0_enc = gates_reorder_pad(w_ih0[:, H:H + E])    # (4Hp, E)
    w_ih0_spk = gates_reorder_pad(w_ih0[:, H + E:])     # (4Hp, S)

    # Fold the linear prenet into the layer-0 gate weight / bias.
    w_dec_gates = (w_ih0_pre @ w_pre).T                 # (P, 4Hp)
    b_gate = (bias_reorder_pad(params["b_ih0"] + params["b_hh0"])
              + w_ih0_pre @ b_pre)                      # (4Hp,)

    # Time-invariant speaker + bias gate contribution (computed once, outside kernel).
    spkr2d = jnp.pad(spkr_vec[:, 0, :].astype(f32), ((0, NP - N), (0, 0)))   # (NP, S)
    spkr_b = spkr2d @ w_ih0_spk.T + b_gate[None, :]     # (NP, 4Hp)

    # Packed [x_dec | x_enc] -> [layer-0 gate inputs | enc part of out_linear].
    w_pack = jnp.zeros((PE, G + P), f32)
    w_pack = w_pack.at[:P, :G].set(w_dec_gates)
    w_pack = w_pack.at[P:, :G].set(w_ih0_enc.T)
    w_pack = w_pack.at[P:, G:].set(w_out[:, H:].T)

    def rec_weight(w):                                  # (4H, H) -> (Hp, 4Hp)
        return jnp.pad(gates_reorder_pad(w), ((0, 0), (0, Hp - H))).T

    w_hh0_k = rec_weight(params["w_hh0"])
    w_hh1_k = rec_weight(params["w_hh1"])
    w_ih1_k = rec_weight(params["w_ih1"])
    b1_k = bias_reorder_pad(params["b_ih1"] + params["b_hh1"]).reshape(1, G)

    w_outh = jnp.pad(w_out[:, :H].T, ((0, Hp - H), (0, 0)))                  # (Hp, P)
    b_out = params["b_out"].reshape(1, -1).astype(f32)                       # (1, P)

    # Packed time-major inputs (single streamed tensor).
    x_pack = jnp.concatenate([input_dec.astype(f32), input_enc.astype(f32)], axis=-1)
    x_pack = jnp.transpose(x_pack, (1, 0, 2))                                # (T, N, PE)
    x_pack = jnp.pad(x_pack, ((0, T_pad - T), (0, NP - N), (0, 0)))

    num_chunks = T_pad // TT

    # VMEM budget derived from actual buffers; v7x-safe cap (64 MiB physical).
    fb = 4
    vmem_need = fb * (
        4 * NP * Hp + TT * NP * G + TT * NP * Hp                         # persistent scratch
        + 2 * TT * NP * (PE + P)                                         # double-buffered chunks
        + 2 * (NP * G + PE * (G + P) + 3 * Hp * G + G + Hp * P + P)      # resident operands
        + 2 * TT * NP * (G + P))                                         # hoisted matmul temps
    vmem_limit = int(min(64 * 1024 * 1024, max(32 * 1024 * 1024, 2 * vmem_need)))

    out_t = pl.pallas_call(
        temporal_predictor_kernel,
        out_shape=jax.ShapeDtypeStruct((T_pad, NP, P), f32),
        grid_spec=pltpu.PrefetchScalarGridSpec(
            num_scalar_prefetch=0,
            grid=(num_chunks,),
            in_specs=[
                pl.BlockSpec((TT, NP, PE), lambda i: (i, 0, 0)),   # packed x chunk
                pl.BlockSpec((NP, G), lambda i: (0, 0)),           # spkr_b
                pl.BlockSpec((PE, G + P), lambda i: (0, 0)),       # w_pack
                pl.BlockSpec((Hp, G), lambda i: (0, 0)),           # w_hh0
                pl.BlockSpec((Hp, G), lambda i: (0, 0)),           # w_hh1
                pl.BlockSpec((Hp, G), lambda i: (0, 0)),           # w_ih1
                pl.BlockSpec((1, G), lambda i: (0, 0)),            # b1
                pl.BlockSpec((Hp, P), lambda i: (0, 0)),           # w_outh
                pl.BlockSpec((1, P), lambda i: (0, 0)),            # b_out
            ],
            out_specs=pl.BlockSpec((TT, NP, P), lambda i: (i, 0, 0)),
            scratch_shapes=[
                pltpu.VMEM((NP, Hp), f32),       # h0 state
                pltpu.VMEM((NP, Hp), f32),       # h1 state
                pltpu.VMEM((NP, Hp), f32),       # c0 state
                pltpu.VMEM((NP, Hp), f32),       # c1 state
                pltpu.VMEM((TT, NP, G), f32),    # precomputed layer-0 gate inputs
                pltpu.VMEM((TT, NP, Hp), f32),   # per-step h1 buffer
            ],
        ),
        compiler_params=pltpu.CompilerParams(
            # time chunks carry LSTM state in scratch -> recurrence -> arbitrary
            dimension_semantics=("arbitrary",),
            vmem_limit_bytes=vmem_limit,
        ),
    )(x_pack, spkr_b, w_pack, w_hh0_k, w_hh1_k, w_ih1_k, b1_k, w_outh, b_out)

    out = jnp.transpose(out_t, (1, 0, 2))        # (NP, T_pad, P)
    return out[:N, :T]                           # drop batch/time padding


def reference_forward(input_enc, input_dec, spkr_vec, p):
    """Pure-JAX reference mirroring the PyTorch forward (null initial state)."""
    N, T, _ = input_enc.shape
    pre = input_dec @ p["w_pre"].T + p["b_pre"]
    spk = jnp.broadcast_to(spkr_vec, (N, T, spkr_vec.shape[-1]))
    x = jnp.concatenate([pre, input_enc, spk], axis=-1)

    def lstm_layer(x, w_ih, w_hh, b_ih, b_hh):
        Hh = w_hh.shape[1]

        def step(carry, x_t):
            h, c = carry
            g = x_t @ w_ih.T + b_ih + h @ w_hh.T + b_hh
            i = jax.nn.sigmoid(g[:, :Hh])
            f = jax.nn.sigmoid(g[:, Hh:2 * Hh])
            gg = jnp.tanh(g[:, 2 * Hh:3 * Hh])
            o = jax.nn.sigmoid(g[:, 3 * Hh:])
            c = f * c + i * gg
            h = o * jnp.tanh(c)
            return (h, c), h

        init = (jnp.zeros((x.shape[0], Hh)), jnp.zeros((x.shape[0], Hh)))
        _, ys = jax.lax.scan(step, init, jnp.transpose(x, (1, 0, 2)))
        return jnp.transpose(ys, (1, 0, 2))

    y0 = lstm_layer(x, p["w_ih0"], p["w_hh0"], p["b_ih0"], p["b_hh0"])
    y1 = lstm_layer(y0, p["w_ih1"], p["w_hh1"], p["b_ih1"], p["b_hh1"])
    dec_out = jnp.concatenate([y1, input_enc], axis=-1)
    return dec_out @ p["w_out"].T + p["b_out"]


if __name__ == "__main__":
    # Small shapes consistent with the module:
    N, T = 2, 8
    E, H, P, S = 32, 32, 8, 16     # enc_hidden, dec_hidden, output_size, spkr_embed_size

    key = jax.random.PRNGKey(0)
    ks = jax.random.split(key, 16)

    def u(k, shape, fan_in):
        bound = 1.0 / (fan_in ** 0.5)
        return jax.random.uniform(k, shape, jnp.float32, -bound, bound)

    params = {
        "w_pre": u(ks[0], (H, P), P),
        "b_pre": u(ks[1], (H,), P),
        "w_ih0": u(ks[2], (4 * H, H + E + S), H),
        "w_hh0": u(ks[3], (4 * H, H), H),
        "b_ih0": u(ks[4], (4 * H,), H),
        "b_hh0": u(ks[5], (4 * H,), H),
        "w_ih1": u(ks[6], (4 * H, H), H),
        "w_hh1": u(ks[7], (4 * H, H), H),
        "b_ih1": u(ks[8], (4 * H,), H),
        "b_hh1": u(ks[9], (4 * H,), H),
        "w_out": u(ks[10], (P, E + H), E + H),
        "b_out": u(ks[11], (P,), E + H),
    }

    input_enc = jax.random.normal(ks[12], (N, T, E), jnp.float32)
    input_dec = jax.random.normal(ks[13], (N, T, P), jnp.float32)
    spkr_vec = jax.random.normal(ks[14], (N, 1, S), jnp.float32)

    out = temporal_predictor_rnn(input_enc, input_dec, spkr_vec, params)
    out = jax.block_until_ready(out)

    ref = reference_forward(input_enc, input_dec, spkr_vec, params)
    assert out.shape == (N, T, P), out.shape
    if not jnp.allclose(out, ref, rtol=1e-4, atol=1e-4):
        raise AssertionError(
            f"Pallas kernel mismatch vs reference; max abs err = "
            f"{float(jnp.max(jnp.abs(out - ref)))}")

    print("KERNEL_OK")
</pallas_src>

<mosaic_0001>
module attributes {stable_mosaic.version = 11 : i64} {
  func.func @temporal_predictor_kernel(%arg0: i32, %arg1: memref<8x8x40xf32, #tpu.memory_space<vmem>>, %arg2: memref<8x512xf32, #tpu.memory_space<vmem>>, %arg3: memref<40x520xf32, #tpu.memory_space<vmem>>, %arg4: memref<128x512xf32, #tpu.memory_space<vmem>>, %arg5: memref<128x512xf32, #tpu.memory_space<vmem>>, %arg6: memref<128x512xf32, #tpu.memory_space<vmem>>, %arg7: memref<1x512xf32, #tpu.memory_space<vmem>>, %arg8: memref<128x8xf32, #tpu.memory_space<vmem>>, %arg9: memref<1x8xf32, #tpu.memory_space<vmem>>, %arg10: memref<8x8x8xf32, #tpu.memory_space<vmem>>, %arg11: memref<8x128xf32, #tpu.memory_space<vmem>>, %arg12: memref<8x128xf32, #tpu.memory_space<vmem>>, %arg13: memref<8x128xf32, #tpu.memory_space<vmem>>, %arg14: memref<8x128xf32, #tpu.memory_space<vmem>>, %arg15: memref<8x8x512xf32, #tpu.memory_space<vmem>>, %arg16: memref<8x8x128xf32, #tpu.memory_space<vmem>>) attributes {dimension_semantics = [#tpu.dimension_semantics<arbitrary>], iteration_bounds = array<i64: 1>, scalar_prefetch = 0 : i64, scratch_operands = 6 : i64, tpu.core_type = #tpu.core_type<tc>, window_params = [{transform_indices = @transform_0, window_bounds = array<i64: 8, 8, 40>}, {pipeline_mode = #tpu.pipeline_mode<synchronous>, transform_indices = @transform_1, window_bounds = array<i64: 8, 512>}, {pipeline_mode = #tpu.pipeline_mode<synchronous>, transform_indices = @transform_2, window_bounds = array<i64: 40, 520>}, {pipeline_mode = #tpu.pipeline_mode<synchronous>, transform_indices = @transform_3, window_bounds = array<i64: 128, 512>}, {pipeline_mode = #tpu.pipeline_mode<synchronous>, transform_indices = @transform_4, window_bounds = array<i64: 128, 512>}, {pipeline_mode = #tpu.pipeline_mode<synchronous>, transform_indices = @transform_5, window_bounds = array<i64: 128, 512>}, {pipeline_mode = #tpu.pipeline_mode<synchronous>, transform_indices = @transform_6, window_bounds = array<i64: 1, 512>}, {pipeline_mode = #tpu.pipeline_mode<synchronous>, transform_indices = @transform_7, window_bounds = array<i64: 128, 8>}, {pipeline_mode = #tpu.pipeline_mode<synchronous>, transform_indices = @transform_8, window_bounds = array<i64: 1, 8>}, {transform_indices = @transform_9, window_bounds = array<i64: 8, 8, 8>}]} {
    %c0_i32 = arith.constant 0 : i32
    %0 = arith.cmpi eq, %arg0, %c0_i32 : i32
    %1 = arith.extui %0 : i1 to i32
    %c0_i32_0 = arith.constant 0 : i32
    %2 = arith.cmpi ne, %1, %c0_i32_0 : i32
    scf.if %2 {
      %cst_124 = arith.constant 0.000000e+00 : f32
      %408 = vector.broadcast %cst_124 : f32 to vector<8x128xf32>
      %c0_125 = arith.constant 0 : index
      %c0_126 = arith.constant 0 : index
      %409 = vector.load %arg11[%c0_125, %c0_126] : memref<8x128xf32, #tpu.memory_space<vmem>>, vector<8x128xf32>
      tpu.vector_store %arg11[%c0_125, %c0_126], %408 {strides = array<i32>} : memref<8x128xf32, #tpu.memory_space<vmem>>, vector<8x128xf32>,
      %cst_127 = arith.constant 0.000000e+00 : f32
      %410 = vector.broadcast %cst_127 : f32 to vector<8x128xf32>
      %c0_128 = arith.constant 0 : index
      %c0_129 = arith.constant 0 : index
      %411 = vector.load %arg12[%c0_128, %c0_129] : memref<8x128xf32, #tpu.memory_space<vmem>>, vector<8x128xf32>
      tpu.vector_store %arg12[%c0_128, %c0_129], %410 {strides = array<i32>} : memref<8x128xf32, #tpu.memory_space<vmem>>, vector<8x128xf32>,
      %cst_130 = arith.constant 0.000000e+00 : f32
      %412 = vector.broadcast %cst_130 : f32 to vector<8x128xf32>
      %c0_131 = arith.constant 0 : index
      %c0_132 = arith.constant 0 : index
      %413 = vector.load %arg13[%c0_131, %c0_132] : memref<8x128xf32, #tpu.memory_space<vmem>>, vector<8x128xf32>
      tpu.vector_store %arg13[%c0_131, %c0_132], %412 {strides = array<i32>} : memref<8x128xf32, #tpu.memory_space<vmem>>, vector<8x128xf32>,
      %cst_133 = arith.constant 0.000000e+00 : f32
      %414 = vector.broadcast %cst_133 : f32 to vector<8x128xf32>
      %c0_134 = arith.constant 0 : index
      %c0_135 = arith.constant 0 : index
      %415 = vector.load %arg14[%c0_134, %c0_135] : memref<8x128xf32, #tpu.memory_space<vmem>>, vector<8x128xf32>
      tpu.vector_store %arg14[%c0_134, %c0_135], %414 {strides = array<i32>} : memref<8x128xf32, #tpu.memory_space<vmem>>, vector<8x128xf32>,
    } else {
    }
    %c0 = arith.constant 0 : index
    %c0_1 = arith.constant 0 : index
    %c0_2 = arith.constant 0 : index
    %3 = vector.load %arg1[%c0, %c0_1, %c0_2] : memref<8x8x40xf32, #tpu.memory_space<vmem>>, vector<8x8x40xf32>
    %4 = vector.shape_cast %3 : vector<8x8x40xf32> to vector<64x40xf32>
    %c0_3 = arith.constant 0 : index
    %c0_4 = arith.constant 0 : index
    %5 = vector.load %arg3[%c0_3, %c0_4] : memref<40x520xf32, #tpu.memory_space<vmem>>, vector<40x520xf32>
    %cst = arith.constant dense<0.000000e+00> : vector<64x520xf32>
    %6 = tpu.matmul %4, %5, %cst {dimension_numbers = #tpu.dot_dimension_numbers<[1], [0], [0], [1], [0, 0, 1, 1], [], []>} : vector<64x40xf32>, vector<40x520xf32>, vector<64x520xf32> -> vector<64x520xf32>
    %7 = vector.extract_strided_slice %6 {offsets = [0, 0], sizes = [64, 512], strides = [1, 1]} : vector<64x520xf32> to vector<64x512xf32>
    %8 = vector.shape_cast %7 : vector<64x512xf32> to vector<8x8x512xf32>
    %c0_5 = arith.constant 0 : index
    %c0_6 = arith.constant 0 : index
    %9 = vector.load %arg2[%c0_5, %c0_6] : memref<8x512xf32, #tpu.memory_space<vmem>>, vector<8x512xf32>
    %10 = vector.shape_cast %9 : vector<8x512xf32> to vector<1x8x512xf32>
    %11 = vector.broadcast %10 : vector<1x8x512xf32> to vector<8x8x512xf32>
    %12 = arith.addf %8, %11 : vector<8x8x512xf32>
    %c0_7 = arith.constant 0 : index
    %c0_8 = arith.constant 0 : index
    %c0_9 = arith.constant 0 : index
    %13 = vector.load %arg15[%c0_7, %c0_8, %c0_9] : memref<8x8x512xf32, #tpu.memory_space<vmem>>, vector<8x8x512xf32>
    tpu.vector_store %arg15[%c0_7, %c0_8, %c0_9], %12 {strides = array<i32>} : memref<8x8x512xf32, #tpu.memory_space<vmem>>, vector<8x8x512xf32>,
    %14 = vector.extract_strided_slice %6 {offsets = [0, 512], sizes = [64, 8], strides = [1, 1]} : vector<64x520xf32> to vector<64x8xf32>
    %c0_10 = arith.constant 0 : index
    %c0_11 = arith.constant 0 : index
    %15 = vector.load %arg9[%c0_10, %c0_11] : memref<1x8xf32, #tpu.memory_space<vmem>>, vector<1x8xf32>
    %16 = vector.broadcast %15 : vector<1x8xf32> to vector<64x8xf32>
    %17 = arith.addf %14, %16 : vector<64x8xf32>
    %18 = vector.shape_cast %17 : vector<64x8xf32> to vector<8x8x8xf32>
    %c0_12 = arith.constant 0 : index
    %c0_13 = arith.constant 0 : index
    %c0_14 = arith.constant 0 : index
    %19 = vector.load %arg10[%c0_12, %c0_13, %c0_14] : memref<8x8x8xf32, #tpu.memory_space<vmem>>, vector<8x8x8xf32>
    tpu.vector_store %arg10[%c0_12, %c0_13, %c0_14], %18 {strides = array<i32>} : memref<8x8x8xf32, #tpu.memory_space<vmem>>, vector<8x8x8xf32>,
    %c0_15 = arith.constant 0 : index
    %c0_16 = arith.constant 0 : index
    %20 = vector.load %arg4[%c0_15, %c0_16] : memref<128x512xf32, #tpu.memory_space<vmem>>, vector<128x512xf32>
    %c0_17 = arith.constant 0 : index
    %c0_18 = arith.constant 0 : index
    %21 = vector.load %arg5[%c0_17, %c0_18] : memref<128x512xf32, #tpu.memory_space<vmem>>, vector<128x512xf32>
    %c0_19 = arith.constant 0 : index
    %c0_20 = arith.constant 0 : index
    %22 = vector.load %arg6[%c0_19, %c0_20] : memref<128x512xf32, #tpu.memory_space<vmem>>, vector<128x512xf32>
    %c0_21 = arith.constant 0 : index
    %c0_22 = arith.constant 0 : index
    %23 = vector.load %arg7[%c0_21, %c0_22] : memref<1x512xf32, #tpu.memory_space<vmem>>, vector<1x512xf32>
    %c0_23 = arith.constant 0 : index
    %c0_24 = arith.constant 0 : index
    %24 = vector.load %arg11[%c0_23, %c0_24] : memref<8x128xf32, #tpu.memory_space<vmem>>, vector<8x128xf32>
    %c0_25 = arith.constant 0 : index
    %c0_26 = arith.constant 0 : index
    %25 = vector.load %arg12[%c0_25, %c0_26] : memref<8x128xf32, #tpu.memory_space<vmem>>, vector<8x128xf32>
    %c0_27 = arith.constant 0 : index
    %c0_28 = arith.constant 0 : index
    %26 = vector.load %arg13[%c0_27, %c0_28] : memref<8x128xf32, #tpu.memory_space<vmem>>, vector<8x128xf32>
    %c0_29 = arith.constant 0 : index
    %c0_30 = arith.constant 0 : index
    %27 = vector.load %arg14[%c0_29, %c0_30] : memref<8x128xf32, #tpu.memory_space<vmem>>, vector<8x128xf32>
    %c0_i32_31 = arith.constant 0 : i32
    %28 = arith.index_cast %c0_i32_31 : i32 to index
    %c0_32 = arith.constant 0 : index
    %c0_33 = arith.constant 0 : index
    %29 = vector.load %arg15[%28, %c0_32, %c0_33] : memref<8x8x512xf32, #tpu.memory_space<vmem>>, vector<1x8x512xf32>
    %30 = vector.shape_cast %29 : vector<1x8x512xf32> to vector<8x512xf32>
    %cst_34 = arith.constant dense<0.000000e+00> : vector<8x512xf32>
    %31 = tpu.matmul %24, %20, %cst_34 {dimension_numbers = #tpu.dot_dimension_numbers<[1], [0], [0], [1], [0, 0, 1, 1], [], []>} : vector<8x128xf32>, vector<128x512xf32>, vector<8x512xf32> -> vector<8x512xf32>
    %32 = arith.addf %30, %31 : vector<8x512xf32>
    %33 = vector.extract_strided_slice %32 {offsets = [0, 0], sizes = [8, 384], strides = [1, 1]} : vector<8x512xf32> to vector<8x384xf32>
    %34 = arith.negf %33 : vector<8x384xf32>
    %35 = math.exp %34 : vector<8x384xf32>
    %cst_35 = arith.constant 1.000000e+00 : f32
    %36 = vector.broadcast %cst_35 : f32 to vector<8x384xf32>
    %37 = arith.addf %36, %35 : vector<8x384xf32>
    %38 = arith.divf %36, %37 : vector<8x384xf32>
    %39 = vector.extract_strided_slice %32 {offsets = [0, 384], sizes = [8, 128], strides = [1, 1]} : vector<8x512xf32> to vector<8x128xf32>
    %40 = math.tanh %39 : vector<8x128xf32>
    %41 = vector.extract_strided_slice %38 {offsets = [0, 128], sizes = [8, 128], strides = [1, 1]} : vector<8x384xf32> to vector<8x128xf32>
    %42 = arith.mulf %41, %26 : vector<8x128xf32>
    %43 = vector.extract_strided_slice %38 {offsets = [0, 0], sizes = [8, 128], strides = [1, 1]} : vector<8x384xf32> to vector<8x128xf32>
    %44 = arith.mulf %43, %40 : vector<8x128xf32>
    %45 = arith.addf %42, %44 : vector<8x128xf32>
    %46 = vector.extract_strided_slice %38 {offsets = [0, 256], sizes = [8, 128], strides = [1, 1]} : vector<8x384xf32> to vector<8x128xf32>
    %47 = math.tanh %45 : vector<8x128xf32>
    %48 = arith.mulf %46, %47 : vector<8x128xf32>
    %cst_36 = arith.constant dense<0.000000e+00> : vector<8x512xf32>
    %49 = tpu.matmul %48, %22, %cst_36 {dimension_numbers = #tpu.dot_dimension_numbers<[1], [0], [0], [1], [0, 0, 1, 1], [], []>} : vector<8x128xf32>, vector<128x512xf32>, vector<8x512xf32> -> vector<8x512xf32>
    %cst_37 = arith.constant dense<0.000000e+00> : vector<8x512xf32>
    %50 = tpu.matmul %25, %21, %cst_37 {dimension_numbers = #tpu.dot_dimension_numbers<[1], [0], [0], [1], [0, 0, 1, 1], [], []>} : vector<8x128xf32>, vector<128x512xf32>, vector<8x512xf32> -> vector<8x512xf32>
    %51 = arith.addf %49, %50 : vector<8x512xf32>
    %52 = vector.broadcast %23 : vector<1x512xf32> to vector<8x512xf32>
    %53 = arith.addf %51, %52 : vector<8x512xf32>
    %54 = vector.extract_strided_slice %53 {offsets = [0, 0], sizes = [8, 384], strides = [1, 1]} : vector<8x512xf32> to vector<8x384xf32>
    %55 = arith.negf %54 : vector<8x384xf32>
    %56 = math.exp %55 : vector<8x384xf32>
    %cst_38 = arith.constant 1.000000e+00 : f32
    %57 = vector.broadcast %cst_38 : f32 to vector<8x384xf32>
    %58 = arith.addf %57, %56 : vector<8x384xf32>
    %59 = arith.divf %57, %58 : vector<8x384xf32>
    %60 = vector.extract_strided_slice %53 {offsets = [0, 384], sizes = [8, 128], strides = [1, 1]} : vector<8x512xf32> to vector<8x128xf32>
    %61 = math.tanh %60 : vector<8x128xf32>
    %62 = vector.extract_strided_slice %59 {offsets = [0, 128], sizes = [8, 128], strides = [1, 1]} : vector<8x384xf32> to vector<8x128xf32>
    %63 = arith.mulf %62, %27 : vector<8x128xf32>
    %64 = vector.extract_strided_slice %59 {offsets = [0, 0], sizes = [8, 128], strides = [1, 1]} : vector<8x384xf32> to vector<8x128xf32>
    %65 = arith.mulf %64, %61 : vector<8x128xf32>
    %66 = arith.addf %63, %65 : vector<8x128xf32>
    %67 = vector.extract_strided_slice %59 {offsets = [0, 256], sizes = [8, 128], strides = [1, 1]} : vector<8x384xf32> to vector<8x128xf32>
    %68 = math.tanh %66 : vector<8x128xf32>
    %69 = arith.mulf %67, %68 : vector<8x128xf32>
    %70 = arith.index_cast %c0_i32_31 : i32 to index
    %c0_39 = arith.constant 0 : index
    %c0_40 = arith.constant 0 : index
    %71 = vector.load %arg16[%70, %c0_39, %c0_40] : memref<8x8x128xf32, #tpu.memory_space<vmem>>, vector<1x8x128xf32>
    %72 = vector.shape_cast %71 : vector<1x8x128xf32> to vector<8x128xf32>
    %73 = vector.shape_cast %69 : vector<8x128xf32> to vector<1x8x128xf32>
    tpu.vector_store %arg16[%70, %c0_39, %c0_40], %73 {strides = array<i32>} : memref<8x8x128xf32, #tpu.memory_space<vmem>>, vector<1x8x128xf32>,
    %c1_i32 = arith.constant 1 : i32
    %74 = arith.index_cast %c1_i32 : i32 to index
    %c0_41 = arith.constant 0 : index
    %c0_42 = arith.constant 0 : index
    %75 = vector.load %arg15[%74, %c0_41, %c0_42] : memref<8x8x512xf32, #tpu.memory_space<vmem>>, vector<1x8x512xf32>
    %76 = vector.shape_cast %75 : vector<1x8x512xf32> to vector<8x512xf32>
    %cst_43 = arith.constant dense<0.000000e+00> : vector<8x512xf32>
    %77 = tpu.matmul %48, %20, %cst_43 {dimension_numbers = #tpu.dot_dimension_numbers<[1], [0], [0], [1], [0, 0, 1, 1], [], []>} : vector<8x128xf32>, vector<128x512xf32>, vector<8x512xf32> -> vector<8x512xf32>
    %78 = arith.addf %76, %77 : vector<8x512xf32>
    %79 = vector.extract_strided_slice %78 {offsets = [0, 0], sizes = [8, 384], strides = [1, 1]} : vector<8x512xf32> to vector<8x384xf32>
    %80 = arith.negf %79 : vector<8x384xf32>
    %81 = math.exp %80 : vector<8x384xf32>
    %cst_44 = arith.constant 1.000000e+00 : f32
    %82 = vector.broadcast %cst_44 : f32 to vector<8x384xf32>
    %83 = arith.addf %82, %81 : vector<8x384xf32>
    %84 = arith.divf %82, %83 : vector<8x384xf32>
    %85 = vector.extract_strided_slice %78 {offsets = [0, 384], sizes = [8, 128], strides = [1, 1]} : vector<8x512xf32> to vector<8x128xf32>
    %86 = math.tanh %85 : vector<8x128xf32>
    %87 = vector.extract_strided_slice %84 {offsets = [0, 128], sizes = [8, 128], strides = [1, 1]} : vector<8x384xf32> to vector<8x128xf32>
    %88 = arith.mulf %87, %45 : vector<8x128xf32>
    %89 = vector.extract_strided_slice %84 {offsets = [0, 0], sizes = [8, 128], strides = [1, 1]} : vector<8x384xf32> to vector<8x128xf32>
    %90 = arith.mulf %89, %86 : vector<8x128xf32>
    %91 = arith.addf %88, %90 : vector<8x128xf32>
    %92 = vector.extract_strided_slice %84 {offsets = [0, 256], sizes = [8, 128], strides = [1, 1]} : vector<8x384xf32> to vector<8x128xf32>
    %93 = math.tanh %91 : vector<8x128xf32>
    %94 = arith.mulf %92, %93 : vector<8x128xf32>
    %cst_45 = arith.constant dense<0.000000e+00> : vector<8x512xf32>
    %95 = tpu.matmul %94, %22, %cst_45 {dimension_numbers = #tpu.dot_dimension_numbers<[1], [0], [0], [1], [0, 0, 1, 1], [], []>} : vector<8x128xf32>, vector<128x512xf32>, vector<8x512xf32> -> vector<8x512xf32>
    %cst_46 = arith.constant dense<0.000000e+00> : vector<8x512xf32>
    %96 = tpu.matmul %69, %21, %cst_46 {dimension_numbers = #tpu.dot_dimension_numbers<[1], [0], [0], [1], [0, 0, 1, 1], [], []>} : vector<8x128xf32>, vector<128x512xf32>, vector<8x512xf32> -> vector<8x512xf32>
    %97 = arith.addf %95, %96 : vector<8x512xf32>
    %98 = vector.broadcast %23 : vector<1x512xf32> to vector<8x512xf32>
    %99 = arith.addf %97, %98 : vector<8x512xf32>
    %100 = vector.extract_strided_slice %99 {offsets = [0, 0], sizes = [8, 384], strides = [1, 1]} : vector<8x512xf32> to vector<8x384xf32>
    %101 = arith.negf %100 : vector<8x384xf32>
    %102 = math.exp %101 : vector<8x384xf32>
    %cst_47 = arith.constant 1.000000e+00 : f32
    %103 = vector.broadcast %cst_47 : f32 to vector<8x384xf32>
    %104 = arith.addf %103, %102 : vector<8x384xf32>
    %105 = arith.divf %103, %104 : vector<8x384xf32>
    %106 = vector.extract_strided_slice %99 {offsets = [0, 384], sizes = [8, 128], strides = [1, 1]} : vector<8x512xf32> to vector<8x128xf32>
    %107 = math.tanh %106 : vector<8x128xf32>
    %108 = vector.extract_strided_slice %105 {offsets = [0, 128], sizes = [8, 128], strides = [1, 1]} : vector<8x384xf32> to vector<8x128xf32>
    %109 = arith.mulf %108, %66 : vector<8x128xf32>
    %110 = vector.extract_strided_slice %105 {offsets = [0, 0], sizes = [8, 128], strides = [1, 1]} : vector<8x384xf32> to vector<8x128xf32>
    %111 = arith.mulf %110, %107 : vector<8x128xf32>
    %112 = arith.addf %109, %111 : vector<8x128xf32>
    %113 = vector.extract_strided_slice %105 {offsets = [0, 256], sizes = [8, 128], strides = [1, 1]} : vector<8x384xf32> to vector<8x128xf32>
    %114 = math.tanh %112 : vector<8x128xf32>
    %115 = arith.mulf %113, %114 : vector<8x128xf32>
    %116 = arith.index_cast %c1_i32 : i32 to index
    %c0_48 = arith.constant 0 : index
    %c0_49 = arith.constant 0 : index
    %117 = vector.load %arg16[%116, %c0_48, %c0_49] : memref<8x8x128xf32, #tpu.memory_space<vmem>>, vector<1x8x128xf32>
    %118 = vector.shape_cast %117 : vector<1x8x128xf32> to vector<8x128xf32>
    %119 = vector.shape_cast %115 : vector<8x128xf32> to vector<1x8x128xf32>
    tpu.vector_store %arg16[%116, %c0_48, %c0_49], %119 {strides = array<i32>} : memref<8x8x128xf32, #tpu.memory_space<vmem>>, vector<1x8x128xf32>,
    %c2_i32 = arith.constant 2 : i32
    %120 = arith.index_cast %c2_i32 : i32 to index
    %c0_50 = arith.constant 0 : index
    %c0_51 = arith.constant 0 : index
    %121 = vector.load %arg15[%120, %c0_50, %c0_51] : memref<8x8x512xf32, #tpu.memory_space<vmem>>, vector<1x8x512xf32>
    %122 = vector.shape_cast %121 : vector<1x8x512xf32> to vector<8x512xf32>
    %cst_52 = arith.constant dense<0.000000e+00> : vector<8x512xf32>
    %123 = tpu.matmul %94, %20, %cst_52 {dimension_numbers = #tpu.dot_dimension_numbers<[1], [0], [0], [1], [0, 0, 1, 1], [], []>} : vector<8x128xf32>, vector<128x512xf32>, vector<8x512xf32> -> vector<8x512xf32>
    %124 = arith.addf %122, %123 : vector<8x512xf32>
    %125 = vector.extract_strided_slice %124 {offsets = [0, 0], sizes = [8, 384], strides = [1, 1]} : vector<8x512xf32> to vector<8x384xf32>
    %126 = arith.negf %125 : vector<8x384xf32>
    %127 = math.exp %126 : vector<8x384xf32>
    %cst_53 = arith.constant 1.000000e+00 : f32
    %128 = vector.broadcast %cst_53 : f32 to vector<8x384xf32>
    %129 = arith.addf %128, %127 : vector<8x384xf32>
    %130 = arith.divf %128, %129 : vector<8x384xf32>
    %131 = vector.extract_strided_slice %124 {offsets = [0, 384], sizes = [8, 128], strides = [1, 1]} : vector<8x512xf32> to vector<8x128xf32>
    %132 = math.tanh %131 : vector<8x128xf32>
    %133 = vector.extract_strided_slice %130 {offsets = [0, 128], sizes = [8, 128], strides = [1, 1]} : vector<8x384xf32> to vector<8x128xf32>
    %134 = arith.mulf %133, %91 : vector<8x128xf32>
    %135 = vector.extract_strided_slice %130 {offsets = [0, 0], sizes = [8, 128], strides = [1, 1]} : vector<8x384xf32> to vector<8x128xf32>
    %136 = arith.mulf %135, %132 : vector<8x128xf32>
    %137 = arith.addf %134, %136 : vector<8x128xf32>
    %138 = vector.extract_strided_slice %130 {offsets = [0, 256], sizes = [8, 128], strides = [1, 1]} : vector<8x384xf32> to vector<8x128xf32>
    %139 = math.tanh %137 : vector<8x128xf32>
    %140 = arith.mulf %138, %139 : vector<8x128xf32>
    %cst_54 = arith.constant dense<0.000000e+00> : vector<8x512xf32>
    %141 = tpu.matmul %140, %22, %cst_54 {dimension_numbers = #tpu.dot_dimension_numbers<[1], [0], [0], [1], [0, 0, 1, 1], [], []>} : vector<8x128xf32>, vector<128x512xf32>, vector<8x512xf32> -> vector<8x512xf32>
    %cst_55 = arith.constant dense<0.000000e+00> : vector<8x512xf32>
    %142 = tpu.matmul %115, %21, %cst_55 {dimension_numbers = #tpu.dot_dimension_numbers<[1], [0], [0], [1], [0, 0, 1, 1], [], []>} : vector<8x128xf32>, vector<128x512xf32>, vector<8x512xf32> -> vector<8x512xf32>
    %143 = arith.addf %141, %142 : vector<8x512xf32>
    %144 = vector.broadcast %23 : vector<1x512xf32> to vector<8x512xf32>
    %145 = arith.addf %143, %144 : vector<8x512xf32>
    %146 = vector.extract_strided_slice %145 {offsets = [0, 0], sizes = [8, 384], strides = [1, 1]} : vector<8x512xf32> to vector<8x384xf32>
    %147 = arith.negf %146 : vector<8x384xf32>
    %148 = math.exp %147 : vector<8x384xf32>
    %cst_56 = arith.constant 1.000000e+00 : f32
    %149 = vector.broadcast %cst_56 : f32 to vector<8x384xf32>
    %150 = arith.addf %149, %148 : vector<8x384xf32>
    %151 = arith.divf %149, %150 : vector<8x384xf32>
    %152 = vector.extract_strided_slice %145 {offsets = [0, 384], sizes = [8, 128], strides = [1, 1]} : vector<8x512xf32> to vector<8x128xf32>
    %153 = math.tanh %152 : vector<8x128xf32>
    %154 = vector.extract_strided_slice %151 {offsets = [0, 128], sizes = [8, 128], strides = [1, 1]} : vector<8x384xf32> to vector<8x128xf32>
    %155 = arith.mulf %154, %112 : vector<8x128xf32>
    %156 = vector.extract_strided_slice %151 {offsets = [0, 0], sizes = [8, 128], strides = [1, 1]} : vector<8x384xf32> to vector<8x128xf32>
    %157 = arith.mulf %156, %153 : vector<8x128xf32>
    %158 = arith.addf %155, %157 : vector<8x128xf32>
    %159 = vector.extract_strided_slice %151 {offsets = [0, 256], sizes = [8, 128], strides = [1, 1]} : vector<8x384xf32> to vector<8x128xf32>
    %160 = math.tanh %158 : vector<8x128xf32>
    %161 = arith.mulf %159, %160 : vector<8x128xf32>
    %162 = arith.index_cast %c2_i32 : i32 to index
    %c0_57 = arith.constant 0 : index
    %c0_58 = arith.constant 0 : index
    %163 = vector.load %arg16[%162, %c0_57, %c0_58] : memref<8x8x128xf32, #tpu.memory_space<vmem>>, vector<1x8x128xf32>
    %164 = vector.shape_cast %163 : vector<1x8x128xf32> to vector<8x128xf32>
    %165 = vector.shape_cast %161 : vector<8x128xf32> to vector<1x8x128xf32>
    tpu.vector_store %arg16[%162, %c0_57, %c0_58], %165 {strides = array<i32>} : memref<8x8x128xf32, #tpu.memory_space<vmem>>, vector<1x8x128xf32>,
    %c3_i32 = arith.constant 3 : i32
    %166 = arith.index_cast %c3_i32 : i32 to index
    %c0_59 = arith.constant 0 : index
    %c0_60 = arith.constant 0 : index
    %167 = vector.load %arg15[%166, %c0_59, %c0_60] : memref<8x8x512xf32, #tpu.memory_space<vmem>>, vector<1x8x512xf32>
    %168 = vector.shape_cast %167 : vector<1x8x512xf32> to vector<8x512xf32>
    %cst_61 = arith.constant dense<0.000000e+00> : vector<8x512xf32>
    %169 = tpu.matmul %140, %20, %cst_61 {dimension_numbers = #tpu.dot_dimension_numbers<[1], [0], [0], [1], [0, 0, 1, 1], [], []>} : vector<8x128xf32>, vector<128x512xf32>, vector<8x512xf32> -> vector<8x512xf32>
    %170 = arith.addf %168, %169 : vector<8x512xf32>
    %171 = vector.extract_strided_slice %170 {offsets = [0, 0], sizes = [8, 384], strides = [1, 1]} : vector<8x512xf32> to vector<8x384xf32>
    %172 = arith.negf %171 : vector<8x384xf32>
    %173 = math.exp %172 : vector<8x384xf32>
    %cst_62 = arith.constant 1.000000e+00 : f32
    %174 = vector.broadcast %cst_62 : f32 to vector<8x384xf32>
    %175 = arith.addf %174, %173 : vector<8x384xf32>
    %176 = arith.divf %174, %175 : vector<8x384xf32>
    %177 = vector.extract_strided_slice %170 {offsets = [0, 384], sizes = [8, 128], strides = [1, 1]} : vector<8x512xf32> to vector<8x128xf32>
    %178 = math.tanh %177 : vector<8x128xf32>
    %179 = vector.extract_strided_slice %176 {offsets = [0, 128], sizes = [8, 128], strides = [1, 1]} : vector<8x384xf32> to vector<8x128xf32>
    %180 = arith.mulf %179, %137 : vector<8x128xf32>
    %181 = vector.extract_strided_slice %176 {offsets = [0, 0], sizes = [8, 128], strides = [1, 1]} : vector<8x384xf32> to vector<8x128xf32>
    %182 = arith.mulf %181, %178 : vector<8x128xf32>
    %183 = arith.addf %180, %182 : vector<8x128xf32>
    %184 = vector.extract_strided_slice %176 {offsets = [0, 256], sizes = [8, 128], strides = [1, 1]} : vector<8x384xf32> to vector<8x128xf32>
    %185 = math.tanh %183 : vector<8x128xf32>
    %186 = arith.mulf %184, %185 : vector<8x128xf32>
    %cst_63 = arith.constant dense<0.000000e+00> : vector<8x512xf32>
    %187 = tpu.matmul %186, %22, %cst_63 {dimension_numbers = #tpu.dot_dimension_numbers<[1], [0], [0], [1], [0, 0, 1, 1], [], []>} : vector<8x128xf32>, vector<128x512xf32>, vector<8x512xf32> -> vector<8x512xf32>
    %cst_64 = arith.constant dense<0.000000e+00> : vector<8x512xf32>
    %188 = tpu.matmul %161, %21, %cst_64 {dimension_numbers = #tpu.dot_dimension_numbers<[1], [0], [0], [1], [0, 0, 1, 1], [], []>} : vector<8x128xf32>, vector<128x512xf32>, vector<8x512xf32> -> vector<8x512xf32>
    %189 = arith.addf %187, %188 : vector<8x512xf32>
    %190 = vector.broadcast %23 : vector<1x512xf32> to vector<8x512xf32>
    %191 = arith.addf %189, %190 : vector<8x512xf32>
    %192 = vector.extract_strided_slice %191 {offsets = [0, 0], sizes = [8, 384], strides = [1, 1]} : vector<8x512xf32> to vector<8x384xf32>
    %193 = arith.negf %192 : vector<8x384xf32>
    %194 = math.exp %193 : vector<8x384xf32>
    %cst_65 = arith.constant 1.000000e+00 : f32
    %195 = vector.broadcast %cst_65 : f32 to vector<8x384xf32>
    %196 = arith.addf %195, %194 : vector<8x384xf32>
    %197 = arith.divf %195, %196 : vector<8x384xf32>
    %198 = vector.extract_strided_slice %191 {offsets = [0, 384], sizes = [8, 128], strides = [1, 1]} : vector<8x512xf32> to vector<8x128xf32>
    %199 = math.tanh %198 : vector<8x128xf32>
    %200 = vector.extract_strided_slice %197 {offsets = [0, 128], sizes = [8, 128], strides = [1, 1]} : vector<8x384xf32> to vector<8x128xf32>
    %201 = arith.mulf %200, %158 : vector<8x128xf32>
    %202 = vector.extract_strided_slice %197 {offsets = [0, 0], sizes = [8, 128], strides = [1, 1]} : vector<8x384xf32> to vector<8x128xf32>
    %203 = arith.mulf %202, %199 : vector<8x128xf32>
    %204 = arith.addf %201, %203 : vector<8x128xf32>
    %205 = vector.extract_strided_slice %197 {offsets = [0, 256], sizes = [8, 128], strides = [1, 1]} : vector<8x384xf32> to vector<8x128xf32>
    %206 = math.tanh %204 : vector<8x128xf32>
    %207 = arith.mulf %205, %206 : vector<8x128xf32>
    %208 = arith.index_cast %c3_i32 : i32 to index
    %c0_66 = arith.constant 0 : index
    %c0_67 = arith.constant 0 : index
    %209 = vector.load %arg16[%208, %c0_66, %c0_67] : memref<8x8x128xf32, #tpu.memory_space<vmem>>, vector<1x8x128xf32>
    %210 = vector.shape_cast %209 : vector<1x8x128xf32> to vector<8x128xf32>
    %211 = vector.shape_cast %207 : vector<8x128xf32> to vector<1x8x128xf32>
    tpu.vector_store %arg16[%208, %c0_66, %c0_67], %211 {strides = array<i32>} : memref<8x8x128xf32, #tpu.memory_space<vmem>>, vector<1x8x128xf32>,
    %c4_i32 = arith.constant 4 : i32
    %212 = arith.index_cast %c4_i32 : i32 to index
    %c0_68 = arith.constant 0 : index
    %c0_69 = arith.constant 0 : index
    %213 = vector.load %arg15[%212, %c0_68, %c0_69] : memref<8x8x512xf32, #tpu.memory_space<vmem>>, vector<1x8x512xf32>
    %214 = vector.shape_cast %213 : vector<1x8x512xf32> to vector<8x512xf32>
    %cst_70 = arith.constant dense<0.000000e+00> : vector<8x512xf32>
    %215 = tpu.matmul %186, %20, %cst_70 {dimension_numbers = #tpu.dot_dimension_numbers<[1], [0], [0], [1], [0, 0, 1, 1], [], []>} : vector<8x128xf32>, vector<128x512xf32>, vector<8x512xf32> -> vector<8x512xf32>
    %216 = arith.addf %214, %215 : vector<8x512xf32>
    %217 = vector.extract_strided_slice %216 {offsets = [0, 0], sizes = [8, 384], strides = [1, 1]} : vector<8x512xf32> to vector<8x384xf32>
    %218 = arith.negf %217 : vector<8x384xf32>
    %219 = math.exp %218 : vector<8x384xf32>
    %cst_71 = arith.constant 1.000000e+00 : f32
    %220 = vector.broadcast %cst_71 : f32 to vector<8x384xf32>
    %221 = arith.addf %220, %219 : vector<8x384xf32>
    %222 = arith.divf %220, %221 : vector<8x384xf32>
    %223 = vector.extract_strided_slice %216 {offsets = [0, 384], sizes = [8, 128], strides = [1, 1]} : vector<8x512xf32> to vector<8x128xf32>
    %224 = math.tanh %223 : vector<8x128xf32>
    %225 = vector.extract_strided_slice %222 {offsets = [0, 128], sizes = [8, 128], strides = [1, 1]} : vector<8x384xf32> to vector<8x128xf32>
    %226 = arith.mulf %225, %183 : vector<8x128xf32>
    %227 = vector.extract_strided_slice %222 {offsets = [0, 0], sizes = [8, 128], strides = [1, 1]} : vector<8x384xf32> to vector<8x128xf32>
    %228 = arith.mulf %227, %224 : vector<8x128xf32>
    %229 = arith.addf %226, %228 : vector<8x128xf32>
    %230 = vector.extract_strided_slice %222 {offsets = [0, 256], sizes = [8, 128], strides = [1, 1]} : vector<8x384xf32> to vector<8x128xf32>
    %231 = math.tanh %229 : vector<8x128xf32>
    %232 = arith.mulf %230, %231 : vector<8x128xf32>
    %cst_72 = arith.constant dense<0.000000e+00> : vector<8x512xf32>
    %233 = tpu.matmul %232, %22, %cst_72 {dimension_numbers = #tpu.dot_dimension_numbers<[1], [0], [0], [1], [0, 0, 1, 1], [], []>} : vector<8x128xf32>, vector<128x512xf32>, vector<8x512xf32> -> vector<8x512xf32>
    %cst_73 = arith.constant dense<0.000000e+00> : vector<8x512xf32>
    %234 = tpu.matmul %207, %21, %cst_73 {dimension_numbers = #tpu.dot_dimension_numbers<[1], [0], [0], [1], [0, 0, 1, 1], [], []>} : vector<8x128xf32>, vector<128x512xf32>, vector<8x512xf32> -> vector<8x512xf32>
    %235 = arith.addf %233, %234 : vector<8x512xf32>
    %236 = vector.broadcast %23 : vector<1x512xf32> to vector<8x512xf32>
    %237 = arith.addf %235, %236 : vector<8x512xf32>
    %238 = vector.extract_strided_slice %237 {offsets = [0, 0], sizes = [8, 384], strides = [1, 1]} : vector<8x512xf32> to vector<8x384xf32>
    %239 = arith.negf %238 : vector<8x384xf32>
    %240 = math.exp %239 : vector<8x384xf32>
    %cst_74 = arith.constant 1.000000e+00 : f32
    %241 = vector.broadcast %cst_74 : f32 to vector<8x384xf32>
    %242 = arith.addf %241, %240 : vector<8x384xf32>
    %243 = arith.divf %241, %242 : vector<8x384xf32>
    %244 = vector.extract_strided_slice %237 {offsets = [0, 384], sizes = [8, 128], strides = [1, 1]} : vector<8x512xf32> to vector<8x128xf32>
    %245 = math.tanh %244 : vector<8x128xf32>
    %246 = vector.extract_strided_slice %243 {offsets = [0, 128], sizes = [8, 128], strides = [1, 1]} : vector<8x384xf32> to vector<8x128xf32>
    %247 = arith.mulf %246, %204 : vector<8x128xf32>
    %248 = vector.extract_strided_slice %243 {offsets = [0, 0], sizes = [8, 128], strides = [1, 1]} : vector<8x384xf32> to vector<8x128xf32>
    %249 = arith.mulf %248, %245 : vector<8x128xf32>
    %250 = arith.addf %247, %249 : vector<8x128xf32>
    %251 = vector.extract_strided_slice %243 {offsets = [0, 256], sizes = [8, 128], strides = [1, 1]} : vector<8x384xf32> to vector<8x128xf32>
    %252 = math.tanh %250 : vector<8x128xf32>
    %253 = arith.mulf %251, %252 : vector<8x128xf32>
    %254 = arith.index_cast %c4_i32 : i32 to index
    %c0_75 = arith.constant 0 : index
    %c0_76 = arith.constant 0 : index
    %255 = vector.load %arg16[%254, %c0_75, %c0_76] : memref<8x8x128xf32, #tpu.memory_space<vmem>>, vector<1x8x128xf32>
    %256 = vector.shape_cast %255 : vector<1x8x128xf32> to vector<8x128xf32>
    %257 = vector.shape_cast %253 : vector<8x128xf32> to vector<1x8x128xf32>
    tpu.vector_store %arg16[%254, %c0_75, %c0_76], %257 {strides = array<i32>} : memref<8x8x128xf32, #tpu.memory_space<vmem>>, vector<1x8x128xf32>,
    %c5_i32 = arith.constant 5 : i32
    %258 = arith.index_cast %c5_i32 : i32 to index
    %c0_77 = arith.constant 0 : index
    %c0_78 = arith.constant 0 : index
    %259 = vector.load %arg15[%258, %c0_77, %c0_78] : memref<8x8x512xf32, #tpu.memory_space<vmem>>, vector<1x8x512xf32>
    %260 = vector.shape_cast %259 : vector<1x8x512xf32> to vector<8x512xf32>
    %cst_79 = arith.constant dense<0.000000e+00> : vector<8x512xf32>
    %261 = tpu.matmul %232, %20, %cst_79 {dimension_numbers = #tpu.dot_dimension_numbers<[1], [0], [0], [1], [0, 0, 1, 1], [], []>} : vector<8x128xf32>, vector<128x512xf32>, vector<8x512xf32> -> vector<8x512xf32>
    %262 = arith.addf %260, %261 : vector<8x512xf32>
    %263 = vector.extract_strided_slice %262 {offsets = [0, 0], sizes = [8, 384], strides = [1, 1]} : vector<8x512xf32> to vector<8x384xf32>
    %264 = arith.negf %263 : vector<8x384xf32>
    %265 = math.exp %264 : vector<8x384xf32>
    %cst_80 = arith.constant 1.000000e+00 : f32
    %266 = vector.broadcast %cst_80 : f32 to vector<8x384xf32>
    %267 = arith.addf %266, %265 : vector<8x384xf32>
    %268 = arith.divf %266, %267 : vector<8x384xf32>
    %269 = vector.extract_strided_slice %262 {offsets = [0, 384], sizes = [8, 128], strides = [1, 1]} : vector<8x512xf32> to vector<8x128xf32>
    %270 = math.tanh %269 : vector<8x128xf32>
    %271 = vector.extract_strided_slice %268 {offsets = [0, 128], sizes = [8, 128], strides = [1, 1]} : vector<8x384xf32> to vector<8x128xf32>
    %272 = arith.mulf %271, %229 : vector<8x128xf32>
    %273 = vector.extract_strided_slice %268 {offsets = [0, 0], sizes = [8, 128], strides = [1, 1]} : vector<8x384xf32> to vector<8x128xf32>
    %274 = arith.mulf %273, %270 : vector<8x128xf32>
    %275 = arith.addf %272, %274 : vector<8x128xf32>
    %276 = vector.extract_strided_slice %268 {offsets = [0, 256], sizes = [8, 128], strides = [1, 1]} : vector<8x384xf32> to vector<8x128xf32>
    %277 = math.tanh %275 : vector<8x128xf32>
    %278 = arith.mulf %276, %277 : vector<8x128xf32>
    %cst_81 = arith.constant dense<0.000000e+00> : vector<8x512xf32>
    %279 = tpu.matmul %278, %22, %cst_81 {dimension_numbers = #tpu.dot_dimension_numbers<[1], [0], [0], [1], [0, 0, 1, 1], [], []>} : vector<8x128xf32>, vector<128x512xf32>, vector<8x512xf32> -> vector<8x512xf32>
    %cst_82 = arith.constant dense<0.000000e+00> : vector<8x512xf32>
    %280 = tpu.matmul %253, %21, %cst_82 {dimension_numbers = #tpu.dot_dimension_numbers<[1], [0], [0], [1], [0, 0, 1, 1], [], []>} : vector<8x128xf32>, vector<128x512xf32>, vector<8x512xf32> -> vector<8x512xf32>
    %281 = arith.addf %279, %280 : vector<8x512xf32>
    %282 = vector.broadcast %23 : vector<1x512xf32> to vector<8x512xf32>
    %283 = arith.addf %281, %282 : vector<8x512xf32>
    %284 = vector.extract_strided_slice %283 {offsets = [0, 0], sizes = [8, 384], strides = [1, 1]} : vector<8x512xf32> to vector<8x384xf32>
    %285 = arith.negf %284 : vector<8x384xf32>
    %286 = math.exp %285 : vector<8x384xf32>
    %cst_83 = arith.constant 1.000000e+00 : f32
    %287 = vector.broadcast %cst_83 : f32 to vector<8x384xf32>
    %288 = arith.addf %287, %286 : vector<8x384xf32>
    %289 = arith.divf %287, %288 : vector<8x384xf32>
    %290 = vector.extract_strided_slice %283 {offsets = [0, 384], sizes = [8, 128], strides = [1, 1]} : vector<8x512xf32> to vector<8x128xf32>
    %291 = math.tanh %290 : vector<8x128xf32>
    %292 = vector.extract_strided_slice %289 {offsets = [0, 128], sizes = [8, 128], strides = [1, 1]} : vector<8x384xf32> to vector<8x128xf32>
    %293 = arith.mulf %292, %250 : vector<8x128xf32>
    %294 = vector.extract_strided_slice %289 {offsets = [0, 0], sizes = [8, 128], strides = [1, 1]} : vector<8x384xf32> to vector<8x128xf32>
    %295 = arith.mulf %294, %291 : vector<8x128xf32>
    %296 = arith.addf %293, %295 : vector<8x128xf32>
    %297 = vector.extract_strided_slice %289 {offsets = [0, 256], sizes = [8, 128], strides = [1, 1]} : vector<8x384xf32> to vector<8x128xf32>
    %298 = math.tanh %296 : vector<8x128xf32>
    %299 = arith.mulf %297, %298 : vector<8x128xf32>
    %300 = arith.index_cast %c5_i32 : i32 to index
    %c0_84 = arith.constant 0 : index
    %c0_85 = arith.constant 0 : index
    %301 = vector.load %arg16[%300, %c0_84, %c0_85] : memref<8x8x128xf32, #tpu.memory_space<vmem>>, vector<1x8x128xf32>
    %302 = vector.shape_cast %301 : vector<1x8x128xf32> to vector<8x128xf32>
    %303 = vector.shape_cast %299 : vector<8x128xf32> to vector<1x8x128xf32>
    tpu.vector_store %arg16[%300, %c0_84, %c0_85], %303 {strides = array<i32>} : memref<8x8x128xf32, #tpu.memory_space<vmem>>, vector<1x8x128xf32>,
    %c6_i32 = arith.constant 6 : i32
    %304 = arith.index_cast %c6_i32 : i32 to index
    %c0_86 = arith.constant 0 : index
    %c0_87 = arith.constant 0 : index
    %305 = vector.load %arg15[%304, %c0_86, %c0_87] : memref<8x8x512xf32, #tpu.memory_space<vmem>>, vector<1x8x512xf32>
    %306 = vector.shape_cast %305 : vector<1x8x512xf32> to vector<8x512xf32>
    %cst_88 = arith.constant dense<0.000000e+00> : vector<8x512xf32>
    %307 = tpu.matmul %278, %20, %cst_88 {dimension_numbers = #tpu.dot_dimension_numbers<[1], [0], [0], [1], [0, 0, 1, 1], [], []>} : vector<8x128xf32>, vector<128x512xf32>, vector<8x512xf32> -> vector<8x512xf32>
    %308 = arith.addf %306, %307 : vector<8x512xf32>
    %309 = vector.extract_strided_slice %308 {offsets = [0, 0], sizes = [8, 384], strides = [1, 1]} : vector<8x512xf32> to vector<8x384xf32>
    %310 = arith.negf %309 : vector<8x384xf32>
    %311 = math.exp %310 : vector<8x384xf32>
    %cst_89 = arith.constant 1.000000e+00 : f32
    %312 = vector.broadcast %cst_89 : f32 to vector<8x384xf32>
    %313 = arith.addf %312, %311 : vector<8x384xf32>
    %314 = arith.divf %312, %313 : vector<8x384xf32>
    %315 = vector.extract_strided_slice %308 {offsets = [0, 384], sizes = [8, 128], strides = [1, 1]} : vector<8x512xf32> to vector<8x128xf32>
    %316 = math.tanh %315 : vector<8x128xf32>
    %317 = vector.extract_strided_slice %314 {offsets = [0, 128], sizes = [8, 128], strides = [1, 1]} : vector<8x384xf32> to vector<8x128xf32>
    %318 = arith.mulf %317, %275 : vector<8x128xf32>
    %319 = vector.extract_strided_slice %314 {offsets = [0, 0], sizes = [8, 128], strides = [1, 1]} : vector<8x384xf32> to vector<8x128xf32>
    %320 = arith.mulf %319, %316 : vector<8x128xf32>
    %321 = arith.addf %318, %320 : vector<8x128xf32>
    %322 = vector.extract_strided_slice %314 {offsets = [0, 256], sizes = [8, 128], strides = [1, 1]} : vector<8x384xf32> to vector<8x128xf32>
    %323 = math.tanh %321 : vector<8x128xf32>
    %324 = arith.mulf %322, %323 : vector<8x128xf32>
    %cst_90 = arith.constant dense<0.000000e+00> : vector<8x512xf32>
    %325 = tpu.matmul %324, %22, %cst_90 {dimension_numbers = #tpu.dot_dimension_numbers<[1], [0], [0], [1], [0, 0, 1, 1], [], []>} : vector<8x128xf32>, vector<128x512xf32>, vector<8x512xf32> -> vector<8x512xf32>
    %cst_91 = arith.constant dense<0.000000e+00> : vector<8x512xf32>
    %326 = tpu.matmul %299, %21, %cst_91 {dimension_numbers = #tpu.dot_dimension_numbers<[1], [0], [0], [1], [0, 0, 1, 1], [], []>} : vector<8x128xf32>, vector<128x512xf32>, vector<8x512xf32> -> vector<8x512xf32>
    %327 = arith.addf %325, %326 : vector<8x512xf32>
    %328 = vector.broadcast %23 : vector<1x512xf32> to vector<8x512xf32>
    %329 = arith.addf %327, %328 : vector<8x512xf32>
    %330 = vector.extract_strided_slice %329 {offsets = [0, 0], sizes = [8, 384], strides = [1, 1]} : vector<8x512xf32> to vector<8x384xf32>
    %331 = arith.negf %330 : vector<8x384xf32>
    %332 = math.exp %331 : vector<8x384xf32>
    %cst_92 = arith.constant 1.000000e+00 : f32
    %333 = vector.broadcast %cst_92 : f32 to vector<8x384xf32>
    %334 = arith.addf %333, %332 : vector<8x384xf32>
    %335 = arith.divf %333, %334 : vector<8x384xf32>
    %336 = vector.extract_strided_slice %329 {offsets = [0, 384], sizes = [8, 128], strides = [1, 1]} : vector<8x512xf32> to vector<8x128xf32>
    %337 = math.tanh %336 : vector<8x128xf32>
    %338 = vector.extract_strided_slice %335 {offsets = [0, 128], sizes = [8, 128], strides = [1, 1]} : vector<8x384xf32> to vector<8x128xf32>
    %339 = arith.mulf %338, %296 : vector<8x128xf32>
    %340 = vector.extract_strided_slice %335 {offsets = [0, 0], sizes = [8, 128], strides = [1, 1]} : vector<8x384xf32> to vector<8x128xf32>
    %341 = arith.mulf %340, %337 : vector<8x128xf32>
    %342 = arith.addf %339, %341 : vector<8x128xf32>
    %343 = vector.extract_strided_slice %335 {offsets = [0, 256], sizes = [8, 128], strides = [1, 1]} : vector<8x384xf32> to vector<8x128xf32>
    %344 = math.tanh %342 : vector<8x128xf32>
    %345 = arith.mulf %343, %344 : vector<8x128xf32>
    %346 = arith.index_cast %c6_i32 : i32 to index
    %c0_93 = arith.constant 0 : index
    %c0_94 = arith.constant 0 : index
    %347 = vector.load %arg16[%346, %c0_93, %c0_94] : memref<8x8x128xf32, #tpu.memory_space<vmem>>, vector<1x8x128xf32>
    %348 = vector.shape_cast %347 : vector<1x8x128xf32> to vector<8x128xf32>
    %349 = vector.shape_cast %345 : vector<8x128xf32> to vector<1x8x128xf32>
    tpu.vector_store %arg16[%346, %c0_93, %c0_94], %349 {strides = array<i32>} : memref<8x8x128xf32, #tpu.memory_space<vmem>>, vector<1x8x128xf32>,
    %c7_i32 = arith.constant 7 : i32
    %350 = arith.index_cast %c7_i32 : i32 to index
    %c0_95 = arith.constant 0 : index
    %c0_96 = arith.constant 0 : index
    %351 = vector.load %arg15[%350, %c0_95, %c0_96] : memref<8x8x512xf32, #tpu.memory_space<vmem>>, vector<1x8x512xf32>
    %352 = vector.shape_cast %351 : vector<1x8x512xf32> to vector<8x512xf32>
    %cst_97 = arith.constant dense<0.000000e+00> : vector<8x512xf32>
    %353 = tpu.matmul %324, %20, %cst_97 {dimension_numbers = #tpu.dot_dimension_numbers<[1], [0], [0], [1], [0, 0, 1, 1], [], []>} : vector<8x128xf32>, vector<128x512xf32>, vector<8x512xf32> -> vector<8x512xf32>
    %354 = arith.addf %352, %353 : vector<8x512xf32>
    %355 = vector.extract_strided_slice %354 {offsets = [0, 0], sizes = [8, 384], strides = [1, 1]} : vector<8x512xf32> to vector<8x384xf32>
    %356 = arith.negf %355 : vector<8x384xf32>
    %357 = math.exp %356 : vector<8x384xf32>
    %cst_98 = arith.constant 1.000000e+00 : f32
    %358 = vector.broadcast %cst_98 : f32 to vector<8x384xf32>
    %359 = arith.addf %358, %357 : vector<8x384xf32>
    %360 = arith.divf %358, %359 : vector<8x384xf32>
    %361 = vector.extract_strided_slice %354 {offsets = [0, 384], sizes = [8, 128], strides = [1, 1]} : vector<8x512xf32> to vector<8x128xf32>
    %362 = math.tanh %361 : vector<8x128xf32>
    %363 = vector.extract_strided_slice %360 {offsets = [0, 128], sizes = [8, 128], strides = [1, 1]} : vector<8x384xf32> to vector<8x128xf32>
    %364 = arith.mulf %363, %321 : vector<8x128xf32>
    %365 = vector.extract_strided_slice %360 {offsets = [0, 0], sizes = [8, 128], strides = [1, 1]} : vector<8x384xf32> to vector<8x128xf32>
    %366 = arith.mulf %365, %362 : vector<8x128xf32>
    %367 = arith.addf %364, %366 : vector<8x128xf32>
    %368 = vector.extract_strided_slice %360 {offsets = [0, 256], sizes = [8, 128], strides = [1, 1]} : vector<8x384xf32> to vector<8x128xf32>
    %369 = math.tanh %367 : vector<8x128xf32>
    %370 = arith.mulf %368, %369 : vector<8x128xf32>
    %cst_99 = arith.constant dense<0.000000e+00> : vector<8x512xf32>
    %371 = tpu.matmul %370, %22, %cst_99 {dimension_numbers = #tpu.dot_dimension_numbers<[1], [0], [0], [1], [0, 0, 1, 1], [], []>} : vector<8x128xf32>, vector<128x512xf32>, vector<8x512xf32> -> vector<8x512xf32>
    %cst_100 = arith.constant dense<0.000000e+00> : vector<8x512xf32>
    %372 = tpu.matmul %345, %21, %cst_100 {dimension_numbers = #tpu.dot_dimension_numbers<[1], [0], [0], [1], [0, 0, 1, 1], [], []>} : vector<8x128xf32>, vector<128x512xf32>, vector<8x512xf32> -> vector<8x512xf32>
    %373 = arith.addf %371, %372 : vector<8x512xf32>
    %374 = vector.broadcast %23 : vector<1x512xf32> to vector<8x512xf32>
    %375 = arith.addf %373, %374 : vector<8x512xf32>
    %376 = vector.extract_strided_slice %375 {offsets = [0, 0], sizes = [8, 384], strides = [1, 1]} : vector<8x512xf32> to vector<8x384xf32>
    %377 = arith.negf %376 : vector<8x384xf32>
    %378 = math.exp %377 : vector<8x384xf32>
    %cst_101 = arith.constant 1.000000e+00 : f32
    %379 = vector.broadcast %cst_101 : f32 to vector<8x384xf32>
    %380 = arith.addf %379, %378 : vector<8x384xf32>
    %381 = arith.divf %379, %380 : vector<8x384xf32>
    %382 = vector.extract_strided_slice %375 {offsets = [0, 384], sizes = [8, 128], strides = [1, 1]} : vector<8x512xf32> to vector<8x128xf32>
    %383 = math.tanh %382 : vector<8x128xf32>
    %384 = vector.extract_strided_slice %381 {offsets = [0, 128], sizes = [8, 128], strides = [1, 1]} : vector<8x384xf32> to vector<8x128xf32>
    %385 = arith.mulf %384, %342 : vector<8x128xf32>
    %386 = vector.extract_strided_slice %381 {offsets = [0, 0], sizes = [8, 128], strides = [1, 1]} : vector<8x384xf32> to vector<8x128xf32>
    %387 = arith.mulf %386, %383 : vector<8x128xf32>
    %388 = arith.addf %385, %387 : vector<8x128xf32>
    %389 = vector.extract_strided_slice %381 {offsets = [0, 256], sizes = [8, 128], strides = [1, 1]} : vector<8x384xf32> to vector<8x128xf32>
    %390 = math.tanh %388 : vector<8x128xf32>
    %391 = arith.mulf %389, %390 : vector<8x128xf32>
    %392 = arith.index_cast %c7_i32 : i32 to index
    %c0_102 = arith.constant 0 : index
    %c0_103 = arith.constant 0 : index
    %393 = vector.load %arg16[%392, %c0_102, %c0_103] : memref<8x8x128xf32, #tpu.memory_space<vmem>>, vector<1x8x128xf32>
    %394 = vector.shape_cast %393 : vector<1x8x128xf32> to vector<8x128xf32>
    %395 = vector.shape_cast %391 : vector<8x128xf32> to vector<1x8x128xf32>
    tpu.vector_store %arg16[%392, %c0_102, %c0_103], %395 {strides = array<i32>} : memref<8x8x128xf32, #tpu.memory_space<vmem>>, vector<1x8x128xf32>,
    %c8_i32 = arith.constant 8 : i32
    %c0_104 = arith.constant 0 : index
    %c0_105 = arith.constant 0 : index
    %396 = vector.load %arg11[%c0_104, %c0_105] : memref<8x128xf32, #tpu.memory_space<vmem>>, vector<8x128xf32>
    tpu.vector_store %arg11[%c0_104, %c0_105], %370 {strides = array<i32>} : memref<8x128xf32, #tpu.memory_space<vmem>>, vector<8x128xf32>,
    %c0_106 = arith.constant 0 : index
    %c0_107 = arith.constant 0 : index
    %397 = vector.load %arg12[%c0_106, %c0_107] : memref<8x128xf32, #tpu.memory_space<vmem>>, vector<8x128xf32>
    tpu.vector_store %arg12[%c0_106, %c0_107], %391 {strides = array<i32>} : memref<8x128xf32, #tpu.memory_space<vmem>>, vector<8x128xf32>,
    %c0_108 = arith.constant 0 : index
    %c0_109 = arith.constant 0 : index
    %398 = vector.load %arg13[%c0_108, %c0_109] : memref<8x128xf32, #tpu.memory_space<vmem>>, vector<8x128xf32>
    tpu.vector_store %arg13[%c0_108, %c0_109], %367 {strides = array<i32>} : memref<8x128xf32, #tpu.memory_space<vmem>>, vector<8x128xf32>,
    %c0_110 = arith.constant 0 : index
    %c0_111 = arith.constant 0 : index
    %399 = vector.load %arg14[%c0_110, %c0_111] : memref<8x128xf32, #tpu.memory_space<vmem>>, vector<8x128xf32>
    tpu.vector_store %arg14[%c0_110, %c0_111], %388 {strides = array<i32>} : memref<8x128xf32, #tpu.memory_space<vmem>>, vector<8x128xf32>,
    %c0_112 = arith.constant 0 : index
    %c0_113 = arith.constant 0 : index
    %c0_114 = arith.constant 0 : index
    %400 = vector.load %arg16[%c0_112, %c0_113, %c0_114] : memref<8x8x128xf32, #tpu.memory_space<vmem>>, vector<8x8x128xf32>
    %401 = vector.shape_cast %400 : vector<8x8x128xf32> to vector<64x128xf32>
    %c0_115 = arith.constant 0 : index
    %c0_116 = arith.constant 0 : index
    %402 = vector.load %arg8[%c0_115, %c0_116] : memref<128x8xf32, #tpu.memory_space<vmem>>, vector<128x8xf32>
    %cst_117 = arith.constant dense<0.000000e+00> : vector<64x8xf32>
    %403 = tpu.matmul %401, %402, %cst_117 {dimension_numbers = #tpu.dot_dimension_numbers<[1], [0], [0], [1], [0, 0, 1, 1], [], []>} : vector<64x128xf32>, vector<128x8xf32>, vector<64x8xf32> -> vector<64x8xf32>
    %c0_118 = arith.constant 0 : index
    %c0_119 = arith.constant 0 : index
    %c0_120 = arith.constant 0 : index
    %404 = vector.load %arg10[%c0_118, %c0_119, %c0_120] : memref<8x8x8xf32, #tpu.memory_space<vmem>>, vector<8x8x8xf32>
    %405 = vector.shape_cast %403 : vector<64x8xf32> to vector<8x8x8xf32>
    %406 = arith.addf %404, %405 : vector<8x8x8xf32>
    %c0_121 = arith.constant 0 : index
    %c0_122 = arith.constant 0 : index
    %c0_123 = arith.constant 0 : index
    %407 = vector.load %arg10[%c0_121, %c0_122, %c0_123] : memref<8x8x8xf32, #tpu.memory_space<vmem>>, vector<8x8x8xf32>
    tpu.vector_store %arg10[%c0_121, %c0_122, %c0_123], %406 {strides = array<i32>} : memref<8x8x8xf32, #tpu.memory_space<vmem>>, vector<8x8x8xf32>,
    return
  }
  func.func @transform_0(%arg0: i32) -> (i32, i32, i32) {
    %c0_i32 = arith.constant 0 : i32
    %c0_i32_0 = arith.constant 0 : i32
    %c0_i32_1 = arith.constant 0 : i32
    return %arg0, %c0_i32, %c0_i32_0 : i32, i32, i32
  }
  func.func @transform_1(%arg0: i32) -> (i32, i32) {
    %c0_i32 = arith.constant 0 : i32
    %c0_i32_0 = arith.constant 0 : i32
    %c0_i32_1 = arith.constant 0 : i32
    return %c0_i32, %c0_i32_0 : i32, i32
  }
  func.func @transform_2(%arg0: i32) -> (i32, i32) {
    %c0_i32 = arith.constant 0 : i32
    %c0_i32_0 = arith.constant 0 : i32
    %c0_i32_1 = arith.constant 0 : i32
    return %c0_i32, %c0_i32_0 : i32, i32
  }
  func.func @transform_3(%arg0: i32) -> (i32, i32) {
    %c0_i32 = arith.constant 0 : i32
    %c0_i32_0 = arith.constant 0 : i32
    %c0_i32_1 = arith.constant 0 : i32
    return %c0_i32, %c0_i32_0 : i32, i32
  }
  func.func @transform_4(%arg0: i32) -> (i32, i32) {
    %c0_i32 = arith.constant 0 : i32
    %c0_i32_0 = arith.constant 0 : i32
    %c0_i32_1 = arith.constant 0 : i32
    return %c0_i32, %c0_i32_0 : i32, i32
  }
  func.func @transform_5(%arg0: i32) -> (i32, i32) {
    %c0_i32 = arith.constant 0 : i32
    %c0_i32_0 = arith.constant 0 : i32
    %c0_i32_1 = arith.constant 0 : i32
    return %c0_i32, %c0_i32_0 : i32, i32
  }
  func.func @transform_6(%arg0: i32) -> (i32, i32) {
    %c0_i32 = arith.constant 0 : i32
    %c0_i32_0 = arith.constant 0 : i32
    %c0_i32_1 = arith.constant 0 : i32
    return %c0_i32, %c0_i32_0 : i32, i32
  }
  func.func @transform_7(%arg0: i32) -> (i32, i32) {
    %c0_i32 = arith.constant 0 : i32
    %c0_i32_0 = arith.constant 0 : i32
    %c0_i32_1 = arith.constant 0 : i32
    return %c0_i32, %c0_i32_0 : i32, i32
  }
  func.func @transform_8(%arg0: i32) -> (i32, i32) {
    %c0_i32 = arith.constant 0 : i32
    %c0_i32_0 = arith.constant 0 : i32
    %c0_i32_1 = arith.constant 0 : i32
    return %c0_i32, %c0_i32_0 : i32, i32
  }
  func.func @transform_9(%arg0: i32) -> (i32, i32, i32) {
    %c0_i32 = arith.constant 0 : i32
    %c0_i32_0 = arith.constant 0 : i32
    %c0_i32_1 = arith.constant 0 : i32
    return %arg0, %c0_i32, %c0_i32_0 : i32, i32, i32
  }
}

</mosaic_0001>

<bundles_post_ra>
// kernel: tpu_custom_call.1
= control target key start
LH: loop header
LB: loop body
LE: loop exit
PB: predicated region body
PF: predicated region fallthrough
CT: control target
= control target key end

     0   :  { %14 = vsyncpa [#allocation9], 0  ;;  %s8999_s0 = inlined_call_operand.vmem [shape: f32[8,8,40], index: 0, kind: input, shape index: {}]   ;;  %s9000_s1 = inlined_call_operand.vmem [shape: f32[8,512], index: 1, kind: input, shape index: {}]   ;;  %s9001_s2 = inlined_call_operand.hbm [shape: f32[40,520], index: 2, kind: input, shape index: {}]   ;;  %s9002_s3 = inlined_call_operand.hbm [shape: f32[128,512], index: 3, kind: input, shape index: {}]   ;;  %s9003_s4 = inlined_call_operand.hbm [shape: f32[128,512], index: 4, kind: input, shape index: {}]   ;;  %s9004_s5 = inlined_call_operand.hbm [shape: f32[128,512], index: 5, kind: input, shape index: {}]   ;;  %s9005_s6 = inlined_call_operand.vmem [shape: f32[1,512], index: 6, kind: input, shape index: {}]   ;;  %s9006_s7 = inlined_call_operand.vmem [shape: f32[128,8], index: 7, kind: input, shape index: {}]   ;;  %s9007_s8 = inlined_call_operand.vmem [shape: f32[1,8], index: 8, kind: input, shape index: {}]   ;;  %s9008_s9 = inlined_call_operand.hbm [shape: f32[8,8,8], index: 9, kind: output, shape index: {}]  }
   0x1   :  { %15 = vsyncpa [#allocation12], 0 }
   0x2   :  { %16 = vsyncpa [#allocation15], 0  ;;  %s39_s11 = sshll.u32 %s9002_s3, 4  ;;  %s40_s11 = int_to_ptr.hbm [resolvable:$true] %s39_s11 }
   0x3   :  { %17 = vsyncpa [#allocation10], 0  ;;  %s4908_s12 = smov [#allocation11]   ;;  %s26_s16 = sshll.u32 %s9001_s2, 4  ;;  %s27_s16 = int_to_ptr.hbm [resolvable:$true] %s26_s16 }
   0x4   :  { %s41_s13 = sshll.u32 %s4908_s12, 4  ;;  %s4909_s17 = smov 512   ;;  %s42_s13 = int_to_ptr.vmem [resolvable:$true] %s41_s13 }
   0x5   :  { %s4910_s18 = smov 32   ;;  %s4911_s19 = smov [#allocation8]  }
   0x6   :  { %47 = dma.hbm_to_vmem [thread:$0]  %s40_s11, 8192, %s42_s13, [#allocation12], %s4909_s17, %s4909_s17, %s4910_s18  }
   0x7   :  { %s28_s20 = sshll.u32 %s4911_s19, 4  ;;  %s4912_s21 = smov 640   ;;  %s29_s20 = int_to_ptr.vmem [resolvable:$true] %s28_s20 }
   0x8   :  { %s4913_s22 = smov 40   ;;  %s52_s24 = sshll.u32 %s9003_s4, 4  ;;  %s53_s24 = int_to_ptr.hbm [resolvable:$true] %s52_s24 }
   0x9   :  { %34 = dma.hbm_to_vmem [thread:$0]  %s27_s16, 3200, %s29_s20, [#allocation9], %s4912_s21, %s4912_s21, %s4913_s22  }
   0xa   :  { %s4914_s25 = smov [#allocation13]   ;;  %s65_s28 = sshll.u32 %s9004_s5, 4  ;;  %s66_s28 = int_to_ptr.hbm [resolvable:$true] %s65_s28 }
   0xb   :  { %s54_s26 = sshll.u32 %s4914_s25, 4  ;;  %s4915_s29 = smov [#allocation14]   ;;  %s55_s26 = int_to_ptr.vmem [resolvable:$true] %s54_s26 }
   0xc   :  { %60 = dma.hbm_to_vmem [thread:$0]  %s53_s24, 8192, %s55_s26, [#allocation12], %s4909_s17, %s4909_s17, %s4910_s18  }
   0xd   :  { %s67_s30 = sshll.u32 %s4915_s29, 4  ;;  %s68_s30 = int_to_ptr.vmem [resolvable:$true] %s67_s30 }
   0xe   :  { %73 = dma.hbm_to_vmem [thread:$0]  %s66_s28, 8192, %s68_s30, [#allocation15], %s4909_s17, %s4909_s17, %s4910_s18  }
   0xf   :  { %4900 = dma.done.wait [#allocation9], 3200  }
  0x10   :  { %4901 = vsyncadd [#allocation9], 4294964096 }
  0x11   :  { %4902 = dma.done.wait [#allocation12], 16384  }
  0x12   :  { %4903 = vsyncadd [#allocation12], 4294950912 }
  0x13   :  { %4904 = dma.done.wait [#allocation15], 8192  }
  0x14   :  { %4905 = vsyncadd [#allocation15], 4294959104  ;;  %v133_v0 = vld [vmem:[#allocation8 + $0xa8] sm:$0xff]  ;;  %v134_v1 = vld [vmem:[#allocation8 + $0xb0] sm:$0xff]  ;;  %vm137_vm0 = vcmask 326656   ;;  %vm447_vm13 = vcmask 64512  }
  0x15   :  { %v128_v2 = vld [vmem:[#allocation8 + $0x80] sm:$0xff]  ;;  %214 = vmatpush.msra.mxu1 %v133_v0  ;;  %255 = vmatpush.msra.mxu2 %v134_v1  ;;  %v129_v3 = vld [vmem:[#allocation8 + $0x88] sm:$0xff]  ;;  %v123_v4 = vld [vmem:[#allocation8 + $0x58] sm:$0xff]  ;;  %s3807_s5 = sshll.u32 %s9008_s9, 4  ;;  %s4918_s10 = smov 128   ;;  %s3808_s5 = int_to_ptr.hbm [resolvable:$true] %s3807_s5 }
  0x16   :  { %3910 = vmatpush.msra.mxu3 %v134_v1  ;;  %v124_v5 = vld [vmem:[#allocation8 + $0x60] sm:$0xff]  ;;  %v118_v6 = vld [vmem:[#allocation8 + $0x30] sm:$0xff]  ;;  %v119_v7 = vld [vmem:[#allocation8 + $0x38] sm:$0xff]  ;;  %v9020_v1 = vmov 0.0   ;;  %s4919_s11 = smov 8  }
  0x17   :  { %215 = vmatpush.msra.mxu1 %v128_v2  ;;  %256 = vmatpush.msra.mxu2 %v129_v3  ;;  %v113_v8 = vld [vmem:[#allocation8 + $0x8] sm:$0xff]  ;;  %v114_v9 = vld [vmem:[#allocation8 + $0x10] sm:$0xff]  ;;  %v4985_v10 = vld [vmem:[%s8999_s0] sm:$0xff] }
  0x18   :  { %3911 = vmatpush.msra.mxu3 %v129_v3  ;;  %v4990_v11 = vld [vmem:[%s8999_s0 + $0x20] sm:$0xff]  ;;  %v135_v12 = vld [vmem:[#allocation8 + $0xb8] sm:$0xff]  ;;  %v517_v13 = vld [vmem:[#allocation11 + $0x1e8] sm:$0xff] }
  0x19   :  { %216 = vmatpush.msra.mxu1 %v123_v4  ;;  %257 = vmatpush.msra.mxu2 %v124_v5  ;;  %v4994_v14 = vld [vmem:[#allocation11 + $0x1e0] sm:$0xff]  ;;  %v5000_v15 = vld [vmem:[#allocation11 + $0x1c8] sm:$0xff]  ;;  %v120_v26 = vld [vmem:[#allocation8 + $0x40] sm:$0xff] }
  0x1a   :  { %3912 = vmatpush.msra.mxu3 %v124_v5  ;;  %v130_v16 = vld [vmem:[#allocation8 + $0x90] sm:$0xff]  ;;  %v5002_v17 = vld [vmem:[#allocation11 + $0x1c0] sm:$0xff]  ;;  %v115_v29 = vld [vmem:[#allocation8 + $0x18] sm:$0xff] }
  0x1b   :  { %217 = vmatpush.msra.mxu1 %v118_v6  ;;  %258 = vmatpush.msra.mxu2 %v119_v7  ;;  %v5004_v18 = vld [vmem:[#allocation11 + $0x1a8] sm:$0xff]  ;;  %v125_v19 = vld [vmem:[#allocation8 + $0x68] sm:$0xff]  ;;  %v5048_v32 = vld [vmem:[#allocation11 + $0x1f0] sm:$0xff] }
  0x1c   :  { %3913 = vmatpush.msra.mxu3 %v119_v7  ;;  %v5008_v20 = vld [vmem:[#allocation11 + $0x1a0] sm:$0xff]  ;;  %v5010_v21 = vld [vmem:[#allocation11 + $0x188] sm:$0xff]  ;;  %v5072_v38 = vld [vmem:[#allocation11 + $0x1d0] sm:$0xff] }
  0x1d   :  { %218 = vmatpush.msra.mxu1 %v113_v8  ;;  %259 = vmatpush.msra.mxu2 %v114_v9  ;;  %v5015_v22 = vld [vmem:[%s8999_s0 + $0x8] sm:$0xff]  ;;  %v5024_v24 = vld [vmem:[#allocation11 + $0x168] sm:$0xff]  ;;  %v5082_v41 = vld [vmem:[#allocation11 + $0x1b0] sm:$0xff] }
  0x1e   :  { %3914 = vmatpush.msra.mxu3 %v114_v9  ;;  %3830 = vmatmul.msk.f32.vlgmr.msra.gmra.mxu1 %vm137_vm0, %v4985_v10  ;;  %v5022_v23 = vld [vmem:[%s8999_s0 + $0x28] sm:$0xff]  ;;  %v5036_v27 = vld [vmem:[#allocation11 + $0x148] sm:$0xff]  ;;  %v5088_v44 = vld [vmem:[#allocation11 + $0x190] sm:$0xff] }
  0x1f   :  { %3838 = vmatmul.msk.f32.vlgmr.msra.gmra.mxu2 %vm137_vm0, %v4985_v10  ;;  %3842 = vmatmul.msk.f32.vlgmr.msra.gmra.mxu3 %vm137_vm0, %v4990_v11  ;;  %v5027_v25 = vld [vmem:[#allocation11 + $0x180] sm:$0xff]  ;;  %v5042_v30 = vld [vmem:[#allocation11 + $0x128] sm:$0xff]  ;;  %v132_v45 = vld [vmem:[#allocation8 + $0xa0] sm:$0xff] }
  0x20   :  { %296 = vmatpush.msrb.mxu3 %v135_v12  ;;  %677 = vmatpush.msrb.mxu2 %v517_v13  ;;  %v5038_v28 = vld [vmem:[#allocation11 + $0x160] sm:$0xff]  ;;  %v5050_v33 = vld [vmem:[#allocation11 + $0x108] sm:$0xff]  ;;  %v5093_v47 = vld [vmem:[%s8999_s0 + $0x18] sm:$0xff] }
  0x21   :  { %657 = vmatpush.msrb.mxu1 %v4994_v14  ;;  %v5044_v31 = vld [vmem:[#allocation11 + $0x140] sm:$0xff]  ;;  %v5055_v34 = vld [vmem:[%s8999_s0 + $0x10] sm:$0xff]  ;;  %173 = vmatpush.msra.mxu0 %v132_v45  ;;  %v5099_v48 = vld [vmem:[%s8999_s0 + $0x38] sm:$0xff] }
  0x22   :  { %678 = vmatpush.msrb.mxu2 %v5000_v15  ;;  %297 = vmatpush.msrb.mxu3 %v130_v16  ;;  %v5061_v35 = vld [vmem:[%s8999_s0 + $0x30] sm:$0xff]  ;;  %v5066_v37 = vld [vmem:[#allocation11 + $0x120] sm:$0xff]  ;;  %v127_v49 = vld [vmem:[#allocation8 + $0x78] sm:$0xff] }
  0x23   :  { %658 = vmatpush.msrb.mxu1 %v5002_v17  ;;  %v5064_v36 = vld [vmem:[#allocation11 + $0xe8] sm:$0xff]  ;;  %v5078_v40 = vld [vmem:[#allocation11 + $0x100] sm:$0xff]  ;;  %174 = vmatpush.msra.mxu0 %v127_v49  ;;  %v5107_v52 = vld [vmem:[#allocation11 + $0x170] sm:$0xff] }
  0x24   :  { %679 = vmatpush.msrb.mxu2 %v5004_v18  ;;  %298 = vmatpush.msrb.mxu3 %v125_v19  ;;  %v481_v39 = vld [vmem:[#allocation11 + $0xc8] sm:$0xff]  ;;  %v5084_v43 = vld [vmem:[#allocation11 + $0xe0] sm:$0xff]  ;;  %v5116_v56 = vld [vmem:[#allocation11 + $0x150] sm:$0xff] }
  0x25   :  { %659 = vmatpush.msrb.mxu1 %v5008_v20  ;;  %v477_v42 = vld [vmem:[#allocation11 + $0xa8] sm:$0xff]  ;;  %v5102_v51 = vld [vmem:[#allocation11 + $0xc0] sm:$0xff]  ;;  %v5122_v60 = vld [vmem:[#allocation11 + $0x130] sm:$0xff] }
  0x26   :  { %680 = vmatpush.msrb.mxu2 %v5010_v21  ;;  %3831 = vmatmul.msk.f32.gmra.mxu1 %vm137_vm0, %v5015_v22  ;;  %v473_v46 = vld [vmem:[#allocation11 + $0x88] sm:$0xff]  ;;  %v5113_v54 = vld [vmem:[#allocation11 + $0xa0] sm:$0xff]  ;;  %v112_v61 = vld [vmem:[#allocation8] sm:$0xff] }
  0x27   :  { %3839 = vmatmul.msk.f32.gmra.mxu2 %vm137_vm0, %v5015_v22  ;;  %3843 = vmatmul.msk.f32.gmra.mxu3 %vm137_vm0, %v5022_v23  ;;  %v469_v50 = vld [vmem:[#allocation11 + $0x68] sm:$0xff]  ;;  %v117_v57 = vld [vmem:[#allocation8 + $0x28] sm:$0xff]  ;;  %v5129_v0 = vld [vmem:[#allocation11 + $0x110] sm:$0xff] }
  0x28   :  { %681 = vmatpush.msrb.mxu2 %v5024_v24  ;;  %660 = vmatpush.msrb.mxu1 %v5027_v25  ;;  %v465_v53 = vld [vmem:[#allocation11 + $0x48] sm:$0xff]  ;;  %v5118_v59 = vld [vmem:[#allocation11 + $0x80] sm:$0xff]  ;;  %v5138_v3 = vld [vmem:[#allocation11 + $0xf0] sm:$0xff] }
  0x29   :  { %299 = vmatpush.msrb.mxu3 %v120_v26  ;;  %v122_v55 = vld [vmem:[#allocation8 + $0x50] sm:$0xff]  ;;  %v5126_v63 = vld [vmem:[#allocation11 + $0x60] sm:$0xff]  ;;  %v5148_v5 = vld [vmem:[#allocation11 + $0xd0] sm:$0xff] }
  0x2a   :  { %682 = vmatpush.msrb.mxu2 %v5036_v27  ;;  %661 = vmatpush.msrb.mxu1 %v5038_v28  ;;  %v461_v58 = vld [vmem:[#allocation11 + $0x28] sm:$0xff]  ;;  %9624 = vst [vmem:[#allocation21_spill] sm:$0xff] %v5126_v63  ;;  %v5136_v2 = vld [vmem:[#allocation11 + $0x40] sm:$0xff]  ;;  %v5154_v7 = vld [vmem:[#allocation11 + $0x1f8] sm:$0xff] }
  0x2b   :  { %300 = vmatpush.msrb.mxu3 %v115_v29  ;;  %175 = vmatpush.msra.mxu0 %v122_v55  ;;  %v457_v62 = vld [vmem:[#allocation11 + $0x8] sm:$0xff]  ;;  %9625 = vst [vmem:[#allocation22_spill] sm:$0xff] %v5136_v2  ;;  %v5142_v4 = vld [vmem:[#allocation11 + $0x20] sm:$0xff]  ;;  %v5161_v8 = vld [vmem:[#allocation11 + $0x1d8] sm:$0xff] }
  0x2c   :  { %683 = vmatpush.msrb.mxu2 %v5042_v30  ;;  %662 = vmatpush.msrb.mxu1 %v5044_v31  ;;  %9626 = vst [vmem:[#allocation23_spill] sm:$0xff] %v5142_v4  ;;  %v5151_v6 = vld [vmem:[#allocation11] sm:$0xff]  ;;  %v5163_v9 = vld [vmem:[#allocation11 + $0xb0] sm:$0xff]  ;;  %v5169_v13 = vld [vmem:[#allocation11 + $0x1b8] sm:$0xff] }
  0x2d   :  { %697 = vmatpush.msra.mxu3 %v5048_v32  ;;  %176 = vmatpush.msra.mxu0 %v117_v57  ;;  %9627 = vst [vmem:[#allocation24_spill] sm:$0xff] %v5151_v6  ;;  %v5165_v12 = vld [vmem:[#allocation11 + $0x90] sm:$0xff]  ;;  %v5175_v16 = vld [vmem:[#allocation11 + $0x198] sm:$0xff] }
  0x2e   :  { %684 = vmatpush.msrb.mxu2 %v5050_v33  ;;  %3832 = vmatmul.msk.f32.gmra.mxu1 %vm137_vm0, %v5055_v34  ;;  %v5178_v19 = vld [vmem:[#allocation11 + $0x178] sm:$0xff]  ;;  %v5187_v29 = vld [vmem:[#allocation11 + $0x70] sm:$0xff] }
  0x2f   :  { %3840 = vmatmul.msk.f32.gmra.mxu2 %vm137_vm0, %v5055_v34  ;;  %3844 = vmatmul.msk.f32.gmra.mxu3 %vm137_vm0, %v5061_v35  ;;  %v5185_v26 = vld [vmem:[#allocation11 + $0x158] sm:$0xff]  ;;  %9628 = vst [vmem:[#allocation25_spill] sm:$0xff] %v5187_v29 }
  0x30   :  { %685 = vmatpush.msrb.mxu2 %v5064_v36  ;;  %663 = vmatpush.msrb.mxu1 %v5066_v37  ;;  %v5199_v45 = vld [vmem:[#allocation11 + $0x118] sm:$0xff] }
  0x31   :  { %698 = vmatpush.msra.mxu3 %v5072_v38  ;;  %177 = vmatpush.msra.mxu0 %v112_v61  ;;  %v5209_v49 = vld [vmem:[#allocation11 + $0xd8] sm:$0xff] }
  0x32   :  { %686 = vmatpush.msrb.mxu2 %v481_v39  ;;  %664 = vmatpush.msrb.mxu1 %v5078_v40  ;;  %v5189_v39 = vld [vmem:[#allocation11 + $0x50] sm:$0xff]  ;;  %v5217_v55 = vld [vmem:[#allocation11 + $0xb8] sm:$0xff] }
  0x33   :  { %699 = vmatpush.msra.mxu3 %v5082_v41  ;;  %3822 = vmatmul.msk.f32.vlgmr.msra.gmra.mxu0 %vm137_vm0, %v4985_v10  ;;  %9629 = vst [vmem:[#allocation26_spill] sm:$0xff] %v5189_v39  ;;  %v5223_v57 = vld [vmem:[#allocation11 + $0x98] sm:$0xff] }
  0x34   :  { %687 = vmatpush.msrb.mxu2 %v477_v42  ;;  %665 = vmatpush.msrb.mxu1 %v5084_v43  ;;  %v5193_v42 = vld [vmem:[#allocation11 + $0x138] sm:$0xff]  ;;  %9632 = vst [vmem:[#allocation29_spill] sm:$0xff] %v5223_v57 }
  0x35   :  { %700 = vmatpush.msra.mxu3 %v5088_v44  ;;  %v5232_v61 = vld [vmem:[#allocation11 + $0x58] sm:$0xff] }
  0x36   :  { %688 = vmatpush.msrb.mxu2 %v473_v46  ;;  %3833 = vmatmul.msk.f32.gmra.mxu1 %vm137_vm0, %v5093_v47  ;;  %v5202_v46 = vld [vmem:[#allocation11 + $0xf8] sm:$0xff]  ;;  %9634 = vst [vmem:[#allocation31_spill] sm:$0xff] %v5232_v61 }
  0x37   :  { %3841 = vmatmul.msk.f32.gmra.mxu2 %vm137_vm0, %v5093_v47  ;;  %3845 = vmatmul.msk.f32.gmra.mxu3 %vm137_vm0, %v5099_v48 }
  0x38   :  { %689 = vmatpush.msrb.mxu2 %v469_v50  ;;  %666 = vmatpush.msrb.mxu1 %v5102_v51  ;;  %v5211_v50 = vld [vmem:[#allocation11 + $0x30] sm:$0xff] }
  0x39   :  { %701 = vmatpush.msra.mxu3 %v5107_v52  ;;  %9630 = vst [vmem:[#allocation27_spill] sm:$0xff] %v5211_v50 }
  0x3a   :  { %690 = vmatpush.msrb.mxu2 %v465_v53  ;;  %667 = vmatpush.msrb.mxu1 %v5113_v54  ;;  %v5213_v53 = vld [vmem:[#allocation11 + $0x10] sm:$0xff] }
  0x3b   :  { %702 = vmatpush.msra.mxu3 %v5116_v56  ;;  %3823 = vmatmul.msk.f32.gmra.mxu0 %vm137_vm0, %v5015_v22  ;;  %9631 = vst [vmem:[#allocation28_spill] sm:$0xff] %v5213_v53 }
  0x3c   :  { %691 = vmatpush.msrb.mxu2 %v461_v58  ;;  %668 = vmatpush.msrb.mxu1 %v5118_v59  ;;  %v5226_v58 = vld [vmem:[#allocation11 + $0x78] sm:$0xff] }
  0x3d   :  { %703 = vmatpush.msra.mxu3 %v5122_v60  ;;  %9633 = vst [vmem:[#allocation30_spill] sm:$0xff] %v5226_v58 }
  0x3e   :  { %692 = vmatpush.msrb.mxu2 %v457_v62  ;;  %3834 = vmatmul.msk.f32.gmra.mxu1 %vm137_vm0, %v4990_v11  ;;  %v5235_v62 = vld [vmem:[#allocation11 + $0x38] sm:$0xff] }
  0x3f   :  { %3846 = vmatmul.msk.f32.vlgmr.msrb.gmra.mxu3 %vm137_vm0, %v4985_v10  ;;  %693 = vmatmul.f32.vlgmr.msrb.gmra.mxu2 %v9020_v1  ;;  %9635 = vst [vmem:[#allocation32_spill] sm:$0xff] %v5235_v62 }
  0x40   :  { %669 = vmatpush.msrb.mxu1 %v5126_v63  ;;  %704 = vmatpush.msra.mxu3 %v5129_v0 }
  0x42   :  { %670 = vmatpush.msrb.mxu1 %v5136_v2  ;;  %705 = vmatpush.msra.mxu3 %v5138_v3 }
  0x43   :  { %3824 = vmatmul.msk.f32.gmra.mxu0 %vm137_vm0, %v5055_v34 }
  0x44   :  { %671 = vmatpush.msrb.mxu1 %v5142_v4  ;;  %706 = vmatpush.msra.mxu3 %v5148_v5 }
  0x46   :  { %3835 = vmatmul.msk.f32.gmra.mxu1 %vm137_vm0, %v5022_v23  ;;  %707 = vmatpush.msra.mxu3 %v5163_v9 }
  0x47   :  { %3847 = vmatmul.msk.f32.gmra.mxu3 %vm137_vm0, %v5015_v22  ;;  %672 = vmatpush.msrb.mxu1 %v5151_v6  ;;  %v131_v6 = vld [vmem:[#allocation8 + $0x98] sm:$0xff] }
  0x48   :  { %708 = vmatpush.msra.mxu3 %v5165_v12 }
  0x49   :  { %717 = vmatpush.msra.mxu1 %v5154_v7 }
  0x4a   :  { %709 = vmatpush.msra.mxu3 %v5187_v29 }
  0x4b   :  { %718 = vmatpush.msra.mxu1 %v5161_v8  ;;  %3825 = vmatmul.msk.f32.gmra.mxu0 %vm137_vm0, %v5093_v47 }
  0x4c   :  { %710 = vmatpush.msra.mxu3 %v5189_v39  ;;  %v121_v39 = vld [vmem:[#allocation8 + $0x48] sm:$0xff] }
  0x4d   :  { %719 = vmatpush.msra.mxu1 %v5169_v13 }
  0x4e   :  { %3836 = vmatmul.msk.f32.gmra.mxu1 %vm137_vm0, %v5061_v35  ;;  %711 = vmatpush.msra.mxu3 %v5211_v50 }
  0x4f   :  { %720 = vmatpush.msra.mxu1 %v5175_v16  ;;  %3848 = vmatmul.msk.f32.gmra.mxu3 %vm137_vm0, %v5055_v34 }
  0x50   :  { %712 = vmatpush.msra.mxu3 %v5213_v53  ;;  %v5240_v53 = vld [vmem:[#allocation11 + $0x18] sm:$0xff] }
  0x51   :  { %721 = vmatpush.msra.mxu1 %v5178_v19  ;;  %9636 = vst [vmem:[#allocation33_spill] sm:$0xff] %v5240_v53 }
  0x53   :  { %722 = vmatpush.msra.mxu1 %v5185_v26  ;;  %3826 = vmatmul.msk.f32.gmra.mxu0 %vm137_vm0, %v4990_v11 }
  0x55   :  { %723 = vmatpush.msra.mxu1 %v5193_v42 }
  0x56   :  { %3837 = vmatmul.msk.f32.gmra.mxu1 %vm137_vm0, %v5099_v48 }
  0x57   :  { %724 = vmatpush.msra.mxu1 %v5199_v45  ;;  %3849 = vmatmul.msk.f32.gmra.mxu3 %vm137_vm0, %v5093_v47 }
  0x59   :  { %725 = vmatpush.msra.mxu1 %v5202_v46 }
  0x5b   :  { %726 = vmatpush.msra.mxu1 %v5209_v49  ;;  %3827 = vmatmul.msk.f32.gmra.mxu0 %vm137_vm0, %v5022_v23 }
  0x5d   :  { %727 = vmatpush.msra.mxu1 %v5217_v55 }
  0x5e   :  { %673 = vmatmul.f32.vlgmr.msrb.gmra.mxu1 %v9020_v1 }
  0x5f   :  { %728 = vmatpush.msra.mxu1 %v5223_v57  ;;  %3850 = vmatmul.msk.f32.gmra.mxu3 %vm137_vm0, %v4990_v11 }
  0x61   :  { %729 = vmatpush.msra.mxu1 %v5226_v58  ;;  %v116_v58 = vld [vmem:[#allocation8 + $0x20] sm:$0xff] }
  0x63   :  { %730 = vmatpush.msra.mxu1 %v5232_v61  ;;  %3828 = vmatmul.msk.f32.gmra.mxu0 %vm137_vm0, %v5061_v35 }
  0x65   :  { %731 = vmatpush.msra.mxu1 %v5235_v62  ;;  %v126_v62 = vld [vmem:[#allocation8 + $0x70] sm:$0xff] }
  0x67   :  { %732 = vmatpush.msra.mxu1 %v5240_v53  ;;  %3851 = vmatmul.msk.f32.gmra.mxu3 %vm137_vm0, %v5022_v23  ;;  %v136_v53 = vld [vmem:[#allocation8 + $0xc0] sm:$0xff] }
  0x68   :  { %733 = vmatmul.f32.vlgmr.msra.gmra.mxu1 %v9020_v1  ;;  %337 = vmatpush.msrb.mxu0 %v136_v53  ;;  %v5272_v53 = vld [vmem:[#allocation13 + $0x1e8] sm:$0xff] }
  0x69   :  { %9642 = vst [vmem:[#allocation39_spill] sm:$0xff] %v5272_v53  ;;  %824 = vmatpush.msrb.mxu3 %v5272_v53  ;;  %v5369_v53 = vld [vmem:[#allocation13 + $0x110] sm:$0xff] }
  0x6a   :  { %338 = vmatpush.msrb.mxu0 %v131_v6  ;;  %v5270_v6 = vld [vmem:[#allocation13 + $0x1e0] sm:$0xff]  ;;  %9675 = vst [vmem:[#allocation72_spill] sm:$0xff] %v5369_v53 }
  0x6b   :  { %3829 = vmatmul.msk.f32.gmra.mxu0 %vm137_vm0, %v5099_v48  ;;  %9641 = vst [vmem:[#allocation38_spill] sm:$0xff] %v5270_v6  ;;  %804 = vmatpush.msra.mxu2 %v5270_v6 }
  0x6c   :  { %339 = vmatpush.msrb.mxu0 %v126_v62  ;;  %v5274_v62 = vld [vmem:[#allocation13 + $0x1f0] sm:$0xff] }
  0x6d   :  { %9643 = vst [vmem:[#allocation40_spill] sm:$0xff] %v5274_v62 }
  0x6e   :  { %340 = vmatpush.msrb.mxu0 %v121_v39  ;;  %v5278_v39 = vld [vmem:[#allocation13 + $0x1f8] sm:$0xff] }
  0x6f   :  { %3852 = vmatmul.msk.f32.gmra.mxu3 %vm137_vm0, %v5061_v35  ;;  %9644 = vst [vmem:[#allocation41_spill] sm:$0xff] %v5278_v39  ;;  %864 = vmatpush.msrb.mxu1 %v5278_v39 }
  0x70   :  { %341 = vmatpush.msrb.mxu0 %v116_v58  ;;  %v5282_v58 = vld [vmem:[#allocation13 + $0x1c0] sm:$0xff] }
  0x71   :  { %9645 = vst [vmem:[#allocation42_spill] sm:$0xff] %v5282_v58  ;;  %805 = vmatpush.msra.mxu2 %v5282_v58  ;;  %v5304_v58 = vld [vmem:[#allocation13 + $0x1b8] sm:$0xff] }
  0x72   :  { %844 = vmatpush.msra.mxu0 %v5274_v62  ;;  %9653 = vst [vmem:[#allocation50_spill] sm:$0xff] %v5304_v58  ;;  %v5314_v62 = vld [vmem:[#allocation13 + $0x190] sm:$0xff] }
  0x73   :  { %3854 = vmatmul.msk.f32.vlgmr.msrb.gmra.mxu0 %vm137_vm0, %v4985_v10  ;;  %v5286_v10 = vld [vmem:[#allocation13 + $0x1d0] sm:$0xff]  ;;  %9657 = vst [vmem:[#allocation54_spill] sm:$0xff] %v5314_v62 }
  0x74   :  { %9647 = vst [vmem:[#allocation44_spill] sm:$0xff] %v5286_v10  ;;  %845 = vmatpush.msra.mxu0 %v5286_v10  ;;  %v5312_v10 = vld [vmem:[#allocation13 + $0x188] sm:$0xff] }
  0x75   :  { %9656 = vst [vmem:[#allocation53_spill] sm:$0xff] %v5312_v10 }
  0x77   :  { %3853 = vmatmul.msk.f32.gmra.mxu3 %vm137_vm0, %v5099_v48 }
  0x7b   :  { %3855 = vmatmul.msk.f32.gmra.mxu0 %vm137_vm0, %v5015_v22  ;;  %v5333_v22 = vld [vmem:[#allocation13 + $0x178] sm:$0xff] }
  0x7c   :  { %9662 = vst [vmem:[#allocation59_spill] sm:$0xff] %v5333_v22 }
  0x7f   :  { %713 = vmatmul.f32.vlgmr.msra.gmra.mxu3 %v9020_v1  ;;  %v5284_v1 = vld [vmem:[#allocation13 + $0x1c8] sm:$0xff] }
  0x80   :  { %9646 = vst [vmem:[#allocation43_spill] sm:$0xff] %v5284_v1  ;;  %825 = vmatpush.msrb.mxu3 %v5284_v1 }
  0x83   :  { %3856 = vmatmul.msk.f32.gmra.mxu0 %vm137_vm0, %v5055_v34  ;;  %v5392_v34 = vld [vmem:[#allocation13 + $0xc0] sm:$0xff] }
  0x84   :  { %9682 = vst [vmem:[#allocation79_spill] sm:$0xff] %v5392_v34 }
  0x8b   :  { %3857 = vmatmul.msk.f32.gmra.mxu0 %vm137_vm0, %v5093_v47  ;;  %v5447_v47 = vld [vmem:[#allocation13 + $0x48] sm:$0xff] }
  0x8c   :  { %9700 = vst [vmem:[#allocation97_spill] sm:$0xff] %v5447_v47 }
  0x93   :  { %3858 = vmatmul.msk.f32.gmra.mxu0 %vm137_vm0, %v4990_v11  ;;  %v5506_v11 = vld [vmem:[#allocation14 + $0x1d0] sm:$0xff] }
  0x94   :  { %9720 = vst [vmem:[#allocation117_spill] sm:$0xff] %v5506_v11 }
  0x9b   :  { %v5258_v50 = vpop.f32.mrf.mxu1  ;;  %3859 = vmatmul.msk.f32.gmra.mxu0 %vm137_vm0, %v5022_v23  ;;  %v5579_v23 = vld [vmem:[#allocation14 + $0x128] sm:$0xff] }
  0x9c   :  { %9744 = vst [vmem:[#allocation141_spill] sm:$0xff] %v5579_v23 }
  0xa2   :  { %v5260_v4 = vpop.f32.mrf.mxu3 }
  0xa3   :  { %9637 = vst [vmem:[#allocation34_spill] sm:$0xff] %v5260_v4  ;;  %v5262_v61 = vpop.f32.mrf.mxu1  ;;  %v5294_v4 = vld [vmem:[#allocation13 + $0x1a0] sm:$0xff]  ;;  %3860 = vmatmul.msk.f32.gmra.mxu0 %vm137_vm0, %v5061_v35 }
  0xa4   :  { %9638 = vst [vmem:[#allocation35_spill] sm:$0xff] %v5262_v61  ;;  %v5298_v61 = vld [vmem:[#allocation13 + $0x1b0] sm:$0xff]  ;;  %806 = vmatpush.msra.mxu2 %v5294_v4  ;;  %v5635_v35 = vld [vmem:[#allocation14 + $0xa0] sm:$0xff] }
  0xa5   :  { %9649 = vst [vmem:[#allocation46_spill] sm:$0xff] %v5294_v4  ;;  %846 = vmatpush.msra.mxu0 %v5298_v61  ;;  %v5345_v4 = vld [vmem:[#allocation13 + $0x158] sm:$0xff] }
  0xa6   :  { %9651 = vst [vmem:[#allocation48_spill] sm:$0xff] %v5298_v61  ;;  %v5329_v61 = vld [vmem:[#allocation13 + $0x170] sm:$0xff] }
  0xa7   :  { %847 = vmatpush.msra.mxu0 %v5314_v62  ;;  %9661 = vst [vmem:[#allocation58_spill] sm:$0xff] %v5329_v61  ;;  %v5341_v62 = vld [vmem:[#allocation13 + $0x150] sm:$0xff] }
  0xa8   :  { %9665 = vst [vmem:[#allocation62_spill] sm:$0xff] %v5341_v62 }
  0xa9   :  { %848 = vmatpush.msra.mxu0 %v5329_v61  ;;  %9666 = vst [vmem:[#allocation63_spill] sm:$0xff] %v5345_v4  ;;  %v5353_v61 = vld [vmem:[#allocation13 + $0x130] sm:$0xff] }
  0xaa   :  { %v5264_v2 = vpop.f32.mrf.mxu3  ;;  %9669 = vst [vmem:[#allocation66_spill] sm:$0xff] %v5353_v61 }
  0xab   :  { %9639 = vst [vmem:[#allocation36_spill] sm:$0xff] %v5264_v2  ;;  %v5266_v29 = vpop.f32.mrf.mxu1  ;;  %v5290_v2 = vld [vmem:[#allocation13 + $0x1d8] sm:$0xff]  ;;  %849 = vmatpush.msra.mxu0 %v5341_v62  ;;  %v5365_v62 = vld [vmem:[#allocation13 + $0x100] sm:$0xff] }
  0xac   :  { %9640 = vst [vmem:[#allocation37_spill] sm:$0xff] %v5266_v29  ;;  %865 = vmatpush.msrb.mxu1 %v5290_v2  ;;  %v5296_v29 = vld [vmem:[#allocation13 + $0x1a8] sm:$0xff]  ;;  %3861 = vmatmul.msk.f32.gmra.mxu0 %vm137_vm0, %v5099_v48 }
  0xad   :  { %9648 = vst [vmem:[#allocation45_spill] sm:$0xff] %v5290_v2  ;;  %826 = vmatpush.msrb.mxu3 %v5296_v29  ;;  %v5310_v2 = vld [vmem:[#allocation13 + $0x180] sm:$0xff]  ;;  %850 = vmatpush.msra.mxu0 %v5353_v61  ;;  %v5380_v61 = vld [vmem:[#allocation13 + $0xe8] sm:$0xff] }
  0xae   :  { %9650 = vst [vmem:[#allocation47_spill] sm:$0xff] %v5296_v29  ;;  %866 = vmatpush.msrb.mxu1 %v5304_v58  ;;  %807 = vmatpush.msra.mxu2 %v5310_v2  ;;  %v5321_v29 = vpop.f32.mrf.mxu2  ;;  %v5327_v58 = vld [vmem:[#allocation13 + $0x168] sm:$0xff] }
  0xaf   :  { %9655 = vst [vmem:[#allocation52_spill] sm:$0xff] %v5310_v2  ;;  %827 = vmatpush.msrb.mxu3 %v5312_v10  ;;  %v5337_v2 = vld [vmem:[#allocation13 + $0x140] sm:$0xff]  ;;  %v5339_v10 = vld [vmem:[#allocation13 + $0x148] sm:$0xff]  ;;  %851 = vmatpush.msra.mxu0 %v5369_v53  ;;  %v5400_v53 = vld [vmem:[#allocation13 + $0xd8] sm:$0xff] }
  0xb0   :  { %9660 = vst [vmem:[#allocation57_spill] sm:$0xff] %v5327_v58  ;;  %v5690_v48 = vld [vmem:[#allocation14 + $0x28] sm:$0xff] }
  0xb1   :  { %828 = vmatpush.msrb.mxu3 %v5327_v58  ;;  %9663 = vst [vmem:[#allocation60_spill] sm:$0xff] %v5337_v2  ;;  %v5351_v58 = vld [vmem:[#allocation13 + $0x128] sm:$0xff] }
  0xb2   :  { %v5300_v39 = vpop.f32.mrf.mxu3  ;;  %9664 = vst [vmem:[#allocation61_spill] sm:$0xff] %v5339_v10 }
  0xb3   :  { %9652 = vst [vmem:[#allocation49_spill] sm:$0xff] %v5300_v39  ;;  %v5306_v1 = vpop.f32.mrf.mxu1  ;;  %v5319_v39 = vld [vmem:[#allocation13 + $0x198] sm:$0xff]  ;;  %829 = vmatpush.msrb.mxu3 %v5339_v10  ;;  %v5367_v10 = vld [vmem:[#allocation13 + $0x108] sm:$0xff] }
  0xb4   :  { %9654 = vst [vmem:[#allocation51_spill] sm:$0xff] %v5306_v1  ;;  %v5325_v1 = vld [vmem:[#allocation13 + $0x160] sm:$0xff]  ;;  %867 = vmatpush.msrb.mxu1 %v5319_v39 }
  0xb5   :  { %9658 = vst [vmem:[#allocation55_spill] sm:$0xff] %v5319_v39  ;;  %808 = vmatpush.msra.mxu2 %v5325_v1  ;;  %830 = vmatpush.msrb.mxu3 %v5351_v58 }
  0xb6   :  { %9659 = vst [vmem:[#allocation56_spill] sm:$0xff] %v5325_v1  ;;  %868 = vmatpush.msrb.mxu1 %v5333_v22  ;;  %v5349_v1 = vld [vmem:[#allocation13 + $0x120] sm:$0xff]  ;;  %v5359_v22 = vld [vmem:[#allocation13 + $0x138] sm:$0xff] }
  0xb7   :  { %809 = vmatpush.msra.mxu2 %v5337_v2  ;;  %9667 = vst [vmem:[#allocation64_spill] sm:$0xff] %v5349_v1  ;;  %831 = vmatpush.msrb.mxu3 %v5367_v10 }
  0xb8   :  { %9668 = vst [vmem:[#allocation65_spill] sm:$0xff] %v5351_v58  ;;  %869 = vmatpush.msrb.mxu1 %v5345_v4  ;;  %v5382_v58 = vld [vmem:[#allocation13 + $0xf0] sm:$0xff] }
  0xb9   :  { %810 = vmatpush.msra.mxu2 %v5349_v1  ;;  %9671 = vst [vmem:[#allocation68_spill] sm:$0xff] %v5359_v22  ;;  %v5388_v1 = vpop.f32.mrf.mxu2  ;;  %832 = vmatpush.msrb.mxu3 %v5380_v61  ;;  %v5424_v4 = vld [vmem:[#allocation13 + $0x90] sm:$0xff] }
  0xba   :  { %v5355_v39 = vpop.f32.mrf.mxu3  ;;  %9673 = vst [vmem:[#allocation70_spill] sm:$0xff] %v5365_v62  ;;  %870 = vmatpush.msrb.mxu1 %v5359_v22  ;;  %v5386_v22 = vld [vmem:[#allocation13 + $0xf8] sm:$0xff]  ;;  %852 = vmatpush.msra.mxu0 %v5382_v58 }
  0xbb   :  { %9670 = vst [vmem:[#allocation67_spill] sm:$0xff] %v5355_v39  ;;  %v5361_v2 = vpop.f32.mrf.mxu1  ;;  %v5374_v39 = vld [vmem:[#allocation13 + $0x118] sm:$0xff]  ;;  %811 = vmatpush.msra.mxu2 %v5365_v62  ;;  %v5396_v62 = vld [vmem:[#allocation13 + $0xd0] sm:$0xff] }
  0xbc   :  { %9672 = vst [vmem:[#allocation69_spill] sm:$0xff] %v5361_v2  ;;  %v5378_v2 = vld [vmem:[#allocation13 + $0xe0] sm:$0xff]  ;;  %871 = vmatpush.msrb.mxu1 %v5374_v39  ;;  %853 = vmatpush.msra.mxu0 %v5396_v62 }
  0xbd   :  { %9674 = vst [vmem:[#allocation71_spill] sm:$0xff] %v5367_v10  ;;  %812 = vmatpush.msra.mxu2 %v5378_v2  ;;  %v5394_v10 = vld [vmem:[#allocation13 + $0xc8] sm:$0xff] }
  0xbe   :  { %9676 = vst [vmem:[#allocation73_spill] sm:$0xff] %v5374_v39  ;;  %872 = vmatpush.msrb.mxu1 %v5386_v22  ;;  %833 = vmatpush.msrb.mxu3 %v5394_v10 }
  0xbf   :  { %9677 = vst [vmem:[#allocation74_spill] sm:$0xff] %v5378_v2  ;;  %813 = vmatpush.msra.mxu2 %v5392_v34  ;;  %v5406_v2 = vld [vmem:[#allocation13 + $0xa8] sm:$0xff] }
  0xc0   :  { %9678 = vst [vmem:[#allocation75_spill] sm:$0xff] %v5380_v61  ;;  %v5408_v61 = vld [vmem:[#allocation13 + $0xb0] sm:$0xff]  ;;  %873 = vmatpush.msrb.mxu1 %v5400_v53  ;;  %834 = vmatpush.msrb.mxu3 %v5406_v2  ;;  %v5422_v34 = vld [vmem:[#allocation13 + $0x88] sm:$0xff] }
  0xc1   :  { %9679 = vst [vmem:[#allocation76_spill] sm:$0xff] %v5382_v58  ;;  %v5414_v58 = vld [vmem:[#allocation13 + $0xb8] sm:$0xff]  ;;  %854 = vmatpush.msra.mxu0 %v5408_v61 }
  0xc2   :  { %9680 = vst [vmem:[#allocation77_spill] sm:$0xff] %v5386_v22  ;;  %v5410_v39 = vpop.f32.mrf.mxu3  ;;  %874 = vmatpush.msrb.mxu1 %v5414_v58  ;;  %835 = vmatpush.msrb.mxu3 %v5422_v34 }
  0xc3   :  { %9681 = vst [vmem:[#allocation78_spill] sm:$0xff] %v5388_v1  ;;  %v5404_v1 = vld [vmem:[#allocation13 + $0xa0] sm:$0xff]  ;;  %v5416_v22 = vpop.f32.mrf.mxu1  ;;  %855 = vmatpush.msra.mxu0 %v5424_v4 }
  0xc4   :  { %9683 = vst [vmem:[#allocation80_spill] sm:$0xff] %v5394_v10  ;;  %814 = vmatpush.msra.mxu2 %v5404_v1  ;;  %v5420_v10 = vld [vmem:[#allocation13 + $0x80] sm:$0xff] }
  0xc5   :  { %9684 = vst [vmem:[#allocation81_spill] sm:$0xff] %v5396_v62  ;;  %v5428_v62 = vld [vmem:[#allocation13 + $0x98] sm:$0xff] }
  0xc6   :  { %9685 = vst [vmem:[#allocation82_spill] sm:$0xff] %v5400_v53  ;;  %815 = vmatpush.msra.mxu2 %v5420_v10  ;;  %875 = vmatpush.msrb.mxu1 %v5428_v62  ;;  %v5453_v53 = vld [vmem:[#allocation13 + $0x58] sm:$0xff] }
  0xc7   :  { %9686 = vst [vmem:[#allocation83_spill] sm:$0xff] %v5404_v1  ;;  %v5437_v1 = vld [vmem:[#allocation13 + $0x70] sm:$0xff] }
  0xc8   :  { %9687 = vst [vmem:[#allocation84_spill] sm:$0xff] %v5406_v2  ;;  %v5435_v2 = vld [vmem:[#allocation13 + $0x68] sm:$0xff]  ;;  %856 = vmatpush.msra.mxu0 %v5437_v1 }
  0xc9   :  { %9688 = vst [vmem:[#allocation85_spill] sm:$0xff] %v5408_v61  ;;  %v5441_v61 = vld [vmem:[#allocation13 + $0x78] sm:$0xff]  ;;  %836 = vmatpush.msrb.mxu3 %v5435_v2 }
  0xca   :  { %9689 = vst [vmem:[#allocation86_spill] sm:$0xff] %v5414_v58  ;;  %v5445_v58 = vld [vmem:[#allocation13 + $0x40] sm:$0xff]  ;;  %876 = vmatpush.msrb.mxu1 %v5441_v61  ;;  %v5465_v6 = vpop.f32.mrf.mxu3 }
  0xcb   :  { %9690 = vst [vmem:[#allocation87_spill] sm:$0xff] %v5416_v22  ;;  %v5433_v22 = vld [vmem:[#allocation13 + $0x60] sm:$0xff]  ;;  %837 = vmatpush.msrb.mxu3 %v5447_v47  ;;  %v5483_v47 = vld [vmem:[#allocation13 + $0x18] sm:$0xff] }
  0xcc   :  { %9691 = vst [vmem:[#allocation88_spill] sm:$0xff] %v5420_v10  ;;  %816 = vmatpush.msra.mxu2 %v5433_v22  ;;  %v5449_v10 = vld [vmem:[#allocation13 + $0x50] sm:$0xff]  ;;  %877 = vmatpush.msrb.mxu1 %v5453_v53 }
  0xcd   :  { %9692 = vst [vmem:[#allocation89_spill] sm:$0xff] %v5422_v34  ;;  %v5455_v34 = vpop.f32.mrf.mxu2  ;;  %857 = vmatpush.msra.mxu0 %v5449_v10 }
  0xce   :  { %9693 = vst [vmem:[#allocation90_spill] sm:$0xff] %v5424_v4  ;;  %817 = vmatpush.msra.mxu2 %v5445_v58  ;;  %v5463_v4 = vld [vmem:[#allocation13 + $0x30] sm:$0xff] }
  0xcf   :  { %9694 = vst [vmem:[#allocation91_spill] sm:$0xff] %v5428_v62  ;;  %v5459_v62 = vld [vmem:[#allocation13 + $0x20] sm:$0xff]  ;;  %858 = vmatpush.msra.mxu0 %v5463_v4 }
  0xd0   :  { %9695 = vst [vmem:[#allocation92_spill] sm:$0xff] %v5433_v22  ;;  %v5461_v22 = vld [vmem:[#allocation13 + $0x28] sm:$0xff]  ;;  %818 = vmatpush.msra.mxu2 %v5459_v62 }
  0xd1   :  { %9696 = vst [vmem:[#allocation93_spill] sm:$0xff] %v5435_v2  ;;  %838 = vmatpush.msrb.mxu3 %v5461_v22 }
  0xd2   :  { %9697 = vst [vmem:[#allocation94_spill] sm:$0xff] %v5437_v1  ;;  %v5469_v1 = vld [vmem:[#allocation13 + $0x38] sm:$0xff] }
  0xd3   :  { %9698 = vst [vmem:[#allocation95_spill] sm:$0xff] %v5441_v61  ;;  %v5477_v61 = vpop.f32.mrf.mxu1  ;;  %878 = vmatpush.msrb.mxu1 %v5469_v1 }
  0xd4   :  { %9699 = vst [vmem:[#allocation96_spill] sm:$0xff] %v5445_v58  ;;  %v5475_v58 = vld [vmem:[#allocation13 + $0x8] sm:$0xff] }
  0xd5   :  { %9701 = vst [vmem:[#allocation98_spill] sm:$0xff] %v5449_v10  ;;  %839 = vmatpush.msrb.mxu3 %v5475_v58  ;;  %879 = vmatpush.msrb.mxu1 %v5483_v47  ;;  %v5524_v10 = vpop.f32.mrf.mxu2 }
  0xd6   :  { %9702 = vst [vmem:[#allocation99_spill] sm:$0xff] %v5453_v53  ;;  %v5490_v53 = vld [vmem:[#allocation14 + $0x1e8] sm:$0xff] }
  0xd7   :  { %9703 = vst [vmem:[#allocation100_spill] sm:$0xff] %v5455_v34  ;;  %v5473_v34 = vld [vmem:[#allocation13] sm:$0xff]  ;;  %904 = vmatpush.msra.mxu3 %v5490_v53 }
  0xd8   :  { %9704 = vst [vmem:[#allocation101_spill] sm:$0xff] %v5459_v62  ;;  %v5488_v62 = vld [vmem:[#allocation14 + $0x1e0] sm:$0xff]  ;;  %819 = vmatpush.msra.mxu2 %v5473_v34 }
  0xd9   :  { %9705 = vst [vmem:[#allocation102_spill] sm:$0xff] %v5461_v22  ;;  %v5502_v22 = vld [vmem:[#allocation14 + $0x1c8] sm:$0xff] }
  0xda   :  { %9706 = vst [vmem:[#allocation103_spill] sm:$0xff] %v5463_v4  ;;  %v5496_v4 = vld [vmem:[#allocation14 + $0x1f8] sm:$0xff]  ;;  %884 = vmatpush.msrb.mxu2 %v5488_v62  ;;  %905 = vmatpush.msra.mxu3 %v5502_v22 }
  0xdb   :  { %9707 = vst [vmem:[#allocation104_spill] sm:$0xff] %v5465_v6  ;;  %v5481_v6 = vld [vmem:[#allocation13 + $0x10] sm:$0xff]  ;;  %944 = vmatpush.msra.mxu1 %v5496_v4  ;;  %v5532_v2 = vpop.f32.mrf.mxu1 }
  0xdc   :  { %9708 = vst [vmem:[#allocation105_spill] sm:$0xff] %v5469_v1  ;;  %859 = vmatpush.msra.mxu0 %v5481_v6  ;;  %v5500_v1 = vld [vmem:[#allocation14 + $0x1c0] sm:$0xff] }
  0xdd   :  { %9709 = vst [vmem:[#allocation106_spill] sm:$0xff] %v5473_v34  ;;  %v5508_v34 = vld [vmem:[#allocation14 + $0x1d8] sm:$0xff]  ;;  %885 = vmatpush.msrb.mxu2 %v5500_v1 }
  0xde   :  { %9710 = vst [vmem:[#allocation107_spill] sm:$0xff] %v5475_v58  ;;  %v5512_v58 = vld [vmem:[#allocation14 + $0x1a0] sm:$0xff]  ;;  %945 = vmatpush.msra.mxu1 %v5508_v34 }
  0xdf   :  { %9711 = vst [vmem:[#allocation108_spill] sm:$0xff] %v5477_v61  ;;  %v5494_v61 = vld [vmem:[#allocation14 + $0x1f0] sm:$0xff]  ;;  %886 = vmatpush.msrb.mxu2 %v5512_v58 }
  0xe0   :  { %9712 = vst [vmem:[#allocation109_spill] sm:$0xff] %v5481_v6  ;;  %924 = vmatpush.msrb.mxu0 %v5494_v61  ;;  %v5514_v6 = vld [vmem:[#allocation14 + $0x1a8] sm:$0xff] }
  0xe1   :  { %9713 = vst [vmem:[#allocation110_spill] sm:$0xff] %v5483_v47  ;;  %v5516_v47 = vpop.f32.mrf.mxu3  ;;  %906 = vmatpush.msra.mxu3 %v5514_v6 }
  0xe2   :  { %9714 = vst [vmem:[#allocation111_spill] sm:$0xff] %v5488_v62  ;;  %v5520_v62 = vld [vmem:[#allocation14 + $0x1b0] sm:$0xff]  ;;  %925 = vmatpush.msrb.mxu0 %v5506_v11 }
  0xe3   :  { %9715 = vst [vmem:[#allocation112_spill] sm:$0xff] %v5490_v53  ;;  %v5522_v53 = vld [vmem:[#allocation14 + $0x1b8] sm:$0xff] }
  0xe4   :  { %9716 = vst [vmem:[#allocation113_spill] sm:$0xff] %v5494_v61  ;;  %v5530_v61 = vld [vmem:[#allocation14 + $0x188] sm:$0xff]  ;;  %926 = vmatpush.msrb.mxu0 %v5520_v62  ;;  %946 = vmatpush.msra.mxu1 %v5522_v53 }
  0xe5   :  { %9717 = vst [vmem:[#allocation114_spill] sm:$0xff] %v5496_v4  ;;  %v5528_v4 = vld [vmem:[#allocation14 + $0x180] sm:$0xff]  ;;  %907 = vmatpush.msra.mxu3 %v5530_v61 }
  0xe6   :  { %9718 = vst [vmem:[#allocation115_spill] sm:$0xff] %v5500_v1  ;;  %887 = vmatpush.msrb.mxu2 %v5528_v4 }
  0xe7   :  { %9719 = vst [vmem:[#allocation116_spill] sm:$0xff] %v5502_v22  ;;  %v5538_v22 = vld [vmem:[#allocation14 + $0x198] sm:$0xff] }
  0xe8   :  { %9721 = vst [vmem:[#allocation118_spill] sm:$0xff] %v5508_v34  ;;  %v5546_v34 = vld [vmem:[#allocation14 + $0x168] sm:$0xff]  ;;  %947 = vmatpush.msra.mxu1 %v5538_v22 }
  0xe9   :  { %9722 = vst [vmem:[#allocation119_spill] sm:$0xff] %v5512_v58  ;;  %v179_v58 = vpop.f32.mrf.mxu0  ;;  %908 = vmatpush.msra.mxu3 %v5546_v34  ;;  %v5575_v1 = vpop.f32.mrf.mxu3 }
  0xea   :  { %9723 = vst [vmem:[#allocation120_spill] sm:$0xff] %v5514_v6  ;;  %v5553_v6 = vld [vmem:[%s9000_s1] sm:$0xff] }
  0xeb   :  { %9724 = vst [vmem:[#allocation121_spill] sm:$0xff] %v5516_v47  ;;  %v5536_v47 = vld [vmem:[#allocation14 + $0x190] sm:$0xff]  ;;  %v371_v11 = vadd.f32 %v5553_v6, %v179_v58  ;;  %v5590_v58 = vld [vmem:[#allocation14 + $0x138] sm:$0xff] }
  0xec   :  { %9725 = vst [vmem:[#allocation122_spill] sm:$0xff] %v5520_v62  ;;  %927 = vmatpush.msrb.mxu0 %v5536_v47  ;;  %v5559_v62 = vld [vmem:[#allocation14 + $0x140] sm:$0xff] }
  0xed   :  { %9726 = vst [vmem:[#allocation123_spill] sm:$0xff] %v5522_v53  ;;  %v5557_v53 = vld [vmem:[#allocation14 + $0x178] sm:$0xff] }
  0xee   :  { %9727 = vst [vmem:[#allocation124_spill] sm:$0xff] %v5524_v10  ;;  %v5542_v10 = vld [vmem:[#allocation14 + $0x160] sm:$0xff]  ;;  %948 = vmatpush.msra.mxu1 %v5557_v53 }
  0xef   :  { %9728 = vst [vmem:[#allocation125_spill] sm:$0xff] %v5528_v4  ;;  %888 = vmatpush.msrb.mxu2 %v5542_v10  ;;  %v5566_v4 = vld [vmem:[#allocation14 + $0x150] sm:$0xff] }
  0xf0   :  { %9729 = vst [vmem:[#allocation126_spill] sm:$0xff] %v5530_v61  ;;  %v5564_v61 = vld [vmem:[#allocation14 + $0x148] sm:$0xff] }
  0xf1   :  { %9730 = vst [vmem:[#allocation127_spill] sm:$0xff] %v5532_v2  ;;  %v5548_v2 = vld [vmem:[#allocation14 + $0x170] sm:$0xff]  ;;  %889 = vmatpush.msrb.mxu2 %v5559_v62  ;;  %909 = vmatpush.msra.mxu3 %v5564_v61 }
  0xf2   :  { %9731 = vst [vmem:[#allocation128_spill] sm:$0xff] %v5536_v47  ;;  %928 = vmatpush.msrb.mxu0 %v5548_v2  ;;  %v5570_v47 = vld [vmem:[#allocation14 + $0x158] sm:$0xff] }
  0xf3   :  { %9732 = vst [vmem:[#allocation129_spill] sm:$0xff] %v5538_v22  ;;  %v5572_v22 = vld [vmem:[#allocation14 + $0x120] sm:$0xff]  ;;  %949 = vmatpush.msra.mxu1 %v5570_v47  ;;  %910 = vmatpush.msra.mxu3 %v5579_v23  ;;  %v5614_v23 = vld [vmem:[#allocation14 + $0xf0] sm:$0xff] }
  0xf4   :  { %9733 = vst [vmem:[#allocation130_spill] sm:$0xff] %v5542_v10  ;;  %v5581_v10 = vld [vmem:[#allocation14 + $0x130] sm:$0xff]  ;;  %929 = vmatpush.msrb.mxu0 %v5566_v4  ;;  %890 = vmatpush.msrb.mxu2 %v5572_v22 }
  0xf5   :  { %9734 = vst [vmem:[#allocation131_spill] sm:$0xff] %v5546_v34  ;;  %v694_v34 = vpop.f32.mrf.mxu2  ;;  %950 = vmatpush.msra.mxu1 %v5590_v58 }
  0xf6   :  { %9735 = vst [vmem:[#allocation132_spill] sm:$0xff] %v5548_v2  ;;  %v5586_v2 = vld [vmem:[%s9000_s1 + $0x8] sm:$0xff]  ;;  %930 = vmatpush.msrb.mxu0 %v5581_v10 }
  0xf7   :  { %9736 = vst [vmem:[#allocation133_spill] sm:$0xff] %v5553_v6  ;;  %v674_v6 = vpop.f32.mrf.mxu1 }
  0xf8   :  { %9737 = vst [vmem:[#allocation134_spill] sm:$0xff] %v5557_v53  ;;  %v5598_v53 = vld [vmem:[#allocation14 + $0x110] sm:$0xff]  ;;  %v737_v63 = vadd.f32 %v674_v6, %v371_v11  ;;  %v5623_v6 = vld [vmem:[#allocation14 + $0xc8] sm:$0xff] }
  0xf9   :  { %9738 = vst [vmem:[#allocation135_spill] sm:$0xff] %v5559_v62  ;;  %v5596_v62 = vld [vmem:[#allocation14 + $0x108] sm:$0xff]  ;;  %931 = vmatpush.msrb.mxu0 %v5598_v53  ;;  %v5627_v11 = vld [vmem:[#allocation14 + $0xd0] sm:$0xff] }
  0xfa   :  { %9739 = vst [vmem:[#allocation136_spill] sm:$0xff] %v5564_v61  ;;  %v5602_v61 = vld [vmem:[#allocation14 + $0x118] sm:$0xff]  ;;  %911 = vmatpush.msra.mxu3 %v5596_v62 }
  0xfb   :  { %9740 = vst [vmem:[#allocation137_spill] sm:$0xff] %v5566_v4  ;;  %v372_v4 = vadd.f32 %v5586_v2, %v5258_v50  ;;  %951 = vmatpush.msra.mxu1 %v5602_v61  ;;  %v5621_v50 = vld [vmem:[#allocation14 + $0xc0] sm:$0xff]  ;;  %932 = vmatpush.msrb.mxu0 %v5614_v23 }
  0xfc   :  { %9741 = vst [vmem:[#allocation138_spill] sm:$0xff] %v5570_v47  ;;  %v5610_v47 = vld [vmem:[#allocation14 + $0xe8] sm:$0xff] }
  0xfd   :  { %9742 = vst [vmem:[#allocation139_spill] sm:$0xff] %v5572_v22  ;;  %v5608_v22 = vld [vmem:[#allocation14 + $0xe0] sm:$0xff]  ;;  %v738_v57 = vadd.f32 %v694_v34, %v372_v4  ;;  %912 = vmatpush.msra.mxu3 %v5610_v47  ;;  %v5637_v4 = vld [vmem:[#allocation14 + $0xa8] sm:$0xff]  ;;  %v5641_v34 = vld [vmem:[#allocation14 + $0xb0] sm:$0xff]  ;;  %933 = vmatpush.msrb.mxu0 %v5627_v11 }
  0xfe   :  { %9743 = vst [vmem:[#allocation140_spill] sm:$0xff] %v5575_v1  ;;  %v5592_v1 = vld [vmem:[#allocation14 + $0x100] sm:$0xff] }
  0xff   :  { %9745 = vst [vmem:[#allocation142_spill] sm:$0xff] %v5581_v10  ;;  %891 = vmatpush.msrb.mxu2 %v5592_v1  ;;  %v5616_v10 = vld [vmem:[#allocation14 + $0xf8] sm:$0xff]  ;;  %913 = vmatpush.msra.mxu3 %v5623_v6 }
 0x100   :  { %9746 = vst [vmem:[#allocation143_spill] sm:$0xff] %v5586_v2  ;;  %v5629_v2 = vld [vmem:[#allocation14 + $0xd8] sm:$0xff]  ;;  %952 = vmatpush.msra.mxu1 %v5616_v10  ;;  %934 = vmatpush.msrb.mxu0 %v5641_v34 }
 0x101   :  { %9747 = vst [vmem:[#allocation144_spill] sm:$0xff] %v5596_v62  ;;  %892 = vmatpush.msrb.mxu2 %v5608_v22  ;;  %v5631_v62 = vpop.f32.mrf.mxu3  ;;  %914 = vmatpush.msra.mxu3 %v5637_v4 }
 0x102   :  { %9748 = vst [vmem:[#allocation145_spill] sm:$0xff] %v5598_v53  ;;  %v3862_v53 = vmul.f32 -1.442695, %v737_v63  ;;  %953 = vmatpush.msra.mxu1 %v5629_v2  ;;  %v5647_v63 = vld [vmem:[#allocation14 + $0x80] sm:$0xff] }
 0x103   :  { %9749 = vst [vmem:[#allocation146_spill] sm:$0xff] %v5608_v22  ;;  %893 = vmatpush.msrb.mxu2 %v5621_v50  ;;  %v3863_v22 = vmul.f32 -1.442695, %v738_v57  ;;  %v5659_v57 = vld [vmem:[#allocation14 + $0x60] sm:$0xff] }
 0x104   :  { %9750 = vst [vmem:[#allocation147_spill] sm:$0xff] %v5610_v47  ;;  %v5643_v47 = vld [vmem:[#allocation14 + $0xb8] sm:$0xff]  ;;  %3928 = vpow2.f32 %v3862_v53 }
 0x105   :  { %9751 = vst [vmem:[#allocation148_spill] sm:$0xff] %v5621_v50  ;;  %894 = vmatpush.msrb.mxu2 %v5635_v35  ;;  %v5653_v50 = vld [vmem:[#allocation14 + $0x90] sm:$0xff]  ;;  %954 = vmatpush.msra.mxu1 %v5643_v47  ;;  %3930 = vpow2.f32 %v3863_v22  ;;  %v5669_v53 = vld [vmem:[#allocation14 + $0x78] sm:$0xff] }
 0x106   :  { %9752 = vst [vmem:[#allocation149_spill] sm:$0xff] %v5623_v6  ;;  %v5655_v6 = vld [vmem:[#allocation14 + $0x98] sm:$0xff]  ;;  %935 = vmatpush.msrb.mxu0 %v5653_v50 }
 0x107   :  { %9753 = vst [vmem:[#allocation150_spill] sm:$0xff] %v5629_v2  ;;  %895 = vmatpush.msrb.mxu2 %v5647_v63  ;;  %v5663_v2 = vld [vmem:[#allocation14 + $0x68] sm:$0xff]  ;;  %955 = vmatpush.msra.mxu1 %v5655_v6  ;;  %v5684_v22 = vld [vmem:[#allocation14 + $0x58] sm:$0xff] }
 0x108   :  { %9754 = vst [vmem:[#allocation151_spill] sm:$0xff] %v5631_v62  ;;  %v5649_v62 = vld [vmem:[#allocation14 + $0x88] sm:$0xff] }
 0x109   :  { %9755 = vst [vmem:[#allocation152_spill] sm:$0xff] %v5635_v35  ;;  %915 = vmatpush.msra.mxu3 %v5649_v62  ;;  %v5665_v35 = vld [vmem:[#allocation14 + $0x70] sm:$0xff]  ;;  %896 = vmatpush.msrb.mxu2 %v5659_v57 }
 0x10a   :  { %9756 = vst [vmem:[#allocation153_spill] sm:$0xff] %v5641_v34  ;;  %v5671_v34 = vld [vmem:[#allocation14 + $0x40] sm:$0xff]  ;;  %936 = vmatpush.msrb.mxu0 %v5665_v35  ;;  %956 = vmatpush.msra.mxu1 %v5669_v53 }
 0x10b   :  { %9757 = vst [vmem:[#allocation154_spill] sm:$0xff] %v5643_v47  ;;  %v5680_v47 = vpop.f32.mrf.mxu3  ;;  %916 = vmatpush.msra.mxu3 %v5663_v2  ;;  %897 = vmatpush.msrb.mxu2 %v5671_v34 }
 0x10c   :  { %9758 = vst [vmem:[#allocation155_spill] sm:$0xff] %v5647_v63  ;;  %v5676_v63 = vld [vmem:[#allocation14 + $0x48] sm:$0xff]  ;;  %957 = vmatpush.msra.mxu1 %v5684_v22 }
 0x10d   :  { %9759 = vst [vmem:[#allocation156_spill] sm:$0xff] %v5649_v62  ;;  %v5678_v62 = vld [vmem:[#allocation14 + $0x50] sm:$0xff]  ;;  %917 = vmatpush.msra.mxu3 %v5676_v63 }
 0x10e   :  { %9760 = vst [vmem:[#allocation157_spill] sm:$0xff] %v5653_v50  ;;  %v3929_v50 = vpop.eup %3928  ;;  %937 = vmatpush.msrb.mxu0 %v5678_v62 }
 0x10f   :  { %9761 = vst [vmem:[#allocation158_spill] sm:$0xff] %v5655_v6  ;;  %v5686_v6 = vld [vmem:[#allocation14 + $0x20] sm:$0xff]  ;;  %918 = vmatpush.msra.mxu3 %v5690_v48 }
 0x110   :  { %9762 = vst [vmem:[#allocation159_spill] sm:$0xff] %v5659_v57  ;;  %v5692_v57 = vld [vmem:[#allocation14 + $0x30] sm:$0xff]  ;;  %898 = vmatpush.msrb.mxu2 %v5686_v6 }
 0x111   :  { %9763 = vst [vmem:[#allocation160_spill] sm:$0xff] %v5663_v2  ;;  %v3931_v2 = vpop.eup %3930  ;;  %938 = vmatpush.msrb.mxu0 %v5692_v57 }
 0x112   :  { %9764 = vst [vmem:[#allocation161_spill] sm:$0xff] %v5665_v35  ;;  %v5698_v35 = vld [vmem:[#allocation14] sm:$0xff] }
 0x113   :  { %9765 = vst [vmem:[#allocation162_spill] sm:$0xff] %v5669_v53  ;;  %v5702_v53 = vld [vmem:[#allocation14 + $0x8] sm:$0xff]  ;;  %899 = vmatpush.msrb.mxu2 %v5698_v35 }
 0x114   :  { %9766 = vst [vmem:[#allocation163_spill] sm:$0xff] %v5671_v34  ;;  %v5704_v34 = vld [vmem:[#allocation14 + $0x10] sm:$0xff]  ;;  %919 = vmatpush.msra.mxu3 %v5702_v53 }
 0x115   :  { %9767 = vst [vmem:[#allocation164_spill] sm:$0xff] %v5676_v63  ;;  %v5708_v63 = vld [vmem:[#allocation14 + $0x18] sm:$0xff]  ;;  %939 = vmatpush.msrb.mxu0 %v5704_v34 }
 0x116   :  { %9768 = vst [vmem:[#allocation165_spill] sm:$0xff] %v5678_v62  ;;  %v5710_v62 = vadd.f32 1.0, %v3929_v50  ;;  %v5727_v50 = vld [vmem:[#allocation11 + $0x1e8] sm:$0xff] }
 0x117   :  { %9769 = vst [vmem:[#allocation166_spill] sm:$0xff] %v5680_v47  ;;  %v5696_v47 = vld [vmem:[#allocation14 + $0x38] sm:$0xff] }
 0x118   :  { %9770 = vst [vmem:[#allocation167_spill] sm:$0xff] %v5684_v22  ;;  %958 = vmatpush.msra.mxu1 %v5696_v47  ;;  %v9773_v22 = vmov 0.0   ;;  %3932 = vrcp.f32 %v5710_v62  ;;  %vm758_vm1 = vweird.f32 %v5710_v62 }
 0x119   :  { %9771 = vst [vmem:[#allocation168_spill] sm:$0xff] %v5686_v6  ;;  %v5716_v6 = vadd.f32 1.0, %v3931_v2  ;;  %820 = vmatmul.f32.vlgmr.msra.gmra.mxu2 %v9773_v22  ;;  %840 = vmatmul.f32.vlgmr.msrb.gmra.mxu3 %v9773_v22  ;;  %v5823_v2 = vld [vmem:[#allocation11 + $0x88] sm:$0xff] }
 0x11a   :  { %9772 = vst [vmem:[#allocation169_spill] sm:$0xff] %v5690_v48  ;;  %959 = vmatpush.msra.mxu1 %v5708_v63  ;;  %v5720_v48 = vpop.f32.mrf.mxu3  ;;  %860 = vmatmul.f32.vlgmr.msra.gmra.mxu0 %v9773_v22 }
 0x11b   :  { %9774 = vst [vmem:[#allocation170_spill] sm:$0xff] %v5720_v48  ;;  %880 = vmatmul.f32.vlgmr.msrb.gmra.mxu1 %v9773_v22  ;;  %1046 = vmatpush.msra.mxu2 %v4994_v14  ;;  %3934 = vrcp.f32 %v5716_v6  ;;  %vm773_vm5 = vweird.f32 %v5716_v6  ;;  %v5856_v22 = vld [vmem:[#allocation11 + $0x28] sm:$0xff]  ;;  %v6265_v48 = vld [vmem:[#allocation11 + $0x78] sm:$0xff] }
 0x11c   :  { %1066 = vmatpush.msrb.mxu3 %v5727_v50  ;;  %1086 = vmatpush.msra.mxu0 %v5048_v32 }
 0x11d   :  { %1106 = vmatpush.msrb.mxu1 %v5154_v7  ;;  %1047 = vmatpush.msra.mxu2 %v5002_v17  ;;  %v9778_v7 = vld [vmem:[#allocation29_spill] sm:$0xff] }
 0x11e   :  { %1067 = vmatpush.msrb.mxu3 %v5000_v15  ;;  %1087 = vmatpush.msra.mxu0 %v5072_v38  ;;  %v5740_v14 = vpop.eup %3932 }
 0x11f   :  { %1107 = vmatpush.msrb.mxu1 %v5161_v8  ;;  %1048 = vmatpush.msra.mxu2 %v5008_v20  ;;  %v754_v17 = vmul.f32 %v5740_v14, %v5710_v62  ;;  %v5767_v20 = vld [vmem:[%s9000_s1 + $0x10] sm:$0xff]  ;;  %vm759_vm2 = vweird.f32 %v5740_v14  ;;  %v9779_v8 = vld [vmem:[#allocation21_spill] sm:$0xff] }
 0x120   :  { %1068 = vmatpush.msrb.mxu3 %v5004_v18  ;;  %1088 = vmatpush.msra.mxu0 %v5082_v41  ;;  %vm5815_vm3 = vmor %vm758_vm1, %vm759_vm2 }
 0x121   :  { %1108 = vmatpush.msrb.mxu1 %v5169_v13  ;;  %1049 = vmatpush.msra.mxu2 %v5027_v25  ;;  %v5748_v15 = vpop.eup %3934  ;;  %v373_v25 = vadd.f32 %v5767_v20, %v5321_v29  ;;  %v5835_v13 = vld [vmem:[#allocation11 + $0x68] sm:$0xff] }
 0x122   :  { %v5744_v32 = vpop.f32.mrf.mxu3  ;;  %1069 = vmatpush.msrb.mxu3 %v5010_v21  ;;  %1089 = vmatpush.msra.mxu0 %v5088_v44  ;;  %v769_v18 = vmul.f32 %v5748_v15, %v5716_v6  ;;  %v755_v21 = vsub.f32 1.0, %v754_v17  ;;  %v764_v44 = vand.u32 2147483648, %v5710_v62  ;;  %vm774_vm4 = vweird.f32 %v5748_v15  ;;  %v9784_v29 = vld [vmem:[#allocation22_spill] sm:$0xff] }
 0x123   :  { %9775 = vst [vmem:[#allocation171_spill] sm:$0xff] %v5744_v32  ;;  %1109 = vmatpush.msrb.mxu1 %v5175_v16  ;;  %1050 = vmatpush.msra.mxu2 %v5038_v28  ;;  %vm5841_vm7 = vmor %vm773_vm5, %vm774_vm4  ;;  %v6255_v32 = vld [vmem:[#allocation11 + $0x98] sm:$0xff] }
 0x124   :  { %1070 = vmatpush.msrb.mxu3 %v5024_v24  ;;  %1090 = vmatpush.msra.mxu0 %v5107_v52  ;;  %v5771_v24 = vpop.f32.mrf.mxu0  ;;  %v770_v28 = vsub.f32 1.0, %v769_v18  ;;  %v756_v38 = vmul.f32 %v5740_v14, %v755_v21  ;;  %v762_v52 = vand.u32 2147483647, %v5710_v62  ;;  %v9790_v21 = vld [vmem:[#allocation32_spill] sm:$0xff] }
 0x125   :  { %1110 = vmatpush.msrb.mxu1 %v5178_v19  ;;  %1051 = vmatpush.msra.mxu2 %v5044_v31  ;;  %v9798_v19 = vld [vmem:[#allocation40_spill] sm:$0xff] }
 0x126   :  { %1071 = vmatpush.msrb.mxu3 %v5036_v27  ;;  %1091 = vmatpush.msra.mxu0 %v5116_v56  ;;  %v5780_v27 = vld [vmem:[%s9000_s1 + $0x18] sm:$0xff]  ;;  %v5805_v56 = vld [vmem:[#allocation11 + $0xa8] sm:$0xff]  ;;  %vm763_vm6 = vcmp.eq.f32.partialorder %v762_v52, 8.507059e+37 }
 0x127   :  { %1111 = vmatpush.msrb.mxu1 %v5185_v26  ;;  %1052 = vmatpush.msra.mxu2 %v5066_v37  ;;  %v734_v37 = vpop.f32.mrf.mxu1  ;;  %v9783_v26 = vld [vmem:[#allocation30_spill] sm:$0xff] }
 0x128   :  { %1072 = vmatpush.msrb.mxu3 %v5042_v30  ;;  %1092 = vmatpush.msra.mxu0 %v5122_v60 }
 0x129   :  { %1112 = vmatpush.msrb.mxu1 %v5193_v42  ;;  %1053 = vmatpush.msra.mxu2 %v5078_v40  ;;  %v374_v40 = vadd.f32 %v5780_v27, %v5410_v39  ;;  %v9786_v39 = vld [vmem:[#allocation31_spill] sm:$0xff] }
 0x12a   :  { %v714_v31 = vpop.f32.mrf.mxu3  ;;  %1073 = vmatpush.msrb.mxu3 %v5050_v33  ;;  %1093 = vmatpush.msra.mxu0 %v5129_v0  ;;  %v771_v33 = vmul.f32 %v5748_v15, %v770_v28 }
 0x12b   :  { %v739_v30 = vadd.f32 %v714_v31, %v373_v25  ;;  %1113 = vmatpush.msrb.mxu1 %v5199_v45  ;;  %1054 = vmatpush.msra.mxu2 %v5084_v43  ;;  %v5796_v43 = vld [vmem:[#allocation11 + $0xc8] sm:$0xff]  ;;  %v9791_v25 = vld [vmem:[#allocation24_spill] sm:$0xff] }
 0x12c   :  { %1074 = vmatpush.msrb.mxu3 %v5064_v36  ;;  %1094 = vmatpush.msra.mxu0 %v5138_v3  ;;  %v740_v36 = vadd.f32 %v734_v37, %v374_v40  ;;  %v5809_v60 = vpop.f32.mrf.mxu0  ;;  %v779_v3 = vand.u32 2147483648, %v5716_v6  ;;  %v5864_v31 = vld [vmem:[#allocation11 + $0x8] sm:$0xff]  ;;  %v9793_v37 = vld [vmem:[#allocation33_spill] sm:$0xff] }
 0x12d   :  { %v3864_v41 = vmul.f32 -1.442695, %v739_v30  ;;  %1114 = vmatpush.msrb.mxu1 %v5202_v46  ;;  %1055 = vmatpush.msra.mxu2 %v5102_v51  ;;  %v757_v51 = vadd.f32 %v5740_v14, %v756_v38  ;;  %v5850_v46 = vld [vmem:[#allocation11 + $0x48] sm:$0xff]  ;;  %v9792_v30 = vld [vmem:[#allocation28_spill] sm:$0xff] }
 0x12e   :  { %1075 = vmatpush.msrb.mxu3 %v5796_v43  ;;  %1095 = vmatpush.msra.mxu0 %v5148_v5  ;;  %v765_v5 = vor.u32 1.1754944e-38, %v764_v44  ;;  %v780_v62 = vor.u32 1.1754944e-38, %v779_v3 }
 0x12f   :  { %3936 = vpow2.f32 %v3864_v41  ;;  %1115 = vmatpush.msrb.mxu1 %v5209_v49  ;;  %1056 = vmatpush.msra.mxu2 %v5113_v54  ;;  %v772_v54 = vadd.f32 %v5748_v15, %v771_v33  ;;  %v9785_v49 = vld [vmem:[#allocation26_spill] sm:$0xff] }
 0x130   :  { %1076 = vmatpush.msrb.mxu3 %v5805_v56  ;;  %1096 = vmatpush.msra.mxu0 %v5163_v9  ;;  %3938 = vtanh.f32 %v740_v36  ;;  %v777_v9 = vand.u32 2147483647, %v5716_v6  ;;  %v9787_v6 = vld [vmem:[#allocation23_spill] sm:$0xff] }
 0x131   :  { %1116 = vmatpush.msrb.mxu1 %v5217_v55  ;;  %1057 = vmatpush.msra.mxu2 %v5118_v59  ;;  %v761_v59 = vsel %vm5815_vm3, %v5740_v14, %v757_v51  ;;  %v776_v42 = vsel %vm5841_vm7, %v5748_v15, %v772_v54  ;;  %v9788_v14 = vld [vmem:[#allocation27_spill] sm:$0xff] }
 0x132   :  { %1077 = vmatpush.msrb.mxu3 %v5823_v2  ;;  %1097 = vmatpush.msra.mxu0 %v5165_v12  ;;  %v9780_v12 = vld [vmem:[#allocation25_spill] sm:$0xff]  ;;  %v766_v55 = vsel %vm763_vm6, %v765_v5, %v761_v59  ;;  %vm778_vm8 = vcmp.eq.f32.partialorder %v777_v9, 8.507059e+37 }
 0x133   :  { %1117 = vmatpush.msrb.mxu1 %v9778_v7  ;;  %1058 = vmatpush.msra.mxu2 %v9779_v8  ;;  %v781_v18 = vsel %vm778_vm8, %v780_v62, %v776_v42  ;;  %v9801_v42 = vld [vmem:[#allocation43_spill] sm:$0xff]  ;;  %v9805_v62 = vld [vmem:[#allocation46_spill] sm:$0xff] }
 0x134   :  { %1078 = vmatpush.msrb.mxu3 %v5835_v13  ;;  %1098 = vmatpush.msra.mxu0 %v9780_v12  ;;  %v5860_v15 = vpop.f32.mrf.mxu0  ;;  %v799_v38 = vmul.f32 0.0, %v781_v18  ;;  %v9796_v12 = vld [vmem:[#allocation38_spill] sm:$0xff]  ;;  %v9810_v18 = vld [vmem:[#allocation53_spill] sm:$0xff] }
 0x135   :  { %v3937_v16 = vpop.eup %3936  ;;  %1118 = vmatpush.msrb.mxu1 %v9783_v26  ;;  %1059 = vmatpush.msra.mxu2 %v9784_v29  ;;  %9789 = vst [vmem:[#allocation29_spill] sm:$0xff] %v5860_v15  ;;  %v9799_v26 = vld [vmem:[#allocation41_spill] sm:$0xff]  ;;  %v9800_v29 = vld [vmem:[#allocation42_spill] sm:$0xff]  ;;  %v6285_v15 = vld [vmem:[#allocation11 + $0x38] sm:$0xff] }
 0x136   :  { %v752_v45 = vadd.f32 1.0, %v3937_v16  ;;  %1079 = vmatpush.msrb.mxu3 %v5850_v46  ;;  %1099 = vmatpush.msra.mxu0 %v9785_v49  ;;  %v3939_v17 = vpop.eup %3938  ;;  %v9797_v16 = vld [vmem:[#allocation39_spill] sm:$0xff]  ;;  %v9803_v49 = vld [vmem:[#allocation44_spill] sm:$0xff] }
 0x137   :  { %1119 = vmatpush.msrb.mxu1 %v9786_v39  ;;  %1060 = vmatpush.msra.mxu2 %v9787_v6  ;;  %v800_v28 = vmul.f32 %v3939_v17, %v766_v55  ;;  %v9804_v55 = vld [vmem:[#allocation45_spill] sm:$0xff]  ;;  %v9806_v39 = vld [vmem:[#allocation47_spill] sm:$0xff]  ;;  %v9807_v6 = vld [vmem:[#allocation48_spill] sm:$0xff] }
 0x138   :  { %3940 = vrcp.f32 %v752_v45  ;;  %1080 = vmatpush.msrb.mxu3 %v5856_v22  ;;  %1100 = vmatpush.msra.mxu0 %v9788_v14  ;;  %v794_v51 = vand.u32 2147483648, %v752_v45  ;;  %v792_v0 = vand.u32 2147483647, %v752_v45  ;;  %vm788_vm10 = vweird.f32 %v752_v45  ;;  %v9808_v14 = vld [vmem:[#allocation50_spill] sm:$0xff]  ;;  %v9809_v17 = vld [vmem:[#allocation52_spill] sm:$0xff]  ;;  %9935 = vst [vmem:[#allocation45_spill] sm:$0xff] %v6255_v32 }
 0x139   :  { %1120 = vmatpush.msrb.mxu1 %v9790_v21  ;;  %1061 = vmatpush.msra.mxu2 %v9791_v25  ;;  %v5869_v41 = vadd.f32 %v800_v28, %v799_v38  ;;  %v9811_v21 = vld [vmem:[#allocation54_spill] sm:$0xff]  ;;  %v9812_v25 = vld [vmem:[#allocation55_spill] sm:$0xff]  ;;  %v9813_v28 = vld [vmem:[#allocation56_spill] sm:$0xff]  ;;  %9938 = vst [vmem:[#allocation48_spill] sm:$0xff] %v6265_v48 }
 0x13a   :  { %1081 = vmatpush.msrb.mxu3 %v5864_v31  ;;  %1101 = vmatpush.msra.mxu0 %v9792_v30  ;;  %v795_v3 = vor.u32 1.1754944e-38, %v794_v51  ;;  %vm793_vm12 = vcmp.eq.f32.partialorder %v792_v0, 8.507059e+37  ;;  %v9814_v30 = vld [vmem:[#allocation57_spill] sm:$0xff]  ;;  %v9816_v38 = vld [vmem:[#allocation58_spill] sm:$0xff]  ;;  %v9822_v0 = vld [vmem:[#allocation64_spill] sm:$0xff]  ;;  %9944 = vst [vmem:[#allocation56_spill] sm:$0xff] %v6285_v15 }
 0x13b   :  { %1121 = vmatpush.msrb.mxu1 %v9793_v37  ;;  %3942 = vtanh.f32 %v5869_v41  ;;  %v9820_v51 = vld [vmem:[#allocation62_spill] sm:$0xff] }
 0x13c   :  { %v5871_v36 = vpop.f32.mrf.mxu0 }
 0x13d   :  { %9794 = vst [vmem:[#allocation21_spill] sm:$0xff] %v5871_v36  ;;  %v6282_v36 = vld [vmem:[#allocation11 + $0x30] sm:$0xff] }
 0x13e   :  { %v3941_v40 = vpop.eup %3940  ;;  %9943 = vst [vmem:[#allocation55_spill] sm:$0xff] %v6282_v36 }
 0x13f   :  { %v784_v33 = vmul.f32 %v3941_v40, %v752_v45  ;;  %vm789_vm9 = vweird.f32 %v3941_v40 }
 0x140   :  { %vm790_vm11 = vmor %vm788_vm10, %vm789_vm9 }
 0x141   :  { %v785_v44 = vsub.f32 1.0, %v784_v33  ;;  %v3943_v7 = vpop.eup %3942  ;;  %v9818_v33 = vld [vmem:[#allocation60_spill] sm:$0xff] }
 0x143   :  { %v786_v52 = vmul.f32 %v3941_v40, %v785_v44  ;;  %v9819_v44 = vld [vmem:[#allocation61_spill] sm:$0xff] }
 0x144   :  { %v5874_v59 = vpop.f32.mrf.mxu0 }
 0x145   :  { %v787_v54 = vadd.f32 %v3941_v40, %v786_v52  ;;  %9795 = vst [vmem:[#allocation25_spill] sm:$0xff] %v5874_v59  ;;  %v9821_v52 = vld [vmem:[#allocation63_spill] sm:$0xff]  ;;  %v6275_v59 = vld [vmem:[#allocation11 + $0x58] sm:$0xff] }
 0x146   :  { %9941 = vst [vmem:[#allocation53_spill] sm:$0xff] %v6275_v59 }
 0x147   :  { %v791_v5 = vsel %vm790_vm11, %v3941_v40, %v787_v54  ;;  %v9817_v40 = vld [vmem:[#allocation59_spill] sm:$0xff]  ;;  %v9823_v54 = vld [vmem:[#allocation65_spill] sm:$0xff] }
 0x148   :  { %v796_v8 = vsel %vm793_vm12, %v795_v3, %v791_v5  ;;  %v9824_v3 = vld [vmem:[#allocation66_spill] sm:$0xff]  ;;  %v9825_v5 = vld [vmem:[#allocation68_spill] sm:$0xff] }
 0x149   :  { %v803_v9 = vmul.f32 %v3943_v7, %v796_v8  ;;  %v5911_v7 = vld [vmem:[%s9007_s8] ss:$0 sm:$0xff]  ;;  %v9826_v8 = vld [vmem:[#allocation70_spill] sm:$0xff] }
 0x14b   :  { %900 = vmatmul.f32.vlgmr.msrb.gmra.mxu2 %v803_v9  ;;  %920 = vmatmul.f32.vlgmr.msra.gmra.mxu3 %v803_v9 }
 0x14c   :  { %940 = vmatmul.f32.vlgmr.msrb.gmra.mxu0 %v803_v9  ;;  %960 = vmatmul.f32.vlgmr.msra.gmra.mxu1 %v803_v9  ;;  %v5882_v45 = vpop.f32.mrf.mxu0 }
 0x14d   :  { %1193 = vmatpush.msrb.mxu2 %v9796_v12  ;;  %1213 = vmatpush.msra.mxu3 %v9797_v16  ;;  %9802 = vst [vmem:[#allocation30_spill] sm:$0xff] %v5882_v45  ;;  %v9828_v12 = vld [vmem:[#allocation72_spill] sm:$0xff]  ;;  %v9829_v16 = vld [vmem:[#allocation73_spill] sm:$0xff]  ;;  %v6272_v45 = vld [vmem:[#allocation11 + $0x50] sm:$0xff] }
 0x14e   :  { %1233 = vmatpush.msrb.mxu0 %v9798_v19  ;;  %1253 = vmatpush.msra.mxu1 %v9799_v26  ;;  %v9830_v19 = vld [vmem:[#allocation74_spill] sm:$0xff]  ;;  %v9831_v26 = vld [vmem:[#allocation75_spill] sm:$0xff]  ;;  %9940 = vst [vmem:[#allocation52_spill] sm:$0xff] %v6272_v45 }
 0x14f   :  { %1194 = vmatpush.msrb.mxu2 %v9800_v29  ;;  %1214 = vmatpush.msra.mxu3 %v9801_v42  ;;  %v9832_v42 = vld [vmem:[#allocation76_spill] sm:$0xff] }
 0x150   :  { %1234 = vmatpush.msrb.mxu0 %v9803_v49  ;;  %1254 = vmatpush.msra.mxu1 %v9804_v55  ;;  %v9833_v49 = vld [vmem:[#allocation77_spill] sm:$0xff] }
 0x151   :  { %1195 = vmatpush.msrb.mxu2 %v9805_v62  ;;  %1215 = vmatpush.msra.mxu3 %v9806_v39  ;;  %v9834_v62 = vld [vmem:[#allocation79_spill] sm:$0xff]  ;;  %v9835_v39 = vld [vmem:[#allocation80_spill] sm:$0xff] }
 0x152   :  { %1235 = vmatpush.msrb.mxu0 %v9807_v6  ;;  %1255 = vmatpush.msra.mxu1 %v9808_v14  ;;  %v9836_v6 = vld [vmem:[#allocation81_spill] sm:$0xff]  ;;  %v9837_v14 = vld [vmem:[#allocation82_spill] sm:$0xff] }
 0x153   :  { %1062 = vmatmul.f32.vlgmr.msra.gmra.mxu2 %v803_v9  ;;  %1082 = vmatmul.f32.vlgmr.msrb.gmra.mxu3 %v803_v9 }
 0x154   :  { %1102 = vmatmul.f32.vlgmr.msra.gmra.mxu0 %v803_v9  ;;  %1122 = vmatmul.f32.vlgmr.msrb.gmra.mxu1 %v803_v9  ;;  %v5896_v37 = vpop.f32.mrf.mxu0  ;;  %v9827_v9 = vld [vmem:[#allocation71_spill] sm:$0xff] }
 0x155   :  { %1196 = vmatpush.msrb.mxu2 %v9809_v17  ;;  %1216 = vmatpush.msra.mxu3 %v9810_v18  ;;  %9815 = vst [vmem:[#allocation22_spill] sm:$0xff] %v5896_v37  ;;  %v9838_v17 = vld [vmem:[#allocation83_spill] sm:$0xff]  ;;  %v9839_v18 = vld [vmem:[#allocation84_spill] sm:$0xff] }
 0x156   :  { %1236 = vmatpush.msrb.mxu0 %v9811_v21  ;;  %1256 = vmatpush.msra.mxu1 %v9812_v25  ;;  %v9840_v21 = vld [vmem:[#allocation85_spill] sm:$0xff]  ;;  %v9841_v25 = vld [vmem:[#allocation86_spill] sm:$0xff]  ;;  %v6262_v37 = vld [vmem:[#allocation11 + $0x70] sm:$0xff] }
 0x157   :  { %1197 = vmatpush.msrb.mxu2 %v9813_v28  ;;  %1217 = vmatpush.msra.mxu3 %v9814_v30  ;;  %v9842_v28 = vld [vmem:[#allocation88_spill] sm:$0xff]  ;;  %v9843_v30 = vld [vmem:[#allocation89_spill] sm:$0xff]  ;;  %9937 = vst [vmem:[#allocation47_spill] sm:$0xff] %v6262_v37 }
 0x158   :  { %1237 = vmatpush.msrb.mxu0 %v9816_v38  ;;  %1257 = vmatpush.msra.mxu1 %v9817_v40  ;;  %v9844_v38 = vld [vmem:[#allocation90_spill] sm:$0xff]  ;;  %v9845_v40 = vld [vmem:[#allocation91_spill] sm:$0xff] }
 0x159   :  { %1198 = vmatpush.msrb.mxu2 %v9818_v33  ;;  %1218 = vmatpush.msra.mxu3 %v9819_v44  ;;  %v9846_v33 = vld [vmem:[#allocation92_spill] sm:$0xff]  ;;  %v9847_v44 = vld [vmem:[#allocation93_spill] sm:$0xff] }
 0x15a   :  { %1238 = vmatpush.msrb.mxu0 %v9820_v51  ;;  %1258 = vmatpush.msra.mxu1 %v9821_v52  ;;  %v9848_v52 = vld [vmem:[#allocation94_spill] sm:$0xff] }
 0x15b   :  { %1199 = vmatpush.msrb.mxu2 %v9822_v0  ;;  %1219 = vmatpush.msra.mxu3 %v9823_v54  ;;  %v9849_v0 = vld [vmem:[#allocation95_spill] sm:$0xff] }
 0x15c   :  { %1239 = vmatpush.msrb.mxu0 %v9824_v3  ;;  %1259 = vmatpush.msra.mxu1 %v9825_v5  ;;  %v343_v29 = vpop.f32.mrf.mxu0  ;;  %v9850_v3 = vld [vmem:[#allocation96_spill] sm:$0xff]  ;;  %v9851_v5 = vld [vmem:[#allocation97_spill] sm:$0xff] }
 0x15d   :  { %1200 = vmatpush.msrb.mxu2 %v9826_v8  ;;  %1220 = vmatpush.msra.mxu3 %v9827_v9  ;;  %v439_v55 = vadd.f32 %v5911_v7, %v343_v29  ;;  %v9852_v8 = vld [vmem:[#allocation98_spill] sm:$0xff]  ;;  %v9853_v9 = vld [vmem:[#allocation99_spill] sm:$0xff] }
 0x15e   :  { %1240 = vmatpush.msrb.mxu0 %v9828_v12  ;;  %1260 = vmatpush.msra.mxu1 %v9829_v16  ;;  %v9854_v12 = vld [vmem:[#allocation101_spill] sm:$0xff]  ;;  %v9855_v16 = vld [vmem:[#allocation102_spill] sm:$0xff] }
 0x15f   :  { %1201 = vmatpush.msrb.mxu2 %v9830_v19  ;;  %1221 = vmatpush.msra.mxu3 %v9831_v26  ;;  %448 = vst.msk [vmem:[#allocation16] sm:$0xff] %vm447_vm13, %v439_v55  ;;  %v9856_v19 = vld [vmem:[#allocation103_spill] sm:$0xff]  ;;  %v9857_v26 = vld [vmem:[#allocation105_spill] sm:$0xff]  ;;  %v9858_v29 = vld [vmem:[#allocation106_spill] sm:$0xff] }
 0x160   :  { %1241 = vmatpush.msrb.mxu0 %v9832_v42  ;;  %1261 = vmatpush.msra.mxu1 %v9833_v49  ;;  %v9859_v42 = vld [vmem:[#allocation107_spill] sm:$0xff]  ;;  %v9860_v49 = vld [vmem:[#allocation109_spill] sm:$0xff]  ;;  %v9861_v55 = vld [vmem:[#allocation110_spill] sm:$0xff] }
 0x161   :  { %1202 = vmatpush.msrb.mxu2 %v9834_v62  ;;  %1222 = vmatpush.msra.mxu3 %v9835_v39  ;;  %v9862_v62 = vld [vmem:[#allocation111_spill] sm:$0xff]  ;;  %v9863_v39 = vld [vmem:[#allocation112_spill] sm:$0xff] }
 0x162   :  { %1242 = vmatpush.msrb.mxu0 %v9836_v6  ;;  %1262 = vmatpush.msra.mxu1 %v9837_v14  ;;  %v9864_v14 = vld [vmem:[#allocation113_spill] sm:$0xff] }
 0x163   :  { %1203 = vmatpush.msrb.mxu2 %v9838_v17  ;;  %1223 = vmatpush.msra.mxu3 %v9839_v18  ;;  %v9865_v17 = vld [vmem:[#allocation114_spill] sm:$0xff] }
 0x164   :  { %1243 = vmatpush.msrb.mxu0 %v9840_v21  ;;  %1263 = vmatpush.msra.mxu1 %v9841_v25  ;;  %v346_v51 = vpop.f32.mrf.mxu0  ;;  %v9866_v21 = vld [vmem:[#allocation115_spill] sm:$0xff]  ;;  %v9867_v25 = vld [vmem:[#allocation116_spill] sm:$0xff] }
 0x165   :  { %1204 = vmatpush.msrb.mxu2 %v9842_v28  ;;  %1224 = vmatpush.msra.mxu3 %v9843_v30  ;;  %v440_v54 = vadd.f32 %v5911_v7, %v346_v51  ;;  %v9868_v28 = vld [vmem:[#allocation117_spill] sm:$0xff]  ;;  %v9869_v30 = vld [vmem:[#allocation118_spill] sm:$0xff] }
 0x166   :  { %1244 = vmatpush.msrb.mxu0 %v9844_v38  ;;  %1264 = vmatpush.msra.mxu1 %v9845_v40  ;;  %v9870_v38 = vld [vmem:[#allocation119_spill] sm:$0xff]  ;;  %v9871_v40 = vld [vmem:[#allocation120_spill] sm:$0xff]  ;;  %v9874_v51 = vld [vmem:[#allocation125_spill] sm:$0xff] }
 0x167   :  { %1205 = vmatpush.msrb.mxu2 %v9846_v33  ;;  %1225 = vmatpush.msra.mxu3 %v9847_v44  ;;  %449 = vst.msk [vmem:[#allocation16 + $0x8] sm:$0xff] %vm447_vm13, %v440_v54  ;;  %v9872_v33 = vld [vmem:[#allocation122_spill] sm:$0xff]  ;;  %v9873_v44 = vld [vmem:[#allocation123_spill] sm:$0xff]  ;;  %v9877_v54 = vld [vmem:[#allocation129_spill] sm:$0xff] }
 0x168   :  { %1245 = vmatpush.msrb.mxu0 %v9848_v52  ;;  %1265 = vmatpush.msra.mxu1 %v9849_v0  ;;  %v9875_v52 = vld [vmem:[#allocation126_spill] sm:$0xff]  ;;  %v9876_v0 = vld [vmem:[#allocation128_spill] sm:$0xff] }
 0x169   :  { %1206 = vmatpush.msrb.mxu2 %v9850_v3  ;;  %1226 = vmatpush.msra.mxu3 %v9851_v5  ;;  %v9878_v3 = vld [vmem:[#allocation130_spill] sm:$0xff]  ;;  %v9879_v5 = vld [vmem:[#allocation131_spill] sm:$0xff] }
 0x16a   :  { %1246 = vmatpush.msrb.mxu0 %v9852_v8  ;;  %1266 = vmatpush.msra.mxu1 %v9853_v9  ;;  %v9880_v9 = vld [vmem:[#allocation132_spill] sm:$0xff] }
 0x16b   :  { %1207 = vmatpush.msrb.mxu2 %v9854_v12  ;;  %1227 = vmatpush.msra.mxu3 %v9855_v16  ;;  %v9881_v12 = vld [vmem:[#allocation134_spill] sm:$0xff] }
 0x16c   :  { %1247 = vmatpush.msrb.mxu0 %v9856_v19  ;;  %1267 = vmatpush.msra.mxu1 %v9857_v26  ;;  %v349_v6 = vpop.f32.mrf.mxu0  ;;  %v9882_v19 = vld [vmem:[#allocation135_spill] sm:$0xff]  ;;  %v9883_v26 = vld [vmem:[#allocation136_spill] sm:$0xff] }
 0x16d   :  { %1208 = vmatpush.msrb.mxu2 %v9858_v29  ;;  %1228 = vmatpush.msra.mxu3 %v9859_v42  ;;  %v441_v18 = vadd.f32 %v5911_v7, %v349_v6  ;;  %v9884_v29 = vld [vmem:[#allocation137_spill] sm:$0xff]  ;;  %v9885_v42 = vld [vmem:[#allocation138_spill] sm:$0xff] }
 0x16e   :  { %1248 = vmatpush.msrb.mxu0 %v9860_v49  ;;  %1268 = vmatpush.msra.mxu1 %v9861_v55  ;;  %v9886_v49 = vld [vmem:[#allocation139_spill] sm:$0xff]  ;;  %v9887_v55 = vld [vmem:[#allocation141_spill] sm:$0xff] }
 0x16f   :  { %1273 = vmatpush.msra.mxu2 %v9862_v62  ;;  %1293 = vmatpush.msrb.mxu3 %v9863_v39  ;;  %450 = vst.msk [vmem:[#allocation16 + $0x10] sm:$0xff] %vm447_vm13, %v441_v18  ;;  %v9888_v62 = vld [vmem:[#allocation142_spill] sm:$0xff]  ;;  %v9889_v39 = vld [vmem:[#allocation144_spill] sm:$0xff]  ;;  %v9890_v6 = vld [vmem:[#allocation145_spill] sm:$0xff] }
 0x170   :  { %1313 = vmatpush.msra.mxu0 %v9864_v14  ;;  %1333 = vmatpush.msrb.mxu1 %v9865_v17  ;;  %v9891_v14 = vld [vmem:[#allocation146_spill] sm:$0xff]  ;;  %v9892_v17 = vld [vmem:[#allocation147_spill] sm:$0xff] }
 0x171   :  { %1274 = vmatpush.msra.mxu2 %v9866_v21  ;;  %1294 = vmatpush.msrb.mxu3 %v9867_v25  ;;  %v9895_v25 = vld [vmem:[#allocation150_spill] sm:$0xff] }
 0x172   :  { %1314 = vmatpush.msra.mxu0 %v9868_v28  ;;  %1334 = vmatpush.msrb.mxu1 %v9869_v30  ;;  %v9897_v28 = vld [vmem:[#allocation153_spill] sm:$0xff]  ;;  %v9900_v30 = vld [vmem:[#allocation156_spill] sm:$0xff] }
 0x173   :  { %1275 = vmatpush.msra.mxu2 %v9870_v38  ;;  %1295 = vmatpush.msrb.mxu3 %v9871_v40  ;;  %v9901_v38 = vld [vmem:[#allocation157_spill] sm:$0xff]  ;;  %v9902_v40 = vld [vmem:[#allocation158_spill] sm:$0xff] }
 0x174   :  { %1315 = vmatpush.msra.mxu0 %v9872_v33  ;;  %1335 = vmatpush.msrb.mxu1 %v9873_v44  ;;  %v352_v8 = vpop.f32.mrf.mxu0  ;;  %v9904_v33 = vld [vmem:[#allocation160_spill] sm:$0xff] }
 0x175   :  { %1276 = vmatpush.msra.mxu2 %v9874_v51  ;;  %1296 = vmatpush.msrb.mxu3 %v9875_v52  ;;  %v442_v16 = vadd.f32 %v5911_v7, %v352_v8  ;;  %v9905_v51 = vld [vmem:[#allocation161_spill] sm:$0xff]  ;;  %v9911_v8 = vld [vmem:[#allocation168_spill] sm:$0xff] }
 0x176   :  { %1316 = vmatpush.msra.mxu0 %v9876_v0  ;;  %1336 = vmatpush.msrb.mxu1 %v9877_v54  ;;  %v9907_v0 = vld [vmem:[#allocation163_spill] sm:$0xff]  ;;  %v9908_v54 = vld [vmem:[#allocation164_spill] sm:$0xff] }
 0x177   :  { %1277 = vmatpush.msra.mxu2 %v9878_v3  ;;  %1297 = vmatpush.msrb.mxu3 %v9879_v5  ;;  %451 = vst.msk [vmem:[#allocation16 + $0x18] sm:$0xff] %vm447_vm13, %v442_v16  ;;  %v9909_v3 = vld [vmem:[#allocation165_spill] sm:$0xff]  ;;  %v9910_v5 = vld [vmem:[#allocation167_spill] sm:$0xff] }
 0x178   :  { %1317 = vmatpush.msra.mxu0 %v9880_v9  ;;  %1337 = vmatpush.msrb.mxu1 %v9881_v12  ;;  %v9912_v9 = vld [vmem:[#allocation169_spill] sm:$0xff] }
 0x179   :  { %1278 = vmatpush.msra.mxu2 %v9882_v19  ;;  %1298 = vmatpush.msrb.mxu3 %v9883_v26 }
 0x17a   :  { %1318 = vmatpush.msra.mxu0 %v9884_v29  ;;  %1338 = vmatpush.msrb.mxu1 %v9885_v42 }
 0x17b   :  { %1279 = vmatpush.msra.mxu2 %v9886_v49  ;;  %1299 = vmatpush.msrb.mxu3 %v9887_v55 }
 0x17c   :  { %1319 = vmatpush.msra.mxu0 %v9888_v62  ;;  %1339 = vmatpush.msrb.mxu1 %v5590_v58  ;;  %v355_v18 = vpop.f32.mrf.mxu0  ;;  %v9893_v58 = vld [vmem:[#allocation148_spill] sm:$0xff] }
 0x17d   :  { %1280 = vmatpush.msra.mxu2 %v5592_v1  ;;  %1300 = vmatpush.msrb.mxu3 %v9889_v39  ;;  %v443_v21 = vadd.f32 %v5911_v7, %v355_v18  ;;  %v9894_v1 = vld [vmem:[#allocation149_spill] sm:$0xff]  ;;  %v9916_v18 = vld [vmem:[#allocation78_spill] sm:$0xff] }
 0x17e   :  { %1320 = vmatpush.msra.mxu0 %v9890_v6  ;;  %1340 = vmatpush.msrb.mxu1 %v5602_v61  ;;  %v9896_v61 = vld [vmem:[#allocation152_spill] sm:$0xff] }
 0x17f   :  { %1281 = vmatpush.msra.mxu2 %v9891_v14  ;;  %1301 = vmatpush.msrb.mxu3 %v9892_v17  ;;  %452 = vst.msk [vmem:[#allocation16 + $0x20] sm:$0xff] %vm447_vm13, %v443_v21  ;;  %v377_v21 = vadd.f32 %v5767_v20, %v9916_v18 }
 0x180   :  { %1321 = vmatpush.msra.mxu0 %v5614_v23  ;;  %1341 = vmatpush.msrb.mxu1 %v5616_v10  ;;  %v9898_v23 = vld [vmem:[#allocation154_spill] sm:$0xff]  ;;  %v9899_v10 = vld [vmem:[#allocation155_spill] sm:$0xff] }
 0x181   :  { %1282 = vmatpush.msra.mxu2 %v9893_v58  ;;  %1302 = vmatpush.msrb.mxu3 %v9894_v1 }
 0x182   :  { %1322 = vmatpush.msra.mxu0 %v5627_v11  ;;  %1342 = vmatpush.msrb.mxu1 %v9895_v25  ;;  %v9903_v11 = vld [vmem:[#allocation159_spill] sm:$0xff] }
 0x183   :  { %1283 = vmatpush.msra.mxu2 %v9896_v61  ;;  %1303 = vmatpush.msrb.mxu3 %v5637_v4  ;;  %v9906_v4 = vld [vmem:[#allocation162_spill] sm:$0xff] }
 0x184   :  { %1323 = vmatpush.msra.mxu0 %v9897_v28  ;;  %1343 = vmatpush.msrb.mxu1 %v9898_v23  ;;  %v358_v44 = vpop.f32.mrf.mxu0 }
 0x185   :  { %1284 = vmatpush.msra.mxu2 %v9899_v10  ;;  %1304 = vmatpush.msrb.mxu3 %v9900_v30  ;;  %v444_v52 = vadd.f32 %v5911_v7, %v358_v44  ;;  %v9917_v10 = vld [vmem:[#allocation35_spill] sm:$0xff] }
 0x186   :  { %1324 = vmatpush.msra.mxu0 %v9901_v38  ;;  %1344 = vmatpush.msrb.mxu1 %v9902_v40  ;;  %v9918_v30 = vld [vmem:[#allocation143_spill] sm:$0xff]  ;;  %v9919_v40 = vld [vmem:[#allocation133_spill] sm:$0xff] }
 0x187   :  { %1285 = vmatpush.msra.mxu2 %v9903_v11  ;;  %1305 = vmatpush.msrb.mxu3 %v9904_v33  ;;  %453 = vst.msk [vmem:[#allocation16 + $0x28] sm:$0xff] %vm447_vm13, %v444_v52  ;;  %v376_v38 = vadd.f32 %v9918_v30, %v9917_v10  ;;  %v375_v11 = vadd.f32 %v9919_v40, %v5771_v24 }
 0x188   :  { %1325 = vmatpush.msra.mxu0 %v9905_v51  ;;  %1345 = vmatpush.msrb.mxu1 %v9906_v4 }
 0x189   :  { %1286 = vmatpush.msra.mxu2 %v9907_v0  ;;  %1306 = vmatpush.msrb.mxu3 %v9908_v54 }
 0x18a   :  { %1326 = vmatpush.msra.mxu0 %v9909_v3  ;;  %1346 = vmatpush.msrb.mxu1 %v9910_v5 }
 0x18b   :  { %1287 = vmatpush.msra.mxu2 %v9911_v8  ;;  %1307 = vmatpush.msrb.mxu3 %v9912_v9 }
 0x18c   :  { %1327 = vmatpush.msra.mxu0 %v5692_v57  ;;  %1347 = vmatpush.msrb.mxu1 %v5696_v47  ;;  %v361_v12 = vpop.f32.mrf.mxu0  ;;  %v648_v47 = vld [vmem:[%s9005_s6] sm:$0xf] }
 0x18d   :  { %1288 = vmatpush.msra.mxu2 %v5698_v35  ;;  %1308 = vmatpush.msrb.mxu3 %v5702_v53  ;;  %v445_v16 = vadd.f32 %v5911_v7, %v361_v12  ;;  %v6035_v49 = vperm.slane %v648_v47, 0  ;;  %v6037_v55 = vperm.slane %v648_v47, 1 }
 0x18e   :  { %1328 = vmatpush.msra.mxu0 %v5704_v34  ;;  %1348 = vmatpush.msrb.mxu1 %v5708_v63  ;;  %v6032_v34 = vperm.slane %v648_v47, 2 }
 0x18f   :  { %454 = vst.msk [vmem:[#allocation16 + $0x30] sm:$0xff] %vm447_vm13, %v445_v16 }
 0x190   :  { %9913 = vst [vmem:[#allocation26_spill] sm:$0xff] %v6032_v34 }
 0x191   :  { %9914 = vst [vmem:[#allocation31_spill] sm:$0xff] %v6035_v49 }
 0x192   :  { %9915 = vst [vmem:[#allocation23_spill] sm:$0xff] %v6037_v55 }
 0x194   :  { %v364_v19 = vpop.f32.mrf.mxu0 }
 0x195   :  { %v446_v26 = vadd.f32 %v5911_v7, %v364_v19  ;;  %v6050_v19 = vperm.slane %v648_v47, 3 }
 0x197   :  { %455 = vst.msk [vmem:[#allocation16 + $0x38] sm:$0xff] %vm447_vm13, %v446_v26 }
 0x198   :  { %v881_v6 = vpop.f32.mrf.mxu1  ;;  %9920 = vst [vmem:[#allocation27_spill] sm:$0xff] %v6050_v19 }
 0x19c   :  { %v861_v57 = vpop.f32.mrf.mxu0  ;;  %v821_v35 = vpop.f32.mrf.mxu2 }
 0x19d   :  { %v841_v53 = vpop.f32.mrf.mxu3 }
 0x1c9   :  { %v941_v63 = vpop.f32.mrf.mxu0  ;;  %v961_v54 = vpop.f32.mrf.mxu1 }
 0x1ca   :  { %v942_v29 = vadd.f32 %v941_v63, %v861_v57  ;;  %v962_v16 = vadd.f32 %v961_v54, %v881_v6 }
 0x1cc   :  { %v975_v42 = vadd.f32 %v6032_v34, %v942_v29  ;;  %v976_v63 = vadd.f32 %v6050_v19, %v962_v16 }
 0x1ce   :  { %v3867_v7 = vmul.f32 -1.442695, %v975_v42  ;;  %v901_v62 = vpop.f32.mrf.mxu2  ;;  %v921_v39 = vpop.f32.mrf.mxu3 }
 0x1cf   :  { %v902_v14 = vadd.f32 %v901_v62, %v821_v35  ;;  %v922_v17 = vadd.f32 %v921_v39, %v841_v53  ;;  %v9921_v39 = vld [vmem:[#allocation104_spill] sm:$0xff] }
 0x1d0   :  { %3944 = vpow2.f32 %v3867_v7  ;;  %v378_v6 = vadd.f32 %v5780_v27, %v9921_v39 }
 0x1d1   :  { %v973_v58 = vadd.f32 %v6035_v49, %v902_v14  ;;  %v974_v1 = vadd.f32 %v6037_v55, %v922_v17  ;;  %v1103_v25 = vpop.f32.mrf.mxu0  ;;  %v1123_v29 = vpop.f32.mrf.mxu1 }
 0x1d2   :  { %v1128_v61 = vadd.f32 %v1103_v25, %v377_v21 }
 0x1d3   :  { %v3865_v28 = vmul.f32 -1.442695, %v973_v58  ;;  %v3866_v23 = vmul.f32 -1.442695, %v974_v1  ;;  %v1129_v58 = vadd.f32 %v1123_v29, %v378_v6 }
 0x1d4   :  { %v3870_v33 = vmul.f32 -1.442695, %v1128_v61 }
 0x1d5   :  { %3946 = vpow2.f32 %v3865_v28 }
 0x1d6   :  { %v3945_v44 = vpop.eup %3944  ;;  %3948 = vpow2.f32 %v3866_v23  ;;  %v1063_v20 = vpop.f32.mrf.mxu2 }
 0x1d7   :  { %v1083_v51 = vpop.f32.mrf.mxu3  ;;  %v6047_v4 = vadd.f32 1.0, %v3945_v44  ;;  %v1126_v52 = vadd.f32 %v1063_v20, %v375_v11  ;;  %3950 = vpow2.f32 %v3870_v33 }
 0x1d8   :  { %v1127_v0 = vadd.f32 %v1083_v51, %v376_v38 }
 0x1d9   :  { %v3868_v3 = vmul.f32 -1.442695, %v1126_v52  ;;  %3952 = vrcp.f32 %v6047_v4  ;;  %v1030_v11 = vand.u32 2147483648, %v6047_v4  ;;  %vm1024_vm4 = vweird.f32 %v6047_v4 }
 0x1da   :  { %v3869_v5 = vmul.f32 -1.442695, %v1127_v0 }
 0x1db   :  { %v3947_v8 = vpop.eup %3946  ;;  %3954 = vpow2.f32 %v3868_v3 }
 0x1dc   :  { %v3949_v9 = vpop.eup %3948  ;;  %v986_v24 = vadd.f32 1.0, %v3947_v8  ;;  %3956 = vpow2.f32 %v3869_v5 }
 0x1dd   :  { %v987_v12 = vadd.f32 1.0, %v3949_v9  ;;  %v3951_v26 = vpop.eup %3950 }
 0x1de   :  { %3958 = vrcp.f32 %v986_v24  ;;  %v6061_v47 = vadd.f32 1.0, %v3951_v26  ;;  %v998_v25 = vand.u32 2147483647, %v986_v24  ;;  %v1000_v61 = vand.u32 2147483648, %v986_v24 }
 0x1df   :  { %3960 = vrcp.f32 %v987_v12  ;;  %v6052_v57 = vpop.eup %3952  ;;  %v1013_v23 = vand.u32 2147483647, %v987_v12  ;;  %v1015_v30 = vand.u32 2147483648, %v987_v12  ;;  %vm994_vm0 = vweird.f32 %v986_v24 }
 0x1e0   :  { %v1020_v17 = vmul.f32 %v6052_v57, %v6047_v4  ;;  %vm1009_vm1 = vweird.f32 %v987_v12  ;;  %vm999_vm3 = vcmp.eq.f32.partialorder %v998_v25, 8.507059e+37  ;;  %v1001_v20 = vor.u32 1.1754944e-38, %v1000_v61 }
 0x1e1   :  { %v3955_v35 = vpop.eup %3954  ;;  %vm1014_vm6 = vcmp.eq.f32.partialorder %v1013_v23, 8.507059e+37  ;;  %v1016_v5 = vor.u32 1.1754944e-38, %v1015_v30  ;;  %vm1025_vm12 = vweird.f32 %v6052_v57  ;;  %v1028_v30 = vand.u32 2147483647, %v6047_v4 }
 0x1e2   :  { %v3957_v53 = vpop.eup %3956  ;;  %v6055_v42 = vadd.f32 1.0, %v3955_v35  ;;  %v1021_v27 = vsub.f32 1.0, %v1020_v17 }
 0x1e3   :  { %v6057_v7 = vadd.f32 1.0, %v3957_v53 }
 0x1e4   :  { %v3959_v62 = vpop.eup %3958  ;;  %3962 = vrcp.f32 %v6055_v42  ;;  %v1022_v54 = vmul.f32 %v6052_v57, %v1021_v27  ;;  %v1151_v53 = vand.u32 2147483647, %v6055_v42  ;;  %vm1147_vm8 = vweird.f32 %v6055_v42 }
 0x1e5   :  { %v3961_v14 = vpop.eup %3960  ;;  %v990_v18 = vmul.f32 %v3959_v62, %v986_v24  ;;  %3964 = vtanh.f32 %v976_v63  ;;  %vm995_vm14 = vweird.f32 %v3959_v62  ;;  %v1153_v63 = vand.u32 2147483648, %v6055_v42 }
 0x1e6   :  { %v1005_v21 = vmul.f32 %v3961_v14, %v987_v12  ;;  %3966 = vrcp.f32 %v6057_v7  ;;  %vm1010_vm15 = vweird.f32 %v3961_v14  ;;  %vm996_vm2 = vmor %vm994_vm0, %vm995_vm14  ;;  %vm1162_vm11 = vweird.f32 %v6057_v7 }
 0x1e7   :  { %v991_v1 = vsub.f32 1.0, %v990_v18  ;;  %3968 = vrcp.f32 %v6061_v47  ;;  %vm1011_vm5 = vmor %vm1009_vm1, %vm1010_vm15  ;;  %v1168_v18 = vand.u32 2147483648, %v6057_v7  ;;  %v1154_v25 = vor.u32 1.1754944e-38, %v1153_v63  ;;  %v6141_v63 = vld [vmem:[#allocation11 + $0x1a8] sm:$0xff] }
 0x1e8   :  { %v1006_v28 = vsub.f32 1.0, %v1005_v21  ;;  %3970 = vtanh.f32 %v1129_v58  ;;  %v1023_v61 = vadd.f32 %v6052_v57, %v1022_v54  ;;  %vm1152_vm14 = vcmp.eq.f32.partialorder %v1151_v53, 8.507059e+37  ;;  %vm1026_vm1 = vmor %vm1024_vm4, %vm1025_vm12  ;;  %v6135_v53 = vld [vmem:[#allocation11 + $0x1d8] sm:$0xff] }
 0x1e9   :  { %v992_v10 = vmul.f32 %v3959_v62, %v991_v1  ;;  %vm1177_vm4 = vweird.f32 %v6061_v47 }
 0x1ea   :  { %v1007_v38 = vmul.f32 %v3961_v14, %v1006_v28  ;;  %v3963_v40 = vpop.eup %3962 }
 0x1eb   :  { %v993_v33 = vadd.f32 %v3959_v62, %v992_v10  ;;  %v3965_v44 = vpop.eup %3964  ;;  %v1143_v52 = vmul.f32 %v3963_v40, %v6055_v42  ;;  %vm1148_vm7 = vweird.f32 %v3963_v40  ;;  %v1169_v10 = vor.u32 1.1754944e-38, %v1168_v18  ;;  %v6158_v18 = vld [vmem:[#allocation11 + $0x190] sm:$0xff] }
 0x1ec   :  { %v1008_v51 = vadd.f32 %v3961_v14, %v1007_v38  ;;  %v3967_v0 = vpop.eup %3966  ;;  %vm1149_vm10 = vmor %vm1147_vm8, %vm1148_vm7 }
 0x1ed   :  { %v997_v3 = vsel %vm996_vm2, %v3959_v62, %v993_v33  ;;  %v6073_v8 = vpop.eup %3968  ;;  %v1144_v12 = vsub.f32 1.0, %v1143_v52  ;;  %v1158_v16 = vmul.f32 %v3967_v0, %v6057_v7  ;;  %vm1163_vm9 = vweird.f32 %v3967_v0 }
 0x1ee   :  { %v1002_v9 = vsel %vm999_vm3, %v1001_v20, %v997_v3  ;;  %v1012_v24 = vsel %vm1011_vm5, %v3961_v14, %v1008_v51  ;;  %v3971_v29 = vpop.eup %3970  ;;  %v1173_v17 = vmul.f32 %v6073_v8, %v6061_v47  ;;  %v1166_v14 = vand.u32 2147483647, %v6057_v7  ;;  %vm1164_vm15 = vmor %vm1162_vm11, %vm1163_vm9 }
 0x1ef   :  { %v1036_v26 = vmul.f32 %v3965_v44, %v1002_v9  ;;  %v1017_v35 = vsel %vm1014_vm6, %v1016_v5, %v1012_v24  ;;  %v1145_v62 = vmul.f32 %v3963_v40, %v1144_v12  ;;  %v1159_v6 = vsub.f32 1.0, %v1158_v16  ;;  %v6117_v9 = vld [vmem:[#allocation11 + $0x1f0] sm:$0xff]  ;;  %v6120_v24 = vld [vmem:[#allocation11 + $0x1f8] sm:$0xff]  ;;  %v6126_v12 = vld [vmem:[#allocation11 + $0x1c0] sm:$0xff] }
 0x1f0   :  { %v1035_v39 = vmul.f32 0.0, %v1017_v35  ;;  %v1174_v23 = vsub.f32 1.0, %v1173_v17  ;;  %vm1167_vm0 = vcmp.eq.f32.partialorder %v1166_v14, 8.507059e+37  ;;  %v1027_v44 = vsel %vm1026_vm1, %v6052_v57, %v1023_v61  ;;  %v6132_v35 = vld [vmem:[#allocation11 + $0x1d0] sm:$0xff]  ;;  %v6152_v17 = vld [vmem:[#allocation11 + $0x180] sm:$0xff]  ;;  %v6155_v14 = vld [vmem:[#allocation11 + $0x188] sm:$0xff] }
 0x1f1   :  { %v1146_v21 = vadd.f32 %v3963_v40, %v1145_v62  ;;  %v1160_v58 = vmul.f32 %v3967_v0, %v1159_v6  ;;  %v1031_v20 = vor.u32 1.1754944e-38, %v1030_v11  ;;  %vm1029_vm2 = vcmp.eq.f32.partialorder %v1028_v30, 8.507059e+37  ;;  %v6109_v11 = vld [vmem:[#allocation11 + $0x1e0] sm:$0xff]  ;;  %v6147_v62 = vld [vmem:[#allocation11 + $0x1b8] sm:$0xff]  ;;  %v6174_v61 = vld [vmem:[#allocation11 + $0x170] sm:$0xff] }
 0x1f2   :  { %v6083_v1 = vadd.f32 %v1036_v26, %v1035_v39  ;;  %v1175_v51 = vmul.f32 %v6073_v8, %v1174_v23  ;;  %vm1178_vm3 = vweird.f32 %v6073_v8  ;;  %v1181_v57 = vand.u32 2147483647, %v6061_v47  ;;  %v6144_v39 = vld [vmem:[#allocation11 + $0x1b0] sm:$0xff]  ;;  %v6183_v23 = vld [vmem:[#allocation11 + $0x148] sm:$0xff]  ;;  %v6192_v30 = vld [vmem:[#allocation11 + $0x120] sm:$0xff] }
 0x1f3   :  { %v1150_v28 = vsel %vm1149_vm10, %v3963_v40, %v1146_v21  ;;  %v1161_v42 = vadd.f32 %v3967_v0, %v1160_v58  ;;  %v1032_v3 = vsel %vm1029_vm2, %v1031_v20, %v1027_v44  ;;  %vm6113_vm5 = vmor %vm1177_vm4, %vm1178_vm3  ;;  %v6161_v21 = vld [vmem:[#allocation11 + $0x198] sm:$0xff]  ;;  %v6168_v58 = vld [vmem:[#allocation11 + $0x160] sm:$0xff] }
 0x1f4   :  { %3972 = vtanh.f32 %v6083_v1  ;;  %v1155_v27 = vsel %vm1152_vm14, %v1154_v25, %v1150_v28  ;;  %v1176_v4 = vadd.f32 %v6073_v8, %v1175_v51  ;;  %vm1182_vm6 = vcmp.eq.f32.partialorder %v1181_v57, 8.507059e+37  ;;  %v6171_v25 = vld [vmem:[#allocation11 + $0x168] sm:$0xff]  ;;  %v6177_v28 = vld [vmem:[#allocation11 + $0x178] sm:$0xff]  ;;  %v6204_v44 = vld [vmem:[#allocation11 + $0x100] sm:$0xff] }
 0x1f5   :  { %v1189_v38 = vmul.f32 %v3971_v29, %v1155_v27  ;;  %v1165_v33 = vsel %vm1164_vm15, %v3967_v0, %v1161_v42  ;;  %v6180_v42 = vld [vmem:[#allocation11 + $0x140] sm:$0xff]  ;;  %v6186_v27 = vld [vmem:[#allocation11 + $0x150] sm:$0xff]  ;;  %v6213_v51 = vld [vmem:[#allocation11 + $0x118] sm:$0xff] }
 0x1f6   :  { %v1170_v7 = vsel %vm1167_vm0, %v1169_v10, %v1165_v33  ;;  %v6189_v10 = vld [vmem:[#allocation11 + $0x158] sm:$0xff]  ;;  %v6198_v33 = vld [vmem:[#allocation11 + $0x130] sm:$0xff]  ;;  %v6228_v57 = vld [vmem:[#allocation11 + $0xc0] sm:$0xff] }
 0x1f7   :  { %v1188_v40 = vmul.f32 %v1170_v7, %v5869_v41  ;;  %v1183_v41 = vand.u32 2147483648, %v6061_v47  ;;  %v1180_v47 = vsel %vm6113_vm5, %v6073_v8, %v1176_v4  ;;  %v6138_v8 = vld [vmem:[#allocation11 + $0x1a0] sm:$0xff]  ;;  %v6201_v7 = vld [vmem:[#allocation11 + $0x138] sm:$0xff]  ;;  %v6210_v20 = vld [vmem:[#allocation11 + $0x110] sm:$0xff]  ;;  %9927 = vst [vmem:[#allocation33_spill] sm:$0xff] %v6228_v57 }
 0x1f8   :  { %v6222_v4 = vld [vmem:[#allocation11 + $0xf0] sm:$0xff] }
 0x1f9   :  { %v6095_v54 = vadd.f32 %v1189_v38, %v1188_v40  ;;  %v1184_v26 = vor.u32 1.1754944e-38, %v1183_v41  ;;  %v6195_v38 = vld [vmem:[#allocation11 + $0x128] sm:$0xff]  ;;  %9925 = vst [vmem:[#allocation24_spill] sm:$0xff] %v6222_v4  ;;  %v6225_v41 = vld [vmem:[#allocation11 + $0xf8] sm:$0xff]  ;;  %v6232_v0 = vld [vmem:[#allocation11 + $0xd0] sm:$0xff] }
 0x1fa   :  { %v3973_v52 = vpop.eup %3972  ;;  %v6207_v40 = vld [vmem:[#allocation11 + $0x108] sm:$0xff]  ;;  %9926 = vst [vmem:[#allocation28_spill] sm:$0xff] %v6225_v41 }
 0x1fb   :  { %v6097_v5 = vmul.f32 %v3973_v52, %v1032_v3  ;;  %3974 = vtanh.f32 %v6095_v54  ;;  %v1185_v29 = vsel %vm1182_vm6, %v1184_v26, %v1180_v47  ;;  %v6216_v52 = vld [vmem:[#allocation11 + $0xe0] sm:$0xff]  ;;  %v6219_v3 = vld [vmem:[#allocation11 + $0xe8] sm:$0xff]  ;;  %9928 = vst [vmem:[#allocation38_spill] sm:$0xff] %v6232_v0  ;;  %v6235_v47 = vld [vmem:[#allocation11 + $0xd8] sm:$0xff] }
 0x1fc   :  { %9929 = vst [vmem:[#allocation39_spill] sm:$0xff] %v6235_v47  ;;  %v6242_v26 = vld [vmem:[#allocation11 + $0xb0] sm:$0xff] }
 0x1fd   :  { %9922 = vst [vmem:[#allocation32_spill] sm:$0xff] %v6097_v5  ;;  %1209 = vmatmul.f32.vlgmr.msrb.gmra.mxu2 %v6097_v5  ;;  %1229 = vmatmul.f32.vlgmr.msra.gmra.mxu3 %v6097_v5 }
 0x1fe   :  { %1249 = vmatmul.f32.vlgmr.msrb.gmra.mxu0 %v6097_v5  ;;  %1269 = vmatmul.f32.vlgmr.msra.gmra.mxu1 %v6097_v5  ;;  %9931 = vst [vmem:[#allocation41_spill] sm:$0xff] %v6242_v26  ;;  %v6252_v5 = vld [vmem:[#allocation11 + $0x90] sm:$0xff] }
 0x1ff   :  { %1427 = vmatpush.msrb.mxu2 %v6109_v11  ;;  %1447 = vmatpush.msra.mxu3 %v5727_v50  ;;  %v6129_v50 = vld [vmem:[#allocation11 + $0x1c8] sm:$0xff]  ;;  %9934 = vst [vmem:[#allocation44_spill] sm:$0xff] %v6252_v5 }
 0x200   :  { %1467 = vmatpush.msrb.mxu0 %v6117_v9  ;;  %1487 = vmatpush.msra.mxu1 %v6120_v24 }
 0x201   :  { %1428 = vmatpush.msrb.mxu2 %v6126_v12  ;;  %1448 = vmatpush.msra.mxu3 %v6129_v50  ;;  %v3975_v16 = vpop.eup %3974 }
 0x202   :  { %1468 = vmatpush.msrb.mxu0 %v6132_v35  ;;  %1488 = vmatpush.msra.mxu1 %v6135_v53  ;;  %v6150_v6 = vmul.f32 %v3975_v16, %v1185_v29  ;;  %v6238_v16 = vld [vmem:[#allocation11 + $0xa0] sm:$0xff]  ;;  %v6245_v29 = vld [vmem:[#allocation11 + $0xb8] sm:$0xff] }
 0x203   :  { %1429 = vmatpush.msrb.mxu2 %v6138_v8  ;;  %1449 = vmatpush.msra.mxu3 %v6141_v63  ;;  %9930 = vst [vmem:[#allocation40_spill] sm:$0xff] %v6238_v16 }
 0x204   :  { %1469 = vmatpush.msrb.mxu0 %v6144_v39  ;;  %1489 = vmatpush.msra.mxu1 %v6147_v62  ;;  %9932 = vst [vmem:[#allocation42_spill] sm:$0xff] %v6245_v29 }
 0x205   :  { %1430 = vmatpush.msrb.mxu2 %v6152_v17  ;;  %1450 = vmatpush.msra.mxu3 %v6155_v14 }
 0x206   :  { %1470 = vmatpush.msrb.mxu0 %v6158_v18  ;;  %1490 = vmatpush.msra.mxu1 %v6161_v21 }
 0x207   :  { %1289 = vmatmul.f32.vlgmr.msra.gmra.mxu2 %v6150_v6  ;;  %1309 = vmatmul.f32.vlgmr.msrb.gmra.mxu3 %v6150_v6 }
 0x208   :  { %1329 = vmatmul.f32.vlgmr.msra.gmra.mxu0 %v6150_v6  ;;  %1349 = vmatmul.f32.vlgmr.msrb.gmra.mxu1 %v6150_v6 }
 0x209   :  { %1431 = vmatpush.msrb.mxu2 %v6168_v58  ;;  %1451 = vmatpush.msra.mxu3 %v6171_v25 }
 0x20a   :  { %1471 = vmatpush.msrb.mxu0 %v6174_v61  ;;  %1491 = vmatpush.msra.mxu1 %v6177_v28 }
 0x20b   :  { %1432 = vmatpush.msrb.mxu2 %v6180_v42  ;;  %1452 = vmatpush.msra.mxu3 %v6183_v23 }
 0x20c   :  { %1472 = vmatpush.msrb.mxu0 %v6186_v27  ;;  %1492 = vmatpush.msra.mxu1 %v6189_v10 }
 0x20d   :  { %1433 = vmatpush.msrb.mxu2 %v6192_v30  ;;  %1453 = vmatpush.msra.mxu3 %v6195_v38 }
 0x20e   :  { %1473 = vmatpush.msrb.mxu0 %v6198_v33  ;;  %1493 = vmatpush.msra.mxu1 %v6201_v7 }
 0x20f   :  { %1434 = vmatpush.msrb.mxu2 %v6204_v44  ;;  %1454 = vmatpush.msra.mxu3 %v6207_v40 }
 0x210   :  { %1474 = vmatpush.msrb.mxu0 %v6210_v20  ;;  %1494 = vmatpush.msra.mxu1 %v6213_v51 }
 0x211   :  { %1435 = vmatpush.msrb.mxu2 %v6216_v52  ;;  %1455 = vmatpush.msra.mxu3 %v6219_v3 }
 0x212   :  { %1475 = vmatpush.msrb.mxu0 %v6222_v4  ;;  %1495 = vmatpush.msra.mxu1 %v6225_v41 }
 0x213   :  { %1436 = vmatpush.msrb.mxu2 %v6228_v57  ;;  %1456 = vmatpush.msra.mxu3 %v5796_v43  ;;  %v6248_v43 = vld [vmem:[#allocation11 + $0x80] sm:$0xff] }
 0x214   :  { %1476 = vmatpush.msrb.mxu0 %v6232_v0  ;;  %1496 = vmatpush.msra.mxu1 %v6235_v47  ;;  %9933 = vst [vmem:[#allocation43_spill] sm:$0xff] %v6248_v43 }
 0x215   :  { %1437 = vmatpush.msrb.mxu2 %v6238_v16  ;;  %1457 = vmatpush.msra.mxu3 %v5805_v56  ;;  %v6258_v56 = vld [vmem:[#allocation11 + $0x60] sm:$0xff] }
 0x216   :  { %1477 = vmatpush.msrb.mxu0 %v6242_v26  ;;  %1497 = vmatpush.msra.mxu1 %v6245_v29  ;;  %9936 = vst [vmem:[#allocation46_spill] sm:$0xff] %v6258_v56 }
 0x217   :  { %1438 = vmatpush.msrb.mxu2 %v6248_v43  ;;  %1458 = vmatpush.msra.mxu3 %v5823_v2  ;;  %v6268_v2 = vld [vmem:[#allocation11 + $0x40] sm:$0xff] }
 0x218   :  { %1478 = vmatpush.msrb.mxu0 %v6252_v5  ;;  %1498 = vmatpush.msra.mxu1 %v6255_v32  ;;  %9939 = vst [vmem:[#allocation50_spill] sm:$0xff] %v6268_v2 }
 0x219   :  { %1439 = vmatpush.msrb.mxu2 %v6258_v56  ;;  %1459 = vmatpush.msra.mxu3 %v5835_v13  ;;  %v6278_v13 = vld [vmem:[#allocation11 + $0x20] sm:$0xff] }
 0x21a   :  { %1479 = vmatpush.msrb.mxu0 %v6262_v37  ;;  %1499 = vmatpush.msra.mxu1 %v6265_v48  ;;  %9942 = vst [vmem:[#allocation54_spill] sm:$0xff] %v6278_v13 }
 0x21b   :  { %1440 = vmatpush.msrb.mxu2 %v6268_v2  ;;  %1460 = vmatpush.msra.mxu3 %v5850_v46  ;;  %v6288_v46 = vld [vmem:[#allocation11] sm:$0xff] }
 0x21c   :  { %1480 = vmatpush.msrb.mxu0 %v6272_v45  ;;  %1500 = vmatpush.msra.mxu1 %v6275_v59  ;;  %9945 = vst [vmem:[#allocation57_spill] sm:$0xff] %v6288_v46  ;;  %v6292_v59 = vld [vmem:[#allocation11 + $0x10] sm:$0xff] }
 0x21d   :  { %1441 = vmatpush.msrb.mxu2 %v6278_v13  ;;  %1461 = vmatpush.msra.mxu3 %v5856_v22  ;;  %9946 = vst [vmem:[#allocation58_spill] sm:$0xff] %v6292_v59  ;;  %v6295_v13 = vld [vmem:[#allocation11 + $0x18] sm:$0xff]  ;;  %v6302_v22 = vld [vmem:[#allocation13 + $0x1e0] sm:$0xff] }
 0x21e   :  { %1481 = vmatpush.msrb.mxu0 %v6282_v36  ;;  %1501 = vmatpush.msra.mxu1 %v6285_v15  ;;  %9947 = vst [vmem:[#allocation59_spill] sm:$0xff] %v6295_v13 }
 0x21f   :  { %1442 = vmatpush.msrb.mxu2 %v6288_v46  ;;  %1462 = vmatpush.msra.mxu3 %v5864_v31  ;;  %9948 = vst [vmem:[#allocation60_spill] sm:$0xff] %v6302_v22  ;;  %v6305_v31 = vld [vmem:[#allocation13 + $0x1e8] sm:$0xff]  ;;  %v6314_v46 = vld [vmem:[#allocation13 + $0x1c0] sm:$0xff] }
 0x220   :  { %1482 = vmatpush.msrb.mxu0 %v6292_v59  ;;  %1502 = vmatpush.msra.mxu1 %v6295_v13  ;;  %9949 = vst [vmem:[#allocation61_spill] sm:$0xff] %v6305_v31  ;;  %v6308_v59 = vld [vmem:[#allocation13 + $0x1f0] sm:$0xff]  ;;  %v6311_v13 = vld [vmem:[#allocation13 + $0x1f8] sm:$0xff] }
 0x221   :  { %1443 = vmatmul.f32.vlgmr.msrb.gmra.mxu2 %v6150_v6  ;;  %1463 = vmatmul.f32.vlgmr.msra.gmra.mxu3 %v6150_v6  ;;  %9950 = vst [vmem:[#allocation62_spill] sm:$0xff] %v6308_v59 }
 0x222   :  { %1483 = vmatmul.f32.vlgmr.msrb.gmra.mxu0 %v6150_v6  ;;  %1503 = vmatmul.f32.vlgmr.msra.gmra.mxu1 %v6150_v6  ;;  %9951 = vst [vmem:[#allocation63_spill] sm:$0xff] %v6311_v13  ;;  %v6317_v6 = vld [vmem:[#allocation13 + $0x1c8] sm:$0xff] }
 0x223   :  { %1574 = vmatpush.msra.mxu2 %v6302_v22  ;;  %1594 = vmatpush.msrb.mxu3 %v6305_v31  ;;  %9952 = vst [vmem:[#allocation64_spill] sm:$0xff] %v6314_v46  ;;  %v6320_v22 = vld [vmem:[#allocation13 + $0x1d0] sm:$0xff]  ;;  %v6323_v31 = vld [vmem:[#allocation13 + $0x1d8] sm:$0xff] }
 0x224   :  { %1614 = vmatpush.msra.mxu0 %v6308_v59  ;;  %1634 = vmatpush.msrb.mxu1 %v6311_v13  ;;  %9953 = vst [vmem:[#allocation65_spill] sm:$0xff] %v6317_v6  ;;  %v6326_v59 = vld [vmem:[#allocation13 + $0x1a0] sm:$0xff]  ;;  %v6329_v13 = vld [vmem:[#allocation13 + $0x1a8] sm:$0xff] }
 0x225   :  { %1575 = vmatpush.msra.mxu2 %v6314_v46  ;;  %1595 = vmatpush.msrb.mxu3 %v6317_v6  ;;  %9954 = vst [vmem:[#allocation66_spill] sm:$0xff] %v6320_v22  ;;  %v6332_v46 = vld [vmem:[#allocation13 + $0x1b0] sm:$0xff]  ;;  %v6335_v6 = vld [vmem:[#allocation13 + $0x1b8] sm:$0xff] }
 0x226   :  { %1615 = vmatpush.msra.mxu0 %v6320_v22  ;;  %9955 = vst [vmem:[#allocation68_spill] sm:$0xff] %v6323_v31  ;;  %1635 = vmatpush.msrb.mxu1 %v6323_v31  ;;  %v6338_v22 = vld [vmem:[#allocation13 + $0x180] sm:$0xff]  ;;  %v6341_v31 = vld [vmem:[#allocation13 + $0x188] sm:$0xff] }
 0x227   :  { %9956 = vst [vmem:[#allocation70_spill] sm:$0xff] %v6326_v59  ;;  %1576 = vmatpush.msra.mxu2 %v6326_v59  ;;  %1596 = vmatpush.msrb.mxu3 %v6329_v13  ;;  %v6344_v59 = vld [vmem:[#allocation13 + $0x190] sm:$0xff] }
 0x228   :  { %9957 = vst [vmem:[#allocation71_spill] sm:$0xff] %v6329_v13  ;;  %1616 = vmatpush.msra.mxu0 %v6332_v46  ;;  %1636 = vmatpush.msrb.mxu1 %v6335_v6  ;;  %v6347_v13 = vld [vmem:[#allocation13 + $0x198] sm:$0xff] }
 0x229   :  { %9958 = vst [vmem:[#allocation72_spill] sm:$0xff] %v6332_v46  ;;  %1577 = vmatpush.msra.mxu2 %v6338_v22  ;;  %1597 = vmatpush.msrb.mxu3 %v6341_v31  ;;  %v6350_v46 = vld [vmem:[#allocation13 + $0x160] sm:$0xff] }
 0x22a   :  { %9959 = vst [vmem:[#allocation73_spill] sm:$0xff] %v6335_v6  ;;  %1617 = vmatpush.msra.mxu0 %v6344_v59  ;;  %1637 = vmatpush.msrb.mxu1 %v6347_v13  ;;  %v6353_v6 = vld [vmem:[#allocation13 + $0x168] sm:$0xff] }
 0x22b   :  { %9960 = vst [vmem:[#allocation74_spill] sm:$0xff] %v6338_v22  ;;  %1578 = vmatpush.msra.mxu2 %v6350_v46  ;;  %1598 = vmatpush.msrb.mxu3 %v6353_v6  ;;  %v6356_v22 = vld [vmem:[#allocation13 + $0x170] sm:$0xff] }
 0x22c   :  { %9961 = vst [vmem:[#allocation75_spill] sm:$0xff] %v6341_v31  ;;  %1618 = vmatpush.msra.mxu0 %v6356_v22  ;;  %v6359_v31 = vld [vmem:[#allocation13 + $0x178] sm:$0xff] }
 0x22d   :  { %9962 = vst [vmem:[#allocation76_spill] sm:$0xff] %v6344_v59  ;;  %1638 = vmatpush.msrb.mxu1 %v6359_v31  ;;  %v6362_v59 = vld [vmem:[#allocation13 + $0x140] sm:$0xff] }
 0x22e   :  { %9963 = vst [vmem:[#allocation77_spill] sm:$0xff] %v6347_v13  ;;  %1579 = vmatpush.msra.mxu2 %v6362_v59  ;;  %v6365_v13 = vld [vmem:[#allocation13 + $0x148] sm:$0xff] }
 0x22f   :  { %9964 = vst [vmem:[#allocation79_spill] sm:$0xff] %v6350_v46  ;;  %1599 = vmatpush.msrb.mxu3 %v6365_v13  ;;  %v6368_v46 = vld [vmem:[#allocation13 + $0x150] sm:$0xff] }
 0x230   :  { %9965 = vst [vmem:[#allocation80_spill] sm:$0xff] %v6353_v6  ;;  %1619 = vmatpush.msra.mxu0 %v6368_v46  ;;  %v6371_v6 = vld [vmem:[#allocation13 + $0x158] sm:$0xff] }
 0x231   :  { %9966 = vst [vmem:[#allocation81_spill] sm:$0xff] %v6356_v22  ;;  %1639 = vmatpush.msrb.mxu1 %v6371_v6  ;;  %v6374_v22 = vld [vmem:[#allocation13 + $0x120] sm:$0xff] }
 0x232   :  { %9967 = vst [vmem:[#allocation82_spill] sm:$0xff] %v6359_v31  ;;  %1580 = vmatpush.msra.mxu2 %v6374_v22  ;;  %v6377_v31 = vld [vmem:[#allocation13 + $0x128] sm:$0xff] }
 0x233   :  { %9968 = vst [vmem:[#allocation83_spill] sm:$0xff] %v6362_v59  ;;  %1600 = vmatpush.msrb.mxu3 %v6377_v31  ;;  %v6380_v59 = vld [vmem:[#allocation13 + $0x130] sm:$0xff] }
 0x234   :  { %9969 = vst [vmem:[#allocation84_spill] sm:$0xff] %v6365_v13  ;;  %1620 = vmatpush.msra.mxu0 %v6380_v59  ;;  %v6383_v13 = vld [vmem:[#allocation13 + $0x138] sm:$0xff] }
 0x235   :  { %9970 = vst [vmem:[#allocation85_spill] sm:$0xff] %v6368_v46  ;;  %1640 = vmatpush.msrb.mxu1 %v6383_v13  ;;  %v6386_v46 = vld [vmem:[#allocation13 + $0x100] sm:$0xff] }
 0x236   :  { %9971 = vst [vmem:[#allocation86_spill] sm:$0xff] %v6371_v6  ;;  %1581 = vmatpush.msra.mxu2 %v6386_v46  ;;  %v6389_v6 = vld [vmem:[#allocation13 + $0x108] sm:$0xff] }
 0x237   :  { %9972 = vst [vmem:[#allocation88_spill] sm:$0xff] %v6374_v22  ;;  %1601 = vmatpush.msrb.mxu3 %v6389_v6  ;;  %v6392_v22 = vld [vmem:[#allocation13 + $0x110] sm:$0xff] }
 0x238   :  { %9973 = vst [vmem:[#allocation89_spill] sm:$0xff] %v6377_v31  ;;  %1621 = vmatpush.msra.mxu0 %v6392_v22  ;;  %v6395_v31 = vld [vmem:[#allocation13 + $0x118] sm:$0xff] }
 0x239   :  { %9974 = vst [vmem:[#allocation90_spill] sm:$0xff] %v6380_v59  ;;  %1641 = vmatpush.msrb.mxu1 %v6395_v31  ;;  %v6398_v59 = vld [vmem:[#allocation13 + $0xe0] sm:$0xff] }
 0x23a   :  { %9975 = vst [vmem:[#allocation91_spill] sm:$0xff] %v6383_v13  ;;  %1582 = vmatpush.msra.mxu2 %v6398_v59  ;;  %v6401_v13 = vld [vmem:[#allocation13 + $0xe8] sm:$0xff] }
 0x23b   :  { %9976 = vst [vmem:[#allocation92_spill] sm:$0xff] %v6386_v46  ;;  %1602 = vmatpush.msrb.mxu3 %v6401_v13  ;;  %v6404_v46 = vld [vmem:[#allocation13 + $0xf0] sm:$0xff] }
 0x23c   :  { %9977 = vst [vmem:[#allocation93_spill] sm:$0xff] %v6389_v6  ;;  %1622 = vmatpush.msra.mxu0 %v6404_v46  ;;  %v6407_v6 = vld [vmem:[#allocation13 + $0xf8] sm:$0xff] }
 0x23d   :  { %9978 = vst [vmem:[#allocation94_spill] sm:$0xff] %v6392_v22  ;;  %1642 = vmatpush.msrb.mxu1 %v6407_v6  ;;  %v6410_v22 = vld [vmem:[#allocation13 + $0xc0] sm:$0xff] }
 0x23e   :  { %9979 = vst [vmem:[#allocation95_spill] sm:$0xff] %v6395_v31  ;;  %1583 = vmatpush.msra.mxu2 %v6410_v22  ;;  %v6413_v31 = vld [vmem:[#allocation13 + $0xc8] sm:$0xff] }
 0x23f   :  { %9980 = vst [vmem:[#allocation96_spill] sm:$0xff] %v6398_v59  ;;  %1603 = vmatpush.msrb.mxu3 %v6413_v31  ;;  %v6416_v59 = vld [vmem:[#allocation13 + $0xd0] sm:$0xff] }
 0x240   :  { %9981 = vst [vmem:[#allocation97_spill] sm:$0xff] %v6401_v13  ;;  %1623 = vmatpush.msra.mxu0 %v6416_v59  ;;  %v6419_v13 = vld [vmem:[#allocation13 + $0xd8] sm:$0xff] }
 0x241   :  { %9982 = vst [vmem:[#allocation98_spill] sm:$0xff] %v6404_v46  ;;  %1643 = vmatpush.msrb.mxu1 %v6419_v13  ;;  %v6422_v46 = vld [vmem:[#allocation13 + $0xa0] sm:$0xff] }
 0x242   :  { %9983 = vst [vmem:[#allocation99_spill] sm:$0xff] %v6407_v6  ;;  %1584 = vmatpush.msra.mxu2 %v6422_v46  ;;  %v6425_v6 = vld [vmem:[#allocation13 + $0xa8] sm:$0xff] }
 0x243   :  { %9984 = vst [vmem:[#allocation101_spill] sm:$0xff] %v6410_v22  ;;  %1604 = vmatpush.msrb.mxu3 %v6425_v6  ;;  %v6428_v22 = vld [vmem:[#allocation13 + $0xb0] sm:$0xff] }
 0x244   :  { %9985 = vst [vmem:[#allocation102_spill] sm:$0xff] %v6413_v31  ;;  %1624 = vmatpush.msra.mxu0 %v6428_v22  ;;  %v6431_v31 = vld [vmem:[#allocation13 + $0xb8] sm:$0xff] }
 0x245   :  { %9986 = vst [vmem:[#allocation103_spill] sm:$0xff] %v6416_v59  ;;  %1644 = vmatpush.msrb.mxu1 %v6431_v31  ;;  %v6434_v59 = vld [vmem:[#allocation13 + $0x80] sm:$0xff] }
 0x246   :  { %9987 = vst [vmem:[#allocation105_spill] sm:$0xff] %v6419_v13  ;;  %1585 = vmatpush.msra.mxu2 %v6434_v59  ;;  %v6437_v13 = vld [vmem:[#allocation13 + $0x88] sm:$0xff] }
 0x247   :  { %9988 = vst [vmem:[#allocation106_spill] sm:$0xff] %v6422_v46  ;;  %1605 = vmatpush.msrb.mxu3 %v6437_v13  ;;  %v6440_v46 = vld [vmem:[#allocation13 + $0x90] sm:$0xff] }
 0x248   :  { %9989 = vst [vmem:[#allocation107_spill] sm:$0xff] %v6425_v6  ;;  %1625 = vmatpush.msra.mxu0 %v6440_v46  ;;  %v6443_v6 = vld [vmem:[#allocation13 + $0x98] sm:$0xff] }
 0x249   :  { %9990 = vst [vmem:[#allocation109_spill] sm:$0xff] %v6428_v22  ;;  %1645 = vmatpush.msrb.mxu1 %v6443_v6  ;;  %v6446_v22 = vld [vmem:[#allocation13 + $0x60] sm:$0xff] }
 0x24a   :  { %9991 = vst [vmem:[#allocation110_spill] sm:$0xff] %v6431_v31  ;;  %1586 = vmatpush.msra.mxu2 %v6446_v22  ;;  %v6449_v31 = vld [vmem:[#allocation13 + $0x68] sm:$0xff] }
 0x24b   :  { %9992 = vst [vmem:[#allocation111_spill] sm:$0xff] %v6434_v59  ;;  %1606 = vmatpush.msrb.mxu3 %v6449_v31  ;;  %v6452_v59 = vld [vmem:[#allocation13 + $0x70] sm:$0xff] }
 0x24c   :  { %9993 = vst [vmem:[#allocation112_spill] sm:$0xff] %v6437_v13  ;;  %1626 = vmatpush.msra.mxu0 %v6452_v59  ;;  %v6455_v13 = vld [vmem:[#allocation13 + $0x78] sm:$0xff] }
 0x24d   :  { %9994 = vst [vmem:[#allocation113_spill] sm:$0xff] %v6440_v46  ;;  %1646 = vmatpush.msrb.mxu1 %v6455_v13  ;;  %v6458_v46 = vld [vmem:[#allocation13 + $0x40] sm:$0xff] }
 0x24e   :  { %9995 = vst [vmem:[#allocation114_spill] sm:$0xff] %v6443_v6  ;;  %1587 = vmatpush.msra.mxu2 %v6458_v46  ;;  %v6461_v6 = vld [vmem:[#allocation13 + $0x48] sm:$0xff] }
 0x24f   :  { %9996 = vst [vmem:[#allocation115_spill] sm:$0xff] %v6446_v22  ;;  %1607 = vmatpush.msrb.mxu3 %v6461_v6  ;;  %v6464_v22 = vld [vmem:[#allocation13 + $0x50] sm:$0xff] }
 0x250   :  { %9997 = vst [vmem:[#allocation116_spill] sm:$0xff] %v6449_v31  ;;  %1627 = vmatpush.msra.mxu0 %v6464_v22  ;;  %v6467_v31 = vld [vmem:[#allocation13 + $0x58] sm:$0xff] }
 0x251   :  { %9998 = vst [vmem:[#allocation117_spill] sm:$0xff] %v6452_v59  ;;  %1647 = vmatpush.msrb.mxu1 %v6467_v31  ;;  %v6470_v59 = vld [vmem:[#allocation13 + $0x20] sm:$0xff] }
 0x252   :  { %9999 = vst [vmem:[#allocation118_spill] sm:$0xff] %v6455_v13  ;;  %1588 = vmatpush.msra.mxu2 %v6470_v59  ;;  %v6473_v13 = vld [vmem:[#allocation13 + $0x28] sm:$0xff] }
 0x253   :  { %10000 = vst [vmem:[#allocation119_spill] sm:$0xff] %v6458_v46  ;;  %1608 = vmatpush.msrb.mxu3 %v6473_v13  ;;  %v6476_v46 = vld [vmem:[#allocation13 + $0x30] sm:$0xff] }
 0x254   :  { %10001 = vst [vmem:[#allocation120_spill] sm:$0xff] %v6461_v6  ;;  %1628 = vmatpush.msra.mxu0 %v6476_v46  ;;  %v6479_v6 = vld [vmem:[#allocation13 + $0x38] sm:$0xff] }
 0x255   :  { %10002 = vst [vmem:[#allocation122_spill] sm:$0xff] %v6464_v22  ;;  %1648 = vmatpush.msrb.mxu1 %v6479_v6  ;;  %v6482_v22 = vld [vmem:[#allocation13] sm:$0xff] }
 0x256   :  { %10003 = vst [vmem:[#allocation123_spill] sm:$0xff] %v6467_v31  ;;  %1589 = vmatpush.msra.mxu2 %v6482_v22  ;;  %v6485_v31 = vld [vmem:[#allocation13 + $0x8] sm:$0xff] }
 0x257   :  { %10004 = vst [vmem:[#allocation125_spill] sm:$0xff] %v6470_v59  ;;  %1609 = vmatpush.msrb.mxu3 %v6485_v31  ;;  %v6488_v59 = vld [vmem:[#allocation13 + $0x10] sm:$0xff] }
 0x258   :  { %10005 = vst [vmem:[#allocation126_spill] sm:$0xff] %v6473_v13  ;;  %1629 = vmatpush.msra.mxu0 %v6488_v59  ;;  %v6491_v13 = vld [vmem:[#allocation13 + $0x18] sm:$0xff] }
 0x259   :  { %10006 = vst [vmem:[#allocation128_spill] sm:$0xff] %v6476_v46  ;;  %1649 = vmatpush.msrb.mxu1 %v6491_v13  ;;  %v6494_v46 = vld [vmem:[#allocation14 + $0x1e0] sm:$0xff] }
 0x25a   :  { %10007 = vst [vmem:[#allocation129_spill] sm:$0xff] %v6479_v6  ;;  %1654 = vmatpush.msrb.mxu2 %v6494_v46  ;;  %v6497_v6 = vld [vmem:[#allocation14 + $0x1e8] sm:$0xff] }
 0x25b   :  { %10008 = vst [vmem:[#allocation130_spill] sm:$0xff] %v6482_v22  ;;  %1674 = vmatpush.msra.mxu3 %v6497_v6  ;;  %v6500_v22 = vld [vmem:[#allocation14 + $0x1f0] sm:$0xff] }
 0x25c   :  { %10009 = vst [vmem:[#allocation131_spill] sm:$0xff] %v6485_v31  ;;  %1694 = vmatpush.msrb.mxu0 %v6500_v22  ;;  %v6503_v31 = vld [vmem:[#allocation14 + $0x1f8] sm:$0xff] }
 0x25d   :  { %10010 = vst [vmem:[#allocation132_spill] sm:$0xff] %v6488_v59  ;;  %1714 = vmatpush.msra.mxu1 %v6503_v31  ;;  %v6506_v59 = vld [vmem:[#allocation14 + $0x1c0] sm:$0xff] }
 0x25e   :  { %10011 = vst [vmem:[#allocation134_spill] sm:$0xff] %v6491_v13  ;;  %1655 = vmatpush.msrb.mxu2 %v6506_v59  ;;  %v6509_v13 = vld [vmem:[#allocation14 + $0x1c8] sm:$0xff] }
 0x25f   :  { %10012 = vst [vmem:[#allocation135_spill] sm:$0xff] %v6494_v46  ;;  %1675 = vmatpush.msra.mxu3 %v6509_v13  ;;  %v6512_v46 = vld [vmem:[#allocation14 + $0x1d0] sm:$0xff] }
 0x260   :  { %10013 = vst [vmem:[#allocation136_spill] sm:$0xff] %v6497_v6  ;;  %1695 = vmatpush.msrb.mxu0 %v6512_v46  ;;  %v6515_v6 = vld [vmem:[#allocation14 + $0x1d8] sm:$0xff] }
 0x261   :  { %10014 = vst [vmem:[#allocation137_spill] sm:$0xff] %v6500_v22  ;;  %1715 = vmatpush.msra.mxu1 %v6515_v6  ;;  %v6518_v22 = vld [vmem:[#allocation14 + $0x1a0] sm:$0xff] }
 0x262   :  { %10015 = vst [vmem:[#allocation138_spill] sm:$0xff] %v6503_v31  ;;  %1656 = vmatpush.msrb.mxu2 %v6518_v22  ;;  %v6521_v31 = vld [vmem:[#allocation14 + $0x1a8] sm:$0xff] }
 0x263   :  { %10016 = vst [vmem:[#allocation139_spill] sm:$0xff] %v6506_v59  ;;  %1676 = vmatpush.msra.mxu3 %v6521_v31  ;;  %v6524_v59 = vld [vmem:[#allocation14 + $0x1b0] sm:$0xff] }
 0x264   :  { %10017 = vst [vmem:[#allocation141_spill] sm:$0xff] %v6509_v13  ;;  %1696 = vmatpush.msrb.mxu0 %v6524_v59  ;;  %v6527_v13 = vld [vmem:[#allocation14 + $0x1b8] sm:$0xff] }
 0x265   :  { %10018 = vst [vmem:[#allocation142_spill] sm:$0xff] %v6512_v46  ;;  %1716 = vmatpush.msra.mxu1 %v6527_v13  ;;  %v6530_v46 = vld [vmem:[#allocation14 + $0x180] sm:$0xff] }
 0x266   :  { %10019 = vst [vmem:[#allocation144_spill] sm:$0xff] %v6515_v6  ;;  %1657 = vmatpush.msrb.mxu2 %v6530_v46  ;;  %v6533_v6 = vld [vmem:[#allocation14 + $0x188] sm:$0xff] }
 0x267   :  { %10020 = vst [vmem:[#allocation145_spill] sm:$0xff] %v6518_v22  ;;  %1677 = vmatpush.msra.mxu3 %v6533_v6  ;;  %v6536_v22 = vld [vmem:[#allocation14 + $0x190] sm:$0xff] }
 0x268   :  { %10021 = vst [vmem:[#allocation146_spill] sm:$0xff] %v6521_v31  ;;  %1697 = vmatpush.msrb.mxu0 %v6536_v22  ;;  %v6539_v31 = vld [vmem:[#allocation14 + $0x198] sm:$0xff] }
 0x269   :  { %10022 = vst [vmem:[#allocation147_spill] sm:$0xff] %v6524_v59  ;;  %1717 = vmatpush.msra.mxu1 %v6539_v31  ;;  %v6542_v59 = vld [vmem:[#allocation14 + $0x160] sm:$0xff] }
 0x26a   :  { %10023 = vst [vmem:[#allocation148_spill] sm:$0xff] %v6527_v13  ;;  %1658 = vmatpush.msrb.mxu2 %v6542_v59  ;;  %v6545_v13 = vld [vmem:[#allocation14 + $0x168] sm:$0xff] }
 0x26b   :  { %10024 = vst [vmem:[#allocation149_spill] sm:$0xff] %v6530_v46  ;;  %1678 = vmatpush.msra.mxu3 %v6545_v13  ;;  %v6548_v46 = vld [vmem:[#allocation14 + $0x170] sm:$0xff] }
 0x26c   :  { %10025 = vst [vmem:[#allocation150_spill] sm:$0xff] %v6533_v6  ;;  %1698 = vmatpush.msrb.mxu0 %v6548_v46  ;;  %v6551_v6 = vld [vmem:[#allocation14 + $0x178] sm:$0xff] }
 0x26d   :  { %10026 = vst [vmem:[#allocation152_spill] sm:$0xff] %v6536_v22  ;;  %1718 = vmatpush.msra.mxu1 %v6551_v6  ;;  %v6554_v22 = vld [vmem:[#allocation14 + $0x140] sm:$0xff] }
 0x26e   :  { %10027 = vst [vmem:[#allocation153_spill] sm:$0xff] %v6539_v31  ;;  %1659 = vmatpush.msrb.mxu2 %v6554_v22  ;;  %v6557_v31 = vld [vmem:[#allocation14 + $0x148] sm:$0xff] }
 0x26f   :  { %10028 = vst [vmem:[#allocation154_spill] sm:$0xff] %v6542_v59  ;;  %1679 = vmatpush.msra.mxu3 %v6557_v31  ;;  %v6560_v59 = vld [vmem:[#allocation14 + $0x150] sm:$0xff] }
 0x270   :  { %10029 = vst [vmem:[#allocation155_spill] sm:$0xff] %v6545_v13  ;;  %1699 = vmatpush.msrb.mxu0 %v6560_v59  ;;  %v6563_v13 = vld [vmem:[#allocation14 + $0x158] sm:$0xff] }
 0x271   :  { %10030 = vst [vmem:[#allocation156_spill] sm:$0xff] %v6548_v46  ;;  %1719 = vmatpush.msra.mxu1 %v6563_v13  ;;  %v6566_v46 = vld [vmem:[#allocation14 + $0x120] sm:$0xff] }
 0x272   :  { %10031 = vst [vmem:[#allocation157_spill] sm:$0xff] %v6551_v6  ;;  %1660 = vmatpush.msrb.mxu2 %v6566_v46  ;;  %v6569_v6 = vld [vmem:[#allocation14 + $0x128] sm:$0xff] }
 0x273   :  { %10032 = vst [vmem:[#allocation158_spill] sm:$0xff] %v6554_v22  ;;  %1680 = vmatpush.msra.mxu3 %v6569_v6  ;;  %v6572_v22 = vld [vmem:[#allocation14 + $0x130] sm:$0xff] }
 0x274   :  { %10033 = vst [vmem:[#allocation159_spill] sm:$0xff] %v6557_v31  ;;  %1700 = vmatpush.msrb.mxu0 %v6572_v22  ;;  %v6575_v31 = vld [vmem:[#allocation14 + $0x138] sm:$0xff] }
 0x275   :  { %10034 = vst [vmem:[#allocation160_spill] sm:$0xff] %v6560_v59  ;;  %1720 = vmatpush.msra.mxu1 %v6575_v31  ;;  %v6578_v59 = vld [vmem:[#allocation14 + $0x100] sm:$0xff] }
 0x276   :  { %10035 = vst [vmem:[#allocation161_spill] sm:$0xff] %v6563_v13  ;;  %1661 = vmatpush.msrb.mxu2 %v6578_v59  ;;  %v6581_v13 = vld [vmem:[#allocation14 + $0x108] sm:$0xff] }
 0x277   :  { %10036 = vst [vmem:[#allocation162_spill] sm:$0xff] %v6566_v46  ;;  %1681 = vmatpush.msra.mxu3 %v6581_v13  ;;  %v6584_v46 = vld [vmem:[#allocation14 + $0x110] sm:$0xff] }
 0x278   :  { %10037 = vst [vmem:[#allocation163_spill] sm:$0xff] %v6569_v6  ;;  %1701 = vmatpush.msrb.mxu0 %v6584_v46  ;;  %v6587_v6 = vld [vmem:[#allocation14 + $0x118] sm:$0xff] }
 0x279   :  { %10038 = vst [vmem:[#allocation164_spill] sm:$0xff] %v6572_v22  ;;  %1721 = vmatpush.msra.mxu1 %v6587_v6  ;;  %v6590_v22 = vld [vmem:[#allocation14 + $0xe0] sm:$0xff] }
 0x27a   :  { %10039 = vst [vmem:[#allocation165_spill] sm:$0xff] %v6575_v31  ;;  %1662 = vmatpush.msrb.mxu2 %v6590_v22  ;;  %v6593_v31 = vld [vmem:[#allocation14 + $0xe8] sm:$0xff] }
 0x27b   :  { %10040 = vst [vmem:[#allocation167_spill] sm:$0xff] %v6578_v59  ;;  %1682 = vmatpush.msra.mxu3 %v6593_v31  ;;  %v6596_v59 = vld [vmem:[#allocation14 + $0xf0] sm:$0xff]  ;;  %v1270_v5 = vpop.f32.mrf.mxu1 }
 0x27c   :  { %10041 = vst [vmem:[#allocation168_spill] sm:$0xff] %v6581_v13  ;;  %1702 = vmatpush.msrb.mxu0 %v6596_v59  ;;  %v6599_v13 = vld [vmem:[#allocation14 + $0xf8] sm:$0xff] }
 0x27d   :  { %10042 = vst [vmem:[#allocation169_spill] sm:$0xff] %v6584_v46  ;;  %1722 = vmatpush.msra.mxu1 %v6599_v13  ;;  %v6602_v46 = vld [vmem:[#allocation14 + $0xc0] sm:$0xff] }
 0x27e   :  { %10043 = vst [vmem:[#allocation78_spill] sm:$0xff] %v6587_v6  ;;  %1663 = vmatpush.msrb.mxu2 %v6602_v46  ;;  %v6605_v6 = vld [vmem:[#allocation14 + $0xc8] sm:$0xff] }
 0x27f   :  { %10044 = vst [vmem:[#allocation35_spill] sm:$0xff] %v6590_v22  ;;  %1683 = vmatpush.msra.mxu3 %v6605_v6  ;;  %v6608_v22 = vld [vmem:[#allocation14 + $0xd0] sm:$0xff] }
 0x280   :  { %10045 = vst [vmem:[#allocation143_spill] sm:$0xff] %v6593_v31  ;;  %1703 = vmatpush.msrb.mxu0 %v6608_v22  ;;  %v6611_v31 = vld [vmem:[#allocation14 + $0xd8] sm:$0xff]  ;;  %v1210_v15 = vpop.f32.mrf.mxu2  ;;  %v1230_v36 = vpop.f32.mrf.mxu3 }
 0x281   :  { %10046 = vst [vmem:[#allocation133_spill] sm:$0xff] %v6596_v59  ;;  %1723 = vmatpush.msra.mxu1 %v6611_v31  ;;  %v6614_v59 = vld [vmem:[#allocation14 + $0xa0] sm:$0xff] }
 0x282   :  { %10047 = vst [vmem:[#allocation104_spill] sm:$0xff] %v6599_v13  ;;  %1664 = vmatpush.msrb.mxu2 %v6614_v59  ;;  %v6617_v13 = vld [vmem:[#allocation14 + $0xa8] sm:$0xff] }
 0x283   :  { %10048 = vst [vmem:[#allocation172_spill] sm:$0xff] %v6602_v46  ;;  %1684 = vmatpush.msra.mxu3 %v6617_v13  ;;  %v6620_v46 = vld [vmem:[#allocation14 + $0xb0] sm:$0xff] }
 0x284   :  { %10049 = vst [vmem:[#allocation173_spill] sm:$0xff] %v6605_v6  ;;  %1704 = vmatpush.msrb.mxu0 %v6620_v46  ;;  %v6623_v6 = vld [vmem:[#allocation14 + $0xb8] sm:$0xff] }
 0x285   :  { %10050 = vst [vmem:[#allocation174_spill] sm:$0xff] %v6608_v22  ;;  %1724 = vmatpush.msra.mxu1 %v6623_v6  ;;  %v6626_v22 = vld [vmem:[#allocation14 + $0x80] sm:$0xff] }
 0x286   :  { %10051 = vst [vmem:[#allocation175_spill] sm:$0xff] %v6611_v31  ;;  %1665 = vmatpush.msrb.mxu2 %v6626_v22  ;;  %v6629_v31 = vld [vmem:[#allocation14 + $0x88] sm:$0xff] }
 0x287   :  { %10052 = vst [vmem:[#allocation176_spill] sm:$0xff] %v6614_v59  ;;  %1685 = vmatpush.msra.mxu3 %v6629_v31  ;;  %v6632_v59 = vld [vmem:[#allocation14 + $0x90] sm:$0xff] }
 0x288   :  { %10053 = vst [vmem:[#allocation177_spill] sm:$0xff] %v6617_v13  ;;  %1705 = vmatpush.msrb.mxu0 %v6632_v59  ;;  %v6635_v13 = vld [vmem:[#allocation14 + $0x98] sm:$0xff] }
 0x289   :  { %10054 = vst [vmem:[#allocation178_spill] sm:$0xff] %v6620_v46  ;;  %1725 = vmatpush.msra.mxu1 %v6635_v13  ;;  %v6638_v46 = vld [vmem:[#allocation14 + $0x60] sm:$0xff] }
 0x28a   :  { %10055 = vst [vmem:[#allocation179_spill] sm:$0xff] %v6623_v6  ;;  %1666 = vmatpush.msrb.mxu2 %v6638_v46  ;;  %v6641_v6 = vld [vmem:[#allocation14 + $0x68] sm:$0xff]  ;;  %v1290_v48 = vpop.f32.mrf.mxu2  ;;  %v1310_v37 = vpop.f32.mrf.mxu3 }
 0x28b   :  { %10056 = vst [vmem:[#allocation180_spill] sm:$0xff] %v6626_v22  ;;  %1686 = vmatpush.msra.mxu3 %v6641_v6  ;;  %v6644_v22 = vld [vmem:[#allocation14 + $0x70] sm:$0xff]  ;;  %v1291_v56 = vadd.f32 %v1290_v48, %v1210_v15 }
 0x28c   :  { %10057 = vst [vmem:[#allocation181_spill] sm:$0xff] %v6629_v31  ;;  %1706 = vmatpush.msrb.mxu0 %v6644_v22  ;;  %v6647_v31 = vld [vmem:[#allocation14 + $0x78] sm:$0xff] }
 0x28d   :  { %10058 = vst [vmem:[#allocation182_spill] sm:$0xff] %v6632_v59  ;;  %1726 = vmatpush.msra.mxu1 %v6647_v31  ;;  %v6650_v59 = vld [vmem:[#allocation14 + $0x40] sm:$0xff]  ;;  %v1353_v32 = vadd.f32 %v1291_v56, %v6035_v49 }
 0x28e   :  { %10059 = vst [vmem:[#allocation183_spill] sm:$0xff] %v6635_v13  ;;  %1667 = vmatpush.msrb.mxu2 %v6650_v59  ;;  %v6653_v13 = vld [vmem:[#allocation14 + $0x48] sm:$0xff] }
 0x28f   :  { %10060 = vst [vmem:[#allocation184_spill] sm:$0xff] %v6638_v46  ;;  %1687 = vmatpush.msra.mxu3 %v6653_v13  ;;  %v6656_v46 = vld [vmem:[#allocation14 + $0x50] sm:$0xff]  ;;  %v3871_v43 = vmul.f32 -1.442695, %v1353_v32  ;;  %v6695_v32 = vld [vmem:[%s9000_s1 + $0x10] sm:$0xff] }
 0x290   :  { %10061 = vst [vmem:[#allocation185_spill] sm:$0xff] %v6641_v6  ;;  %1707 = vmatpush.msrb.mxu0 %v6656_v46  ;;  %v6659_v6 = vld [vmem:[#allocation14 + $0x58] sm:$0xff] }
 0x291   :  { %10062 = vst [vmem:[#allocation186_spill] sm:$0xff] %v6644_v22  ;;  %1727 = vmatpush.msra.mxu1 %v6659_v6  ;;  %v6662_v22 = vld [vmem:[#allocation14 + $0x20] sm:$0xff] }
 0x292   :  { %10063 = vst [vmem:[#allocation187_spill] sm:$0xff] %v6647_v31  ;;  %1668 = vmatpush.msrb.mxu2 %v6662_v22  ;;  %v6665_v31 = vld [vmem:[#allocation14 + $0x28] sm:$0xff] }
 0x293   :  { %10064 = vst [vmem:[#allocation188_spill] sm:$0xff] %v6650_v59  ;;  %1688 = vmatpush.msra.mxu3 %v6665_v31  ;;  %v6668_v59 = vld [vmem:[#allocation14 + $0x30] sm:$0xff] }
 0x294   :  { %10065 = vst [vmem:[#allocation189_spill] sm:$0xff] %v6653_v13  ;;  %1708 = vmatpush.msrb.mxu0 %v6668_v59  ;;  %v6671_v13 = vld [vmem:[#allocation14 + $0x38] sm:$0xff] }
 0x295   :  { %10066 = vst [vmem:[#allocation190_spill] sm:$0xff] %v6656_v46  ;;  %1728 = vmatpush.msra.mxu1 %v6671_v13  ;;  %v6674_v46 = vld [vmem:[#allocation14] sm:$0xff] }
 0x296   :  { %10067 = vst [vmem:[#allocation191_spill] sm:$0xff] %v6659_v6  ;;  %1669 = vmatpush.msrb.mxu2 %v6674_v46  ;;  %v6677_v6 = vld [vmem:[#allocation14 + $0x8] sm:$0xff] }
 0x297   :  { %10068 = vst [vmem:[#allocation192_spill] sm:$0xff] %v6662_v22  ;;  %1689 = vmatpush.msra.mxu3 %v6677_v6  ;;  %v6680_v22 = vld [vmem:[#allocation14 + $0x10] sm:$0xff] }
 0x298   :  { %10069 = vst [vmem:[#allocation193_spill] sm:$0xff] %v6665_v31  ;;  %1709 = vmatpush.msrb.mxu0 %v6680_v22  ;;  %v6683_v31 = vld [vmem:[#allocation14 + $0x18] sm:$0xff] }
 0x299   :  { %10070 = vst [vmem:[#allocation194_spill] sm:$0xff] %v6668_v59  ;;  %1729 = vmatpush.msra.mxu1 %v6683_v31  ;;  %v1250_v59 = vpop.f32.mrf.mxu0 }
 0x29a   :  { %10071 = vst [vmem:[#allocation195_spill] sm:$0xff] %v6671_v13 }
 0x29b   :  { %10072 = vst [vmem:[#allocation196_spill] sm:$0xff] %v6674_v46 }
 0x29c   :  { %10073 = vst [vmem:[#allocation197_spill] sm:$0xff] %v6677_v6  ;;  %v1311_v6 = vadd.f32 %v1310_v37, %v1230_v36  ;;  %v10077_v36 = vld [vmem:[#allocation100_spill] sm:$0xff] }
 0x29d   :  { %10074 = vst [vmem:[#allocation198_spill] sm:$0xff] %v6680_v22  ;;  %v381_v37 = vadd.f32 %v6695_v32, %v10077_v36 }
 0x29e   :  { %10075 = vst [vmem:[#allocation199_spill] sm:$0xff] %v6683_v31  ;;  %v1354_v22 = vadd.f32 %v1311_v6, %v6037_v55 }
 0x29f   :  { %10076 = vst [vmem:[#allocation200_spill] sm:$0xff] %v6695_v32 }
 0x2a0   :  { %v3872_v31 = vmul.f32 -1.442695, %v1354_v22 }
 0x2a1   :  { %v1330_v13 = vpop.f32.mrf.mxu0 }
 0x2a2   :  { %v1331_v45 = vadd.f32 %v1330_v13, %v1250_v59 }
 0x2a4   :  { %v1355_v2 = vadd.f32 %v1331_v45, %v6032_v34 }
 0x2a6   :  { %v3873_v46 = vmul.f32 -1.442695, %v1355_v2  ;;  %v1350_v2 = vpop.f32.mrf.mxu1 }
 0x2a7   :  { %v1351_v15 = vadd.f32 %v1350_v2, %v1270_v5  ;;  %v6705_v5 = vld [vmem:[%s9000_s1 + $0x8] sm:$0xff]  ;;  %v6712_v2 = vld [vmem:[%s9000_s1] sm:$0xff] }
 0x2a8   :  { %3976 = vpow2.f32 %v3873_v46  ;;  %10078 = vst [vmem:[#allocation100_spill] sm:$0xff] %v6705_v5 }
 0x2a9   :  { %3978 = vpow2.f32 %v3871_v43  ;;  %v1356_v43 = vadd.f32 %v1351_v15, %v6050_v19  ;;  %v1484_v56 = vpop.f32.mrf.mxu0  ;;  %v379_v15 = vadd.f32 %v6712_v2, %v5809_v60 }
 0x2aa   :  { %3980 = vpow2.f32 %v3872_v31  ;;  %v1509_v22 = vadd.f32 %v1484_v56, %v381_v37 }
 0x2ac   :  { %v3876_v37 = vmul.f32 -1.442695, %v1509_v22 }
 0x2ae   :  { %v3977_v29 = vpop.eup %3976 }
 0x2af   :  { %v6689_v26 = vadd.f32 1.0, %v3977_v29  ;;  %v3979_v59 = vpop.eup %3978 }
 0x2b0   :  { %v3981_v45 = vpop.eup %3980  ;;  %v1366_v13 = vadd.f32 1.0, %v3979_v59  ;;  %v10079_v59 = vld [vmem:[#allocation37_spill] sm:$0xff] }
 0x2b1   :  { %3982 = vrcp.f32 %v6689_v26  ;;  %v1367_v48 = vadd.f32 1.0, %v3981_v45  ;;  %v380_v45 = vadd.f32 %v6705_v5, %v10079_v59  ;;  %10080 = vst [vmem:[#allocation37_spill] sm:$0xff] %v6712_v2  ;;  %v1444_v59 = vpop.f32.mrf.mxu2  ;;  %v1464_v5 = vpop.f32.mrf.mxu3  ;;  %vm1404_vm1 = vweird.f32 %v6689_v26 }
 0x2b2   :  { %3984 = vrcp.f32 %v1366_v13  ;;  %v1378_v32 = vand.u32 2147483647, %v1366_v13  ;;  %v1380_v55 = vand.u32 2147483648, %v1366_v13  ;;  %v1507_v47 = vadd.f32 %v1444_v59, %v379_v15  ;;  %v6738_v59 = vld [vmem:[%s9000_s1 + $0x18] sm:$0xff] }
 0x2b3   :  { %3986 = vrcp.f32 %v1367_v48  ;;  %v1395_v34 = vand.u32 2147483648, %v1367_v48  ;;  %v1508_v0 = vadd.f32 %v1464_v5, %v380_v45  ;;  %vm1374_vm8 = vweird.f32 %v1366_v13 }
 0x2b4   :  { %3988 = vtanh.f32 %v1356_v43  ;;  %v1393_v22 = vand.u32 2147483647, %v1367_v48  ;;  %v3874_v41 = vmul.f32 -1.442695, %v1507_v47  ;;  %vm1389_vm11 = vweird.f32 %v1367_v48 }
 0x2b5   :  { %3990 = vpow2.f32 %v3876_v37  ;;  %v3875_v43 = vmul.f32 -1.442695, %v1508_v0  ;;  %vm1379_vm12 = vcmp.eq.f32.partialorder %v1378_v32, 8.507059e+37 }
 0x2b6   :  { %3992 = vpow2.f32 %v3874_v41  ;;  %vm1394_vm15 = vcmp.eq.f32.partialorder %v1393_v22, 8.507059e+37 }
 0x2b7   :  { %v6699_v29 = vpop.eup %3982  ;;  %3994 = vpow2.f32 %v3875_v43 }
 0x2b8   :  { %v3985_v46 = vpop.eup %3984  ;;  %v1400_v56 = vmul.f32 %v6699_v29, %v6689_v26  ;;  %vm1405_vm0 = vweird.f32 %v6699_v29 }
 0x2b9   :  { %v3987_v31 = vpop.eup %3986  ;;  %v1370_v6 = vmul.f32 %v3985_v46, %v1366_v13  ;;  %vm1375_vm7 = vweird.f32 %v3985_v46  ;;  %vm1406_vm2 = vmor %vm1404_vm1, %vm1405_vm0 }
 0x2ba   :  { %v1385_v36 = vmul.f32 %v3987_v31, %v1367_v48  ;;  %vm1390_vm9 = vweird.f32 %v3987_v31  ;;  %v1401_v2 = vsub.f32 1.0, %v1400_v56  ;;  %vm1376_vm10 = vmor %vm1374_vm8, %vm1375_vm7 }
 0x2bb   :  { %v1371_v19 = vsub.f32 1.0, %v1370_v6  ;;  %v1381_v6 = vor.u32 1.1754944e-38, %v1380_v55  ;;  %vm1391_vm14 = vmor %vm1389_vm11, %vm1390_vm9 }
 0x2bc   :  { %v1386_v49 = vsub.f32 1.0, %v1385_v36  ;;  %v3989_v36 = vpop.eup %3988 }
 0x2bd   :  { %v1372_v16 = vmul.f32 %v3985_v46, %v1371_v19  ;;  %v1396_v19 = vor.u32 1.1754944e-38, %v1395_v34  ;;  %v3991_v15 = vpop.eup %3990 }
 0x2be   :  { %v1387_v60 = vmul.f32 %v3987_v31, %v1386_v49  ;;  %v1402_v49 = vmul.f32 %v6699_v29, %v1401_v2  ;;  %v6720_v55 = vadd.f32 1.0, %v3991_v15  ;;  %v1504_v2 = vpop.f32.mrf.mxu1 }
 0x2bf   :  { %v1373_v57 = vadd.f32 %v3985_v46, %v1372_v16 }
 0x2c0   :  { %v1388_v4 = vadd.f32 %v3987_v31, %v1387_v60  ;;  %v1403_v32 = vadd.f32 %v6699_v29, %v1402_v49  ;;  %v10081_v60 = vld [vmem:[#allocation121_spill] sm:$0xff]  ;;  %v6754_v49 = vld [vmem:[#allocation11 + $0x1e8] sm:$0xff] }
 0x2c1   :  { %v1377_v37 = vsel %vm1376_vm10, %v3985_v46, %v1373_v57  ;;  %v3993_v57 = vpop.eup %3992  ;;  %v1408_v46 = vand.u32 2147483647, %v6689_v26  ;;  %v382_v22 = vadd.f32 %v6738_v59, %v10081_v60  ;;  %v10098_v60 = vld [vmem:[#allocation52_spill] sm:$0xff] }
 0x2c2   :  { %v1382_v5 = vsel %vm1379_vm12, %v1381_v6, %v1377_v37  ;;  %v1392_v13 = vsel %vm1391_vm14, %v3987_v31, %v1388_v4  ;;  %v3995_v34 = vpop.eup %3994  ;;  %v1410_v4 = vand.u32 2147483648, %v6689_v26  ;;  %v1520_v41 = vadd.f32 1.0, %v3993_v57 }
 0x2c3   :  { %v1416_v16 = vmul.f32 %v3989_v36, %v1382_v5  ;;  %v1397_v47 = vsel %vm1394_vm15, %v1396_v19, %v1392_v13  ;;  %v1407_v31 = vsel %vm1406_vm2, %v6699_v29, %v1403_v32  ;;  %vm1409_vm3 = vcmp.eq.f32.partialorder %v1408_v46, 8.507059e+37  ;;  %v6826_v46 = vld [vmem:[#allocation11 + $0x68] sm:$0xff] }
 0x2c4   :  { %v1415_v0 = vmul.f32 %v1397_v47, %v6083_v1  ;;  %v6730_v1 = vadd.f32 1.0, %v3995_v34  ;;  %v1411_v45 = vor.u32 1.1754944e-38, %v1410_v4  ;;  %v1510_v37 = vadd.f32 %v1504_v2, %v382_v22  ;;  %v10097_v2 = vld [vmem:[#allocation50_spill] sm:$0xff]  ;;  %v10099_v22 = vld [vmem:[#allocation53_spill] sm:$0xff] }
 0x2c5   :  { %v1532_v57 = vand.u32 2147483647, %v1520_v41  ;;  %vm1528_vm6 = vweird.f32 %v1520_v41  ;;  %vm1558_vm14 = vweird.f32 %v6720_v55 }
 0x2c6   :  { %v6722_v48 = vadd.f32 %v1416_v16, %v1415_v0  ;;  %v1412_v43 = vsel %vm1409_vm3, %v1411_v45, %v1407_v31  ;;  %v1534_v16 = vand.u32 2147483648, %v1520_v41  ;;  %v1549_v32 = vand.u32 2147483648, %v6730_v1  ;;  %v10095_v31 = vld [vmem:[#allocation47_spill] sm:$0xff]  ;;  %v10096_v45 = vld [vmem:[#allocation48_spill] sm:$0xff] }
 0x2c7   :  { %v1547_v34 = vand.u32 2147483647, %v6730_v1  ;;  %vm1543_vm8 = vweird.f32 %v6730_v1  ;;  %vm1533_vm9 = vcmp.eq.f32.partialorder %v1532_v57, 8.507059e+37  ;;  %v10110_v57 = vld [vmem:[#allocation64_spill] sm:$0xff] }
 0x2c8   :  { %3996 = vtanh.f32 %v6722_v48 }
 0x2c9   :  { %3998 = vrcp.f32 %v6720_v55  ;;  %vm1548_vm11 = vcmp.eq.f32.partialorder %v1547_v34, 8.507059e+37  ;;  %v10113_v34 = vld [vmem:[#allocation68_spill] sm:$0xff] }
 0x2ca   :  { %4000 = vrcp.f32 %v1520_v41 }
 0x2cb   :  { %4002 = vrcp.f32 %v6730_v1 }
 0x2cc   :  { %4004 = vtanh.f32 %v1510_v37  ;;  %v10102_v37 = vld [vmem:[#allocation56_spill] sm:$0xff] }
 0x2ce   :  { %v3997_v56 = vpop.eup %3996 }
 0x2cf   :  { %v6742_v26 = vpop.eup %3998  ;;  %v6744_v6 = vmul.f32 %v3997_v56, %v1412_v43  ;;  %v6832_v56 = vld [vmem:[#allocation11 + $0x48] sm:$0xff] }
 0x2d0   :  { %v4001_v36 = vpop.eup %4000  ;;  %v1554_v5 = vmul.f32 %v6742_v26, %v6720_v55  ;;  %vm1559_vm12 = vweird.f32 %v6742_v26  ;;  %v10100_v43 = vld [vmem:[#allocation54_spill] sm:$0xff] }
 0x2d1   :  { %10082 = vst [vmem:[#allocation121_spill] sm:$0xff] %v6744_v6  ;;  %v4003_v29 = vpop.eup %4002  ;;  %v1524_v19 = vmul.f32 %v4001_v36, %v1520_v41  ;;  %1590 = vmatmul.f32.vlgmr.msra.gmra.mxu2 %v6744_v6  ;;  %1610 = vmatmul.f32.vlgmr.msrb.gmra.mxu3 %v6744_v6  ;;  %vm1529_vm4 = vweird.f32 %v4001_v36  ;;  %vm1560_vm15 = vmor %vm1558_vm14, %vm1559_vm12 }
 0x2d2   :  { %v1539_v15 = vmul.f32 %v4003_v29, %v6730_v1  ;;  %1630 = vmatmul.f32.vlgmr.msra.gmra.mxu0 %v6744_v6  ;;  %1650 = vmatmul.f32.vlgmr.msrb.gmra.mxu1 %v6744_v6  ;;  %vm1544_vm5 = vweird.f32 %v4003_v29  ;;  %vm1530_vm7 = vmor %vm1528_vm6, %vm1529_vm4  ;;  %v10094_v1 = vld [vmem:[#allocation46_spill] sm:$0xff]  ;;  %v7238_v6 = vld [vmem:[#allocation11 + $0x10] sm:$0xff] }
 0x2d3   :  { %v1525_v13 = vsub.f32 1.0, %v1524_v19  ;;  %1808 = vmatpush.msra.mxu2 %v6109_v11  ;;  %1828 = vmatpush.msrb.mxu3 %v6754_v49  ;;  %vm1545_vm10 = vmor %vm1543_vm8, %vm1544_vm5  ;;  %v6844_v19 = vld [vmem:[#allocation11 + $0x8] sm:$0xff] }
 0x2d4   :  { %v1540_v47 = vsub.f32 1.0, %v1539_v15  ;;  %1848 = vmatpush.msra.mxu0 %v6117_v9  ;;  %1868 = vmatpush.msrb.mxu1 %v6120_v24  ;;  %v1555_v9 = vsub.f32 1.0, %v1554_v5  ;;  %v1535_v24 = vor.u32 1.1754944e-38, %v1534_v16  ;;  %v10104_v15 = vld [vmem:[#allocation58_spill] sm:$0xff]  ;;  %v10105_v5 = vld [vmem:[#allocation59_spill] sm:$0xff]  ;;  %v10107_v16 = vld [vmem:[#allocation61_spill] sm:$0xff] }
 0x2d5   :  { %v1526_v0 = vmul.f32 %v4001_v36, %v1525_v13  ;;  %1809 = vmatpush.msra.mxu2 %v6126_v12  ;;  %1829 = vmatpush.msrb.mxu3 %v6129_v50  ;;  %v10106_v13 = vld [vmem:[#allocation60_spill] sm:$0xff]  ;;  %10271 = vst [vmem:[#allocation59_spill] sm:$0xff] %v7238_v6 }
 0x2d6   :  { %v1541_v11 = vmul.f32 %v4003_v29, %v1540_v47  ;;  %1849 = vmatpush.msra.mxu0 %v6132_v35  ;;  %1869 = vmatpush.msrb.mxu1 %v6135_v53  ;;  %v1550_v35 = vor.u32 1.1754944e-38, %v1549_v32  ;;  %v4005_v53 = vpop.eup %4004  ;;  %v10108_v47 = vld [vmem:[#allocation62_spill] sm:$0xff]  ;;  %v10111_v32 = vld [vmem:[#allocation65_spill] sm:$0xff] }
 0x2d7   :  { %v1527_v4 = vadd.f32 %v4001_v36, %v1526_v0  ;;  %1810 = vmatpush.msra.mxu2 %v6138_v8  ;;  %1830 = vmatpush.msrb.mxu3 %v6141_v63  ;;  %v10109_v0 = vld [vmem:[#allocation63_spill] sm:$0xff] }
 0x2d8   :  { %v1542_v12 = vadd.f32 %v4003_v29, %v1541_v11  ;;  %1850 = vmatpush.msra.mxu0 %v6144_v39  ;;  %1870 = vmatpush.msrb.mxu1 %v6147_v62  ;;  %v1556_v39 = vmul.f32 %v6742_v26, %v1555_v9  ;;  %v10112_v11 = vld [vmem:[#allocation66_spill] sm:$0xff] }
 0x2d9   :  { %v1531_v50 = vsel %vm1530_vm7, %v4001_v36, %v1527_v4  ;;  %1811 = vmatpush.msra.mxu2 %v6152_v17  ;;  %1831 = vmatpush.msrb.mxu3 %v6155_v14  ;;  %v10101_v36 = vld [vmem:[#allocation55_spill] sm:$0xff]  ;;  %v10114_v9 = vld [vmem:[#allocation70_spill] sm:$0xff] }
 0x2da   :  { %v1536_v8 = vsel %vm1533_vm9, %v1535_v24, %v1531_v50  ;;  %v1546_v63 = vsel %vm1545_vm10, %v4003_v29, %v1542_v12  ;;  %1851 = vmatpush.msra.mxu0 %v6158_v18  ;;  %1871 = vmatpush.msrb.mxu1 %v6161_v21  ;;  %v1557_v18 = vadd.f32 %v6742_v26, %v1556_v39  ;;  %v1562_v21 = vand.u32 2147483647, %v6720_v55  ;;  %v10103_v29 = vld [vmem:[#allocation57_spill] sm:$0xff]  ;;  %v10115_v4 = vld [vmem:[#allocation71_spill] sm:$0xff]  ;;  %v10116_v24 = vld [vmem:[#allocation72_spill] sm:$0xff] }
 0x2db   :  { %v1570_v62 = vmul.f32 %v4005_v53, %v1536_v8  ;;  %v1551_v41 = vsel %vm1548_vm11, %v1550_v35, %v1546_v63  ;;  %1812 = vmatpush.msra.mxu2 %v6168_v58  ;;  %1832 = vmatpush.msrb.mxu3 %v6171_v25  ;;  %v10117_v12 = vld [vmem:[#allocation73_spill] sm:$0xff]  ;;  %v10118_v50 = vld [vmem:[#allocation74_spill] sm:$0xff]  ;;  %v10119_v35 = vld [vmem:[#allocation75_spill] sm:$0xff] }
 0x2dc   :  { %v1569_v17 = vmul.f32 %v1551_v41, %v6095_v54  ;;  %1852 = vmatpush.msra.mxu0 %v6174_v61  ;;  %1872 = vmatpush.msrb.mxu1 %v6177_v28  ;;  %v1564_v54 = vand.u32 2147483648, %v6720_v55  ;;  %v1561_v58 = vsel %vm1560_vm15, %v6742_v26, %v1557_v18  ;;  %v10083_v61 = vld [vmem:[#allocation24_spill] sm:$0xff]  ;;  %vm1563_vm0 = vcmp.eq.f32.partialorder %v1562_v21, 8.507059e+37  ;;  %v10093_v55 = vld [vmem:[#allocation45_spill] sm:$0xff]  ;;  %v6838_v26 = vld [vmem:[#allocation11 + $0x28] sm:$0xff] }
 0x2dd   :  { %1813 = vmatpush.msra.mxu2 %v6180_v42  ;;  %1833 = vmatpush.msrb.mxu3 %v6183_v23  ;;  %v10084_v28 = vld [vmem:[#allocation28_spill] sm:$0xff]  ;;  %v10085_v42 = vld [vmem:[#allocation33_spill] sm:$0xff]  ;;  %v6808_v23 = vld [vmem:[#allocation11 + $0xc8] sm:$0xff] }
 0x2de   :  { %v6784_v14 = vadd.f32 %v1570_v62, %v1569_v17  ;;  %1853 = vmatpush.msra.mxu0 %v6186_v27  ;;  %1873 = vmatpush.msrb.mxu1 %v6189_v10  ;;  %v1565_v25 = vor.u32 1.1754944e-38, %v1564_v54  ;;  %v10120_v53 = vld [vmem:[#allocation76_spill] sm:$0xff]  ;;  %v10121_v8 = vld [vmem:[#allocation77_spill] sm:$0xff]  ;;  %v10122_v63 = vld [vmem:[#allocation79_spill] sm:$0xff] }
 0x2df   :  { %1814 = vmatpush.msra.mxu2 %v6192_v30  ;;  %1834 = vmatpush.msrb.mxu3 %v6195_v38  ;;  %v10086_v30 = vld [vmem:[#allocation38_spill] sm:$0xff]  ;;  %v10087_v38 = vld [vmem:[#allocation39_spill] sm:$0xff]  ;;  %v10123_v39 = vld [vmem:[#allocation80_spill] sm:$0xff] }
 0x2e0   :  { %4006 = vtanh.f32 %v6784_v14  ;;  %1854 = vmatpush.msra.mxu0 %v6198_v33  ;;  %1874 = vmatpush.msrb.mxu1 %v6201_v7  ;;  %v1566_v10 = vsel %vm1563_vm0, %v1565_v25, %v1561_v58  ;;  %v10088_v7 = vld [vmem:[#allocation40_spill] sm:$0xff]  ;;  %v10124_v62 = vld [vmem:[#allocation81_spill] sm:$0xff]  ;;  %v10125_v41 = vld [vmem:[#allocation82_spill] sm:$0xff] }
 0x2e1   :  { %1815 = vmatpush.msra.mxu2 %v6204_v44  ;;  %1835 = vmatpush.msrb.mxu3 %v6207_v40  ;;  %v6814_v44 = vld [vmem:[#allocation11 + $0xa8] sm:$0xff]  ;;  %v10089_v40 = vld [vmem:[#allocation41_spill] sm:$0xff]  ;;  %v10126_v17 = vld [vmem:[#allocation83_spill] sm:$0xff] }
 0x2e2   :  { %1855 = vmatpush.msra.mxu0 %v6210_v20  ;;  %1875 = vmatpush.msrb.mxu1 %v6213_v51  ;;  %v10090_v20 = vld [vmem:[#allocation42_spill] sm:$0xff]  ;;  %v10091_v51 = vld [vmem:[#allocation43_spill] sm:$0xff]  ;;  %v10127_v18 = vld [vmem:[#allocation84_spill] sm:$0xff] }
 0x2e3   :  { %1816 = vmatpush.msra.mxu2 %v6216_v52  ;;  %1836 = vmatpush.msrb.mxu3 %v6219_v3  ;;  %v6820_v52 = vld [vmem:[#allocation11 + $0x88] sm:$0xff]  ;;  %v10092_v3 = vld [vmem:[#allocation44_spill] sm:$0xff]  ;;  %v10128_v54 = vld [vmem:[#allocation85_spill] sm:$0xff] }
 0x2e4   :  { %1856 = vmatpush.msra.mxu0 %v10083_v61  ;;  %1876 = vmatpush.msrb.mxu1 %v10084_v28  ;;  %v10129_v21 = vld [vmem:[#allocation86_spill] sm:$0xff]  ;;  %v10130_v58 = vld [vmem:[#allocation88_spill] sm:$0xff]  ;;  %v10131_v25 = vld [vmem:[#allocation89_spill] sm:$0xff] }
 0x2e5   :  { %1817 = vmatpush.msra.mxu2 %v10085_v42  ;;  %1837 = vmatpush.msrb.mxu3 %v6808_v23  ;;  %v10132_v61 = vld [vmem:[#allocation90_spill] sm:$0xff]  ;;  %v10133_v28 = vld [vmem:[#allocation91_spill] sm:$0xff]  ;;  %v10134_v42 = vld [vmem:[#allocation92_spill] sm:$0xff] }
 0x2e6   :  { %v4007_v27 = vpop.eup %4006  ;;  %1857 = vmatpush.msra.mxu0 %v10086_v30  ;;  %1877 = vmatpush.msrb.mxu1 %v10087_v38  ;;  %v10137_v30 = vld [vmem:[#allocation95_spill] sm:$0xff]  ;;  %v10138_v38 = vld [vmem:[#allocation96_spill] sm:$0xff] }
 0x2e7   :  { %v1573_v33 = vmul.f32 %v4007_v27, %v1566_v10  ;;  %1818 = vmatpush.msra.mxu2 %v10088_v7  ;;  %1838 = vmatpush.msrb.mxu3 %v6814_v44  ;;  %v10135_v27 = vld [vmem:[#allocation93_spill] sm:$0xff]  ;;  %v10136_v10 = vld [vmem:[#allocation94_spill] sm:$0xff] }
 0x2e8   :  { %1858 = vmatpush.msra.mxu0 %v10089_v40  ;;  %1878 = vmatpush.msrb.mxu1 %v10090_v20  ;;  %v10140_v7 = vld [vmem:[#allocation98_spill] sm:$0xff]  ;;  %v10141_v40 = vld [vmem:[#allocation99_spill] sm:$0xff]  ;;  %v10142_v20 = vld [vmem:[#allocation101_spill] sm:$0xff] }
 0x2e9   :  { %1670 = vmatmul.f32.vlgmr.msrb.gmra.mxu2 %v1573_v33  ;;  %1690 = vmatmul.f32.vlgmr.msra.gmra.mxu3 %v1573_v33 }
 0x2ea   :  { %1710 = vmatmul.f32.vlgmr.msrb.gmra.mxu0 %v1573_v33  ;;  %1730 = vmatmul.f32.vlgmr.msra.gmra.mxu1 %v1573_v33 }
 0x2eb   :  { %1819 = vmatpush.msra.mxu2 %v10091_v51  ;;  %1839 = vmatpush.msrb.mxu3 %v6820_v52  ;;  %v10143_v51 = vld [vmem:[#allocation102_spill] sm:$0xff] }
 0x2ec   :  { %1859 = vmatpush.msra.mxu0 %v10092_v3  ;;  %1879 = vmatpush.msrb.mxu1 %v10093_v55  ;;  %v10144_v3 = vld [vmem:[#allocation103_spill] sm:$0xff]  ;;  %v10145_v55 = vld [vmem:[#allocation105_spill] sm:$0xff] }
 0x2ed   :  { %1820 = vmatpush.msra.mxu2 %v10094_v1  ;;  %1840 = vmatpush.msrb.mxu3 %v6826_v46  ;;  %v10146_v1 = vld [vmem:[#allocation106_spill] sm:$0xff] }
 0x2ee   :  { %1860 = vmatpush.msra.mxu0 %v10095_v31  ;;  %1880 = vmatpush.msrb.mxu1 %v10096_v45  ;;  %v10147_v31 = vld [vmem:[#allocation107_spill] sm:$0xff]  ;;  %v10148_v45 = vld [vmem:[#allocation109_spill] sm:$0xff] }
 0x2ef   :  { %1821 = vmatpush.msra.mxu2 %v10097_v2  ;;  %1841 = vmatpush.msrb.mxu3 %v6832_v56  ;;  %v10149_v2 = vld [vmem:[#allocation110_spill] sm:$0xff] }
 0x2f0   :  { %1861 = vmatpush.msra.mxu0 %v10098_v60  ;;  %1881 = vmatpush.msrb.mxu1 %v10099_v22  ;;  %v10150_v60 = vld [vmem:[#allocation111_spill] sm:$0xff]  ;;  %v10151_v22 = vld [vmem:[#allocation112_spill] sm:$0xff] }
 0x2f1   :  { %1822 = vmatpush.msra.mxu2 %v10100_v43  ;;  %1842 = vmatpush.msrb.mxu3 %v6838_v26  ;;  %v10152_v43 = vld [vmem:[#allocation113_spill] sm:$0xff] }
 0x2f2   :  { %1862 = vmatpush.msra.mxu0 %v10101_v36  ;;  %1882 = vmatpush.msrb.mxu1 %v10102_v37  ;;  %v10153_v36 = vld [vmem:[#allocation114_spill] sm:$0xff]  ;;  %v10154_v37 = vld [vmem:[#allocation115_spill] sm:$0xff] }
 0x2f3   :  { %1823 = vmatpush.msra.mxu2 %v10103_v29  ;;  %1843 = vmatpush.msrb.mxu3 %v6844_v19  ;;  %v10155_v29 = vld [vmem:[#allocation116_spill] sm:$0xff] }
 0x2f4   :  { %1863 = vmatpush.msra.mxu0 %v10104_v15  ;;  %1883 = vmatpush.msrb.mxu1 %v10105_v5  ;;  %v10156_v15 = vld [vmem:[#allocation117_spill] sm:$0xff]  ;;  %v10157_v5 = vld [vmem:[#allocation118_spill] sm:$0xff] }
 0x2f5   :  { %1824 = vmatmul.f32.vlgmr.msra.gmra.mxu2 %v1573_v33  ;;  %1844 = vmatmul.f32.vlgmr.msrb.gmra.mxu3 %v1573_v33 }
 0x2f6   :  { %1864 = vmatmul.f32.vlgmr.msra.gmra.mxu0 %v1573_v33  ;;  %1884 = vmatmul.f32.vlgmr.msrb.gmra.mxu1 %v1573_v33  ;;  %v10139_v33 = vld [vmem:[#allocation97_spill] sm:$0xff] }
 0x2f7   :  { %1955 = vmatpush.msrb.mxu2 %v10106_v13  ;;  %1975 = vmatpush.msra.mxu3 %v10107_v16  ;;  %v10158_v13 = vld [vmem:[#allocation119_spill] sm:$0xff]  ;;  %v10159_v16 = vld [vmem:[#allocation120_spill] sm:$0xff] }
 0x2f8   :  { %1995 = vmatpush.msrb.mxu0 %v10108_v47  ;;  %2015 = vmatpush.msra.mxu1 %v10109_v0  ;;  %v10160_v47 = vld [vmem:[#allocation122_spill] sm:$0xff]  ;;  %v10161_v0 = vld [vmem:[#allocation123_spill] sm:$0xff] }
 0x2f9   :  { %1956 = vmatpush.msrb.mxu2 %v10110_v57  ;;  %1976 = vmatpush.msra.mxu3 %v10111_v32  ;;  %v10162_v57 = vld [vmem:[#allocation125_spill] sm:$0xff]  ;;  %v10163_v32 = vld [vmem:[#allocation126_spill] sm:$0xff] }
 0x2fa   :  { %1996 = vmatpush.msrb.mxu0 %v10112_v11  ;;  %2016 = vmatpush.msra.mxu1 %v10113_v34  ;;  %v10164_v11 = vld [vmem:[#allocation128_spill] sm:$0xff]  ;;  %v10165_v34 = vld [vmem:[#allocation129_spill] sm:$0xff] }
 0x2fb   :  { %1957 = vmatpush.msrb.mxu2 %v10114_v9  ;;  %1977 = vmatpush.msra.mxu3 %v10115_v4  ;;  %v10166_v9 = vld [vmem:[#allocation130_spill] sm:$0xff]  ;;  %v10167_v4 = vld [vmem:[#allocation131_spill] sm:$0xff] }
 0x2fc   :  { %1997 = vmatpush.msrb.mxu0 %v10116_v24  ;;  %2017 = vmatpush.msra.mxu1 %v10117_v12  ;;  %v10168_v24 = vld [vmem:[#allocation132_spill] sm:$0xff]  ;;  %v10169_v12 = vld [vmem:[#allocation134_spill] sm:$0xff] }
 0x2fd   :  { %1958 = vmatpush.msrb.mxu2 %v10118_v50  ;;  %1978 = vmatpush.msra.mxu3 %v10119_v35  ;;  %v10170_v50 = vld [vmem:[#allocation135_spill] sm:$0xff]  ;;  %v10171_v35 = vld [vmem:[#allocation136_spill] sm:$0xff] }
 0x2fe   :  { %1998 = vmatpush.msrb.mxu0 %v10120_v53  ;;  %2018 = vmatpush.msra.mxu1 %v10121_v8  ;;  %v10172_v53 = vld [vmem:[#allocation137_spill] sm:$0xff]  ;;  %v10173_v8 = vld [vmem:[#allocation138_spill] sm:$0xff] }
 0x2ff   :  { %1959 = vmatpush.msrb.mxu2 %v10122_v63  ;;  %1979 = vmatpush.msra.mxu3 %v10123_v39  ;;  %v10174_v63 = vld [vmem:[#allocation139_spill] sm:$0xff]  ;;  %v10175_v39 = vld [vmem:[#allocation141_spill] sm:$0xff] }
 0x300   :  { %1999 = vmatpush.msrb.mxu0 %v10124_v62  ;;  %2019 = vmatpush.msra.mxu1 %v10125_v41  ;;  %v10176_v62 = vld [vmem:[#allocation142_spill] sm:$0xff]  ;;  %v10177_v41 = vld [vmem:[#allocation144_spill] sm:$0xff] }
 0x301   :  { %1960 = vmatpush.msrb.mxu2 %v10126_v17  ;;  %1980 = vmatpush.msra.mxu3 %v10127_v18  ;;  %v10178_v17 = vld [vmem:[#allocation145_spill] sm:$0xff]  ;;  %v10179_v18 = vld [vmem:[#allocation146_spill] sm:$0xff] }
 0x302   :  { %2000 = vmatpush.msrb.mxu0 %v10128_v54  ;;  %2020 = vmatpush.msra.mxu1 %v10129_v21  ;;  %v10180_v54 = vld [vmem:[#allocation147_spill] sm:$0xff]  ;;  %v10181_v21 = vld [vmem:[#allocation148_spill] sm:$0xff] }
 0x303   :  { %1961 = vmatpush.msrb.mxu2 %v10130_v58  ;;  %1981 = vmatpush.msra.mxu3 %v10131_v25  ;;  %v10182_v58 = vld [vmem:[#allocation149_spill] sm:$0xff]  ;;  %v10183_v25 = vld [vmem:[#allocation150_spill] sm:$0xff] }
 0x304   :  { %2001 = vmatpush.msrb.mxu0 %v10132_v61  ;;  %2021 = vmatpush.msra.mxu1 %v10133_v28  ;;  %v10184_v61 = vld [vmem:[#allocation152_spill] sm:$0xff]  ;;  %v10185_v28 = vld [vmem:[#allocation153_spill] sm:$0xff] }
 0x305   :  { %1962 = vmatpush.msrb.mxu2 %v10134_v42  ;;  %1982 = vmatpush.msra.mxu3 %v10135_v27  ;;  %v10186_v42 = vld [vmem:[#allocation154_spill] sm:$0xff]  ;;  %v10187_v27 = vld [vmem:[#allocation155_spill] sm:$0xff] }
 0x306   :  { %2002 = vmatpush.msrb.mxu0 %v10136_v10  ;;  %2022 = vmatpush.msra.mxu1 %v10137_v30  ;;  %v10188_v10 = vld [vmem:[#allocation156_spill] sm:$0xff]  ;;  %v10189_v30 = vld [vmem:[#allocation157_spill] sm:$0xff] }
 0x307   :  { %1963 = vmatpush.msrb.mxu2 %v10138_v38  ;;  %1983 = vmatpush.msra.mxu3 %v10139_v33  ;;  %v10190_v38 = vld [vmem:[#allocation158_spill] sm:$0xff]  ;;  %v10191_v33 = vld [vmem:[#allocation159_spill] sm:$0xff] }
 0x308   :  { %2003 = vmatpush.msrb.mxu0 %v10140_v7  ;;  %2023 = vmatpush.msra.mxu1 %v10141_v40  ;;  %v10192_v7 = vld [vmem:[#allocation160_spill] sm:$0xff]  ;;  %v10193_v40 = vld [vmem:[#allocation161_spill] sm:$0xff] }
 0x309   :  { %1964 = vmatpush.msrb.mxu2 %v10142_v20  ;;  %1984 = vmatpush.msra.mxu3 %v10143_v51  ;;  %v10194_v20 = vld [vmem:[#allocation162_spill] sm:$0xff]  ;;  %v10195_v51 = vld [vmem:[#allocation163_spill] sm:$0xff] }
 0x30a   :  { %2004 = vmatpush.msrb.mxu0 %v10144_v3  ;;  %2024 = vmatpush.msra.mxu1 %v10145_v55  ;;  %v10196_v3 = vld [vmem:[#allocation164_spill] sm:$0xff]  ;;  %v10197_v55 = vld [vmem:[#allocation165_spill] sm:$0xff] }
 0x30b   :  { %1965 = vmatpush.msrb.mxu2 %v10146_v1  ;;  %1985 = vmatpush.msra.mxu3 %v10147_v31  ;;  %v10198_v1 = vld [vmem:[#allocation167_spill] sm:$0xff]  ;;  %v10199_v31 = vld [vmem:[#allocation168_spill] sm:$0xff] }
 0x30c   :  { %2005 = vmatpush.msrb.mxu0 %v10148_v45  ;;  %2025 = vmatpush.msra.mxu1 %v10149_v2  ;;  %v10200_v45 = vld [vmem:[#allocation169_spill] sm:$0xff]  ;;  %v10201_v2 = vld [vmem:[#allocation78_spill] sm:$0xff] }
 0x30d   :  { %1966 = vmatpush.msrb.mxu2 %v10150_v60  ;;  %1986 = vmatpush.msra.mxu3 %v10151_v22  ;;  %v10202_v60 = vld [vmem:[#allocation35_spill] sm:$0xff] }
 0x30e   :  { %2006 = vmatpush.msrb.mxu0 %v10152_v43  ;;  %2026 = vmatpush.msra.mxu1 %v10153_v36  ;;  %v10203_v22 = vld [vmem:[#allocation143_spill] sm:$0xff]  ;;  %v10204_v43 = vld [vmem:[#allocation133_spill] sm:$0xff]  ;;  %v10205_v36 = vld [vmem:[#allocation104_spill] sm:$0xff] }
 0x30f   :  { %1967 = vmatpush.msrb.mxu2 %v10154_v37  ;;  %1987 = vmatpush.msra.mxu3 %v10155_v29  ;;  %v10206_v37 = vld [vmem:[#allocation172_spill] sm:$0xff]  ;;  %v10207_v29 = vld [vmem:[#allocation173_spill] sm:$0xff] }
 0x310   :  { %2007 = vmatpush.msrb.mxu0 %v10156_v15  ;;  %2027 = vmatpush.msra.mxu1 %v10157_v5  ;;  %v10208_v15 = vld [vmem:[#allocation174_spill] sm:$0xff]  ;;  %v10209_v5 = vld [vmem:[#allocation175_spill] sm:$0xff] }
 0x311   :  { %1968 = vmatpush.msrb.mxu2 %v10158_v13  ;;  %1988 = vmatpush.msra.mxu3 %v10159_v16  ;;  %v10210_v13 = vld [vmem:[#allocation176_spill] sm:$0xff]  ;;  %v10211_v16 = vld [vmem:[#allocation177_spill] sm:$0xff] }
 0x312   :  { %2008 = vmatpush.msrb.mxu0 %v10160_v47  ;;  %2028 = vmatpush.msra.mxu1 %v10161_v0  ;;  %v10212_v47 = vld [vmem:[#allocation178_spill] sm:$0xff]  ;;  %v10213_v0 = vld [vmem:[#allocation179_spill] sm:$0xff] }
 0x313   :  { %1969 = vmatpush.msrb.mxu2 %v10162_v57  ;;  %1989 = vmatpush.msra.mxu3 %v10163_v32  ;;  %v10214_v57 = vld [vmem:[#allocation180_spill] sm:$0xff]  ;;  %v10215_v32 = vld [vmem:[#allocation181_spill] sm:$0xff] }
 0x314   :  { %2009 = vmatpush.msrb.mxu0 %v10164_v11  ;;  %2029 = vmatpush.msra.mxu1 %v10165_v34  ;;  %v10216_v11 = vld [vmem:[#allocation182_spill] sm:$0xff]  ;;  %v10217_v34 = vld [vmem:[#allocation183_spill] sm:$0xff] }
 0x315   :  { %1970 = vmatpush.msrb.mxu2 %v10166_v9  ;;  %1990 = vmatpush.msra.mxu3 %v10167_v4  ;;  %v10218_v9 = vld [vmem:[#allocation184_spill] sm:$0xff]  ;;  %v10219_v4 = vld [vmem:[#allocation185_spill] sm:$0xff] }
 0x316   :  { %2010 = vmatpush.msrb.mxu0 %v10168_v24  ;;  %2030 = vmatpush.msra.mxu1 %v10169_v12  ;;  %v10220_v24 = vld [vmem:[#allocation186_spill] sm:$0xff]  ;;  %v10221_v12 = vld [vmem:[#allocation187_spill] sm:$0xff] }
 0x317   :  { %2035 = vmatpush.msra.mxu2 %v10170_v50  ;;  %2055 = vmatpush.msrb.mxu3 %v10171_v35  ;;  %v10222_v50 = vld [vmem:[#allocation188_spill] sm:$0xff]  ;;  %v10223_v35 = vld [vmem:[#allocation189_spill] sm:$0xff] }
 0x318   :  { %2075 = vmatpush.msra.mxu0 %v10172_v53  ;;  %2095 = vmatpush.msrb.mxu1 %v10173_v8  ;;  %v10224_v53 = vld [vmem:[#allocation190_spill] sm:$0xff]  ;;  %v10225_v8 = vld [vmem:[#allocation191_spill] sm:$0xff] }
 0x319   :  { %2036 = vmatpush.msra.mxu2 %v10174_v63  ;;  %2056 = vmatpush.msrb.mxu3 %v10175_v39  ;;  %v10226_v63 = vld [vmem:[#allocation192_spill] sm:$0xff]  ;;  %v10227_v39 = vld [vmem:[#allocation193_spill] sm:$0xff] }
 0x31a   :  { %2076 = vmatpush.msra.mxu0 %v10176_v62  ;;  %2096 = vmatpush.msrb.mxu1 %v10177_v41  ;;  %v10228_v62 = vld [vmem:[#allocation194_spill] sm:$0xff]  ;;  %v10229_v41 = vld [vmem:[#allocation195_spill] sm:$0xff] }
 0x31b   :  { %2037 = vmatpush.msra.mxu2 %v10178_v17  ;;  %2057 = vmatpush.msrb.mxu3 %v10179_v18  ;;  %v10230_v17 = vld [vmem:[#allocation196_spill] sm:$0xff]  ;;  %v10231_v18 = vld [vmem:[#allocation197_spill] sm:$0xff] }
 0x31c   :  { %2077 = vmatpush.msra.mxu0 %v10180_v54  ;;  %2097 = vmatpush.msrb.mxu1 %v10181_v21  ;;  %v10232_v54 = vld [vmem:[#allocation198_spill] sm:$0xff]  ;;  %v10233_v21 = vld [vmem:[#allocation199_spill] sm:$0xff] }
 0x31d   :  { %2038 = vmatpush.msra.mxu2 %v10182_v58  ;;  %2058 = vmatpush.msrb.mxu3 %v10183_v25 }
 0x31e   :  { %2078 = vmatpush.msra.mxu0 %v10184_v61  ;;  %2098 = vmatpush.msrb.mxu1 %v10185_v28 }
 0x31f   :  { %2039 = vmatpush.msra.mxu2 %v10186_v42  ;;  %2059 = vmatpush.msrb.mxu3 %v10187_v27  ;;  %v10234_v27 = vld [vmem:[#allocation26_spill] sm:$0xff] }
 0x320   :  { %2079 = vmatpush.msra.mxu0 %v10188_v10  ;;  %2099 = vmatpush.msrb.mxu1 %v10189_v30 }
 0x321   :  { %2040 = vmatpush.msra.mxu2 %v10190_v38  ;;  %2060 = vmatpush.msrb.mxu3 %v10191_v33 }
 0x322   :  { %2080 = vmatpush.msra.mxu0 %v10192_v7  ;;  %2100 = vmatpush.msrb.mxu1 %v10193_v40 }
 0x323   :  { %2041 = vmatpush.msra.mxu2 %v10194_v20  ;;  %2061 = vmatpush.msrb.mxu3 %v10195_v51  ;;  %v10235_v20 = vld [vmem:[#allocation31_spill] sm:$0xff] }
 0x324   :  { %2081 = vmatpush.msra.mxu0 %v10196_v3  ;;  %2101 = vmatpush.msrb.mxu1 %v10197_v55  ;;  %v10236_v3 = vld [vmem:[#allocation23_spill] sm:$0xff] }
 0x325   :  { %2042 = vmatpush.msra.mxu2 %v10198_v1  ;;  %2062 = vmatpush.msrb.mxu3 %v10199_v31 }
 0x326   :  { %2082 = vmatpush.msra.mxu0 %v10200_v45  ;;  %2102 = vmatpush.msrb.mxu1 %v10201_v2  ;;  %v10237_v45 = vld [vmem:[#allocation124_spill] sm:$0xff] }
 0x327   :  { %2043 = vmatpush.msra.mxu2 %v10202_v60  ;;  %2063 = vmatpush.msrb.mxu3 %v10203_v22  ;;  %v10238_v2 = vld [vmem:[#allocation200_spill] sm:$0xff] }
 0x328   :  { %2083 = vmatpush.msra.mxu0 %v10204_v43  ;;  %2103 = vmatpush.msrb.mxu1 %v10205_v36  ;;  %v385_v60 = vadd.f32 %v10238_v2, %v10237_v45 }
 0x329   :  { %2044 = vmatpush.msra.mxu2 %v10206_v37  ;;  %2064 = vmatpush.msrb.mxu3 %v10207_v29 }
 0x32a   :  { %2084 = vmatpush.msra.mxu0 %v10208_v15  ;;  %2104 = vmatpush.msrb.mxu1 %v10209_v5  ;;  %v10239_v15 = vld [vmem:[#allocation51_spill] sm:$0xff]  ;;  %v10240_v5 = vld [vmem:[#allocation100_spill] sm:$0xff] }
 0x32b   :  { %2045 = vmatpush.msra.mxu2 %v10210_v13  ;;  %2065 = vmatpush.msrb.mxu3 %v10211_v16  ;;  %v384_v13 = vadd.f32 %v10240_v5, %v10239_v15  ;;  %v10241_v16 = vld [vmem:[#allocation29_spill] sm:$0xff] }
 0x32c   :  { %2085 = vmatpush.msra.mxu0 %v10212_v47  ;;  %2105 = vmatpush.msrb.mxu1 %v10213_v0  ;;  %v10242_v47 = vld [vmem:[#allocation37_spill] sm:$0xff] }
 0x32d   :  { %2046 = vmatpush.msra.mxu2 %v10214_v57  ;;  %2066 = vmatpush.msrb.mxu3 %v10215_v32  ;;  %v383_v0 = vadd.f32 %v10242_v47, %v10241_v16 }
 0x32e   :  { %2086 = vmatpush.msra.mxu0 %v10216_v11  ;;  %2106 = vmatpush.msrb.mxu1 %v10217_v34 }
 0x32f   :  { %2047 = vmatpush.msra.mxu2 %v10218_v9  ;;  %2067 = vmatpush.msrb.mxu3 %v10219_v4 }
 0x330   :  { %2087 = vmatpush.msra.mxu0 %v10220_v24  ;;  %2107 = vmatpush.msrb.mxu1 %v10221_v12 }
 0x331   :  { %2048 = vmatpush.msra.mxu2 %v10222_v50  ;;  %2068 = vmatpush.msrb.mxu3 %v10223_v35 }
 0x332   :  { %2088 = vmatpush.msra.mxu0 %v10224_v53  ;;  %2108 = vmatpush.msrb.mxu1 %v10225_v8 }
 0x333   :  { %2049 = vmatpush.msra.mxu2 %v10226_v63  ;;  %2069 = vmatpush.msrb.mxu3 %v10227_v39 }
 0x334   :  { %2089 = vmatpush.msra.mxu0 %v10228_v62  ;;  %2109 = vmatpush.msrb.mxu1 %v10229_v41  ;;  %v10243_v41 = vld [vmem:[#allocation27_spill] sm:$0xff] }
 0x335   :  { %2050 = vmatpush.msra.mxu2 %v10230_v17  ;;  %2070 = vmatpush.msrb.mxu3 %v10231_v18 }
 0x336   :  { %2090 = vmatpush.msra.mxu0 %v10232_v54  ;;  %2110 = vmatpush.msrb.mxu1 %v10233_v21 }
 0x34f   :  { %v1631_v58 = vpop.f32.mrf.mxu0  ;;  %v1651_v22 = vpop.f32.mrf.mxu1 }
 0x354   :  { %v1591_v25 = vpop.f32.mrf.mxu2  ;;  %v1611_v61 = vpop.f32.mrf.mxu3 }
 0x367   :  { %v1711_v28 = vpop.f32.mrf.mxu0  ;;  %v1731_v12 = vpop.f32.mrf.mxu1 }
 0x368   :  { %v1712_v42 = vadd.f32 %v1711_v28, %v1631_v58  ;;  %v1732_v63 = vadd.f32 %v1731_v12, %v1651_v22 }
 0x36a   :  { %v1736_v10 = vadd.f32 %v1712_v42, %v10234_v27  ;;  %v1737_v17 = vadd.f32 %v1732_v63, %v10243_v41 }
 0x36c   :  { %v3879_v30 = vmul.f32 -1.442695, %v1736_v10  ;;  %v1671_v38 = vpop.f32.mrf.mxu2  ;;  %v1691_v33 = vpop.f32.mrf.mxu3 }
 0x36d   :  { %v1672_v7 = vadd.f32 %v1671_v38, %v1591_v25  ;;  %v1692_v40 = vadd.f32 %v1691_v33, %v1611_v61  ;;  %v10244_v25 = vld [vmem:[#allocation140_spill] sm:$0xff] }
 0x36e   :  { %4008 = vpow2.f32 %v3879_v30  ;;  %v386_v61 = vadd.f32 %v6738_v59, %v10244_v25 }
 0x36f   :  { %v1734_v51 = vadd.f32 %v1672_v7, %v10235_v20  ;;  %v1735_v55 = vadd.f32 %v1692_v40, %v10236_v3 }
 0x371   :  { %v3877_v1 = vmul.f32 -1.442695, %v1734_v51  ;;  %v3878_v31 = vmul.f32 -1.442695, %v1735_v55 }
 0x373   :  { %4010 = vpow2.f32 %v3877_v1  ;;  %v1865_v43 = vpop.f32.mrf.mxu0  ;;  %v1885_v2 = vpop.f32.mrf.mxu1 }
 0x374   :  { %v4009_v36 = vpop.eup %4008  ;;  %4012 = vpow2.f32 %v3878_v31  ;;  %v1890_v37 = vadd.f32 %v1865_v43, %v385_v60 }
 0x375   :  { %v6982_v29 = vadd.f32 1.0, %v4009_v36 }
 0x376   :  { %v3882_v57 = vmul.f32 -1.442695, %v1890_v37 }
 0x377   :  { %4014 = vrcp.f32 %v6982_v29  ;;  %vm1785_vm9 = vweird.f32 %v6982_v29  ;;  %v1791_v12 = vand.u32 2147483648, %v6982_v29 }
 0x378   :  { %v1825_v32 = vpop.f32.mrf.mxu2  ;;  %v1845_v11 = vpop.f32.mrf.mxu3  ;;  %4016 = vpow2.f32 %v3882_v57 }
 0x379   :  { %v4011_v34 = vpop.eup %4010  ;;  %v1888_v9 = vadd.f32 %v1825_v32, %v383_v0  ;;  %v1889_v4 = vadd.f32 %v1845_v11, %v384_v13  ;;  %v1891_v13 = vadd.f32 %v1885_v2, %v386_v61 }
 0x37a   :  { %v4013_v24 = vpop.eup %4012  ;;  %v1747_v50 = vadd.f32 1.0, %v4011_v34 }
 0x37b   :  { %v1748_v35 = vadd.f32 1.0, %v4013_v24  ;;  %v3880_v53 = vmul.f32 -1.442695, %v1888_v9  ;;  %v3881_v8 = vmul.f32 -1.442695, %v1889_v4 }
 0x37c   :  { %4018 = vrcp.f32 %v1747_v50  ;;  %v1759_v7 = vand.u32 2147483647, %v1747_v50  ;;  %v1761_v40 = vand.u32 2147483648, %v1747_v50  ;;  %vm1755_vm3 = vweird.f32 %v1747_v50 }
 0x37d   :  { %4020 = vrcp.f32 %v1748_v35  ;;  %v6989_v39 = vpop.eup %4014  ;;  %v1776_v31 = vand.u32 2147483648, %v1748_v35  ;;  %v1774_v45 = vand.u32 2147483647, %v1748_v35  ;;  %vm1770_vm5 = vweird.f32 %v1748_v35 }
 0x37e   :  { %4022 = vpow2.f32 %v3880_v53  ;;  %v4017_v62 = vpop.eup %4016  ;;  %v1781_v30 = vmul.f32 %v6989_v39, %v6982_v29  ;;  %v1762_v43 = vor.u32 1.1754944e-38, %v1761_v40  ;;  %vm1760_vm6 = vcmp.eq.f32.partialorder %v1759_v7, 8.507059e+37 }
 0x37f   :  { %4024 = vpow2.f32 %v3881_v8  ;;  %v6994_v42 = vadd.f32 1.0, %v4017_v62  ;;  %v1777_v5 = vor.u32 1.1754944e-38, %v1776_v31  ;;  %vm1775_vm8 = vcmp.eq.f32.partialorder %v1774_v45, 8.507059e+37 }
 0x380   :  { %4026 = vtanh.f32 %v1737_v17  ;;  %v1782_v60 = vsub.f32 1.0, %v1781_v30  ;;  %vm1786_vm10 = vweird.f32 %v6989_v39 }
 0x381   :  { %vm7031_vm15 = vmor %vm1785_vm9, %vm1786_vm10 }
 0x382   :  { %v4019_v18 = vpop.eup %4018  ;;  %v1783_v57 = vmul.f32 %v6989_v39, %v1782_v60 }
 0x383   :  { %v4021_v54 = vpop.eup %4020  ;;  %v1751_v21 = vmul.f32 %v4019_v18, %v1747_v50  ;;  %vm1756_vm1 = vweird.f32 %v4019_v18 }
 0x384   :  { %v4023_v58 = vpop.eup %4022  ;;  %v1766_v28 = vmul.f32 %v4021_v54, %v1748_v35  ;;  %vm1771_vm2 = vweird.f32 %v4021_v54  ;;  %vm1757_vm4 = vmor %vm1755_vm3, %vm1756_vm1 }
 0x385   :  { %v4025_v10 = vpop.eup %4024  ;;  %v1752_v38 = vsub.f32 1.0, %v1751_v21  ;;  %v6998_v33 = vadd.f32 1.0, %v4023_v58  ;;  %vm1772_vm7 = vmor %vm1770_vm5, %vm1771_vm2  ;;  %v1789_v21 = vand.u32 2147483647, %v6982_v29 }
 0x386   :  { %v1767_v51 = vsub.f32 1.0, %v1766_v28  ;;  %v7000_v55 = vadd.f32 1.0, %v4025_v10  ;;  %v4027_v37 = vpop.eup %4026  ;;  %v7138_v28 = vld [vmem:[#allocation11 + $0x120] sm:$0xff] }
 0x387   :  { %v1753_v1 = vmul.f32 %v4019_v18, %v1752_v38  ;;  %4028 = vrcp.f32 %v6998_v33  ;;  %v1915_v8 = vand.u32 2147483648, %v6998_v33  ;;  %v1913_v17 = vand.u32 2147483647, %v6998_v33 }
 0x388   :  { %v1768_v59 = vmul.f32 %v4021_v54, %v1767_v51  ;;  %4030 = vrcp.f32 %v6994_v42  ;;  %vm1909_vm12 = vweird.f32 %v6998_v33  ;;  %v1928_v61 = vand.u32 2147483647, %v7000_v55 }
 0x389   :  { %v1754_v22 = vadd.f32 %v4019_v18, %v1753_v1  ;;  %4032 = vrcp.f32 %v7000_v55  ;;  %v1916_v38 = vor.u32 1.1754944e-38, %v1915_v8  ;;  %vm1914_vm1 = vcmp.eq.f32.partialorder %v1913_v17, 8.507059e+37  ;;  %v7104_v8 = vld [vmem:[#allocation11 + $0x190] sm:$0xff]  ;;  %v7113_v17 = vld [vmem:[#allocation11 + $0x168] sm:$0xff] }
 0x38a   :  { %v1769_v36 = vadd.f32 %v4021_v54, %v1768_v59  ;;  %4034 = vtanh.f32 %v1891_v13  ;;  %vm1924_vm2 = vweird.f32 %v7000_v55  ;;  %v1792_v1 = vor.u32 1.1754944e-38, %v1791_v12  ;;  %v7062_v13 = vld [vmem:[#allocation11 + $0x1f8] sm:$0xff] }
 0x38b   :  { %v1758_v15 = vsel %vm1757_vm4, %v4019_v18, %v1754_v22  ;;  %vm1929_vm4 = vcmp.eq.f32.partialorder %v1928_v61, 8.507059e+37  ;;  %vm1790_vm5 = vcmp.eq.f32.partialorder %v1789_v21, 8.507059e+37  ;;  %v7126_v21 = vld [vmem:[#allocation11 + $0x140] sm:$0xff]  ;;  %v7135_v61 = vld [vmem:[#allocation11 + $0x158] sm:$0xff] }
 0x38c   :  { %v1763_v16 = vsel %vm1760_vm6, %v1762_v43, %v1758_v15  ;;  %v1773_v47 = vsel %vm1772_vm7, %v4021_v54, %v1769_v36  ;;  %v1930_v54 = vand.u32 2147483648, %v7000_v55  ;;  %vm1939_vm7 = vweird.f32 %v6994_v42 }
 0x38d   :  { %v4029_v0 = vpop.eup %4028  ;;  %v1797_v32 = vmul.f32 %v4027_v37, %v1763_v16  ;;  %v1778_v11 = vsel %vm1775_vm8, %v1777_v5, %v1773_v47  ;;  %v1945_v37 = vand.u32 2147483648, %v6994_v42  ;;  %v1943_v15 = vand.u32 2147483647, %v6994_v42  ;;  %v7059_v5 = vld [vmem:[#allocation11 + $0x1f0] sm:$0xff]  ;;  %v7069_v47 = vld [vmem:[#allocation11 + $0x1c0] sm:$0xff] }
 0x38e   :  { %v7007_v34 = vpop.eup %4030  ;;  %v1796_v9 = vmul.f32 %v1778_v11, %v6722_v48  ;;  %v1905_v4 = vmul.f32 %v4029_v0, %v6998_v33  ;;  %v1784_v48 = vadd.f32 %v6989_v39, %v1783_v57  ;;  %vm1910_vm11 = vweird.f32 %v4029_v0  ;;  %v7081_v57 = vld [vmem:[#allocation11 + $0x1d8] sm:$0xff]  ;;  %v7084_v11 = vld [vmem:[#allocation11 + $0x1a0] sm:$0xff]  ;;  %v7208_v16 = vld [vmem:[#allocation11 + $0x70] sm:$0xff] }
 0x38f   :  { %v4033_v24 = vpop.eup %4032  ;;  %v1935_v53 = vmul.f32 %v7007_v34, %v6994_v42  ;;  %vm1911_vm0 = vmor %vm1909_vm12, %vm1910_vm11  ;;  %v1931_v29 = vor.u32 1.1754944e-38, %v1930_v54  ;;  %vm1940_vm6 = vweird.f32 %v7007_v34  ;;  %vm1944_vm9 = vcmp.eq.f32.partialorder %v1943_v15, 8.507059e+37  ;;  %v7123_v54 = vld [vmem:[#allocation11 + $0x178] sm:$0xff]  ;;  %10262 = vst [vmem:[#allocation48_spill] sm:$0xff] %v7208_v16 }
 0x390   :  { %v1906_v50 = vsub.f32 1.0, %v1905_v4  ;;  %v1920_v35 = vmul.f32 %v4033_v24, %v7000_v55  ;;  %v7019_v63 = vadd.f32 %v1797_v32, %v1796_v9  ;;  %vm1925_vm14 = vweird.f32 %v4033_v24  ;;  %v4035_v10 = vpop.eup %4034  ;;  %vm7065_vm8 = vmor %vm1939_vm7, %vm1940_vm6  ;;  %v7087_v9 = vld [vmem:[#allocation11 + $0x1a8] sm:$0xff]  ;;  %v7090_v4 = vld [vmem:[#allocation11 + $0x1b0] sm:$0xff] }
 0x391   :  { %v1936_v30 = vsub.f32 1.0, %v1935_v53  ;;  %v1788_v33 = vsel %vm7031_vm15, %v6989_v39, %v1784_v48  ;;  %vm1926_vm3 = vmor %vm1924_vm2, %vm1925_vm14  ;;  %v1946_v32 = vor.u32 1.1754944e-38, %v1945_v37  ;;  %v7107_v48 = vld [vmem:[#allocation11 + $0x198] sm:$0xff]  ;;  %v7198_v37 = vld [vmem:[#allocation11 + $0x90] sm:$0xff] }
 0x392   :  { %v1907_v62 = vmul.f32 %v4029_v0, %v1906_v50  ;;  %v1921_v18 = vsub.f32 1.0, %v1920_v35  ;;  %4036 = vtanh.f32 %v7019_v63  ;;  %v1793_v22 = vsel %vm1790_vm5, %v1792_v1, %v1788_v33  ;;  %v7096_v50 = vld [vmem:[#allocation11 + $0x180] sm:$0xff]  ;;  %v7099_v35 = vld [vmem:[#allocation11 + $0x188] sm:$0xff]  ;;  %10259 = vst [vmem:[#allocation45_spill] sm:$0xff] %v7198_v37  ;;  %v7201_v15 = vld [vmem:[#allocation11 + $0x98] sm:$0xff] }
 0x393   :  { %v1937_v2 = vmul.f32 %v7007_v34, %v1936_v30  ;;  %v7144_v30 = vld [vmem:[#allocation11 + $0x130] sm:$0xff]  ;;  %v7150_v33 = vld [vmem:[#allocation11 + $0x100] sm:$0xff]  ;;  %v7165_v1 = vld [vmem:[#allocation11 + $0xe8] sm:$0xff]  ;;  %10260 = vst [vmem:[#allocation46_spill] sm:$0xff] %v7201_v15 }
 0x394   :  { %v1908_v58 = vadd.f32 %v4029_v0, %v1907_v62  ;;  %v1922_v25 = vmul.f32 %v4033_v24, %v1921_v18  ;;  %v7110_v62 = vld [vmem:[#allocation11 + $0x160] sm:$0xff]  ;;  %v7120_v18 = vld [vmem:[#allocation11 + $0x170] sm:$0xff] }
 0x395   :  { %v1938_v55 = vadd.f32 %v7007_v34, %v1937_v2  ;;  %v7178_v2 = vld [vmem:[#allocation11 + $0xd0] sm:$0xff] }
 0x396   :  { %v1912_v7 = vsel %vm1911_vm0, %v4029_v0, %v1908_v58  ;;  %v1923_v40 = vadd.f32 %v4033_v24, %v1922_v25  ;;  %v7078_v0 = vld [vmem:[#allocation11 + $0x1d0] sm:$0xff]  ;;  %v7129_v58 = vld [vmem:[#allocation11 + $0x148] sm:$0xff]  ;;  %10253 = vst [vmem:[#allocation39_spill] sm:$0xff] %v7178_v2 }
 0x397   :  { %v1917_v51 = vsel %vm1914_vm1, %v1916_v38, %v1912_v7  ;;  %v1942_v42 = vsel %vm7065_vm8, %v7007_v34, %v1938_v55  ;;  %v7093_v34 = vld [vmem:[#allocation11 + $0x1b8] sm:$0xff]  ;;  %v7132_v25 = vld [vmem:[#allocation11 + $0x150] sm:$0xff]  ;;  %v7153_v7 = vld [vmem:[#allocation11 + $0x108] sm:$0xff] }
 0x398   :  { %v1951_v31 = vmul.f32 %v4035_v10, %v1917_v51  ;;  %v1927_v59 = vsel %vm1926_vm3, %v4033_v24, %v1923_v40  ;;  %v4037_v45 = vpop.eup %4036  ;;  %v1947_v12 = vsel %vm1944_vm9, %v1946_v32, %v1942_v42  ;;  %v7141_v10 = vld [vmem:[#allocation11 + $0x128] sm:$0xff]  ;;  %v7147_v38 = vld [vmem:[#allocation11 + $0x138] sm:$0xff]  ;;  %v7156_v40 = vld [vmem:[#allocation11 + $0x110] sm:$0xff] }
 0x399   :  { %v1932_v60 = vsel %vm1929_vm4, %v1931_v29, %v1927_v59  ;;  %v7041_v43 = vmul.f32 %v4037_v45, %v1793_v22  ;;  %v7159_v51 = vld [vmem:[#allocation11 + $0x118] sm:$0xff]  ;;  %v7162_v29 = vld [vmem:[#allocation11 + $0xe0] sm:$0xff]  ;;  %v7218_v32 = vld [vmem:[#allocation11 + $0x50] sm:$0xff] }
 0x39a   :  { %v1950_v39 = vmul.f32 %v1932_v60, %v6784_v14  ;;  %v7053_v14 = vld [vmem:[#allocation11 + $0x1e0] sm:$0xff]  ;;  %v7171_v59 = vld [vmem:[#allocation11 + $0xf8] sm:$0xff]  ;;  %10265 = vst [vmem:[#allocation53_spill] sm:$0xff] %v7218_v32 }
 0x39b   :  { %10247 = vst [vmem:[#allocation24_spill] sm:$0xff] %v7041_v43  ;;  %1971 = vmatmul.f32.vlgmr.msrb.gmra.mxu2 %v7041_v43  ;;  %1991 = vmatmul.f32.vlgmr.msra.gmra.mxu3 %v7041_v43  ;;  %v7174_v45 = vld [vmem:[#allocation11 + $0xc0] sm:$0xff]  ;;  %v7181_v60 = vld [vmem:[#allocation11 + $0xd8] sm:$0xff] }
 0x39c   :  { %v7043_v36 = vadd.f32 %v1951_v31, %v1950_v39  ;;  %2011 = vmatmul.f32.vlgmr.msrb.gmra.mxu0 %v7041_v43  ;;  %2031 = vmatmul.f32.vlgmr.msra.gmra.mxu1 %v7041_v43  ;;  %v7168_v31 = vld [vmem:[#allocation11 + $0xf0] sm:$0xff]  ;;  %10251 = vst [vmem:[#allocation33_spill] sm:$0xff] %v7171_v59  ;;  %v7184_v22 = vld [vmem:[#allocation11 + $0xa0] sm:$0xff]  ;;  %v7191_v55 = vld [vmem:[#allocation11 + $0xb8] sm:$0xff] }
 0x39d   :  { %2189 = vmatpush.msrb.mxu2 %v7053_v14  ;;  %2209 = vmatpush.msra.mxu3 %v6754_v49  ;;  %v7072_v49 = vld [vmem:[#allocation11 + $0x1c8] sm:$0xff]  ;;  %10250 = vst [vmem:[#allocation28_spill] sm:$0xff] %v7168_v31  ;;  %v7188_v39 = vld [vmem:[#allocation11 + $0xb0] sm:$0xff]  ;;  %v7211_v42 = vld [vmem:[#allocation11 + $0x78] sm:$0xff] }
 0x39e   :  { %4038 = vtanh.f32 %v7043_v36  ;;  %2229 = vmatpush.msrb.mxu0 %v7059_v5  ;;  %2249 = vmatpush.msra.mxu1 %v7062_v13  ;;  %10252 = vst [vmem:[#allocation38_spill] sm:$0xff] %v7174_v45  ;;  %v7231_v43 = vld [vmem:[#allocation11 + $0x38] sm:$0xff] }
 0x39f   :  { %2190 = vmatpush.msrb.mxu2 %v7069_v47  ;;  %2210 = vmatpush.msra.mxu3 %v7072_v49  ;;  %10254 = vst [vmem:[#allocation40_spill] sm:$0xff] %v7181_v60 }
 0x3a0   :  { %2230 = vmatpush.msrb.mxu0 %v7078_v0  ;;  %2250 = vmatpush.msra.mxu1 %v7081_v57  ;;  %10255 = vst [vmem:[#allocation41_spill] sm:$0xff] %v7184_v22 }
 0x3a1   :  { %2191 = vmatpush.msrb.mxu2 %v7084_v11  ;;  %2211 = vmatpush.msra.mxu3 %v7087_v9  ;;  %10256 = vst [vmem:[#allocation42_spill] sm:$0xff] %v7188_v39 }
 0x3a2   :  { %2231 = vmatpush.msrb.mxu0 %v7090_v4  ;;  %2251 = vmatpush.msra.mxu1 %v7093_v34  ;;  %10257 = vst [vmem:[#allocation43_spill] sm:$0xff] %v7191_v55 }
 0x3a3   :  { %2192 = vmatpush.msrb.mxu2 %v7096_v50  ;;  %2212 = vmatpush.msra.mxu3 %v7099_v35  ;;  %10263 = vst [vmem:[#allocation50_spill] sm:$0xff] %v7211_v42 }
 0x3a4   :  { %v4039_v24 = vpop.eup %4038  ;;  %2232 = vmatpush.msrb.mxu0 %v7104_v8  ;;  %2252 = vmatpush.msra.mxu1 %v7107_v48  ;;  %10269 = vst [vmem:[#allocation57_spill] sm:$0xff] %v7231_v43 }
 0x3a5   :  { %v7102_v53 = vmul.f32 %v4039_v24, %v1947_v12  ;;  %2193 = vmatpush.msrb.mxu2 %v7110_v62  ;;  %2213 = vmatpush.msra.mxu3 %v7113_v17  ;;  %v7221_v24 = vld [vmem:[#allocation11 + $0x58] sm:$0xff]  ;;  %v7228_v12 = vld [vmem:[#allocation11 + $0x30] sm:$0xff] }
 0x3a6   :  { %2233 = vmatpush.msrb.mxu0 %v7120_v18  ;;  %2253 = vmatpush.msra.mxu1 %v7123_v54  ;;  %10266 = vst [vmem:[#allocation54_spill] sm:$0xff] %v7221_v24 }
 0x3a7   :  { %2051 = vmatmul.f32.vlgmr.msra.gmra.mxu2 %v7102_v53  ;;  %2071 = vmatmul.f32.vlgmr.msrb.gmra.mxu3 %v7102_v53  ;;  %10268 = vst [vmem:[#allocation56_spill] sm:$0xff] %v7228_v12 }
 0x3a8   :  { %2091 = vmatmul.f32.vlgmr.msra.gmra.mxu0 %v7102_v53  ;;  %2111 = vmatmul.f32.vlgmr.msrb.gmra.mxu1 %v7102_v53 }
 0x3a9   :  { %2194 = vmatpush.msrb.mxu2 %v7126_v21  ;;  %2214 = vmatpush.msra.mxu3 %v7129_v58 }
 0x3aa   :  { %2234 = vmatpush.msrb.mxu0 %v7132_v25  ;;  %2254 = vmatpush.msra.mxu1 %v7135_v61 }
 0x3ab   :  { %2195 = vmatpush.msrb.mxu2 %v7138_v28  ;;  %2215 = vmatpush.msra.mxu3 %v7141_v10 }
 0x3ac   :  { %2235 = vmatpush.msrb.mxu0 %v7144_v30  ;;  %2255 = vmatpush.msra.mxu1 %v7147_v38 }
 0x3ad   :  { %2196 = vmatpush.msrb.mxu2 %v7150_v33  ;;  %2216 = vmatpush.msra.mxu3 %v7153_v7 }
 0x3ae   :  { %2236 = vmatpush.msrb.mxu0 %v7156_v40  ;;  %2256 = vmatpush.msra.mxu1 %v7159_v51 }
 0x3af   :  { %2197 = vmatpush.msrb.mxu2 %v7162_v29  ;;  %2217 = vmatpush.msra.mxu3 %v7165_v1 }
 0x3b0   :  { %2237 = vmatpush.msrb.mxu0 %v7168_v31  ;;  %2257 = vmatpush.msra.mxu1 %v7171_v59 }
 0x3b1   :  { %2198 = vmatpush.msrb.mxu2 %v7174_v45  ;;  %2218 = vmatpush.msra.mxu3 %v6808_v23  ;;  %v7194_v23 = vld [vmem:[#allocation11 + $0x80] sm:$0xff] }
 0x3b2   :  { %2238 = vmatpush.msrb.mxu0 %v7178_v2  ;;  %2258 = vmatpush.msra.mxu1 %v7181_v60  ;;  %10258 = vst [vmem:[#allocation44_spill] sm:$0xff] %v7194_v23 }
 0x3b3   :  { %2199 = vmatpush.msrb.mxu2 %v7184_v22  ;;  %2219 = vmatpush.msra.mxu3 %v6814_v44  ;;  %v7204_v44 = vld [vmem:[#allocation11 + $0x60] sm:$0xff] }
 0x3b4   :  { %2239 = vmatpush.msrb.mxu0 %v7188_v39  ;;  %2259 = vmatpush.msra.mxu1 %v7191_v55  ;;  %10261 = vst [vmem:[#allocation47_spill] sm:$0xff] %v7204_v44 }
 0x3b5   :  { %2200 = vmatpush.msrb.mxu2 %v7194_v23  ;;  %2220 = vmatpush.msra.mxu3 %v6820_v52  ;;  %v7214_v52 = vld [vmem:[#allocation11 + $0x40] sm:$0xff] }
 0x3b6   :  { %2240 = vmatpush.msrb.mxu0 %v7198_v37  ;;  %2260 = vmatpush.msra.mxu1 %v7201_v15  ;;  %10264 = vst [vmem:[#allocation52_spill] sm:$0xff] %v7214_v52 }
 0x3b7   :  { %2201 = vmatpush.msrb.mxu2 %v7204_v44  ;;  %2221 = vmatpush.msra.mxu3 %v6826_v46  ;;  %v7224_v46 = vld [vmem:[#allocation11 + $0x20] sm:$0xff] }
 0x3b8   :  { %2241 = vmatpush.msrb.mxu0 %v7208_v16  ;;  %2261 = vmatpush.msra.mxu1 %v7211_v42  ;;  %10267 = vst [vmem:[#allocation55_spill] sm:$0xff] %v7224_v46 }
 0x3b9   :  { %2202 = vmatpush.msrb.mxu2 %v7214_v52  ;;  %2222 = vmatpush.msra.mxu3 %v6832_v56  ;;  %v7234_v56 = vld [vmem:[#allocation11] sm:$0xff] }
 0x3ba   :  { %2242 = vmatpush.msrb.mxu0 %v7218_v32  ;;  %2262 = vmatpush.msra.mxu1 %v7221_v24  ;;  %10270 = vst [vmem:[#allocation58_spill] sm:$0xff] %v7234_v56 }
 0x3bb   :  { %2203 = vmatpush.msrb.mxu2 %v7224_v46  ;;  %2223 = vmatpush.msra.mxu3 %v6838_v26  ;;  %v7241_v46 = vld [vmem:[#allocation11 + $0x18] sm:$0xff]  ;;  %v7248_v26 = vld [vmem:[#allocation13 + $0x1e0] sm:$0xff] }
 0x3bc   :  { %2243 = vmatpush.msrb.mxu0 %v7228_v12  ;;  %2263 = vmatpush.msra.mxu1 %v7231_v43  ;;  %10272 = vst [vmem:[#allocation60_spill] sm:$0xff] %v7241_v46 }
 0x3bd   :  { %2204 = vmatpush.msrb.mxu2 %v7234_v56  ;;  %2224 = vmatpush.msra.mxu3 %v6844_v19  ;;  %10273 = vst [vmem:[#allocation61_spill] sm:$0xff] %v7248_v26  ;;  %v7251_v19 = vld [vmem:[#allocation13 + $0x1e8] sm:$0xff]  ;;  %v7260_v56 = vld [vmem:[#allocation13 + $0x1c0] sm:$0xff] }
 0x3be   :  { %2244 = vmatpush.msrb.mxu0 %v7238_v6  ;;  %2264 = vmatpush.msra.mxu1 %v7241_v46  ;;  %10274 = vst [vmem:[#allocation62_spill] sm:$0xff] %v7251_v19  ;;  %v7254_v6 = vld [vmem:[#allocation13 + $0x1f0] sm:$0xff]  ;;  %v7257_v46 = vld [vmem:[#allocation13 + $0x1f8] sm:$0xff] }
 0x3bf   :  { %2205 = vmatmul.f32.vlgmr.msrb.gmra.mxu2 %v7102_v53  ;;  %2225 = vmatmul.f32.vlgmr.msra.gmra.mxu3 %v7102_v53  ;;  %10275 = vst [vmem:[#allocation63_spill] sm:$0xff] %v7254_v6 }
 0x3c0   :  { %2245 = vmatmul.f32.vlgmr.msrb.gmra.mxu0 %v7102_v53  ;;  %2265 = vmatmul.f32.vlgmr.msra.gmra.mxu1 %v7102_v53  ;;  %10276 = vst [vmem:[#allocation64_spill] sm:$0xff] %v7257_v46  ;;  %v7263_v53 = vld [vmem:[#allocation13 + $0x1c8] sm:$0xff] }
 0x3c1   :  { %2336 = vmatpush.msra.mxu2 %v7248_v26  ;;  %2356 = vmatpush.msrb.mxu3 %v7251_v19  ;;  %10277 = vst [vmem:[#allocation65_spill] sm:$0xff] %v7260_v56  ;;  %v7266_v26 = vld [vmem:[#allocation13 + $0x1d0] sm:$0xff]  ;;  %v7269_v19 = vld [vmem:[#allocation13 + $0x1d8] sm:$0xff] }
 0x3c2   :  { %2376 = vmatpush.msra.mxu0 %v7254_v6  ;;  %2396 = vmatpush.msrb.mxu1 %v7257_v46  ;;  %10278 = vst [vmem:[#allocation66_spill] sm:$0xff] %v7263_v53  ;;  %v7272_v6 = vld [vmem:[#allocation13 + $0x1a0] sm:$0xff]  ;;  %v7275_v46 = vld [vmem:[#allocation13 + $0x1a8] sm:$0xff] }
 0x3c3   :  { %2337 = vmatpush.msra.mxu2 %v7260_v56  ;;  %2357 = vmatpush.msrb.mxu3 %v7263_v53  ;;  %10279 = vst [vmem:[#allocation68_spill] sm:$0xff] %v7266_v26  ;;  %v7278_v56 = vld [vmem:[#allocation13 + $0x1b0] sm:$0xff]  ;;  %v7281_v53 = vld [vmem:[#allocation13 + $0x1b8] sm:$0xff] }
 0x3c4   :  { %2377 = vmatpush.msra.mxu0 %v7266_v26  ;;  %10280 = vst [vmem:[#allocation70_spill] sm:$0xff] %v7269_v19  ;;  %2397 = vmatpush.msrb.mxu1 %v7269_v19  ;;  %v7284_v26 = vld [vmem:[#allocation13 + $0x180] sm:$0xff]  ;;  %v7287_v19 = vld [vmem:[#allocation13 + $0x188] sm:$0xff] }
 0x3c5   :  { %10281 = vst [vmem:[#allocation71_spill] sm:$0xff] %v7272_v6  ;;  %2338 = vmatpush.msra.mxu2 %v7272_v6  ;;  %2358 = vmatpush.msrb.mxu3 %v7275_v46  ;;  %v7290_v6 = vld [vmem:[#allocation13 + $0x190] sm:$0xff] }
 0x3c6   :  { %10282 = vst [vmem:[#allocation72_spill] sm:$0xff] %v7275_v46  ;;  %2378 = vmatpush.msra.mxu0 %v7278_v56  ;;  %2398 = vmatpush.msrb.mxu1 %v7281_v53  ;;  %v7293_v46 = vld [vmem:[#allocation13 + $0x198] sm:$0xff] }
 0x3c7   :  { %10283 = vst [vmem:[#allocation73_spill] sm:$0xff] %v7278_v56  ;;  %2339 = vmatpush.msra.mxu2 %v7284_v26  ;;  %2359 = vmatpush.msrb.mxu3 %v7287_v19  ;;  %v7296_v56 = vld [vmem:[#allocation13 + $0x160] sm:$0xff] }
 0x3c8   :  { %10284 = vst [vmem:[#allocation74_spill] sm:$0xff] %v7281_v53  ;;  %2379 = vmatpush.msra.mxu0 %v7290_v6  ;;  %2399 = vmatpush.msrb.mxu1 %v7293_v46  ;;  %v7299_v53 = vld [vmem:[#allocation13 + $0x168] sm:$0xff] }
 0x3c9   :  { %10285 = vst [vmem:[#allocation75_spill] sm:$0xff] %v7284_v26  ;;  %2340 = vmatpush.msra.mxu2 %v7296_v56  ;;  %2360 = vmatpush.msrb.mxu3 %v7299_v53  ;;  %v7302_v26 = vld [vmem:[#allocation13 + $0x170] sm:$0xff] }
 0x3ca   :  { %10286 = vst [vmem:[#allocation76_spill] sm:$0xff] %v7287_v19  ;;  %2380 = vmatpush.msra.mxu0 %v7302_v26  ;;  %v7305_v19 = vld [vmem:[#allocation13 + $0x178] sm:$0xff] }
 0x3cb   :  { %10287 = vst [vmem:[#allocation77_spill] sm:$0xff] %v7290_v6  ;;  %2400 = vmatpush.msrb.mxu1 %v7305_v19  ;;  %v7308_v6 = vld [vmem:[#allocation13 + $0x140] sm:$0xff] }
 0x3cc   :  { %10288 = vst [vmem:[#allocation79_spill] sm:$0xff] %v7293_v46  ;;  %2341 = vmatpush.msra.mxu2 %v7308_v6  ;;  %v7311_v46 = vld [vmem:[#allocation13 + $0x148] sm:$0xff] }
 0x3cd   :  { %10289 = vst [vmem:[#allocation80_spill] sm:$0xff] %v7296_v56  ;;  %2361 = vmatpush.msrb.mxu3 %v7311_v46  ;;  %v7314_v56 = vld [vmem:[#allocation13 + $0x150] sm:$0xff] }
 0x3ce   :  { %10290 = vst [vmem:[#allocation81_spill] sm:$0xff] %v7299_v53  ;;  %2381 = vmatpush.msra.mxu0 %v7314_v56  ;;  %v7317_v53 = vld [vmem:[#allocation13 + $0x158] sm:$0xff] }
 0x3cf   :  { %10291 = vst [vmem:[#allocation82_spill] sm:$0xff] %v7302_v26  ;;  %2401 = vmatpush.msrb.mxu1 %v7317_v53  ;;  %v7320_v26 = vld [vmem:[#allocation13 + $0x120] sm:$0xff] }
 0x3d0   :  { %10292 = vst [vmem:[#allocation83_spill] sm:$0xff] %v7305_v19  ;;  %2342 = vmatpush.msra.mxu2 %v7320_v26  ;;  %v7323_v19 = vld [vmem:[#allocation13 + $0x128] sm:$0xff] }
 0x3d1   :  { %10293 = vst [vmem:[#allocation84_spill] sm:$0xff] %v7308_v6  ;;  %2362 = vmatpush.msrb.mxu3 %v7323_v19  ;;  %v7326_v6 = vld [vmem:[#allocation13 + $0x130] sm:$0xff] }
 0x3d2   :  { %10294 = vst [vmem:[#allocation85_spill] sm:$0xff] %v7311_v46  ;;  %2382 = vmatpush.msra.mxu0 %v7326_v6  ;;  %v7329_v46 = vld [vmem:[#allocation13 + $0x138] sm:$0xff] }
 0x3d3   :  { %10295 = vst [vmem:[#allocation86_spill] sm:$0xff] %v7314_v56  ;;  %2402 = vmatpush.msrb.mxu1 %v7329_v46  ;;  %v7332_v56 = vld [vmem:[#allocation13 + $0x100] sm:$0xff] }
 0x3d4   :  { %10296 = vst [vmem:[#allocation88_spill] sm:$0xff] %v7317_v53  ;;  %2343 = vmatpush.msra.mxu2 %v7332_v56  ;;  %v7335_v53 = vld [vmem:[#allocation13 + $0x108] sm:$0xff] }
 0x3d5   :  { %10297 = vst [vmem:[#allocation89_spill] sm:$0xff] %v7320_v26  ;;  %2363 = vmatpush.msrb.mxu3 %v7335_v53  ;;  %v7338_v26 = vld [vmem:[#allocation13 + $0x110] sm:$0xff] }
 0x3d6   :  { %10298 = vst [vmem:[#allocation90_spill] sm:$0xff] %v7323_v19  ;;  %2383 = vmatpush.msra.mxu0 %v7338_v26  ;;  %v7341_v19 = vld [vmem:[#allocation13 + $0x118] sm:$0xff] }
 0x3d7   :  { %10299 = vst [vmem:[#allocation91_spill] sm:$0xff] %v7326_v6  ;;  %2403 = vmatpush.msrb.mxu1 %v7341_v19  ;;  %v7344_v6 = vld [vmem:[#allocation13 + $0xe0] sm:$0xff] }
 0x3d8   :  { %10300 = vst [vmem:[#allocation92_spill] sm:$0xff] %v7329_v46  ;;  %2344 = vmatpush.msra.mxu2 %v7344_v6  ;;  %v7347_v46 = vld [vmem:[#allocation13 + $0xe8] sm:$0xff] }
 0x3d9   :  { %10301 = vst [vmem:[#allocation93_spill] sm:$0xff] %v7332_v56  ;;  %2364 = vmatpush.msrb.mxu3 %v7347_v46  ;;  %v7350_v56 = vld [vmem:[#allocation13 + $0xf0] sm:$0xff] }
 0x3da   :  { %10302 = vst [vmem:[#allocation94_spill] sm:$0xff] %v7335_v53  ;;  %2384 = vmatpush.msra.mxu0 %v7350_v56  ;;  %v7353_v53 = vld [vmem:[#allocation13 + $0xf8] sm:$0xff] }
 0x3db   :  { %10303 = vst [vmem:[#allocation95_spill] sm:$0xff] %v7338_v26  ;;  %2404 = vmatpush.msrb.mxu1 %v7353_v53  ;;  %v7356_v26 = vld [vmem:[#allocation13 + $0xc0] sm:$0xff] }
 0x3dc   :  { %10304 = vst [vmem:[#allocation96_spill] sm:$0xff] %v7341_v19  ;;  %2345 = vmatpush.msra.mxu2 %v7356_v26  ;;  %v7359_v19 = vld [vmem:[#allocation13 + $0xc8] sm:$0xff] }
 0x3dd   :  { %10305 = vst [vmem:[#allocation97_spill] sm:$0xff] %v7344_v6  ;;  %2365 = vmatpush.msrb.mxu3 %v7359_v19  ;;  %v7362_v6 = vld [vmem:[#allocation13 + $0xd0] sm:$0xff] }
 0x3de   :  { %10306 = vst [vmem:[#allocation98_spill] sm:$0xff] %v7347_v46  ;;  %2385 = vmatpush.msra.mxu0 %v7362_v6  ;;  %v7365_v46 = vld [vmem:[#allocation13 + $0xd8] sm:$0xff] }
 0x3df   :  { %10307 = vst [vmem:[#allocation99_spill] sm:$0xff] %v7350_v56  ;;  %2405 = vmatpush.msrb.mxu1 %v7365_v46  ;;  %v7368_v56 = vld [vmem:[#allocation13 + $0xa0] sm:$0xff] }
 0x3e0   :  { %10308 = vst [vmem:[#allocation101_spill] sm:$0xff] %v7353_v53  ;;  %2346 = vmatpush.msra.mxu2 %v7368_v56  ;;  %v7371_v53 = vld [vmem:[#allocation13 + $0xa8] sm:$0xff] }
 0x3e1   :  { %10309 = vst [vmem:[#allocation102_spill] sm:$0xff] %v7356_v26  ;;  %2366 = vmatpush.msrb.mxu3 %v7371_v53  ;;  %v7374_v26 = vld [vmem:[#allocation13 + $0xb0] sm:$0xff] }
 0x3e2   :  { %10310 = vst [vmem:[#allocation103_spill] sm:$0xff] %v7359_v19  ;;  %2386 = vmatpush.msra.mxu0 %v7374_v26  ;;  %v7377_v19 = vld [vmem:[#allocation13 + $0xb8] sm:$0xff] }
 0x3e3   :  { %10311 = vst [vmem:[#allocation105_spill] sm:$0xff] %v7362_v6  ;;  %2406 = vmatpush.msrb.mxu1 %v7377_v19  ;;  %v7380_v6 = vld [vmem:[#allocation13 + $0x80] sm:$0xff] }
 0x3e4   :  { %10312 = vst [vmem:[#allocation106_spill] sm:$0xff] %v7365_v46  ;;  %2347 = vmatpush.msra.mxu2 %v7380_v6  ;;  %v7383_v46 = vld [vmem:[#allocation13 + $0x88] sm:$0xff] }
 0x3e5   :  { %10313 = vst [vmem:[#allocation107_spill] sm:$0xff] %v7368_v56  ;;  %2367 = vmatpush.msrb.mxu3 %v7383_v46  ;;  %v7386_v56 = vld [vmem:[#allocation13 + $0x90] sm:$0xff] }
 0x3e6   :  { %10314 = vst [vmem:[#allocation109_spill] sm:$0xff] %v7371_v53  ;;  %2387 = vmatpush.msra.mxu0 %v7386_v56  ;;  %v7389_v53 = vld [vmem:[#allocation13 + $0x98] sm:$0xff] }
 0x3e7   :  { %10315 = vst [vmem:[#allocation110_spill] sm:$0xff] %v7374_v26  ;;  %2407 = vmatpush.msrb.mxu1 %v7389_v53  ;;  %v7392_v26 = vld [vmem:[#allocation13 + $0x60] sm:$0xff] }
 0x3e8   :  { %10316 = vst [vmem:[#allocation111_spill] sm:$0xff] %v7377_v19  ;;  %2348 = vmatpush.msra.mxu2 %v7392_v26  ;;  %v7395_v19 = vld [vmem:[#allocation13 + $0x68] sm:$0xff] }
 0x3e9   :  { %10317 = vst [vmem:[#allocation112_spill] sm:$0xff] %v7380_v6  ;;  %2368 = vmatpush.msrb.mxu3 %v7395_v19  ;;  %v7398_v6 = vld [vmem:[#allocation13 + $0x70] sm:$0xff] }
 0x3ea   :  { %10318 = vst [vmem:[#allocation113_spill] sm:$0xff] %v7383_v46  ;;  %2388 = vmatpush.msra.mxu0 %v7398_v6  ;;  %v7401_v46 = vld [vmem:[#allocation13 + $0x78] sm:$0xff] }
 0x3eb   :  { %10319 = vst [vmem:[#allocation114_spill] sm:$0xff] %v7386_v56  ;;  %2408 = vmatpush.msrb.mxu1 %v7401_v46  ;;  %v7404_v56 = vld [vmem:[#allocation13 + $0x40] sm:$0xff] }
 0x3ec   :  { %10320 = vst [vmem:[#allocation115_spill] sm:$0xff] %v7389_v53  ;;  %2349 = vmatpush.msra.mxu2 %v7404_v56  ;;  %v7407_v53 = vld [vmem:[#allocation13 + $0x48] sm:$0xff] }
 0x3ed   :  { %10321 = vst [vmem:[#allocation116_spill] sm:$0xff] %v7392_v26  ;;  %2369 = vmatpush.msrb.mxu3 %v7407_v53  ;;  %v7410_v26 = vld [vmem:[#allocation13 + $0x50] sm:$0xff] }
 0x3ee   :  { %10322 = vst [vmem:[#allocation117_spill] sm:$0xff] %v7395_v19  ;;  %2389 = vmatpush.msra.mxu0 %v7410_v26  ;;  %v7413_v19 = vld [vmem:[#allocation13 + $0x58] sm:$0xff] }
 0x3ef   :  { %10323 = vst [vmem:[#allocation118_spill] sm:$0xff] %v7398_v6  ;;  %2409 = vmatpush.msrb.mxu1 %v7413_v19  ;;  %v7416_v6 = vld [vmem:[#allocation13 + $0x20] sm:$0xff] }
 0x3f0   :  { %10324 = vst [vmem:[#allocation119_spill] sm:$0xff] %v7401_v46  ;;  %2350 = vmatpush.msra.mxu2 %v7416_v6  ;;  %v7419_v46 = vld [vmem:[#allocation13 + $0x28] sm:$0xff] }
 0x3f1   :  { %10325 = vst [vmem:[#allocation120_spill] sm:$0xff] %v7404_v56  ;;  %2370 = vmatpush.msrb.mxu3 %v7419_v46  ;;  %v7422_v56 = vld [vmem:[#allocation13 + $0x30] sm:$0xff] }
 0x3f2   :  { %10326 = vst [vmem:[#allocation122_spill] sm:$0xff] %v7407_v53  ;;  %2390 = vmatpush.msra.mxu0 %v7422_v56  ;;  %v7425_v53 = vld [vmem:[#allocation13 + $0x38] sm:$0xff] }
 0x3f3   :  { %10327 = vst [vmem:[#allocation123_spill] sm:$0xff] %v7410_v26  ;;  %2410 = vmatpush.msrb.mxu1 %v7425_v53  ;;  %v7428_v26 = vld [vmem:[#allocation13] sm:$0xff] }
 0x3f4   :  { %10328 = vst [vmem:[#allocation125_spill] sm:$0xff] %v7413_v19  ;;  %2351 = vmatpush.msra.mxu2 %v7428_v26  ;;  %v7431_v19 = vld [vmem:[#allocation13 + $0x8] sm:$0xff] }
 0x3f5   :  { %10329 = vst [vmem:[#allocation126_spill] sm:$0xff] %v7416_v6  ;;  %2371 = vmatpush.msrb.mxu3 %v7431_v19  ;;  %v7434_v6 = vld [vmem:[#allocation13 + $0x10] sm:$0xff] }
 0x3f6   :  { %10330 = vst [vmem:[#allocation128_spill] sm:$0xff] %v7419_v46  ;;  %2391 = vmatpush.msra.mxu0 %v7434_v6  ;;  %v7437_v46 = vld [vmem:[#allocation13 + $0x18] sm:$0xff] }
 0x3f7   :  { %10331 = vst [vmem:[#allocation129_spill] sm:$0xff] %v7422_v56  ;;  %2411 = vmatpush.msrb.mxu1 %v7437_v46  ;;  %v7440_v56 = vld [vmem:[#allocation14 + $0x1e0] sm:$0xff] }
 0x3f8   :  { %10332 = vst [vmem:[#allocation130_spill] sm:$0xff] %v7425_v53  ;;  %2416 = vmatpush.msrb.mxu2 %v7440_v56  ;;  %v7443_v53 = vld [vmem:[#allocation14 + $0x1e8] sm:$0xff] }
 0x3f9   :  { %10333 = vst [vmem:[#allocation131_spill] sm:$0xff] %v7428_v26  ;;  %2436 = vmatpush.msra.mxu3 %v7443_v53  ;;  %v7446_v26 = vld [vmem:[#allocation14 + $0x1f0] sm:$0xff] }
 0x3fa   :  { %10334 = vst [vmem:[#allocation132_spill] sm:$0xff] %v7431_v19  ;;  %2456 = vmatpush.msrb.mxu0 %v7446_v26  ;;  %v7449_v19 = vld [vmem:[#allocation14 + $0x1f8] sm:$0xff] }
 0x3fb   :  { %10335 = vst [vmem:[#allocation134_spill] sm:$0xff] %v7434_v6  ;;  %2476 = vmatpush.msra.mxu1 %v7449_v19  ;;  %v7452_v6 = vld [vmem:[#allocation14 + $0x1c0] sm:$0xff] }
 0x3fc   :  { %10336 = vst [vmem:[#allocation135_spill] sm:$0xff] %v7437_v46  ;;  %2417 = vmatpush.msrb.mxu2 %v7452_v6  ;;  %v7455_v46 = vld [vmem:[#allocation14 + $0x1c8] sm:$0xff] }
 0x3fd   :  { %10337 = vst [vmem:[#allocation136_spill] sm:$0xff] %v7440_v56  ;;  %2437 = vmatpush.msra.mxu3 %v7455_v46  ;;  %v7458_v56 = vld [vmem:[#allocation14 + $0x1d0] sm:$0xff] }
 0x3fe   :  { %10338 = vst [vmem:[#allocation137_spill] sm:$0xff] %v7443_v53  ;;  %2457 = vmatpush.msrb.mxu0 %v7458_v56  ;;  %v7461_v53 = vld [vmem:[#allocation14 + $0x1d8] sm:$0xff] }
 0x3ff   :  { %10339 = vst [vmem:[#allocation138_spill] sm:$0xff] %v7446_v26  ;;  %2477 = vmatpush.msra.mxu1 %v7461_v53  ;;  %v7464_v26 = vld [vmem:[#allocation14 + $0x1a0] sm:$0xff] }
 0x400   :  { %10340 = vst [vmem:[#allocation139_spill] sm:$0xff] %v7449_v19  ;;  %2418 = vmatpush.msrb.mxu2 %v7464_v26  ;;  %v7467_v19 = vld [vmem:[#allocation14 + $0x1a8] sm:$0xff] }
 0x401   :  { %10341 = vst [vmem:[#allocation141_spill] sm:$0xff] %v7452_v6  ;;  %2438 = vmatpush.msra.mxu3 %v7467_v19  ;;  %v7470_v6 = vld [vmem:[#allocation14 + $0x1b0] sm:$0xff] }
 0x402   :  { %10342 = vst [vmem:[#allocation142_spill] sm:$0xff] %v7455_v46  ;;  %2458 = vmatpush.msrb.mxu0 %v7470_v6  ;;  %v7473_v46 = vld [vmem:[#allocation14 + $0x1b8] sm:$0xff] }
 0x403   :  { %10343 = vst [vmem:[#allocation144_spill] sm:$0xff] %v7458_v56  ;;  %2478 = vmatpush.msra.mxu1 %v7473_v46  ;;  %v7476_v56 = vld [vmem:[#allocation14 + $0x180] sm:$0xff] }
 0x404   :  { %10344 = vst [vmem:[#allocation145_spill] sm:$0xff] %v7461_v53  ;;  %2419 = vmatpush.msrb.mxu2 %v7476_v56  ;;  %v7479_v53 = vld [vmem:[#allocation14 + $0x188] sm:$0xff] }
 0x405   :  { %10345 = vst [vmem:[#allocation146_spill] sm:$0xff] %v7464_v26  ;;  %2439 = vmatpush.msra.mxu3 %v7479_v53  ;;  %v7482_v26 = vld [vmem:[#allocation14 + $0x190] sm:$0xff] }
 0x406   :  { %10346 = vst [vmem:[#allocation147_spill] sm:$0xff] %v7467_v19  ;;  %2459 = vmatpush.msrb.mxu0 %v7482_v26  ;;  %v7485_v19 = vld [vmem:[#allocation14 + $0x198] sm:$0xff] }
 0x407   :  { %10347 = vst [vmem:[#allocation148_spill] sm:$0xff] %v7470_v6  ;;  %2479 = vmatpush.msra.mxu1 %v7485_v19  ;;  %v7488_v6 = vld [vmem:[#allocation14 + $0x160] sm:$0xff] }
 0x408   :  { %10348 = vst [vmem:[#allocation149_spill] sm:$0xff] %v7473_v46  ;;  %2420 = vmatpush.msrb.mxu2 %v7488_v6  ;;  %v7491_v46 = vld [vmem:[#allocation14 + $0x168] sm:$0xff] }
 0x409   :  { %10349 = vst [vmem:[#allocation150_spill] sm:$0xff] %v7476_v56  ;;  %2440 = vmatpush.msra.mxu3 %v7491_v46  ;;  %v7494_v56 = vld [vmem:[#allocation14 + $0x170] sm:$0xff] }
 0x40a   :  { %10350 = vst [vmem:[#allocation152_spill] sm:$0xff] %v7479_v53  ;;  %2460 = vmatpush.msrb.mxu0 %v7494_v56  ;;  %v7497_v53 = vld [vmem:[#allocation14 + $0x178] sm:$0xff] }
 0x40b   :  { %10351 = vst [vmem:[#allocation153_spill] sm:$0xff] %v7482_v26  ;;  %2480 = vmatpush.msra.mxu1 %v7497_v53  ;;  %v7500_v26 = vld [vmem:[#allocation14 + $0x140] sm:$0xff] }
 0x40c   :  { %10352 = vst [vmem:[#allocation154_spill] sm:$0xff] %v7485_v19  ;;  %2421 = vmatpush.msrb.mxu2 %v7500_v26  ;;  %v7503_v19 = vld [vmem:[#allocation14 + $0x148] sm:$0xff] }
 0x40d   :  { %10353 = vst [vmem:[#allocation155_spill] sm:$0xff] %v7488_v6  ;;  %2441 = vmatpush.msra.mxu3 %v7503_v19  ;;  %v7506_v6 = vld [vmem:[#allocation14 + $0x150] sm:$0xff] }
 0x40e   :  { %10354 = vst [vmem:[#allocation156_spill] sm:$0xff] %v7491_v46  ;;  %2461 = vmatpush.msrb.mxu0 %v7506_v6  ;;  %v7509_v46 = vld [vmem:[#allocation14 + $0x158] sm:$0xff] }
 0x40f   :  { %10355 = vst [vmem:[#allocation157_spill] sm:$0xff] %v7494_v56  ;;  %2481 = vmatpush.msra.mxu1 %v7509_v46  ;;  %v7512_v56 = vld [vmem:[#allocation14 + $0x120] sm:$0xff] }
 0x410   :  { %10356 = vst [vmem:[#allocation158_spill] sm:$0xff] %v7497_v53  ;;  %2422 = vmatpush.msrb.mxu2 %v7512_v56  ;;  %v7515_v53 = vld [vmem:[#allocation14 + $0x128] sm:$0xff] }
 0x411   :  { %10357 = vst [vmem:[#allocation159_spill] sm:$0xff] %v7500_v26  ;;  %2442 = vmatpush.msra.mxu3 %v7515_v53  ;;  %v7518_v26 = vld [vmem:[#allocation14 + $0x130] sm:$0xff] }
 0x412   :  { %10358 = vst [vmem:[#allocation160_spill] sm:$0xff] %v7503_v19  ;;  %2462 = vmatpush.msrb.mxu0 %v7518_v26  ;;  %v7521_v19 = vld [vmem:[#allocation14 + $0x138] sm:$0xff] }
 0x413   :  { %10359 = vst [vmem:[#allocation161_spill] sm:$0xff] %v7506_v6  ;;  %2482 = vmatpush.msra.mxu1 %v7521_v19  ;;  %v7524_v6 = vld [vmem:[#allocation14 + $0x100] sm:$0xff] }
 0x414   :  { %10360 = vst [vmem:[#allocation162_spill] sm:$0xff] %v7509_v46  ;;  %2423 = vmatpush.msrb.mxu2 %v7524_v6  ;;  %v7527_v46 = vld [vmem:[#allocation14 + $0x108] sm:$0xff] }
 0x415   :  { %10361 = vst [vmem:[#allocation163_spill] sm:$0xff] %v7512_v56  ;;  %2443 = vmatpush.msra.mxu3 %v7527_v46  ;;  %v7530_v56 = vld [vmem:[#allocation14 + $0x110] sm:$0xff] }
 0x416   :  { %10362 = vst [vmem:[#allocation164_spill] sm:$0xff] %v7515_v53  ;;  %2463 = vmatpush.msrb.mxu0 %v7530_v56  ;;  %v7533_v53 = vld [vmem:[#allocation14 + $0x118] sm:$0xff] }
 0x417   :  { %10363 = vst [vmem:[#allocation165_spill] sm:$0xff] %v7518_v26  ;;  %2483 = vmatpush.msra.mxu1 %v7533_v53  ;;  %v7536_v26 = vld [vmem:[#allocation14 + $0xe0] sm:$0xff] }
 0x418   :  { %10364 = vst [vmem:[#allocation167_spill] sm:$0xff] %v7521_v19  ;;  %2424 = vmatpush.msrb.mxu2 %v7536_v26  ;;  %v7539_v19 = vld [vmem:[#allocation14 + $0xe8] sm:$0xff] }
 0x419   :  { %10365 = vst [vmem:[#allocation168_spill] sm:$0xff] %v7524_v6  ;;  %2444 = vmatpush.msra.mxu3 %v7539_v19  ;;  %v7542_v6 = vld [vmem:[#allocation14 + $0xf0] sm:$0xff]  ;;  %v2032_v44 = vpop.f32.mrf.mxu1 }
 0x41a   :  { %10366 = vst [vmem:[#allocation169_spill] sm:$0xff] %v7527_v46  ;;  %2464 = vmatpush.msrb.mxu0 %v7542_v6  ;;  %v7545_v46 = vld [vmem:[#allocation14 + $0xf8] sm:$0xff] }
 0x41b   :  { %10367 = vst [vmem:[#allocation78_spill] sm:$0xff] %v7530_v56  ;;  %2484 = vmatpush.msra.mxu1 %v7545_v46  ;;  %v7548_v56 = vld [vmem:[#allocation14 + $0xc0] sm:$0xff] }
 0x41c   :  { %10368 = vst [vmem:[#allocation35_spill] sm:$0xff] %v7533_v53  ;;  %2425 = vmatpush.msrb.mxu2 %v7548_v56  ;;  %v7551_v53 = vld [vmem:[#allocation14 + $0xc8] sm:$0xff] }
 0x41d   :  { %10369 = vst [vmem:[#allocation143_spill] sm:$0xff] %v7536_v26  ;;  %2445 = vmatpush.msra.mxu3 %v7551_v53  ;;  %v7554_v26 = vld [vmem:[#allocation14 + $0xd0] sm:$0xff] }
 0x41e   :  { %10370 = vst [vmem:[#allocation133_spill] sm:$0xff] %v7539_v19  ;;  %2465 = vmatpush.msrb.mxu0 %v7554_v26  ;;  %v7557_v19 = vld [vmem:[#allocation14 + $0xd8] sm:$0xff]  ;;  %v1972_v43 = vpop.f32.mrf.mxu2  ;;  %v1992_v12 = vpop.f32.mrf.mxu3 }
 0x41f   :  { %10371 = vst [vmem:[#allocation104_spill] sm:$0xff] %v7542_v6  ;;  %2485 = vmatpush.msra.mxu1 %v7557_v19  ;;  %v7560_v6 = vld [vmem:[#allocation14 + $0xa0] sm:$0xff] }
 0x420   :  { %10372 = vst [vmem:[#allocation172_spill] sm:$0xff] %v7545_v46  ;;  %2426 = vmatpush.msrb.mxu2 %v7560_v6  ;;  %v7563_v46 = vld [vmem:[#allocation14 + $0xa8] sm:$0xff] }
 0x421   :  { %10373 = vst [vmem:[#allocation173_spill] sm:$0xff] %v7548_v56  ;;  %2446 = vmatpush.msra.mxu3 %v7563_v46  ;;  %v7566_v56 = vld [vmem:[#allocation14 + $0xb0] sm:$0xff] }
 0x422   :  { %10374 = vst [vmem:[#allocation174_spill] sm:$0xff] %v7551_v53  ;;  %2466 = vmatpush.msrb.mxu0 %v7566_v56  ;;  %v7569_v53 = vld [vmem:[#allocation14 + $0xb8] sm:$0xff] }
 0x423   :  { %10375 = vst [vmem:[#allocation175_spill] sm:$0xff] %v7554_v26  ;;  %2486 = vmatpush.msra.mxu1 %v7569_v53  ;;  %v7572_v26 = vld [vmem:[#allocation14 + $0x80] sm:$0xff] }
 0x424   :  { %10376 = vst [vmem:[#allocation176_spill] sm:$0xff] %v7557_v19  ;;  %2427 = vmatpush.msrb.mxu2 %v7572_v26  ;;  %v7575_v19 = vld [vmem:[#allocation14 + $0x88] sm:$0xff] }
 0x425   :  { %10377 = vst [vmem:[#allocation177_spill] sm:$0xff] %v7560_v6  ;;  %2447 = vmatpush.msra.mxu3 %v7575_v19  ;;  %v7578_v6 = vld [vmem:[#allocation14 + $0x90] sm:$0xff] }
 0x426   :  { %10378 = vst [vmem:[#allocation178_spill] sm:$0xff] %v7563_v46  ;;  %2467 = vmatpush.msrb.mxu0 %v7578_v6  ;;  %v7581_v46 = vld [vmem:[#allocation14 + $0x98] sm:$0xff] }
 0x427   :  { %10379 = vst [vmem:[#allocation179_spill] sm:$0xff] %v7566_v56  ;;  %2487 = vmatpush.msra.mxu1 %v7581_v46  ;;  %v7584_v56 = vld [vmem:[#allocation14 + $0x60] sm:$0xff] }
 0x428   :  { %10380 = vst [vmem:[#allocation180_spill] sm:$0xff] %v7569_v53  ;;  %2428 = vmatpush.msrb.mxu2 %v7584_v56  ;;  %v7587_v53 = vld [vmem:[#allocation14 + $0x68] sm:$0xff] }
 0x429   :  { %10381 = vst [vmem:[#allocation181_spill] sm:$0xff] %v7572_v26  ;;  %2448 = vmatpush.msra.mxu3 %v7587_v53  ;;  %v7590_v26 = vld [vmem:[#allocation14 + $0x70] sm:$0xff] }
 0x42a   :  { %10382 = vst [vmem:[#allocation182_spill] sm:$0xff] %v7575_v19  ;;  %2468 = vmatpush.msrb.mxu0 %v7590_v26  ;;  %v7593_v19 = vld [vmem:[#allocation14 + $0x78] sm:$0xff]  ;;  %v2052_v52 = vpop.f32.mrf.mxu2  ;;  %v2072_v42 = vpop.f32.mrf.mxu3 }
 0x42b   :  { %10383 = vst [vmem:[#allocation183_spill] sm:$0xff] %v7578_v6  ;;  %2488 = vmatpush.msra.mxu1 %v7593_v19  ;;  %v7596_v6 = vld [vmem:[#allocation14 + $0x40] sm:$0xff]  ;;  %v2053_v16 = vadd.f32 %v2052_v52, %v1972_v43 }
 0x42c   :  { %10384 = vst [vmem:[#allocation184_spill] sm:$0xff] %v7581_v46  ;;  %2429 = vmatpush.msrb.mxu2 %v7596_v6  ;;  %v7599_v46 = vld [vmem:[#allocation14 + $0x48] sm:$0xff] }
 0x42d   :  { %10385 = vst [vmem:[#allocation185_spill] sm:$0xff] %v7584_v56  ;;  %2449 = vmatpush.msra.mxu3 %v7599_v46  ;;  %v7602_v56 = vld [vmem:[#allocation14 + $0x50] sm:$0xff] }
 0x42e   :  { %10386 = vst [vmem:[#allocation186_spill] sm:$0xff] %v7587_v53  ;;  %2469 = vmatpush.msrb.mxu0 %v7602_v56  ;;  %v7605_v53 = vld [vmem:[#allocation14 + $0x58] sm:$0xff] }
 0x42f   :  { %10387 = vst [vmem:[#allocation187_spill] sm:$0xff] %v7590_v26  ;;  %2489 = vmatpush.msra.mxu1 %v7605_v53  ;;  %v7608_v26 = vld [vmem:[#allocation14 + $0x20] sm:$0xff] }
 0x430   :  { %10388 = vst [vmem:[#allocation188_spill] sm:$0xff] %v7593_v19  ;;  %2430 = vmatpush.msrb.mxu2 %v7608_v26  ;;  %v7611_v19 = vld [vmem:[#allocation14 + $0x28] sm:$0xff] }
 0x431   :  { %10389 = vst [vmem:[#allocation189_spill] sm:$0xff] %v7596_v6  ;;  %2450 = vmatpush.msra.mxu3 %v7611_v19  ;;  %v7614_v6 = vld [vmem:[#allocation14 + $0x30] sm:$0xff] }
 0x432   :  { %10390 = vst [vmem:[#allocation190_spill] sm:$0xff] %v7599_v46  ;;  %2470 = vmatpush.msrb.mxu0 %v7614_v6  ;;  %v7617_v46 = vld [vmem:[#allocation14 + $0x38] sm:$0xff] }
 0x433   :  { %10391 = vst [vmem:[#allocation191_spill] sm:$0xff] %v7602_v56  ;;  %2490 = vmatpush.msra.mxu1 %v7617_v46  ;;  %v7620_v56 = vld [vmem:[#allocation14] sm:$0xff] }
 0x434   :  { %10392 = vst [vmem:[#allocation192_spill] sm:$0xff] %v7605_v53  ;;  %2431 = vmatpush.msrb.mxu2 %v7620_v56  ;;  %v7623_v53 = vld [vmem:[#allocation14 + $0x8] sm:$0xff] }
 0x435   :  { %10393 = vst [vmem:[#allocation193_spill] sm:$0xff] %v7608_v26  ;;  %2451 = vmatpush.msra.mxu3 %v7623_v53  ;;  %v7626_v26 = vld [vmem:[#allocation14 + $0x10] sm:$0xff] }
 0x436   :  { %10394 = vst [vmem:[#allocation194_spill] sm:$0xff] %v7611_v19  ;;  %2471 = vmatpush.msrb.mxu0 %v7626_v26  ;;  %v7629_v19 = vld [vmem:[#allocation14 + $0x18] sm:$0xff] }
 0x437   :  { %10395 = vst [vmem:[#allocation195_spill] sm:$0xff] %v7614_v6  ;;  %2491 = vmatpush.msra.mxu1 %v7629_v19  ;;  %v2012_v6 = vpop.f32.mrf.mxu0 }
 0x438   :  { %10396 = vst [vmem:[#allocation196_spill] sm:$0xff] %v7617_v46 }
 0x439   :  { %10397 = vst [vmem:[#allocation197_spill] sm:$0xff] %v7620_v56 }
 0x43a   :  { %10398 = vst [vmem:[#allocation198_spill] sm:$0xff] %v7623_v53  ;;  %v2073_v53 = vadd.f32 %v2072_v42, %v1992_v12 }
 0x43b   :  { %10399 = vst [vmem:[#allocation199_spill] sm:$0xff] %v7626_v26  ;;  %v2115_v26 = vadd.f32 %v2053_v16, %v10235_v20  ;;  %v7641_v16 = vld [vmem:[%s9000_s1 + $0x10] sm:$0xff] }
 0x43c   :  { %10400 = vst [vmem:[#allocation124_spill] sm:$0xff] %v7629_v19  ;;  %v2116_v15 = vadd.f32 %v2073_v53, %v10236_v3 }
 0x43d   :  { %v3883_v37 = vmul.f32 -1.442695, %v2115_v26  ;;  %10401 = vst [vmem:[#allocation200_spill] sm:$0xff] %v7641_v16 }
 0x43e   :  { %v3884_v19 = vmul.f32 -1.442695, %v2116_v15 }
 0x43f   :  { %v2092_v46 = vpop.f32.mrf.mxu0 }
 0x440   :  { %v2093_v24 = vadd.f32 %v2092_v46, %v2012_v6 }
 0x442   :  { %v2117_v32 = vadd.f32 %v2093_v24, %v10234_v27  ;;  %v2112_v24 = vpop.f32.mrf.mxu1  ;;  %v2206_v3 = vpop.f32.mrf.mxu2 }
 0x443   :  { %v2113_v42 = vadd.f32 %v2112_v24, %v2032_v44  ;;  %v10404_v24 = vld [vmem:[#allocation69_spill] sm:$0xff]  ;;  %v2226_v20 = vpop.f32.mrf.mxu3 }
 0x444   :  { %v3885_v56 = vmul.f32 -1.442695, %v2117_v32 }
 0x446   :  { %4040 = vpow2.f32 %v3885_v56 }
 0x447   :  { %4042 = vpow2.f32 %v3883_v37  ;;  %v10402_v37 = vld [vmem:[#allocation34_spill] sm:$0xff]  ;;  %v2246_v52 = vpop.f32.mrf.mxu0 }
 0x448   :  { %4044 = vpow2.f32 %v3884_v19  ;;  %v389_v15 = vadd.f32 %v7641_v16, %v10402_v37  ;;  %v10406_v37 = vld [vmem:[#allocation21_spill] sm:$0xff] }
 0x44a   :  { %v2271_v56 = vadd.f32 %v2246_v52, %v389_v15 }
 0x44c   :  { %v4041_v23 = vpop.eup %4040  ;;  %v3888_v44 = vmul.f32 -1.442695, %v2271_v56 }
 0x44d   :  { %v7635_v55 = vadd.f32 1.0, %v4041_v23  ;;  %v4043_v6 = vpop.eup %4042  ;;  %v2118_v23 = vadd.f32 %v2113_v42, %v10243_v41  ;;  %v7658_v42 = vld [vmem:[%s9000_s1] sm:$0xff] }
 0x44e   :  { %v4045_v32 = vpop.eup %4044  ;;  %v2128_v46 = vadd.f32 1.0, %v4043_v6  ;;  %v7651_v6 = vld [vmem:[%s9000_s1 + $0x8] sm:$0xff]  ;;  %10405 = vst [vmem:[#allocation100_spill] sm:$0xff] %v7658_v42  ;;  %v387_v15 = vadd.f32 %v7658_v42, %v10406_v37 }
 0x44f   :  { %4046 = vrcp.f32 %v7635_v55  ;;  %v2129_v43 = vadd.f32 1.0, %v4045_v32  ;;  %10403 = vst [vmem:[#allocation51_spill] sm:$0xff] %v7651_v6  ;;  %v388_v32 = vadd.f32 %v7651_v6, %v10404_v24  ;;  %vm2166_vm4 = vweird.f32 %v7635_v55 }
 0x450   :  { %4048 = vrcp.f32 %v2128_v46  ;;  %v2140_v16 = vand.u32 2147483647, %v2128_v46  ;;  %v2142_v27 = vand.u32 2147483648, %v2128_v46  ;;  %v2269_v6 = vadd.f32 %v2206_v3, %v387_v15 }
 0x451   :  { %4050 = vrcp.f32 %v2129_v43  ;;  %v2270_v39 = vadd.f32 %v2226_v20, %v388_v32  ;;  %v2155_v60 = vand.u32 2147483647, %v2129_v43  ;;  %v2157_v2 = vand.u32 2147483648, %v2129_v43 }
 0x452   :  { %4052 = vtanh.f32 %v2118_v23  ;;  %v3886_v23 = vmul.f32 -1.442695, %v2269_v6  ;;  %vm2136_vm12 = vweird.f32 %v2128_v46  ;;  %vm2151_vm15 = vweird.f32 %v2129_v43 }
 0x453   :  { %4054 = vpow2.f32 %v3888_v44  ;;  %v3887_v37 = vmul.f32 -1.442695, %v2270_v39  ;;  %v2143_v44 = vor.u32 1.1754944e-38, %v2142_v27  ;;  %vm2141_vm0 = vcmp.eq.f32.partialorder %v2140_v16, 8.507059e+37 }
 0x454   :  { %4056 = vpow2.f32 %v3886_v23  ;;  %v2158_v20 = vor.u32 1.1754944e-38, %v2157_v2  ;;  %vm2156_vm2 = vcmp.eq.f32.partialorder %v2155_v60, 8.507059e+37 }
 0x455   :  { %v7646_v12 = vpop.eup %4046  ;;  %4058 = vpow2.f32 %v3887_v37 }
 0x456   :  { %v4049_v26 = vpop.eup %4048  ;;  %v2162_v56 = vmul.f32 %v7646_v12, %v7635_v55  ;;  %vm2167_vm3 = vweird.f32 %v7646_v12 }
 0x457   :  { %v4051_v19 = vpop.eup %4050  ;;  %v2132_v53 = vmul.f32 %v4049_v26, %v2128_v46  ;;  %vm2137_vm10 = vweird.f32 %v4049_v26  ;;  %vm2168_vm5 = vmor %vm2166_vm4, %vm2167_vm3 }
 0x458   :  { %v2147_v52 = vmul.f32 %v4051_v19, %v2129_v43  ;;  %vm2152_vm11 = vweird.f32 %v4051_v19  ;;  %v2163_v42 = vsub.f32 1.0, %v2162_v56  ;;  %vm2138_vm14 = vmor %vm2136_vm12, %vm2137_vm10  ;;  %v7687_v56 = vld [vmem:[%s9000_s1 + $0x18] sm:$0xff] }
 0x459   :  { %v2133_v41 = vsub.f32 1.0, %v2132_v53  ;;  %v4053_v53 = vpop.eup %4052  ;;  %vm2153_vm1 = vmor %vm2151_vm15, %vm2152_vm11 }
 0x45a   :  { %v2148_v24 = vsub.f32 1.0, %v2147_v52  ;;  %v4055_v52 = vpop.eup %4054  ;;  %v2164_v39 = vmul.f32 %v7646_v12, %v2163_v42 }
 0x45b   :  { %v2134_v22 = vmul.f32 %v4049_v26, %v2133_v41  ;;  %v7666_v6 = vadd.f32 1.0, %v4055_v52 }
 0x45c   :  { %v2149_v45 = vmul.f32 %v4051_v19, %v2148_v24  ;;  %v2165_v2 = vadd.f32 %v7646_v12, %v2164_v39  ;;  %v10407_v24 = vld [vmem:[#allocation151_spill] sm:$0xff] }
 0x45d   :  { %v2135_v59 = vadd.f32 %v4049_v26, %v2134_v22  ;;  %4060 = vrcp.f32 %v7666_v6  ;;  %v390_v23 = vadd.f32 %v7687_v56, %v10407_v24  ;;  %v10424_v24 = vld [vmem:[#allocation53_spill] sm:$0xff] }
 0x45e   :  { %v2150_v31 = vadd.f32 %v4051_v19, %v2149_v45  ;;  %v4057_v45 = vpop.eup %4056 }
 0x45f   :  { %v2139_v3 = vsel %vm2138_vm14, %v4049_v26, %v2135_v59  ;;  %v4059_v59 = vpop.eup %4058  ;;  %v2282_v16 = vadd.f32 1.0, %v4057_v45  ;;  %v2169_v26 = vsel %vm2168_vm5, %v7646_v12, %v2165_v2 }
 0x460   :  { %v2144_v41 = vsel %vm2141_vm0, %v2143_v44, %v2139_v3  ;;  %v2154_v32 = vsel %vm2153_vm1, %v4051_v19, %v2150_v31  ;;  %v2172_v31 = vand.u32 2147483648, %v7635_v55  ;;  %v7675_v60 = vadd.f32 1.0, %v4059_v59  ;;  %v2266_v19 = vpop.f32.mrf.mxu1 }
 0x461   :  { %v2178_v22 = vmul.f32 %v4053_v53, %v2144_v41  ;;  %v2159_v46 = vsel %vm2156_vm2, %v2158_v20, %v2154_v32  ;;  %v2272_v44 = vadd.f32 %v2266_v19, %v390_v23  ;;  %v2296_v39 = vand.u32 2147483648, %v2282_v16  ;;  %v10422_v19 = vld [vmem:[#allocation50_spill] sm:$0xff] }
 0x462   :  { %v2177_v27 = vmul.f32 %v2159_v46, %v7019_v63  ;;  %v2170_v63 = vand.u32 2147483647, %v7635_v55  ;;  %v2173_v42 = vor.u32 1.1754944e-38, %v2172_v31  ;;  %v7701_v46 = vld [vmem:[#allocation11 + $0x1e8] sm:$0xff]  ;;  %v2294_v45 = vand.u32 2147483647, %v2282_v16 }
 0x463   :  { %v7682_v15 = vpop.eup %4060  ;;  %v2311_v59 = vand.u32 2147483648, %v7675_v60  ;;  %v2309_v31 = vand.u32 2147483647, %v7675_v60  ;;  %vm2290_vm9 = vweird.f32 %v2282_v16  ;;  %vm2305_vm11 = vweird.f32 %v7675_v60  ;;  %v10425_v23 = vld [vmem:[#allocation54_spill] sm:$0xff] }
 0x464   :  { %v7669_v43 = vadd.f32 %v2178_v22, %v2177_v27  ;;  %vm2171_vm6 = vcmp.eq.f32.partialorder %v2170_v63, 8.507059e+37  ;;  %v2316_v41 = vmul.f32 %v7682_v15, %v7666_v6  ;;  %vm2295_vm12 = vcmp.eq.f32.partialorder %v2294_v45, 8.507059e+37  ;;  %v10436_v45 = vld [vmem:[#allocation65_spill] sm:$0xff] }
 0x465   :  { %v2174_v55 = vsel %vm2171_vm6, %v2173_v42, %v2169_v26  ;;  %vm2310_vm15 = vcmp.eq.f32.partialorder %v2309_v31, 8.507059e+37  ;;  %vm2321_vm0 = vweird.f32 %v7682_v15  ;;  %vm2320_vm1 = vweird.f32 %v7666_v6  ;;  %v10423_v42 = vld [vmem:[#allocation52_spill] sm:$0xff]  ;;  %v10439_v31 = vld [vmem:[#allocation70_spill] sm:$0xff] }
 0x466   :  { %4062 = vtanh.f32 %v7669_v43  ;;  %vm2322_vm2 = vmor %vm2320_vm1, %vm2321_vm0 }
 0x467   :  { %4064 = vrcp.f32 %v2282_v16 }
 0x468   :  { %4066 = vrcp.f32 %v7675_v60 }
 0x469   :  { %4068 = vtanh.f32 %v2272_v44  ;;  %v10428_v44 = vld [vmem:[#allocation57_spill] sm:$0xff] }
 0x46c   :  { %v4063_v37 = vpop.eup %4062 }
 0x46d   :  { %v4065_v53 = vpop.eup %4064  ;;  %v7691_v52 = vmul.f32 %v4063_v37, %v2174_v55  ;;  %v10426_v37 = vld [vmem:[#allocation55_spill] sm:$0xff]  ;;  %v7785_v55 = vld [vmem:[#allocation11 + $0x28] sm:$0xff] }
 0x46e   :  { %v4067_v12 = vpop.eup %4066  ;;  %v2286_v3 = vmul.f32 %v4065_v53, %v2282_v16  ;;  %vm2291_vm7 = vweird.f32 %v4065_v53 }
 0x46f   :  { %10408 = vst [vmem:[#allocation29_spill] sm:$0xff] %v7691_v52  ;;  %v2301_v20 = vmul.f32 %v4067_v12, %v7675_v60  ;;  %2352 = vmatmul.f32.vlgmr.msra.gmra.mxu2 %v7691_v52  ;;  %2372 = vmatmul.f32.vlgmr.msrb.gmra.mxu3 %v7691_v52  ;;  %vm2306_vm8 = vweird.f32 %v4067_v12  ;;  %vm2292_vm10 = vmor %vm2290_vm9, %vm2291_vm7  ;;  %v10421_v60 = vld [vmem:[#allocation48_spill] sm:$0xff] }
 0x470   :  { %v2287_v32 = vsub.f32 1.0, %v2286_v3  ;;  %2392 = vmatmul.f32.vlgmr.msra.gmra.mxu0 %v7691_v52  ;;  %2412 = vmatmul.f32.vlgmr.msrb.gmra.mxu1 %v7691_v52  ;;  %vm2307_vm14 = vmor %vm2305_vm11, %vm2306_vm8  ;;  %v7791_v3 = vld [vmem:[#allocation11 + $0x8] sm:$0xff]  ;;  %v8185_v52 = vld [vmem:[#allocation11 + $0x10] sm:$0xff] }
 0x471   :  { %v2302_v22 = vsub.f32 1.0, %v2301_v20  ;;  %2570 = vmatpush.msra.mxu2 %v7053_v14  ;;  %2590 = vmatpush.msrb.mxu3 %v7701_v46  ;;  %v2317_v14 = vsub.f32 1.0, %v2316_v41  ;;  %v10430_v20 = vld [vmem:[#allocation59_spill] sm:$0xff]  ;;  %v10431_v41 = vld [vmem:[#allocation60_spill] sm:$0xff]  ;;  %10597 = vst [vmem:[#allocation54_spill] sm:$0xff] %v8185_v52 }
 0x472   :  { %v2288_v27 = vmul.f32 %v4065_v53, %v2287_v32  ;;  %2610 = vmatpush.msra.mxu0 %v7059_v5  ;;  %2630 = vmatpush.msrb.mxu1 %v7062_v13  ;;  %v2297_v5 = vor.u32 1.1754944e-38, %v2296_v39  ;;  %v10432_v32 = vld [vmem:[#allocation61_spill] sm:$0xff]  ;;  %v10433_v39 = vld [vmem:[#allocation62_spill] sm:$0xff] }
 0x473   :  { %v2303_v2 = vmul.f32 %v4067_v12, %v2302_v22  ;;  %2571 = vmatpush.msra.mxu2 %v7069_v47  ;;  %2591 = vmatpush.msrb.mxu3 %v7072_v49  ;;  %v2312_v47 = vor.u32 1.1754944e-38, %v2311_v59  ;;  %v4069_v49 = vpop.eup %4068  ;;  %v10434_v22 = vld [vmem:[#allocation63_spill] sm:$0xff]  ;;  %v10437_v59 = vld [vmem:[#allocation66_spill] sm:$0xff] }
 0x474   :  { %v2289_v63 = vadd.f32 %v4065_v53, %v2288_v27  ;;  %2611 = vmatpush.msra.mxu0 %v7078_v0  ;;  %2631 = vmatpush.msrb.mxu1 %v7081_v57  ;;  %v10435_v27 = vld [vmem:[#allocation64_spill] sm:$0xff] }
 0x475   :  { %v2304_v26 = vadd.f32 %v4067_v12, %v2303_v2  ;;  %2572 = vmatpush.msra.mxu2 %v7084_v11  ;;  %2592 = vmatpush.msrb.mxu3 %v7087_v9  ;;  %v2318_v11 = vmul.f32 %v7682_v15, %v2317_v14  ;;  %v10438_v2 = vld [vmem:[#allocation68_spill] sm:$0xff]  ;;  %v10440_v14 = vld [vmem:[#allocation71_spill] sm:$0xff] }
 0x476   :  { %v2293_v13 = vsel %vm2292_vm10, %v4065_v53, %v2289_v63  ;;  %2612 = vmatpush.msra.mxu0 %v7090_v4  ;;  %2632 = vmatpush.msrb.mxu1 %v7093_v34  ;;  %v10427_v53 = vld [vmem:[#allocation56_spill] sm:$0xff] }
 0x477   :  { %v2298_v0 = vsel %vm2295_vm12, %v2297_v5, %v2293_v13  ;;  %v2308_v57 = vsel %vm2307_vm14, %v4067_v12, %v2304_v26  ;;  %2573 = vmatpush.msra.mxu2 %v7096_v50  ;;  %2593 = vmatpush.msrb.mxu3 %v7099_v35  ;;  %v2319_v50 = vadd.f32 %v7682_v15, %v2318_v11  ;;  %v2324_v35 = vand.u32 2147483647, %v7666_v6  ;;  %v10429_v12 = vld [vmem:[#allocation58_spill] sm:$0xff]  ;;  %v10441_v63 = vld [vmem:[#allocation72_spill] sm:$0xff]  ;;  %v10442_v5 = vld [vmem:[#allocation73_spill] sm:$0xff] }
 0x478   :  { %v2332_v9 = vmul.f32 %v4069_v49, %v2298_v0  ;;  %v2313_v16 = vsel %vm2310_vm15, %v2312_v47, %v2308_v57  ;;  %2613 = vmatpush.msra.mxu0 %v7104_v8  ;;  %2633 = vmatpush.msrb.mxu1 %v7107_v48  ;;  %v10443_v26 = vld [vmem:[#allocation74_spill] sm:$0xff]  ;;  %v10444_v13 = vld [vmem:[#allocation75_spill] sm:$0xff]  ;;  %v10445_v47 = vld [vmem:[#allocation76_spill] sm:$0xff] }
 0x479   :  { %v2331_v4 = vmul.f32 %v2313_v16, %v7043_v36  ;;  %2574 = vmatpush.msra.mxu2 %v7110_v62  ;;  %2594 = vmatpush.msrb.mxu3 %v7113_v17  ;;  %v2326_v36 = vand.u32 2147483648, %v7666_v6  ;;  %v2323_v8 = vsel %vm2322_vm2, %v7682_v15, %v2319_v50  ;;  %vm2325_vm3 = vcmp.eq.f32.partialorder %v2324_v35, 8.507059e+37  ;;  %v10409_v62 = vld [vmem:[#allocation28_spill] sm:$0xff]  ;;  %v10410_v17 = vld [vmem:[#allocation33_spill] sm:$0xff]  ;;  %v7773_v6 = vld [vmem:[#allocation11 + $0x68] sm:$0xff] }
 0x47a   :  { %2614 = vmatpush.msra.mxu0 %v7120_v18  ;;  %2634 = vmatpush.msrb.mxu1 %v7123_v54  ;;  %v7779_v15 = vld [vmem:[#allocation11 + $0x48] sm:$0xff]  ;;  %v10446_v49 = vld [vmem:[#allocation77_spill] sm:$0xff]  ;;  %v10447_v0 = vld [vmem:[#allocation79_spill] sm:$0xff] }
 0x47b   :  { %v7729_v34 = vadd.f32 %v2332_v9, %v2331_v4  ;;  %2575 = vmatpush.msra.mxu2 %v7126_v21  ;;  %2595 = vmatpush.msrb.mxu3 %v7129_v58  ;;  %v2327_v48 = vor.u32 1.1754944e-38, %v2326_v36  ;;  %v10411_v21 = vld [vmem:[#allocation38_spill] sm:$0xff]  ;;  %v10448_v57 = vld [vmem:[#allocation80_spill] sm:$0xff]  ;;  %v10449_v11 = vld [vmem:[#allocation81_spill] sm:$0xff] }
 0x47c   :  { %2615 = vmatpush.msra.mxu0 %v7132_v25  ;;  %2635 = vmatpush.msrb.mxu1 %v7135_v61  ;;  %v7755_v58 = vld [vmem:[#allocation11 + $0xc8] sm:$0xff]  ;;  %v10412_v61 = vld [vmem:[#allocation39_spill] sm:$0xff]  ;;  %v10452_v4 = vld [vmem:[#allocation84_spill] sm:$0xff] }
 0x47d   :  { %4070 = vtanh.f32 %v7729_v34  ;;  %2576 = vmatpush.msra.mxu2 %v7138_v28  ;;  %2596 = vmatpush.msrb.mxu3 %v7141_v10  ;;  %v2328_v54 = vsel %vm2325_vm3, %v2327_v48, %v2323_v8  ;;  %v10413_v28 = vld [vmem:[#allocation40_spill] sm:$0xff]  ;;  %v10414_v10 = vld [vmem:[#allocation41_spill] sm:$0xff]  ;;  %v10450_v9 = vld [vmem:[#allocation82_spill] sm:$0xff] }
 0x47e   :  { %2616 = vmatpush.msra.mxu0 %v7144_v30  ;;  %2636 = vmatpush.msrb.mxu1 %v7147_v38  ;;  %v7761_v30 = vld [vmem:[#allocation11 + $0xa8] sm:$0xff]  ;;  %v10451_v16 = vld [vmem:[#allocation83_spill] sm:$0xff]  ;;  %v10453_v50 = vld [vmem:[#allocation85_spill] sm:$0xff] }
 0x47f   :  { %2577 = vmatpush.msra.mxu2 %v7150_v33  ;;  %2597 = vmatpush.msrb.mxu3 %v7153_v7  ;;  %v10415_v38 = vld [vmem:[#allocation42_spill] sm:$0xff]  ;;  %v10416_v33 = vld [vmem:[#allocation43_spill] sm:$0xff]  ;;  %v10417_v7 = vld [vmem:[#allocation44_spill] sm:$0xff] }
 0x480   :  { %2617 = vmatpush.msra.mxu0 %v7156_v40  ;;  %2637 = vmatpush.msrb.mxu1 %v7159_v51  ;;  %v7767_v40 = vld [vmem:[#allocation11 + $0x88] sm:$0xff]  ;;  %v10418_v51 = vld [vmem:[#allocation45_spill] sm:$0xff]  ;;  %v10455_v35 = vld [vmem:[#allocation88_spill] sm:$0xff] }
 0x481   :  { %2578 = vmatpush.msra.mxu2 %v7162_v29  ;;  %2598 = vmatpush.msrb.mxu3 %v7165_v1  ;;  %v10419_v29 = vld [vmem:[#allocation46_spill] sm:$0xff]  ;;  %v10420_v1 = vld [vmem:[#allocation47_spill] sm:$0xff]  ;;  %v10456_v8 = vld [vmem:[#allocation89_spill] sm:$0xff] }
 0x482   :  { %2618 = vmatpush.msra.mxu0 %v10409_v62  ;;  %2638 = vmatpush.msrb.mxu1 %v10410_v17  ;;  %v10454_v36 = vld [vmem:[#allocation86_spill] sm:$0xff]  ;;  %v10458_v62 = vld [vmem:[#allocation91_spill] sm:$0xff]  ;;  %v10459_v17 = vld [vmem:[#allocation92_spill] sm:$0xff] }
 0x483   :  { %v4071_v18 = vpop.eup %4070  ;;  %2579 = vmatpush.msra.mxu2 %v10411_v21  ;;  %2599 = vmatpush.msrb.mxu3 %v7755_v58  ;;  %v10457_v48 = vld [vmem:[#allocation90_spill] sm:$0xff]  ;;  %v10462_v21 = vld [vmem:[#allocation95_spill] sm:$0xff] }
 0x484   :  { %v2335_v25 = vmul.f32 %v4071_v18, %v2328_v54  ;;  %2619 = vmatpush.msra.mxu0 %v10412_v61  ;;  %2639 = vmatpush.msrb.mxu1 %v10413_v28  ;;  %v10460_v18 = vld [vmem:[#allocation93_spill] sm:$0xff]  ;;  %v10461_v54 = vld [vmem:[#allocation94_spill] sm:$0xff] }
 0x485   :  { %2580 = vmatpush.msra.mxu2 %v10414_v10  ;;  %2600 = vmatpush.msrb.mxu3 %v7761_v30  ;;  %v10464_v61 = vld [vmem:[#allocation97_spill] sm:$0xff]  ;;  %v10465_v28 = vld [vmem:[#allocation98_spill] sm:$0xff]  ;;  %v10466_v10 = vld [vmem:[#allocation99_spill] sm:$0xff] }
 0x486   :  { %2620 = vmatpush.msra.mxu0 %v10415_v38  ;;  %2640 = vmatpush.msrb.mxu1 %v10416_v33  ;;  %v10467_v38 = vld [vmem:[#allocation101_spill] sm:$0xff]  ;;  %v10468_v33 = vld [vmem:[#allocation102_spill] sm:$0xff] }
 0x487   :  { %2432 = vmatmul.f32.vlgmr.msrb.gmra.mxu2 %v2335_v25  ;;  %2452 = vmatmul.f32.vlgmr.msra.gmra.mxu3 %v2335_v25 }
 0x488   :  { %2472 = vmatmul.f32.vlgmr.msrb.gmra.mxu0 %v2335_v25  ;;  %2492 = vmatmul.f32.vlgmr.msra.gmra.mxu1 %v2335_v25 }
 0x489   :  { %2581 = vmatpush.msra.mxu2 %v10417_v7  ;;  %2601 = vmatpush.msrb.mxu3 %v7767_v40  ;;  %v10469_v7 = vld [vmem:[#allocation103_spill] sm:$0xff] }
 0x48a   :  { %2621 = vmatpush.msra.mxu0 %v10418_v51  ;;  %2641 = vmatpush.msrb.mxu1 %v10419_v29  ;;  %v10470_v51 = vld [vmem:[#allocation105_spill] sm:$0xff]  ;;  %v10471_v29 = vld [vmem:[#allocation106_spill] sm:$0xff] }
 0x48b   :  { %2582 = vmatpush.msra.mxu2 %v10420_v1  ;;  %2602 = vmatpush.msrb.mxu3 %v7773_v6  ;;  %v10472_v1 = vld [vmem:[#allocation107_spill] sm:$0xff] }
 0x48c   :  { %2622 = vmatpush.msra.mxu0 %v10421_v60  ;;  %2642 = vmatpush.msrb.mxu1 %v10422_v19  ;;  %v10473_v60 = vld [vmem:[#allocation109_spill] sm:$0xff]  ;;  %v10474_v19 = vld [vmem:[#allocation110_spill] sm:$0xff] }
 0x48d   :  { %2583 = vmatpush.msra.mxu2 %v10423_v42  ;;  %2603 = vmatpush.msrb.mxu3 %v7779_v15  ;;  %v10475_v42 = vld [vmem:[#allocation111_spill] sm:$0xff] }
 0x48e   :  { %2623 = vmatpush.msra.mxu0 %v10424_v24  ;;  %2643 = vmatpush.msrb.mxu1 %v10425_v23  ;;  %v10476_v24 = vld [vmem:[#allocation112_spill] sm:$0xff]  ;;  %v10477_v23 = vld [vmem:[#allocation113_spill] sm:$0xff] }
 0x48f   :  { %2584 = vmatpush.msra.mxu2 %v10426_v37  ;;  %2604 = vmatpush.msrb.mxu3 %v7785_v55  ;;  %v10478_v37 = vld [vmem:[#allocation114_spill] sm:$0xff] }
 0x490   :  { %2624 = vmatpush.msra.mxu0 %v10427_v53  ;;  %2644 = vmatpush.msrb.mxu1 %v10428_v44  ;;  %v10479_v53 = vld [vmem:[#allocation115_spill] sm:$0xff]  ;;  %v10480_v44 = vld [vmem:[#allocation116_spill] sm:$0xff] }
 0x491   :  { %2585 = vmatpush.msra.mxu2 %v10429_v12  ;;  %2605 = vmatpush.msrb.mxu3 %v7791_v3  ;;  %v10481_v12 = vld [vmem:[#allocation117_spill] sm:$0xff] }
 0x492   :  { %2625 = vmatpush.msra.mxu0 %v10430_v20  ;;  %2645 = vmatpush.msrb.mxu1 %v10431_v41  ;;  %v10482_v20 = vld [vmem:[#allocation118_spill] sm:$0xff]  ;;  %v10483_v41 = vld [vmem:[#allocation119_spill] sm:$0xff] }
 0x493   :  { %2586 = vmatmul.f32.vlgmr.msra.gmra.mxu2 %v2335_v25  ;;  %2606 = vmatmul.f32.vlgmr.msrb.gmra.mxu3 %v2335_v25 }
 0x494   :  { %2626 = vmatmul.f32.vlgmr.msra.gmra.mxu0 %v2335_v25  ;;  %2646 = vmatmul.f32.vlgmr.msrb.gmra.mxu1 %v2335_v25  ;;  %v10463_v25 = vld [vmem:[#allocation96_spill] sm:$0xff] }
 0x495   :  { %2717 = vmatpush.msrb.mxu2 %v10432_v32  ;;  %2737 = vmatpush.msra.mxu3 %v10433_v39  ;;  %v10484_v32 = vld [vmem:[#allocation120_spill] sm:$0xff]  ;;  %v10485_v39 = vld [vmem:[#allocation122_spill] sm:$0xff] }
 0x496   :  { %2757 = vmatpush.msrb.mxu0 %v10434_v22  ;;  %2777 = vmatpush.msra.mxu1 %v10435_v27  ;;  %v10486_v22 = vld [vmem:[#allocation123_spill] sm:$0xff]  ;;  %v10487_v27 = vld [vmem:[#allocation125_spill] sm:$0xff] }
 0x497   :  { %2718 = vmatpush.msrb.mxu2 %v10436_v45  ;;  %2738 = vmatpush.msra.mxu3 %v10437_v59  ;;  %v10488_v45 = vld [vmem:[#allocation126_spill] sm:$0xff]  ;;  %v10489_v59 = vld [vmem:[#allocation128_spill] sm:$0xff] }
 0x498   :  { %2758 = vmatpush.msrb.mxu0 %v10438_v2  ;;  %2778 = vmatpush.msra.mxu1 %v10439_v31  ;;  %v10490_v2 = vld [vmem:[#allocation129_spill] sm:$0xff]  ;;  %v10491_v31 = vld [vmem:[#allocation130_spill] sm:$0xff] }
 0x499   :  { %2719 = vmatpush.msrb.mxu2 %v10440_v14  ;;  %2739 = vmatpush.msra.mxu3 %v10441_v63  ;;  %v10492_v14 = vld [vmem:[#allocation131_spill] sm:$0xff]  ;;  %v10493_v63 = vld [vmem:[#allocation132_spill] sm:$0xff] }
 0x49a   :  { %2759 = vmatpush.msrb.mxu0 %v10442_v5  ;;  %2779 = vmatpush.msra.mxu1 %v10443_v26  ;;  %v10494_v5 = vld [vmem:[#allocation134_spill] sm:$0xff]  ;;  %v10495_v26 = vld [vmem:[#allocation135_spill] sm:$0xff] }
 0x49b   :  { %2720 = vmatpush.msrb.mxu2 %v10444_v13  ;;  %2740 = vmatpush.msra.mxu3 %v10445_v47  ;;  %v10496_v13 = vld [vmem:[#allocation136_spill] sm:$0xff]  ;;  %v10497_v47 = vld [vmem:[#allocation137_spill] sm:$0xff] }
 0x49c   :  { %2760 = vmatpush.msrb.mxu0 %v10446_v49  ;;  %2780 = vmatpush.msra.mxu1 %v10447_v0  ;;  %v10498_v49 = vld [vmem:[#allocation138_spill] sm:$0xff]  ;;  %v10499_v0 = vld [vmem:[#allocation139_spill] sm:$0xff] }
 0x49d   :  { %2721 = vmatpush.msrb.mxu2 %v10448_v57  ;;  %2741 = vmatpush.msra.mxu3 %v10449_v11  ;;  %v10500_v57 = vld [vmem:[#allocation141_spill] sm:$0xff]  ;;  %v10501_v11 = vld [vmem:[#allocation142_spill] sm:$0xff] }
 0x49e   :  { %2761 = vmatpush.msrb.mxu0 %v10450_v9  ;;  %2781 = vmatpush.msra.mxu1 %v10451_v16  ;;  %v10502_v9 = vld [vmem:[#allocation144_spill] sm:$0xff]  ;;  %v10503_v16 = vld [vmem:[#allocation145_spill] sm:$0xff] }
 0x49f   :  { %2722 = vmatpush.msrb.mxu2 %v10452_v4  ;;  %2742 = vmatpush.msra.mxu3 %v10453_v50  ;;  %v10504_v4 = vld [vmem:[#allocation146_spill] sm:$0xff]  ;;  %v10505_v50 = vld [vmem:[#allocation147_spill] sm:$0xff] }
 0x4a0   :  { %2762 = vmatpush.msrb.mxu0 %v10454_v36  ;;  %2782 = vmatpush.msra.mxu1 %v10455_v35  ;;  %v10506_v36 = vld [vmem:[#allocation148_spill] sm:$0xff]  ;;  %v10507_v35 = vld [vmem:[#allocation149_spill] sm:$0xff] }
 0x4a1   :  { %2723 = vmatpush.msrb.mxu2 %v10456_v8  ;;  %2743 = vmatpush.msra.mxu3 %v10457_v48  ;;  %v10508_v8 = vld [vmem:[#allocation150_spill] sm:$0xff]  ;;  %v10509_v48 = vld [vmem:[#allocation152_spill] sm:$0xff] }
 0x4a2   :  { %2763 = vmatpush.msrb.mxu0 %v10458_v62  ;;  %2783 = vmatpush.msra.mxu1 %v10459_v17  ;;  %v10510_v62 = vld [vmem:[#allocation153_spill] sm:$0xff]  ;;  %v10511_v17 = vld [vmem:[#allocation154_spill] sm:$0xff] }
 0x4a3   :  { %2724 = vmatpush.msrb.mxu2 %v10460_v18  ;;  %2744 = vmatpush.msra.mxu3 %v10461_v54  ;;  %v10512_v18 = vld [vmem:[#allocation155_spill] sm:$0xff]  ;;  %v10513_v54 = vld [vmem:[#allocation156_spill] sm:$0xff] }
 0x4a4   :  { %2764 = vmatpush.msrb.mxu0 %v10462_v21  ;;  %2784 = vmatpush.msra.mxu1 %v10463_v25  ;;  %v10514_v21 = vld [vmem:[#allocation157_spill] sm:$0xff]  ;;  %v10515_v25 = vld [vmem:[#allocation158_spill] sm:$0xff] }
 0x4a5   :  { %2725 = vmatpush.msrb.mxu2 %v10464_v61  ;;  %2745 = vmatpush.msra.mxu3 %v10465_v28  ;;  %v10516_v61 = vld [vmem:[#allocation159_spill] sm:$0xff]  ;;  %v10517_v28 = vld [vmem:[#allocation160_spill] sm:$0xff] }
 0x4a6   :  { %2765 = vmatpush.msrb.mxu0 %v10466_v10  ;;  %2785 = vmatpush.msra.mxu1 %v10467_v38  ;;  %v10518_v10 = vld [vmem:[#allocation161_spill] sm:$0xff]  ;;  %v10519_v38 = vld [vmem:[#allocation162_spill] sm:$0xff] }
 0x4a7   :  { %2726 = vmatpush.msrb.mxu2 %v10468_v33  ;;  %2746 = vmatpush.msra.mxu3 %v10469_v7  ;;  %v10520_v33 = vld [vmem:[#allocation163_spill] sm:$0xff]  ;;  %v10521_v7 = vld [vmem:[#allocation164_spill] sm:$0xff] }
 0x4a8   :  { %2766 = vmatpush.msrb.mxu0 %v10470_v51  ;;  %2786 = vmatpush.msra.mxu1 %v10471_v29  ;;  %v10522_v51 = vld [vmem:[#allocation165_spill] sm:$0xff]  ;;  %v10523_v29 = vld [vmem:[#allocation167_spill] sm:$0xff] }
 0x4a9   :  { %2727 = vmatpush.msrb.mxu2 %v10472_v1  ;;  %2747 = vmatpush.msra.mxu3 %v10473_v60  ;;  %v10524_v1 = vld [vmem:[#allocation168_spill] sm:$0xff]  ;;  %v10525_v60 = vld [vmem:[#allocation169_spill] sm:$0xff] }
 0x4aa   :  { %2767 = vmatpush.msrb.mxu0 %v10474_v19  ;;  %2787 = vmatpush.msra.mxu1 %v10475_v42  ;;  %v10526_v19 = vld [vmem:[#allocation78_spill] sm:$0xff]  ;;  %v10527_v42 = vld [vmem:[#allocation35_spill] sm:$0xff] }
 0x4ab   :  { %2728 = vmatpush.msrb.mxu2 %v10476_v24  ;;  %2748 = vmatpush.msra.mxu3 %v10477_v23  ;;  %v10528_v24 = vld [vmem:[#allocation143_spill] sm:$0xff]  ;;  %v10529_v23 = vld [vmem:[#allocation133_spill] sm:$0xff] }
 0x4ac   :  { %2768 = vmatpush.msrb.mxu0 %v10478_v37  ;;  %2788 = vmatpush.msra.mxu1 %v10479_v53  ;;  %v10530_v37 = vld [vmem:[#allocation104_spill] sm:$0xff] }
 0x4ad   :  { %2729 = vmatpush.msrb.mxu2 %v10480_v44  ;;  %2749 = vmatpush.msra.mxu3 %v10481_v12  ;;  %v10531_v53 = vld [vmem:[#allocation172_spill] sm:$0xff]  ;;  %v10532_v44 = vld [vmem:[#allocation173_spill] sm:$0xff]  ;;  %v10533_v12 = vld [vmem:[#allocation174_spill] sm:$0xff] }
 0x4ae   :  { %2769 = vmatpush.msrb.mxu0 %v10482_v20  ;;  %2789 = vmatpush.msra.mxu1 %v10483_v41  ;;  %v10534_v20 = vld [vmem:[#allocation175_spill] sm:$0xff]  ;;  %v10535_v41 = vld [vmem:[#allocation176_spill] sm:$0xff] }
 0x4af   :  { %2730 = vmatpush.msrb.mxu2 %v10484_v32  ;;  %2750 = vmatpush.msra.mxu3 %v10485_v39  ;;  %v10536_v32 = vld [vmem:[#allocation177_spill] sm:$0xff]  ;;  %v10537_v39 = vld [vmem:[#allocation178_spill] sm:$0xff] }
 0x4b0   :  { %2770 = vmatpush.msrb.mxu0 %v10486_v22  ;;  %2790 = vmatpush.msra.mxu1 %v10487_v27  ;;  %v10538_v22 = vld [vmem:[#allocation179_spill] sm:$0xff]  ;;  %v10539_v27 = vld [vmem:[#allocation180_spill] sm:$0xff] }
 0x4b1   :  { %2731 = vmatpush.msrb.mxu2 %v10488_v45  ;;  %2751 = vmatpush.msra.mxu3 %v10489_v59  ;;  %v10540_v45 = vld [vmem:[#allocation181_spill] sm:$0xff]  ;;  %v10541_v59 = vld [vmem:[#allocation182_spill] sm:$0xff] }
 0x4b2   :  { %2771 = vmatpush.msrb.mxu0 %v10490_v2  ;;  %2791 = vmatpush.msra.mxu1 %v10491_v31  ;;  %v10542_v2 = vld [vmem:[#allocation183_spill] sm:$0xff]  ;;  %v10543_v31 = vld [vmem:[#allocation184_spill] sm:$0xff] }
 0x4b3   :  { %2732 = vmatpush.msrb.mxu2 %v10492_v14  ;;  %2752 = vmatpush.msra.mxu3 %v10493_v63  ;;  %v10544_v14 = vld [vmem:[#allocation185_spill] sm:$0xff]  ;;  %v10545_v63 = vld [vmem:[#allocation186_spill] sm:$0xff] }
 0x4b4   :  { %2772 = vmatpush.msrb.mxu0 %v10494_v5  ;;  %2792 = vmatpush.msra.mxu1 %v10495_v26  ;;  %v10546_v5 = vld [vmem:[#allocation187_spill] sm:$0xff]  ;;  %v10547_v26 = vld [vmem:[#allocation188_spill] sm:$0xff] }
 0x4b5   :  { %2797 = vmatpush.msra.mxu2 %v10496_v13  ;;  %2817 = vmatpush.msrb.mxu3 %v10497_v47  ;;  %v10548_v13 = vld [vmem:[#allocation189_spill] sm:$0xff]  ;;  %v10549_v47 = vld [vmem:[#allocation190_spill] sm:$0xff] }
 0x4b6   :  { %2837 = vmatpush.msra.mxu0 %v10498_v49  ;;  %2857 = vmatpush.msrb.mxu1 %v10499_v0  ;;  %v10550_v49 = vld [vmem:[#allocation191_spill] sm:$0xff]  ;;  %v10551_v0 = vld [vmem:[#allocation192_spill] sm:$0xff] }
 0x4b7   :  { %2798 = vmatpush.msra.mxu2 %v10500_v57  ;;  %2818 = vmatpush.msrb.mxu3 %v10501_v11  ;;  %v10552_v57 = vld [vmem:[#allocation193_spill] sm:$0xff]  ;;  %v10553_v11 = vld [vmem:[#allocation194_spill] sm:$0xff] }
 0x4b8   :  { %2838 = vmatpush.msra.mxu0 %v10502_v9  ;;  %2858 = vmatpush.msrb.mxu1 %v10503_v16  ;;  %v10554_v9 = vld [vmem:[#allocation195_spill] sm:$0xff]  ;;  %v10555_v16 = vld [vmem:[#allocation196_spill] sm:$0xff] }
 0x4b9   :  { %2799 = vmatpush.msra.mxu2 %v10504_v4  ;;  %2819 = vmatpush.msrb.mxu3 %v10505_v50  ;;  %v10556_v4 = vld [vmem:[#allocation197_spill] sm:$0xff]  ;;  %v10557_v50 = vld [vmem:[#allocation198_spill] sm:$0xff] }
 0x4ba   :  { %2839 = vmatpush.msra.mxu0 %v10506_v36  ;;  %2859 = vmatpush.msrb.mxu1 %v10507_v35  ;;  %v10558_v36 = vld [vmem:[#allocation199_spill] sm:$0xff]  ;;  %v10559_v35 = vld [vmem:[#allocation124_spill] sm:$0xff] }
 0x4bb   :  { %2800 = vmatpush.msra.mxu2 %v10508_v8  ;;  %2820 = vmatpush.msrb.mxu3 %v10509_v48 }
 0x4bc   :  { %2840 = vmatpush.msra.mxu0 %v10510_v62  ;;  %2860 = vmatpush.msrb.mxu1 %v10511_v17 }
 0x4bd   :  { %2801 = vmatpush.msra.mxu2 %v10512_v18  ;;  %2821 = vmatpush.msrb.mxu3 %v10513_v54  ;;  %v10560_v54 = vld [vmem:[#allocation26_spill] sm:$0xff] }
 0x4be   :  { %2841 = vmatpush.msra.mxu0 %v10514_v21  ;;  %2861 = vmatpush.msrb.mxu1 %v10515_v25 }
 0x4bf   :  { %2802 = vmatpush.msra.mxu2 %v10516_v61  ;;  %2822 = vmatpush.msrb.mxu3 %v10517_v28 }
 0x4c0   :  { %2842 = vmatpush.msra.mxu0 %v10518_v10  ;;  %2862 = vmatpush.msrb.mxu1 %v10519_v38 }
 0x4c1   :  { %2803 = vmatpush.msra.mxu2 %v10520_v33  ;;  %2823 = vmatpush.msrb.mxu3 %v10521_v7  ;;  %v10561_v33 = vld [vmem:[#allocation31_spill] sm:$0xff] }
 0x4c2   :  { %2843 = vmatpush.msra.mxu0 %v10522_v51  ;;  %2863 = vmatpush.msrb.mxu1 %v10523_v29  ;;  %v10562_v51 = vld [vmem:[#allocation23_spill] sm:$0xff] }
 0x4c3   :  { %2804 = vmatpush.msra.mxu2 %v10524_v1  ;;  %2824 = vmatpush.msrb.mxu3 %v10525_v60 }
 0x4c4   :  { %2844 = vmatpush.msra.mxu0 %v10526_v19  ;;  %2864 = vmatpush.msrb.mxu1 %v10527_v42  ;;  %v10563_v19 = vld [vmem:[#allocation36_spill] sm:$0xff] }
 0x4c5   :  { %2805 = vmatpush.msra.mxu2 %v10528_v24  ;;  %2825 = vmatpush.msrb.mxu3 %v10529_v23  ;;  %v10564_v42 = vld [vmem:[#allocation200_spill] sm:$0xff] }
 0x4c6   :  { %2845 = vmatpush.msra.mxu0 %v10530_v37  ;;  %2865 = vmatpush.msrb.mxu1 %v10531_v53  ;;  %v393_v24 = vadd.f32 %v10564_v42, %v10563_v19 }
 0x4c7   :  { %2806 = vmatpush.msra.mxu2 %v10532_v44  ;;  %2826 = vmatpush.msrb.mxu3 %v10533_v12 }
 0x4c8   :  { %2846 = vmatpush.msra.mxu0 %v10534_v20  ;;  %2866 = vmatpush.msrb.mxu1 %v10535_v41  ;;  %v10565_v20 = vld [vmem:[#allocation87_spill] sm:$0xff] }
 0x4c9   :  { %2807 = vmatpush.msra.mxu2 %v10536_v32  ;;  %2827 = vmatpush.msrb.mxu3 %v10537_v39  ;;  %v10566_v41 = vld [vmem:[#allocation51_spill] sm:$0xff]  ;;  %v10567_v39 = vld [vmem:[#allocation25_spill] sm:$0xff] }
 0x4ca   :  { %2847 = vmatpush.msra.mxu0 %v10538_v22  ;;  %2867 = vmatpush.msrb.mxu1 %v10539_v27  ;;  %v392_v32 = vadd.f32 %v10566_v41, %v10565_v20  ;;  %v10568_v22 = vld [vmem:[#allocation100_spill] sm:$0xff] }
 0x4cb   :  { %2808 = vmatpush.msra.mxu2 %v10540_v45  ;;  %2828 = vmatpush.msrb.mxu3 %v10541_v59  ;;  %v391_v27 = vadd.f32 %v10568_v22, %v10567_v39 }
 0x4cc   :  { %2848 = vmatpush.msra.mxu0 %v10542_v2  ;;  %2868 = vmatpush.msrb.mxu1 %v10543_v31 }
 0x4cd   :  { %2809 = vmatpush.msra.mxu2 %v10544_v14  ;;  %2829 = vmatpush.msrb.mxu3 %v10545_v63 }
 0x4ce   :  { %2849 = vmatpush.msra.mxu0 %v10546_v5  ;;  %2869 = vmatpush.msrb.mxu1 %v10547_v26 }
 0x4cf   :  { %2810 = vmatpush.msra.mxu2 %v10548_v13  ;;  %2830 = vmatpush.msrb.mxu3 %v10549_v47 }
 0x4d0   :  { %2850 = vmatpush.msra.mxu0 %v10550_v49  ;;  %2870 = vmatpush.msrb.mxu1 %v10551_v0 }
 0x4d1   :  { %2811 = vmatpush.msra.mxu2 %v10552_v57  ;;  %2831 = vmatpush.msrb.mxu3 %v10553_v11 }
 0x4d2   :  { %2851 = vmatpush.msra.mxu0 %v10554_v9  ;;  %2871 = vmatpush.msrb.mxu1 %v10555_v16  ;;  %v10569_v16 = vld [vmem:[#allocation27_spill] sm:$0xff] }
 0x4d3   :  { %2812 = vmatpush.msra.mxu2 %v10556_v4  ;;  %2832 = vmatpush.msrb.mxu3 %v10557_v50 }
 0x4d4   :  { %2852 = vmatpush.msra.mxu0 %v10558_v36  ;;  %2872 = vmatpush.msrb.mxu1 %v10559_v35 }
 0x4ed   :  { %v2393_v8 = vpop.f32.mrf.mxu0  ;;  %v2413_v23 = vpop.f32.mrf.mxu1 }
 0x4f2   :  { %v2353_v48 = vpop.f32.mrf.mxu2  ;;  %v2373_v62 = vpop.f32.mrf.mxu3 }
 0x505   :  { %v2473_v17 = vpop.f32.mrf.mxu0  ;;  %v2493_v26 = vpop.f32.mrf.mxu1 }
 0x506   :  { %v2474_v18 = vadd.f32 %v2473_v17, %v2393_v8  ;;  %v2494_v57 = vadd.f32 %v2493_v26, %v2413_v23 }
 0x508   :  { %v2498_v21 = vadd.f32 %v2474_v18, %v10560_v54  ;;  %v2499_v4 = vadd.f32 %v2494_v57, %v10569_v16 }
 0x50a   :  { %v3891_v25 = vmul.f32 -1.442695, %v2498_v21  ;;  %v2433_v61 = vpop.f32.mrf.mxu2  ;;  %v2453_v28 = vpop.f32.mrf.mxu3 }
 0x50b   :  { %v2434_v10 = vadd.f32 %v2433_v61, %v2353_v48  ;;  %v2454_v38 = vadd.f32 %v2453_v28, %v2373_v62  ;;  %v10570_v48 = vld [vmem:[#allocation166_spill] sm:$0xff] }
 0x50c   :  { %4072 = vpow2.f32 %v3891_v25  ;;  %v394_v62 = vadd.f32 %v7687_v56, %v10570_v48 }
 0x50d   :  { %v2496_v7 = vadd.f32 %v2434_v10, %v10561_v33  ;;  %v2497_v29 = vadd.f32 %v2454_v38, %v10562_v51 }
 0x50f   :  { %v3889_v1 = vmul.f32 -1.442695, %v2496_v7  ;;  %v3890_v60 = vmul.f32 -1.442695, %v2497_v29 }
 0x511   :  { %4074 = vpow2.f32 %v3889_v1  ;;  %v2627_v37 = vpop.f32.mrf.mxu0  ;;  %v2647_v42 = vpop.f32.mrf.mxu1 }
 0x512   :  { %v4073_v53 = vpop.eup %4072  ;;  %4076 = vpow2.f32 %v3890_v60  ;;  %v2652_v44 = vadd.f32 %v2627_v37, %v393_v24 }
 0x513   :  { %v7929_v12 = vadd.f32 1.0, %v4073_v53 }
 0x514   :  { %v3894_v45 = vmul.f32 -1.442695, %v2652_v44 }
 0x515   :  { %4078 = vrcp.f32 %v7929_v12  ;;  %vm2547_vm12 = vweird.f32 %v7929_v12  ;;  %v2553_v26 = vand.u32 2147483648, %v7929_v12 }
 0x516   :  { %v2587_v59 = vpop.f32.mrf.mxu2  ;;  %v2607_v2 = vpop.f32.mrf.mxu3  ;;  %4080 = vpow2.f32 %v3894_v45 }
 0x517   :  { %v4075_v31 = vpop.eup %4074  ;;  %v2650_v14 = vadd.f32 %v2587_v59, %v391_v27  ;;  %v2651_v63 = vadd.f32 %v2607_v2, %v392_v32  ;;  %v2653_v32 = vadd.f32 %v2647_v42, %v394_v62 }
 0x518   :  { %v4077_v5 = vpop.eup %4076  ;;  %v2509_v13 = vadd.f32 1.0, %v4075_v31 }
 0x519   :  { %v2510_v47 = vadd.f32 1.0, %v4077_v5  ;;  %v3892_v49 = vmul.f32 -1.442695, %v2650_v14  ;;  %v3893_v0 = vmul.f32 -1.442695, %v2651_v63 }
 0x51a   :  { %4082 = vrcp.f32 %v2509_v13  ;;  %v2521_v10 = vand.u32 2147483647, %v2509_v13  ;;  %v2523_v38 = vand.u32 2147483648, %v2509_v13  ;;  %vm2517_vm6 = vweird.f32 %v2509_v13 }
 0x51b   :  { %4084 = vrcp.f32 %v2510_v47  ;;  %v7936_v11 = vpop.eup %4078  ;;  %v2538_v60 = vand.u32 2147483648, %v2510_v47  ;;  %v2536_v19 = vand.u32 2147483647, %v2510_v47  ;;  %vm2532_vm8 = vweird.f32 %v2510_v47 }
 0x51c   :  { %4086 = vpow2.f32 %v3892_v49  ;;  %v4081_v9 = vpop.eup %4080  ;;  %v2543_v25 = vmul.f32 %v7936_v11, %v7929_v12  ;;  %v2524_v37 = vor.u32 1.1754944e-38, %v2523_v38  ;;  %vm2522_vm9 = vcmp.eq.f32.partialorder %v2521_v10, 8.507059e+37 }
 0x51d   :  { %4088 = vpow2.f32 %v3893_v0  ;;  %v7941_v18 = vadd.f32 1.0, %v4081_v9  ;;  %v2539_v41 = vor.u32 1.1754944e-38, %v2538_v60  ;;  %vm2537_vm11 = vcmp.eq.f32.partialorder %v2536_v19, 8.507059e+37 }
 0x51e   :  { %4090 = vtanh.f32 %v2499_v4  ;;  %v2544_v24 = vsub.f32 1.0, %v2543_v25  ;;  %vm2548_vm14 = vweird.f32 %v7936_v11 }
 0x51f   :  { %vm7978_vm2 = vmor %vm2547_vm12, %vm2548_vm14 }
 0x520   :  { %v4083_v50 = vpop.eup %4082  ;;  %v2545_v45 = vmul.f32 %v7936_v11, %v2544_v24 }
 0x521   :  { %v4085_v36 = vpop.eup %4084  ;;  %v2513_v35 = vmul.f32 %v4083_v50, %v2509_v13  ;;  %vm2518_vm4 = vweird.f32 %v4083_v50 }
 0x522   :  { %v4087_v8 = vpop.eup %4086  ;;  %v2528_v17 = vmul.f32 %v4085_v36, %v2510_v47  ;;  %vm2533_vm5 = vweird.f32 %v4085_v36  ;;  %vm2519_vm7 = vmor %vm2517_vm6, %vm2518_vm4 }
 0x523   :  { %v4089_v21 = vpop.eup %4088  ;;  %v2514_v61 = vsub.f32 1.0, %v2513_v35  ;;  %v7945_v28 = vadd.f32 1.0, %v4087_v8  ;;  %vm2534_vm10 = vmor %vm2532_vm8, %vm2533_vm5  ;;  %v2551_v35 = vand.u32 2147483647, %v7929_v12 }
 0x524   :  { %v2529_v7 = vsub.f32 1.0, %v2528_v17  ;;  %v7947_v29 = vadd.f32 1.0, %v4089_v21  ;;  %v4091_v44 = vpop.eup %4090  ;;  %v8085_v17 = vld [vmem:[#allocation11 + $0x120] sm:$0xff] }
 0x525   :  { %v2515_v1 = vmul.f32 %v4083_v50, %v2514_v61  ;;  %4092 = vrcp.f32 %v7945_v28  ;;  %v2677_v0 = vand.u32 2147483648, %v7945_v28  ;;  %v2675_v4 = vand.u32 2147483647, %v7945_v28 }
 0x526   :  { %v2530_v56 = vmul.f32 %v4085_v36, %v2529_v7  ;;  %4094 = vrcp.f32 %v7941_v18  ;;  %vm2671_vm0 = vweird.f32 %v7945_v28  ;;  %v2690_v62 = vand.u32 2147483647, %v7947_v29 }
 0x527   :  { %v2516_v23 = vadd.f32 %v4083_v50, %v2515_v1  ;;  %4096 = vrcp.f32 %v7947_v29  ;;  %v2678_v61 = vor.u32 1.1754944e-38, %v2677_v0  ;;  %vm2676_vm4 = vcmp.eq.f32.partialorder %v2675_v4, 8.507059e+37  ;;  %v8051_v0 = vld [vmem:[#allocation11 + $0x190] sm:$0xff]  ;;  %v8060_v4 = vld [vmem:[#allocation11 + $0x168] sm:$0xff] }
 0x528   :  { %v2531_v53 = vadd.f32 %v4085_v36, %v2530_v56  ;;  %4098 = vtanh.f32 %v2653_v32  ;;  %vm2686_vm5 = vweird.f32 %v7947_v29  ;;  %v2554_v1 = vor.u32 1.1754944e-38, %v2553_v26  ;;  %v8009_v32 = vld [vmem:[#allocation11 + $0x1f8] sm:$0xff] }
 0x529   :  { %v2520_v20 = vsel %vm2519_vm7, %v4083_v50, %v2516_v23  ;;  %vm2691_vm7 = vcmp.eq.f32.partialorder %v2690_v62, 8.507059e+37  ;;  %vm2552_vm8 = vcmp.eq.f32.partialorder %v2551_v35, 8.507059e+37  ;;  %v8073_v35 = vld [vmem:[#allocation11 + $0x140] sm:$0xff]  ;;  %v8082_v62 = vld [vmem:[#allocation11 + $0x158] sm:$0xff] }
 0x52a   :  { %v2525_v39 = vsel %vm2522_vm9, %v2524_v37, %v2520_v20  ;;  %v2535_v22 = vsel %vm2534_vm10, %v4085_v36, %v2531_v53  ;;  %v2692_v36 = vand.u32 2147483648, %v7947_v29  ;;  %vm2701_vm10 = vweird.f32 %v7941_v18 }
 0x52b   :  { %v4093_v27 = vpop.eup %4092  ;;  %v2559_v59 = vmul.f32 %v4091_v44, %v2525_v39  ;;  %v2540_v2 = vsel %vm2537_vm11, %v2539_v41, %v2535_v22  ;;  %v2707_v44 = vand.u32 2147483648, %v7941_v18  ;;  %v2705_v20 = vand.u32 2147483647, %v7941_v18  ;;  %v8006_v41 = vld [vmem:[#allocation11 + $0x1f0] sm:$0xff]  ;;  %v8016_v22 = vld [vmem:[#allocation11 + $0x1c0] sm:$0xff] }
 0x52c   :  { %v7954_v31 = vpop.eup %4094  ;;  %v2558_v14 = vmul.f32 %v2540_v2, %v7669_v43  ;;  %v2667_v63 = vmul.f32 %v4093_v27, %v7945_v28  ;;  %v2546_v43 = vadd.f32 %v7936_v11, %v2545_v45  ;;  %vm2672_vm15 = vweird.f32 %v4093_v27  ;;  %v8028_v45 = vld [vmem:[#allocation11 + $0x1d8] sm:$0xff]  ;;  %v8031_v2 = vld [vmem:[#allocation11 + $0x1a0] sm:$0xff]  ;;  %v8155_v39 = vld [vmem:[#allocation11 + $0x70] sm:$0xff] }
 0x52d   :  { %v4097_v5 = vpop.eup %4096  ;;  %v2697_v49 = vmul.f32 %v7954_v31, %v7941_v18  ;;  %vm2673_vm3 = vmor %vm2671_vm0, %vm2672_vm15  ;;  %v2693_v12 = vor.u32 1.1754944e-38, %v2692_v36  ;;  %vm2702_vm9 = vweird.f32 %v7954_v31  ;;  %vm2706_vm12 = vcmp.eq.f32.partialorder %v2705_v20, 8.507059e+37  ;;  %v8070_v36 = vld [vmem:[#allocation11 + $0x178] sm:$0xff]  ;;  %10588 = vst [vmem:[#allocation43_spill] sm:$0xff] %v8155_v39 }
 0x52e   :  { %v2668_v13 = vsub.f32 1.0, %v2667_v63  ;;  %v2682_v47 = vmul.f32 %v4097_v5, %v7947_v29  ;;  %v7966_v57 = vadd.f32 %v2559_v59, %v2558_v14  ;;  %vm2687_vm1 = vweird.f32 %v4097_v5  ;;  %v4099_v21 = vpop.eup %4098  ;;  %vm8012_vm11 = vmor %vm2701_vm10, %vm2702_vm9  ;;  %v8034_v14 = vld [vmem:[#allocation11 + $0x1a8] sm:$0xff]  ;;  %v8037_v63 = vld [vmem:[#allocation11 + $0x1b0] sm:$0xff] }
 0x52f   :  { %v2698_v25 = vsub.f32 1.0, %v2697_v49  ;;  %v2550_v28 = vsel %vm7978_vm2, %v7936_v11, %v2546_v43  ;;  %vm2688_vm6 = vmor %vm2686_vm5, %vm2687_vm1  ;;  %v2708_v59 = vor.u32 1.1754944e-38, %v2707_v44  ;;  %v8054_v43 = vld [vmem:[#allocation11 + $0x198] sm:$0xff]  ;;  %v8145_v44 = vld [vmem:[#allocation11 + $0x90] sm:$0xff] }
 0x530   :  { %v2669_v9 = vmul.f32 %v4093_v27, %v2668_v13  ;;  %v2683_v50 = vsub.f32 1.0, %v2682_v47  ;;  %4100 = vtanh.f32 %v7966_v57  ;;  %v2555_v23 = vsel %vm2552_vm8, %v2554_v1, %v2550_v28  ;;  %v8043_v13 = vld [vmem:[#allocation11 + $0x180] sm:$0xff]  ;;  %v8046_v47 = vld [vmem:[#allocation11 + $0x188] sm:$0xff]  ;;  %10585 = vst [vmem:[#allocation40_spill] sm:$0xff] %v8145_v44  ;;  %v8148_v20 = vld [vmem:[#allocation11 + $0x98] sm:$0xff] }
 0x531   :  { %v2699_v42 = vmul.f32 %v7954_v31, %v2698_v25  ;;  %v8091_v25 = vld [vmem:[#allocation11 + $0x130] sm:$0xff]  ;;  %v8097_v28 = vld [vmem:[#allocation11 + $0x100] sm:$0xff]  ;;  %v8112_v1 = vld [vmem:[#allocation11 + $0xe8] sm:$0xff]  ;;  %10586 = vst [vmem:[#allocation41_spill] sm:$0xff] %v8148_v20 }
 0x532   :  { %v2670_v8 = vadd.f32 %v4093_v27, %v2669_v9  ;;  %v2684_v48 = vmul.f32 %v4097_v5, %v2683_v50  ;;  %v8057_v9 = vld [vmem:[#allocation11 + $0x160] sm:$0xff]  ;;  %v8067_v50 = vld [vmem:[#allocation11 + $0x170] sm:$0xff] }
 0x533   :  { %v2700_v29 = vadd.f32 %v7954_v31, %v2699_v42  ;;  %v8125_v42 = vld [vmem:[#allocation11 + $0xd0] sm:$0xff] }
 0x534   :  { %v2674_v10 = vsel %vm2673_vm3, %v4093_v27, %v2670_v8  ;;  %v2685_v38 = vadd.f32 %v4097_v5, %v2684_v48  ;;  %v8025_v27 = vld [vmem:[#allocation11 + $0x1d0] sm:$0xff]  ;;  %v8076_v8 = vld [vmem:[#allocation11 + $0x148] sm:$0xff]  ;;  %10579 = vst [vmem:[#allocation21_spill] sm:$0xff] %v8125_v42 }
 0x535   :  { %v2679_v7 = vsel %vm2676_vm4, %v2678_v61, %v2674_v10  ;;  %v2704_v18 = vsel %vm8012_vm11, %v7954_v31, %v2700_v29  ;;  %v8040_v31 = vld [vmem:[#allocation11 + $0x1b8] sm:$0xff]  ;;  %v8079_v48 = vld [vmem:[#allocation11 + $0x150] sm:$0xff]  ;;  %v8100_v10 = vld [vmem:[#allocation11 + $0x108] sm:$0xff] }
 0x536   :  { %v2713_v60 = vmul.f32 %v4099_v21, %v2679_v7  ;;  %v2689_v56 = vsel %vm2688_vm6, %v4097_v5, %v2685_v38  ;;  %v4101_v19 = vpop.eup %4100  ;;  %v2709_v26 = vsel %vm2706_vm12, %v2708_v59, %v2704_v18  ;;  %v8088_v21 = vld [vmem:[#allocation11 + $0x128] sm:$0xff]  ;;  %v8094_v61 = vld [vmem:[#allocation11 + $0x138] sm:$0xff]  ;;  %v8103_v38 = vld [vmem:[#allocation11 + $0x110] sm:$0xff] }
 0x537   :  { %v2694_v24 = vsel %vm2691_vm7, %v2693_v12, %v2689_v56  ;;  %v7988_v37 = vmul.f32 %v4101_v19, %v2555_v23  ;;  %v8106_v7 = vld [vmem:[#allocation11 + $0x118] sm:$0xff]  ;;  %v8109_v12 = vld [vmem:[#allocation11 + $0xe0] sm:$0xff]  ;;  %v8165_v59 = vld [vmem:[#allocation11 + $0x50] sm:$0xff] }
 0x538   :  { %v2712_v11 = vmul.f32 %v2694_v24, %v7729_v34  ;;  %v8000_v34 = vld [vmem:[#allocation11 + $0x1e0] sm:$0xff]  ;;  %v8118_v56 = vld [vmem:[#allocation11 + $0xf8] sm:$0xff]  ;;  %10591 = vst [vmem:[#allocation46_spill] sm:$0xff] %v8165_v59 }
 0x539   :  { %10573 = vst [vmem:[#allocation37_spill] sm:$0xff] %v7988_v37  ;;  %2733 = vmatmul.f32.vlgmr.msrb.gmra.mxu2 %v7988_v37  ;;  %2753 = vmatmul.f32.vlgmr.msra.gmra.mxu3 %v7988_v37  ;;  %v8121_v19 = vld [vmem:[#allocation11 + $0xc0] sm:$0xff]  ;;  %v8128_v24 = vld [vmem:[#allocation11 + $0xd8] sm:$0xff] }
 0x53a   :  { %v7990_v53 = vadd.f32 %v2713_v60, %v2712_v11  ;;  %2773 = vmatmul.f32.vlgmr.msrb.gmra.mxu0 %v7988_v37  ;;  %2793 = vmatmul.f32.vlgmr.msra.gmra.mxu1 %v7988_v37  ;;  %v8115_v60 = vld [vmem:[#allocation11 + $0xf0] sm:$0xff]  ;;  %10577 = vst [vmem:[#allocation34_spill] sm:$0xff] %v8118_v56  ;;  %v8131_v23 = vld [vmem:[#allocation11 + $0xa0] sm:$0xff]  ;;  %v8138_v29 = vld [vmem:[#allocation11 + $0xb8] sm:$0xff] }
 0x53b   :  { %2951 = vmatpush.msrb.mxu2 %v8000_v34  ;;  %2971 = vmatpush.msra.mxu3 %v7701_v46  ;;  %v8019_v46 = vld [vmem:[#allocation11 + $0x1c8] sm:$0xff]  ;;  %10576 = vst [vmem:[#allocation140_spill] sm:$0xff] %v8115_v60  ;;  %v8135_v11 = vld [vmem:[#allocation11 + $0xb0] sm:$0xff]  ;;  %v8158_v18 = vld [vmem:[#allocation11 + $0x78] sm:$0xff] }
 0x53c   :  { %4102 = vtanh.f32 %v7990_v53  ;;  %2991 = vmatpush.msrb.mxu0 %v8006_v41  ;;  %3011 = vmatpush.msra.mxu1 %v8009_v32  ;;  %10578 = vst [vmem:[#allocation69_spill] sm:$0xff] %v8121_v19  ;;  %v8178_v37 = vld [vmem:[#allocation11 + $0x38] sm:$0xff] }
 0x53d   :  { %2952 = vmatpush.msrb.mxu2 %v8016_v22  ;;  %2972 = vmatpush.msra.mxu3 %v8019_v46  ;;  %10580 = vst [vmem:[#allocation151_spill] sm:$0xff] %v8128_v24 }
 0x53e   :  { %2992 = vmatpush.msrb.mxu0 %v8025_v27  ;;  %3012 = vmatpush.msra.mxu1 %v8028_v45  ;;  %10581 = vst [vmem:[#allocation28_spill] sm:$0xff] %v8131_v23 }
 0x53f   :  { %2953 = vmatpush.msrb.mxu2 %v8031_v2  ;;  %2973 = vmatpush.msra.mxu3 %v8034_v14  ;;  %10582 = vst [vmem:[#allocation33_spill] sm:$0xff] %v8135_v11 }
 0x540   :  { %2993 = vmatpush.msrb.mxu0 %v8037_v63  ;;  %3013 = vmatpush.msra.mxu1 %v8040_v31  ;;  %10583 = vst [vmem:[#allocation38_spill] sm:$0xff] %v8138_v29 }
 0x541   :  { %2954 = vmatpush.msrb.mxu2 %v8043_v13  ;;  %2974 = vmatpush.msra.mxu3 %v8046_v47  ;;  %10589 = vst [vmem:[#allocation44_spill] sm:$0xff] %v8158_v18 }
 0x542   :  { %v4103_v5 = vpop.eup %4102  ;;  %2994 = vmatpush.msrb.mxu0 %v8051_v0  ;;  %3014 = vmatpush.msra.mxu1 %v8054_v43  ;;  %10595 = vst [vmem:[#allocation52_spill] sm:$0xff] %v8178_v37 }
 0x543   :  { %v8049_v49 = vmul.f32 %v4103_v5, %v2709_v26  ;;  %2955 = vmatpush.msrb.mxu2 %v8057_v9  ;;  %2975 = vmatpush.msra.mxu3 %v8060_v4  ;;  %v8168_v5 = vld [vmem:[#allocation11 + $0x58] sm:$0xff]  ;;  %v8175_v26 = vld [vmem:[#allocation11 + $0x30] sm:$0xff] }
 0x544   :  { %2995 = vmatpush.msrb.mxu0 %v8067_v50  ;;  %3015 = vmatpush.msra.mxu1 %v8070_v36  ;;  %10592 = vst [vmem:[#allocation47_spill] sm:$0xff] %v8168_v5 }
 0x545   :  { %2813 = vmatmul.f32.vlgmr.msra.gmra.mxu2 %v8049_v49  ;;  %2833 = vmatmul.f32.vlgmr.msrb.gmra.mxu3 %v8049_v49  ;;  %10594 = vst [vmem:[#allocation50_spill] sm:$0xff] %v8175_v26 }
 0x546   :  { %2853 = vmatmul.f32.vlgmr.msra.gmra.mxu0 %v8049_v49  ;;  %2873 = vmatmul.f32.vlgmr.msrb.gmra.mxu1 %v8049_v49 }
 0x547   :  { %2956 = vmatpush.msrb.mxu2 %v8073_v35  ;;  %2976 = vmatpush.msra.mxu3 %v8076_v8 }
 0x548   :  { %2996 = vmatpush.msrb.mxu0 %v8079_v48  ;;  %3016 = vmatpush.msra.mxu1 %v8082_v62 }
 0x549   :  { %2957 = vmatpush.msrb.mxu2 %v8085_v17  ;;  %2977 = vmatpush.msra.mxu3 %v8088_v21 }
 0x54a   :  { %2997 = vmatpush.msrb.mxu0 %v8091_v25  ;;  %3017 = vmatpush.msra.mxu1 %v8094_v61 }
 0x54b   :  { %2958 = vmatpush.msrb.mxu2 %v8097_v28  ;;  %2978 = vmatpush.msra.mxu3 %v8100_v10 }
 0x54c   :  { %2998 = vmatpush.msrb.mxu0 %v8103_v38  ;;  %3018 = vmatpush.msra.mxu1 %v8106_v7 }
 0x54d   :  { %2959 = vmatpush.msrb.mxu2 %v8109_v12  ;;  %2979 = vmatpush.msra.mxu3 %v8112_v1 }
 0x54e   :  { %2999 = vmatpush.msrb.mxu0 %v8115_v60  ;;  %3019 = vmatpush.msra.mxu1 %v8118_v56 }
 0x54f   :  { %2960 = vmatpush.msrb.mxu2 %v8121_v19  ;;  %2980 = vmatpush.msra.mxu3 %v7755_v58  ;;  %v8141_v58 = vld [vmem:[#allocation11 + $0x80] sm:$0xff] }
 0x550   :  { %3000 = vmatpush.msrb.mxu0 %v8125_v42  ;;  %3020 = vmatpush.msra.mxu1 %v8128_v24  ;;  %10584 = vst [vmem:[#allocation39_spill] sm:$0xff] %v8141_v58 }
 0x551   :  { %2961 = vmatpush.msrb.mxu2 %v8131_v23  ;;  %2981 = vmatpush.msra.mxu3 %v7761_v30  ;;  %v8151_v30 = vld [vmem:[#allocation11 + $0x60] sm:$0xff] }
 0x552   :  { %3001 = vmatpush.msrb.mxu0 %v8135_v11  ;;  %3021 = vmatpush.msra.mxu1 %v8138_v29  ;;  %10587 = vst [vmem:[#allocation42_spill] sm:$0xff] %v8151_v30 }
 0x553   :  { %2962 = vmatpush.msrb.mxu2 %v8141_v58  ;;  %2982 = vmatpush.msra.mxu3 %v7767_v40  ;;  %v8161_v40 = vld [vmem:[#allocation11 + $0x40] sm:$0xff] }
 0x554   :  { %3002 = vmatpush.msrb.mxu0 %v8145_v44  ;;  %3022 = vmatpush.msra.mxu1 %v8148_v20  ;;  %10590 = vst [vmem:[#allocation45_spill] sm:$0xff] %v8161_v40 }
 0x555   :  { %2963 = vmatpush.msrb.mxu2 %v8151_v30  ;;  %2983 = vmatpush.msra.mxu3 %v7773_v6  ;;  %v8171_v6 = vld [vmem:[#allocation11 + $0x20] sm:$0xff] }
 0x556   :  { %3003 = vmatpush.msrb.mxu0 %v8155_v39  ;;  %3023 = vmatpush.msra.mxu1 %v8158_v18  ;;  %10593 = vst [vmem:[#allocation48_spill] sm:$0xff] %v8171_v6 }
 0x557   :  { %2964 = vmatpush.msrb.mxu2 %v8161_v40  ;;  %2984 = vmatpush.msra.mxu3 %v7779_v15  ;;  %v8181_v15 = vld [vmem:[#allocation11] sm:$0xff] }
 0x558   :  { %3004 = vmatpush.msrb.mxu0 %v8165_v59  ;;  %3024 = vmatpush.msra.mxu1 %v8168_v5  ;;  %10596 = vst [vmem:[#allocation53_spill] sm:$0xff] %v8181_v15 }
 0x559   :  { %2965 = vmatpush.msrb.mxu2 %v8171_v6  ;;  %2985 = vmatpush.msra.mxu3 %v7785_v55  ;;  %v8188_v6 = vld [vmem:[#allocation11 + $0x18] sm:$0xff]  ;;  %v8195_v55 = vld [vmem:[#allocation13 + $0x1e0] sm:$0xff] }
 0x55a   :  { %3005 = vmatpush.msrb.mxu0 %v8175_v26  ;;  %3025 = vmatpush.msra.mxu1 %v8178_v37  ;;  %10598 = vst [vmem:[#allocation55_spill] sm:$0xff] %v8188_v6 }
 0x55b   :  { %2966 = vmatpush.msrb.mxu2 %v8181_v15  ;;  %2986 = vmatpush.msra.mxu3 %v7791_v3  ;;  %10599 = vst [vmem:[#allocation56_spill] sm:$0xff] %v8195_v55  ;;  %v8198_v3 = vld [vmem:[#allocation13 + $0x1e8] sm:$0xff]  ;;  %v8207_v15 = vld [vmem:[#allocation13 + $0x1c0] sm:$0xff] }
 0x55c   :  { %3006 = vmatpush.msrb.mxu0 %v8185_v52  ;;  %3026 = vmatpush.msra.mxu1 %v8188_v6  ;;  %10600 = vst [vmem:[#allocation57_spill] sm:$0xff] %v8198_v3  ;;  %v8201_v52 = vld [vmem:[#allocation13 + $0x1f0] sm:$0xff]  ;;  %v8204_v6 = vld [vmem:[#allocation13 + $0x1f8] sm:$0xff] }
 0x55d   :  { %2967 = vmatmul.f32.vlgmr.msrb.gmra.mxu2 %v8049_v49  ;;  %2987 = vmatmul.f32.vlgmr.msra.gmra.mxu3 %v8049_v49  ;;  %10601 = vst [vmem:[#allocation58_spill] sm:$0xff] %v8201_v52 }
 0x55e   :  { %3007 = vmatmul.f32.vlgmr.msrb.gmra.mxu0 %v8049_v49  ;;  %3027 = vmatmul.f32.vlgmr.msra.gmra.mxu1 %v8049_v49  ;;  %10602 = vst [vmem:[#allocation59_spill] sm:$0xff] %v8204_v6  ;;  %v8210_v49 = vld [vmem:[#allocation13 + $0x1c8] sm:$0xff] }
 0x55f   :  { %3098 = vmatpush.msra.mxu2 %v8195_v55  ;;  %3118 = vmatpush.msrb.mxu3 %v8198_v3  ;;  %10603 = vst [vmem:[#allocation60_spill] sm:$0xff] %v8207_v15  ;;  %v8213_v55 = vld [vmem:[#allocation13 + $0x1d0] sm:$0xff]  ;;  %v8216_v3 = vld [vmem:[#allocation13 + $0x1d8] sm:$0xff] }
 0x560   :  { %3138 = vmatpush.msra.mxu0 %v8201_v52  ;;  %3158 = vmatpush.msrb.mxu1 %v8204_v6  ;;  %10604 = vst [vmem:[#allocation61_spill] sm:$0xff] %v8210_v49  ;;  %v8219_v52 = vld [vmem:[#allocation13 + $0x1a0] sm:$0xff]  ;;  %v8222_v6 = vld [vmem:[#allocation13 + $0x1a8] sm:$0xff] }
 0x561   :  { %3099 = vmatpush.msra.mxu2 %v8207_v15  ;;  %3119 = vmatpush.msrb.mxu3 %v8210_v49  ;;  %10605 = vst [vmem:[#allocation62_spill] sm:$0xff] %v8213_v55  ;;  %v8225_v15 = vld [vmem:[#allocation13 + $0x1b0] sm:$0xff]  ;;  %v8228_v49 = vld [vmem:[#allocation13 + $0x1b8] sm:$0xff] }
 0x562   :  { %3139 = vmatpush.msra.mxu0 %v8213_v55  ;;  %10606 = vst [vmem:[#allocation63_spill] sm:$0xff] %v8216_v3  ;;  %3159 = vmatpush.msrb.mxu1 %v8216_v3  ;;  %v8231_v55 = vld [vmem:[#allocation13 + $0x180] sm:$0xff]  ;;  %v8234_v3 = vld [vmem:[#allocation13 + $0x188] sm:$0xff] }
 0x563   :  { %10607 = vst [vmem:[#allocation64_spill] sm:$0xff] %v8219_v52  ;;  %3100 = vmatpush.msra.mxu2 %v8219_v52  ;;  %3120 = vmatpush.msrb.mxu3 %v8222_v6  ;;  %v8237_v52 = vld [vmem:[#allocation13 + $0x190] sm:$0xff] }
 0x564   :  { %10608 = vst [vmem:[#allocation65_spill] sm:$0xff] %v8222_v6  ;;  %3140 = vmatpush.msra.mxu0 %v8225_v15  ;;  %3160 = vmatpush.msrb.mxu1 %v8228_v49  ;;  %v8240_v6 = vld [vmem:[#allocation13 + $0x198] sm:$0xff] }
 0x565   :  { %10609 = vst [vmem:[#allocation66_spill] sm:$0xff] %v8225_v15  ;;  %3101 = vmatpush.msra.mxu2 %v8231_v55  ;;  %3121 = vmatpush.msrb.mxu3 %v8234_v3  ;;  %v8243_v15 = vld [vmem:[#allocation13 + $0x160] sm:$0xff] }
 0x566   :  { %10610 = vst [vmem:[#allocation68_spill] sm:$0xff] %v8228_v49  ;;  %3141 = vmatpush.msra.mxu0 %v8237_v52  ;;  %3161 = vmatpush.msrb.mxu1 %v8240_v6  ;;  %v8246_v49 = vld [vmem:[#allocation13 + $0x168] sm:$0xff] }
 0x567   :  { %10611 = vst [vmem:[#allocation70_spill] sm:$0xff] %v8231_v55  ;;  %3102 = vmatpush.msra.mxu2 %v8243_v15  ;;  %3122 = vmatpush.msrb.mxu3 %v8246_v49  ;;  %v8249_v55 = vld [vmem:[#allocation13 + $0x170] sm:$0xff] }
 0x568   :  { %10612 = vst [vmem:[#allocation71_spill] sm:$0xff] %v8234_v3  ;;  %3142 = vmatpush.msra.mxu0 %v8249_v55  ;;  %v8252_v3 = vld [vmem:[#allocation13 + $0x178] sm:$0xff] }
 0x569   :  { %10613 = vst [vmem:[#allocation72_spill] sm:$0xff] %v8237_v52  ;;  %3162 = vmatpush.msrb.mxu1 %v8252_v3  ;;  %v8255_v52 = vld [vmem:[#allocation13 + $0x140] sm:$0xff] }
 0x56a   :  { %10614 = vst [vmem:[#allocation73_spill] sm:$0xff] %v8240_v6  ;;  %3103 = vmatpush.msra.mxu2 %v8255_v52  ;;  %v8258_v6 = vld [vmem:[#allocation13 + $0x148] sm:$0xff] }
 0x56b   :  { %10615 = vst [vmem:[#allocation74_spill] sm:$0xff] %v8243_v15  ;;  %3123 = vmatpush.msrb.mxu3 %v8258_v6  ;;  %v8261_v15 = vld [vmem:[#allocation13 + $0x150] sm:$0xff] }
 0x56c   :  { %10616 = vst [vmem:[#allocation75_spill] sm:$0xff] %v8246_v49  ;;  %3143 = vmatpush.msra.mxu0 %v8261_v15  ;;  %v8264_v49 = vld [vmem:[#allocation13 + $0x158] sm:$0xff] }
 0x56d   :  { %10617 = vst [vmem:[#allocation76_spill] sm:$0xff] %v8249_v55  ;;  %3163 = vmatpush.msrb.mxu1 %v8264_v49  ;;  %v8267_v55 = vld [vmem:[#allocation13 + $0x120] sm:$0xff] }
 0x56e   :  { %10618 = vst [vmem:[#allocation77_spill] sm:$0xff] %v8252_v3  ;;  %3104 = vmatpush.msra.mxu2 %v8267_v55  ;;  %v8270_v3 = vld [vmem:[#allocation13 + $0x128] sm:$0xff] }
 0x56f   :  { %10619 = vst [vmem:[#allocation79_spill] sm:$0xff] %v8255_v52  ;;  %3124 = vmatpush.msrb.mxu3 %v8270_v3  ;;  %v8273_v52 = vld [vmem:[#allocation13 + $0x130] sm:$0xff] }
 0x570   :  { %10620 = vst [vmem:[#allocation80_spill] sm:$0xff] %v8258_v6  ;;  %3144 = vmatpush.msra.mxu0 %v8273_v52  ;;  %v8276_v6 = vld [vmem:[#allocation13 + $0x138] sm:$0xff] }
 0x571   :  { %10621 = vst [vmem:[#allocation81_spill] sm:$0xff] %v8261_v15  ;;  %3164 = vmatpush.msrb.mxu1 %v8276_v6  ;;  %v8279_v15 = vld [vmem:[#allocation13 + $0x100] sm:$0xff] }
 0x572   :  { %10622 = vst [vmem:[#allocation82_spill] sm:$0xff] %v8264_v49  ;;  %3105 = vmatpush.msra.mxu2 %v8279_v15  ;;  %v8282_v49 = vld [vmem:[#allocation13 + $0x108] sm:$0xff] }
 0x573   :  { %10623 = vst [vmem:[#allocation83_spill] sm:$0xff] %v8267_v55  ;;  %3125 = vmatpush.msrb.mxu3 %v8282_v49  ;;  %v8285_v55 = vld [vmem:[#allocation13 + $0x110] sm:$0xff] }
 0x574   :  { %10624 = vst [vmem:[#allocation84_spill] sm:$0xff] %v8270_v3  ;;  %3145 = vmatpush.msra.mxu0 %v8285_v55  ;;  %v8288_v3 = vld [vmem:[#allocation13 + $0x118] sm:$0xff] }
 0x575   :  { %10625 = vst [vmem:[#allocation85_spill] sm:$0xff] %v8273_v52  ;;  %3165 = vmatpush.msrb.mxu1 %v8288_v3  ;;  %v8291_v52 = vld [vmem:[#allocation13 + $0xe0] sm:$0xff] }
 0x576   :  { %10626 = vst [vmem:[#allocation86_spill] sm:$0xff] %v8276_v6  ;;  %3106 = vmatpush.msra.mxu2 %v8291_v52  ;;  %v8294_v6 = vld [vmem:[#allocation13 + $0xe8] sm:$0xff] }
 0x577   :  { %10627 = vst [vmem:[#allocation88_spill] sm:$0xff] %v8279_v15  ;;  %3126 = vmatpush.msrb.mxu3 %v8294_v6  ;;  %v8297_v15 = vld [vmem:[#allocation13 + $0xf0] sm:$0xff] }
 0x578   :  { %10628 = vst [vmem:[#allocation89_spill] sm:$0xff] %v8282_v49  ;;  %3146 = vmatpush.msra.mxu0 %v8297_v15  ;;  %v8300_v49 = vld [vmem:[#allocation13 + $0xf8] sm:$0xff] }
 0x579   :  { %10629 = vst [vmem:[#allocation90_spill] sm:$0xff] %v8285_v55  ;;  %3166 = vmatpush.msrb.mxu1 %v8300_v49  ;;  %v8303_v55 = vld [vmem:[#allocation13 + $0xc0] sm:$0xff] }
 0x57a   :  { %10630 = vst [vmem:[#allocation91_spill] sm:$0xff] %v8288_v3  ;;  %3107 = vmatpush.msra.mxu2 %v8303_v55  ;;  %v8306_v3 = vld [vmem:[#allocation13 + $0xc8] sm:$0xff] }
 0x57b   :  { %10631 = vst [vmem:[#allocation92_spill] sm:$0xff] %v8291_v52  ;;  %3127 = vmatpush.msrb.mxu3 %v8306_v3  ;;  %v8309_v52 = vld [vmem:[#allocation13 + $0xd0] sm:$0xff] }
 0x57c   :  { %10632 = vst [vmem:[#allocation93_spill] sm:$0xff] %v8294_v6  ;;  %3147 = vmatpush.msra.mxu0 %v8309_v52  ;;  %v8312_v6 = vld [vmem:[#allocation13 + $0xd8] sm:$0xff] }
 0x57d   :  { %10633 = vst [vmem:[#allocation94_spill] sm:$0xff] %v8297_v15  ;;  %3167 = vmatpush.msrb.mxu1 %v8312_v6  ;;  %v8315_v15 = vld [vmem:[#allocation13 + $0xa0] sm:$0xff] }
 0x57e   :  { %10634 = vst [vmem:[#allocation95_spill] sm:$0xff] %v8300_v49  ;;  %3108 = vmatpush.msra.mxu2 %v8315_v15  ;;  %v8318_v49 = vld [vmem:[#allocation13 + $0xa8] sm:$0xff] }
 0x57f   :  { %10635 = vst [vmem:[#allocation96_spill] sm:$0xff] %v8303_v55  ;;  %3128 = vmatpush.msrb.mxu3 %v8318_v49  ;;  %v8321_v55 = vld [vmem:[#allocation13 + $0xb0] sm:$0xff] }
 0x580   :  { %10636 = vst [vmem:[#allocation97_spill] sm:$0xff] %v8306_v3  ;;  %3148 = vmatpush.msra.mxu0 %v8321_v55  ;;  %v8324_v3 = vld [vmem:[#allocation13 + $0xb8] sm:$0xff] }
 0x581   :  { %10637 = vst [vmem:[#allocation98_spill] sm:$0xff] %v8309_v52  ;;  %3168 = vmatpush.msrb.mxu1 %v8324_v3  ;;  %v8327_v52 = vld [vmem:[#allocation13 + $0x80] sm:$0xff] }
 0x582   :  { %10638 = vst [vmem:[#allocation99_spill] sm:$0xff] %v8312_v6  ;;  %3109 = vmatpush.msra.mxu2 %v8327_v52  ;;  %v8330_v6 = vld [vmem:[#allocation13 + $0x88] sm:$0xff] }
 0x583   :  { %10639 = vst [vmem:[#allocation101_spill] sm:$0xff] %v8315_v15  ;;  %3129 = vmatpush.msrb.mxu3 %v8330_v6  ;;  %v8333_v15 = vld [vmem:[#allocation13 + $0x90] sm:$0xff] }
 0x584   :  { %10640 = vst [vmem:[#allocation102_spill] sm:$0xff] %v8318_v49  ;;  %3149 = vmatpush.msra.mxu0 %v8333_v15  ;;  %v8336_v49 = vld [vmem:[#allocation13 + $0x98] sm:$0xff] }
 0x585   :  { %10641 = vst [vmem:[#allocation103_spill] sm:$0xff] %v8321_v55  ;;  %3169 = vmatpush.msrb.mxu1 %v8336_v49  ;;  %v8339_v55 = vld [vmem:[#allocation13 + $0x60] sm:$0xff] }
 0x586   :  { %10642 = vst [vmem:[#allocation105_spill] sm:$0xff] %v8324_v3  ;;  %3110 = vmatpush.msra.mxu2 %v8339_v55  ;;  %v8342_v3 = vld [vmem:[#allocation13 + $0x68] sm:$0xff] }
 0x587   :  { %10643 = vst [vmem:[#allocation106_spill] sm:$0xff] %v8327_v52  ;;  %3130 = vmatpush.msrb.mxu3 %v8342_v3  ;;  %v8345_v52 = vld [vmem:[#allocation13 + $0x70] sm:$0xff] }
 0x588   :  { %10644 = vst [vmem:[#allocation107_spill] sm:$0xff] %v8330_v6  ;;  %3150 = vmatpush.msra.mxu0 %v8345_v52  ;;  %v8348_v6 = vld [vmem:[#allocation13 + $0x78] sm:$0xff] }
 0x589   :  { %10645 = vst [vmem:[#allocation109_spill] sm:$0xff] %v8333_v15  ;;  %3170 = vmatpush.msrb.mxu1 %v8348_v6  ;;  %v8351_v15 = vld [vmem:[#allocation13 + $0x40] sm:$0xff] }
 0x58a   :  { %10646 = vst [vmem:[#allocation110_spill] sm:$0xff] %v8336_v49  ;;  %3111 = vmatpush.msra.mxu2 %v8351_v15  ;;  %v8354_v49 = vld [vmem:[#allocation13 + $0x48] sm:$0xff] }
 0x58b   :  { %10647 = vst [vmem:[#allocation111_spill] sm:$0xff] %v8339_v55  ;;  %3131 = vmatpush.msrb.mxu3 %v8354_v49  ;;  %v8357_v55 = vld [vmem:[#allocation13 + $0x50] sm:$0xff] }
 0x58c   :  { %10648 = vst [vmem:[#allocation112_spill] sm:$0xff] %v8342_v3  ;;  %3151 = vmatpush.msra.mxu0 %v8357_v55  ;;  %v8360_v3 = vld [vmem:[#allocation13 + $0x58] sm:$0xff] }
 0x58d   :  { %10649 = vst [vmem:[#allocation113_spill] sm:$0xff] %v8345_v52  ;;  %3171 = vmatpush.msrb.mxu1 %v8360_v3  ;;  %v8363_v52 = vld [vmem:[#allocation13 + $0x20] sm:$0xff] }
 0x58e   :  { %10650 = vst [vmem:[#allocation114_spill] sm:$0xff] %v8348_v6  ;;  %3112 = vmatpush.msra.mxu2 %v8363_v52  ;;  %v8366_v6 = vld [vmem:[#allocation13 + $0x28] sm:$0xff] }
 0x58f   :  { %10651 = vst [vmem:[#allocation115_spill] sm:$0xff] %v8351_v15  ;;  %3132 = vmatpush.msrb.mxu3 %v8366_v6  ;;  %v8369_v15 = vld [vmem:[#allocation13 + $0x30] sm:$0xff] }
 0x590   :  { %10652 = vst [vmem:[#allocation116_spill] sm:$0xff] %v8354_v49  ;;  %3152 = vmatpush.msra.mxu0 %v8369_v15  ;;  %v8372_v49 = vld [vmem:[#allocation13 + $0x38] sm:$0xff] }
 0x591   :  { %10653 = vst [vmem:[#allocation117_spill] sm:$0xff] %v8357_v55  ;;  %3172 = vmatpush.msrb.mxu1 %v8372_v49  ;;  %v8375_v55 = vld [vmem:[#allocation13] sm:$0xff] }
 0x592   :  { %10654 = vst [vmem:[#allocation118_spill] sm:$0xff] %v8360_v3  ;;  %3113 = vmatpush.msra.mxu2 %v8375_v55  ;;  %v8378_v3 = vld [vmem:[#allocation13 + $0x8] sm:$0xff] }
 0x593   :  { %10655 = vst [vmem:[#allocation119_spill] sm:$0xff] %v8363_v52  ;;  %3133 = vmatpush.msrb.mxu3 %v8378_v3  ;;  %v8381_v52 = vld [vmem:[#allocation13 + $0x10] sm:$0xff] }
 0x594   :  { %10656 = vst [vmem:[#allocation120_spill] sm:$0xff] %v8366_v6  ;;  %3153 = vmatpush.msra.mxu0 %v8381_v52  ;;  %v8384_v6 = vld [vmem:[#allocation13 + $0x18] sm:$0xff] }
 0x595   :  { %10657 = vst [vmem:[#allocation122_spill] sm:$0xff] %v8369_v15  ;;  %3173 = vmatpush.msrb.mxu1 %v8384_v6  ;;  %v8387_v15 = vld [vmem:[#allocation14 + $0x1e0] sm:$0xff] }
 0x596   :  { %10658 = vst [vmem:[#allocation123_spill] sm:$0xff] %v8372_v49  ;;  %3178 = vmatpush.msrb.mxu2 %v8387_v15  ;;  %v8390_v49 = vld [vmem:[#allocation14 + $0x1e8] sm:$0xff] }
 0x597   :  { %10659 = vst [vmem:[#allocation125_spill] sm:$0xff] %v8375_v55  ;;  %3198 = vmatpush.msra.mxu3 %v8390_v49  ;;  %v8393_v55 = vld [vmem:[#allocation14 + $0x1f0] sm:$0xff] }
 0x598   :  { %10660 = vst [vmem:[#allocation126_spill] sm:$0xff] %v8378_v3  ;;  %3218 = vmatpush.msrb.mxu0 %v8393_v55  ;;  %v8396_v3 = vld [vmem:[#allocation14 + $0x1f8] sm:$0xff] }
 0x599   :  { %10661 = vst [vmem:[#allocation128_spill] sm:$0xff] %v8381_v52  ;;  %3238 = vmatpush.msra.mxu1 %v8396_v3  ;;  %v8399_v52 = vld [vmem:[#allocation14 + $0x1c0] sm:$0xff] }
 0x59a   :  { %10662 = vst [vmem:[#allocation129_spill] sm:$0xff] %v8384_v6  ;;  %3179 = vmatpush.msrb.mxu2 %v8399_v52  ;;  %v8402_v6 = vld [vmem:[#allocation14 + $0x1c8] sm:$0xff] }
 0x59b   :  { %10663 = vst [vmem:[#allocation130_spill] sm:$0xff] %v8387_v15  ;;  %3199 = vmatpush.msra.mxu3 %v8402_v6  ;;  %v8405_v15 = vld [vmem:[#allocation14 + $0x1d0] sm:$0xff] }
 0x59c   :  { %10664 = vst [vmem:[#allocation131_spill] sm:$0xff] %v8390_v49  ;;  %3219 = vmatpush.msrb.mxu0 %v8405_v15  ;;  %v8408_v49 = vld [vmem:[#allocation14 + $0x1d8] sm:$0xff] }
 0x59d   :  { %10665 = vst [vmem:[#allocation132_spill] sm:$0xff] %v8393_v55  ;;  %3239 = vmatpush.msra.mxu1 %v8408_v49  ;;  %v8411_v55 = vld [vmem:[#allocation14 + $0x1a0] sm:$0xff] }
 0x59e   :  { %10666 = vst [vmem:[#allocation134_spill] sm:$0xff] %v8396_v3  ;;  %3180 = vmatpush.msrb.mxu2 %v8411_v55  ;;  %v8414_v3 = vld [vmem:[#allocation14 + $0x1a8] sm:$0xff] }
 0x59f   :  { %10667 = vst [vmem:[#allocation135_spill] sm:$0xff] %v8399_v52  ;;  %3200 = vmatpush.msra.mxu3 %v8414_v3  ;;  %v8417_v52 = vld [vmem:[#allocation14 + $0x1b0] sm:$0xff] }
 0x5a0   :  { %10668 = vst [vmem:[#allocation136_spill] sm:$0xff] %v8402_v6  ;;  %3220 = vmatpush.msrb.mxu0 %v8417_v52  ;;  %v8420_v6 = vld [vmem:[#allocation14 + $0x1b8] sm:$0xff] }
 0x5a1   :  { %10669 = vst [vmem:[#allocation137_spill] sm:$0xff] %v8405_v15  ;;  %3240 = vmatpush.msra.mxu1 %v8420_v6  ;;  %v8423_v15 = vld [vmem:[#allocation14 + $0x180] sm:$0xff] }
 0x5a2   :  { %10670 = vst [vmem:[#allocation138_spill] sm:$0xff] %v8408_v49  ;;  %3181 = vmatpush.msrb.mxu2 %v8423_v15  ;;  %v8426_v49 = vld [vmem:[#allocation14 + $0x188] sm:$0xff] }
 0x5a3   :  { %10671 = vst [vmem:[#allocation139_spill] sm:$0xff] %v8411_v55  ;;  %3201 = vmatpush.msra.mxu3 %v8426_v49  ;;  %v8429_v55 = vld [vmem:[#allocation14 + $0x190] sm:$0xff] }
 0x5a4   :  { %10672 = vst [vmem:[#allocation141_spill] sm:$0xff] %v8414_v3  ;;  %3221 = vmatpush.msrb.mxu0 %v8429_v55  ;;  %v8432_v3 = vld [vmem:[#allocation14 + $0x198] sm:$0xff] }
 0x5a5   :  { %10673 = vst [vmem:[#allocation142_spill] sm:$0xff] %v8417_v52  ;;  %3241 = vmatpush.msra.mxu1 %v8432_v3  ;;  %v8435_v52 = vld [vmem:[#allocation14 + $0x160] sm:$0xff] }
 0x5a6   :  { %10674 = vst [vmem:[#allocation144_spill] sm:$0xff] %v8420_v6  ;;  %3182 = vmatpush.msrb.mxu2 %v8435_v52  ;;  %v8438_v6 = vld [vmem:[#allocation14 + $0x168] sm:$0xff] }
 0x5a7   :  { %10675 = vst [vmem:[#allocation145_spill] sm:$0xff] %v8423_v15  ;;  %3202 = vmatpush.msra.mxu3 %v8438_v6  ;;  %v8441_v15 = vld [vmem:[#allocation14 + $0x170] sm:$0xff] }
 0x5a8   :  { %10676 = vst [vmem:[#allocation146_spill] sm:$0xff] %v8426_v49  ;;  %3222 = vmatpush.msrb.mxu0 %v8441_v15  ;;  %v8444_v49 = vld [vmem:[#allocation14 + $0x178] sm:$0xff] }
 0x5a9   :  { %10677 = vst [vmem:[#allocation147_spill] sm:$0xff] %v8429_v55  ;;  %3242 = vmatpush.msra.mxu1 %v8444_v49  ;;  %v8447_v55 = vld [vmem:[#allocation14 + $0x140] sm:$0xff] }
 0x5aa   :  { %10678 = vst [vmem:[#allocation148_spill] sm:$0xff] %v8432_v3  ;;  %3183 = vmatpush.msrb.mxu2 %v8447_v55  ;;  %v8450_v3 = vld [vmem:[#allocation14 + $0x148] sm:$0xff] }
 0x5ab   :  { %10679 = vst [vmem:[#allocation149_spill] sm:$0xff] %v8435_v52  ;;  %3203 = vmatpush.msra.mxu3 %v8450_v3  ;;  %v8453_v52 = vld [vmem:[#allocation14 + $0x150] sm:$0xff] }
 0x5ac   :  { %10680 = vst [vmem:[#allocation150_spill] sm:$0xff] %v8438_v6  ;;  %3223 = vmatpush.msrb.mxu0 %v8453_v52  ;;  %v8456_v6 = vld [vmem:[#allocation14 + $0x158] sm:$0xff] }
 0x5ad   :  { %10681 = vst [vmem:[#allocation152_spill] sm:$0xff] %v8441_v15  ;;  %3243 = vmatpush.msra.mxu1 %v8456_v6  ;;  %v8459_v15 = vld [vmem:[#allocation14 + $0x120] sm:$0xff] }
 0x5ae   :  { %10682 = vst [vmem:[#allocation153_spill] sm:$0xff] %v8444_v49  ;;  %3184 = vmatpush.msrb.mxu2 %v8459_v15  ;;  %v8462_v49 = vld [vmem:[#allocation14 + $0x128] sm:$0xff] }
 0x5af   :  { %10683 = vst [vmem:[#allocation154_spill] sm:$0xff] %v8447_v55  ;;  %3204 = vmatpush.msra.mxu3 %v8462_v49  ;;  %v8465_v55 = vld [vmem:[#allocation14 + $0x130] sm:$0xff] }
 0x5b0   :  { %10684 = vst [vmem:[#allocation155_spill] sm:$0xff] %v8450_v3  ;;  %3224 = vmatpush.msrb.mxu0 %v8465_v55  ;;  %v8468_v3 = vld [vmem:[#allocation14 + $0x138] sm:$0xff] }
 0x5b1   :  { %10685 = vst [vmem:[#allocation156_spill] sm:$0xff] %v8453_v52  ;;  %3244 = vmatpush.msra.mxu1 %v8468_v3  ;;  %v8471_v52 = vld [vmem:[#allocation14 + $0x100] sm:$0xff] }
 0x5b2   :  { %10686 = vst [vmem:[#allocation157_spill] sm:$0xff] %v8456_v6  ;;  %3185 = vmatpush.msrb.mxu2 %v8471_v52  ;;  %v8474_v6 = vld [vmem:[#allocation14 + $0x108] sm:$0xff] }
 0x5b3   :  { %10687 = vst [vmem:[#allocation158_spill] sm:$0xff] %v8459_v15  ;;  %3205 = vmatpush.msra.mxu3 %v8474_v6  ;;  %v8477_v15 = vld [vmem:[#allocation14 + $0x110] sm:$0xff] }
 0x5b4   :  { %10688 = vst [vmem:[#allocation159_spill] sm:$0xff] %v8462_v49  ;;  %3225 = vmatpush.msrb.mxu0 %v8477_v15  ;;  %v8480_v49 = vld [vmem:[#allocation14 + $0x118] sm:$0xff] }
 0x5b5   :  { %10689 = vst [vmem:[#allocation160_spill] sm:$0xff] %v8465_v55  ;;  %3245 = vmatpush.msra.mxu1 %v8480_v49  ;;  %v8483_v55 = vld [vmem:[#allocation14 + $0xe0] sm:$0xff] }
 0x5b6   :  { %10690 = vst [vmem:[#allocation161_spill] sm:$0xff] %v8468_v3  ;;  %3186 = vmatpush.msrb.mxu2 %v8483_v55  ;;  %v8486_v3 = vld [vmem:[#allocation14 + $0xe8] sm:$0xff] }
 0x5b7   :  { %10691 = vst [vmem:[#allocation162_spill] sm:$0xff] %v8471_v52  ;;  %3206 = vmatpush.msra.mxu3 %v8486_v3  ;;  %v8489_v52 = vld [vmem:[#allocation14 + $0xf0] sm:$0xff]  ;;  %v2794_v30 = vpop.f32.mrf.mxu1 }
 0x5b8   :  { %10692 = vst [vmem:[#allocation163_spill] sm:$0xff] %v8474_v6  ;;  %3226 = vmatpush.msrb.mxu0 %v8489_v52  ;;  %v8492_v6 = vld [vmem:[#allocation14 + $0xf8] sm:$0xff] }
 0x5b9   :  { %10693 = vst [vmem:[#allocation164_spill] sm:$0xff] %v8477_v15  ;;  %3246 = vmatpush.msra.mxu1 %v8492_v6  ;;  %v8495_v15 = vld [vmem:[#allocation14 + $0xc0] sm:$0xff] }
 0x5ba   :  { %10694 = vst [vmem:[#allocation165_spill] sm:$0xff] %v8480_v49  ;;  %3187 = vmatpush.msrb.mxu2 %v8495_v15  ;;  %v8498_v49 = vld [vmem:[#allocation14 + $0xc8] sm:$0xff] }
 0x5bb   :  { %10695 = vst [vmem:[#allocation167_spill] sm:$0xff] %v8483_v55  ;;  %3207 = vmatpush.msra.mxu3 %v8498_v49  ;;  %v8501_v55 = vld [vmem:[#allocation14 + $0xd0] sm:$0xff] }
 0x5bc   :  { %10696 = vst [vmem:[#allocation168_spill] sm:$0xff] %v8486_v3  ;;  %3227 = vmatpush.msrb.mxu0 %v8501_v55  ;;  %v8504_v3 = vld [vmem:[#allocation14 + $0xd8] sm:$0xff]  ;;  %v2734_v37 = vpop.f32.mrf.mxu2  ;;  %v2754_v26 = vpop.f32.mrf.mxu3 }
 0x5bd   :  { %10697 = vst [vmem:[#allocation169_spill] sm:$0xff] %v8489_v52  ;;  %3247 = vmatpush.msra.mxu1 %v8504_v3  ;;  %v8507_v52 = vld [vmem:[#allocation14 + $0xa0] sm:$0xff] }
 0x5be   :  { %10698 = vst [vmem:[#allocation78_spill] sm:$0xff] %v8492_v6  ;;  %3188 = vmatpush.msrb.mxu2 %v8507_v52  ;;  %v8510_v6 = vld [vmem:[#allocation14 + $0xa8] sm:$0xff] }
 0x5bf   :  { %10699 = vst [vmem:[#allocation35_spill] sm:$0xff] %v8495_v15  ;;  %3208 = vmatpush.msra.mxu3 %v8510_v6  ;;  %v8513_v15 = vld [vmem:[#allocation14 + $0xb0] sm:$0xff] }
 0x5c0   :  { %10700 = vst [vmem:[#allocation143_spill] sm:$0xff] %v8498_v49  ;;  %3228 = vmatpush.msrb.mxu0 %v8513_v15  ;;  %v8516_v49 = vld [vmem:[#allocation14 + $0xb8] sm:$0xff] }
 0x5c1   :  { %10701 = vst [vmem:[#allocation133_spill] sm:$0xff] %v8501_v55  ;;  %3248 = vmatpush.msra.mxu1 %v8516_v49  ;;  %v8519_v55 = vld [vmem:[#allocation14 + $0x80] sm:$0xff] }
 0x5c2   :  { %10702 = vst [vmem:[#allocation104_spill] sm:$0xff] %v8504_v3  ;;  %3189 = vmatpush.msrb.mxu2 %v8519_v55  ;;  %v8522_v3 = vld [vmem:[#allocation14 + $0x88] sm:$0xff] }
 0x5c3   :  { %10703 = vst [vmem:[#allocation172_spill] sm:$0xff] %v8507_v52  ;;  %3209 = vmatpush.msra.mxu3 %v8522_v3  ;;  %v8525_v52 = vld [vmem:[#allocation14 + $0x90] sm:$0xff] }
 0x5c4   :  { %10704 = vst [vmem:[#allocation173_spill] sm:$0xff] %v8510_v6  ;;  %3229 = vmatpush.msrb.mxu0 %v8525_v52  ;;  %v8528_v6 = vld [vmem:[#allocation14 + $0x98] sm:$0xff] }
 0x5c5   :  { %10705 = vst [vmem:[#allocation174_spill] sm:$0xff] %v8513_v15  ;;  %3249 = vmatpush.msra.mxu1 %v8528_v6  ;;  %v8531_v15 = vld [vmem:[#allocation14 + $0x60] sm:$0xff] }
 0x5c6   :  { %10706 = vst [vmem:[#allocation175_spill] sm:$0xff] %v8516_v49  ;;  %3190 = vmatpush.msrb.mxu2 %v8531_v15  ;;  %v8534_v49 = vld [vmem:[#allocation14 + $0x68] sm:$0xff] }
 0x5c7   :  { %10707 = vst [vmem:[#allocation176_spill] sm:$0xff] %v8519_v55  ;;  %3210 = vmatpush.msra.mxu3 %v8534_v49  ;;  %v8537_v55 = vld [vmem:[#allocation14 + $0x70] sm:$0xff] }
 0x5c8   :  { %10708 = vst [vmem:[#allocation177_spill] sm:$0xff] %v8522_v3  ;;  %3230 = vmatpush.msrb.mxu0 %v8537_v55  ;;  %v8540_v3 = vld [vmem:[#allocation14 + $0x78] sm:$0xff]  ;;  %v2814_v40 = vpop.f32.mrf.mxu2  ;;  %v2834_v18 = vpop.f32.mrf.mxu3 }
 0x5c9   :  { %10709 = vst [vmem:[#allocation178_spill] sm:$0xff] %v8525_v52  ;;  %3250 = vmatpush.msra.mxu1 %v8540_v3  ;;  %v8543_v52 = vld [vmem:[#allocation14 + $0x40] sm:$0xff]  ;;  %v2815_v39 = vadd.f32 %v2814_v40, %v2734_v37 }
 0x5ca   :  { %10710 = vst [vmem:[#allocation179_spill] sm:$0xff] %v8528_v6  ;;  %3191 = vmatpush.msrb.mxu2 %v8543_v52  ;;  %v8546_v6 = vld [vmem:[#allocation14 + $0x48] sm:$0xff] }
 0x5cb   :  { %10711 = vst [vmem:[#allocation180_spill] sm:$0xff] %v8531_v15  ;;  %3211 = vmatpush.msra.mxu3 %v8546_v6  ;;  %v8549_v15 = vld [vmem:[#allocation14 + $0x50] sm:$0xff] }
 0x5cc   :  { %10712 = vst [vmem:[#allocation181_spill] sm:$0xff] %v8534_v49  ;;  %3231 = vmatpush.msrb.mxu0 %v8549_v15  ;;  %v8552_v49 = vld [vmem:[#allocation14 + $0x58] sm:$0xff] }
 0x5cd   :  { %10713 = vst [vmem:[#allocation182_spill] sm:$0xff] %v8537_v55  ;;  %3251 = vmatpush.msra.mxu1 %v8552_v49  ;;  %v8555_v55 = vld [vmem:[#allocation14 + $0x20] sm:$0xff] }
 0x5ce   :  { %10714 = vst [vmem:[#allocation183_spill] sm:$0xff] %v8540_v3  ;;  %3192 = vmatpush.msrb.mxu2 %v8555_v55  ;;  %v8558_v3 = vld [vmem:[#allocation14 + $0x28] sm:$0xff] }
 0x5cf   :  { %10715 = vst [vmem:[#allocation184_spill] sm:$0xff] %v8543_v52  ;;  %3212 = vmatpush.msra.mxu3 %v8558_v3  ;;  %v8561_v52 = vld [vmem:[#allocation14 + $0x30] sm:$0xff] }
 0x5d0   :  { %10716 = vst [vmem:[#allocation185_spill] sm:$0xff] %v8546_v6  ;;  %3232 = vmatpush.msrb.mxu0 %v8561_v52  ;;  %v8564_v6 = vld [vmem:[#allocation14 + $0x38] sm:$0xff] }
 0x5d1   :  { %10717 = vst [vmem:[#allocation186_spill] sm:$0xff] %v8549_v15  ;;  %3252 = vmatpush.msra.mxu1 %v8564_v6  ;;  %v8567_v15 = vld [vmem:[#allocation14] sm:$0xff] }
 0x5d2   :  { %10718 = vst [vmem:[#allocation187_spill] sm:$0xff] %v8552_v49  ;;  %3193 = vmatpush.msrb.mxu2 %v8567_v15  ;;  %v8570_v49 = vld [vmem:[#allocation14 + $0x8] sm:$0xff] }
 0x5d3   :  { %10719 = vst [vmem:[#allocation188_spill] sm:$0xff] %v8555_v55  ;;  %3213 = vmatpush.msra.mxu3 %v8570_v49  ;;  %v8573_v55 = vld [vmem:[#allocation14 + $0x10] sm:$0xff] }
 0x5d4   :  { %10720 = vst [vmem:[#allocation189_spill] sm:$0xff] %v8558_v3  ;;  %3233 = vmatpush.msrb.mxu0 %v8573_v55  ;;  %v8576_v3 = vld [vmem:[#allocation14 + $0x18] sm:$0xff] }
 0x5d5   :  { %10721 = vst [vmem:[#allocation190_spill] sm:$0xff] %v8561_v52  ;;  %3253 = vmatpush.msra.mxu1 %v8576_v3  ;;  %v2774_v52 = vpop.f32.mrf.mxu0 }
 0x5d6   :  { %10722 = vst [vmem:[#allocation191_spill] sm:$0xff] %v8564_v6 }
 0x5d7   :  { %10723 = vst [vmem:[#allocation192_spill] sm:$0xff] %v8567_v15 }
 0x5d8   :  { %10724 = vst [vmem:[#allocation193_spill] sm:$0xff] %v8570_v49  ;;  %v2835_v49 = vadd.f32 %v2834_v18, %v2754_v26 }
 0x5d9   :  { %10725 = vst [vmem:[#allocation194_spill] sm:$0xff] %v8573_v55  ;;  %v2877_v55 = vadd.f32 %v2815_v39, %v10561_v33  ;;  %v8588_v39 = vld [vmem:[%s9000_s1 + $0x10] sm:$0xff] }
 0x5da   :  { %10726 = vst [vmem:[#allocation195_spill] sm:$0xff] %v8576_v3  ;;  %v2878_v20 = vadd.f32 %v2835_v49, %v10562_v51 }
 0x5db   :  { %v3895_v44 = vmul.f32 -1.442695, %v2877_v55  ;;  %10727 = vst [vmem:[#allocation196_spill] sm:$0xff] %v8588_v39 }
 0x5dc   :  { %v3896_v3 = vmul.f32 -1.442695, %v2878_v20 }
 0x5dd   :  { %v2854_v6 = vpop.f32.mrf.mxu0 }
 0x5de   :  { %v2855_v5 = vadd.f32 %v2854_v6, %v2774_v52 }
 0x5e0   :  { %v2879_v59 = vadd.f32 %v2855_v5, %v10560_v54  ;;  %v2874_v5 = vpop.f32.mrf.mxu1  ;;  %v2968_v51 = vpop.f32.mrf.mxu2 }
 0x5e1   :  { %v2875_v18 = vadd.f32 %v2874_v5, %v2794_v30  ;;  %v10730_v5 = vld [vmem:[#allocation108_spill] sm:$0xff]  ;;  %v2988_v33 = vpop.f32.mrf.mxu3 }
 0x5e2   :  { %v3897_v15 = vmul.f32 -1.442695, %v2879_v59 }
 0x5e4   :  { %4104 = vpow2.f32 %v3897_v15 }
 0x5e5   :  { %4106 = vpow2.f32 %v3895_v44  ;;  %v10728_v44 = vld [vmem:[#allocation49_spill] sm:$0xff]  ;;  %v3008_v40 = vpop.f32.mrf.mxu0 }
 0x5e6   :  { %4108 = vpow2.f32 %v3896_v3  ;;  %v397_v20 = vadd.f32 %v8588_v39, %v10728_v44  ;;  %v10732_v44 = vld [vmem:[#allocation30_spill] sm:$0xff] }
 0x5e8   :  { %v3033_v15 = vadd.f32 %v3008_v40, %v397_v20 }
 0x5ea   :  { %v4105_v58 = vpop.eup %4104  ;;  %v3900_v30 = vmul.f32 -1.442695, %v3033_v15 }
 0x5eb   :  { %v8582_v29 = vadd.f32 1.0, %v4105_v58  ;;  %v4107_v52 = vpop.eup %4106  ;;  %v2880_v58 = vadd.f32 %v2875_v18, %v10569_v16  ;;  %v8605_v18 = vld [vmem:[%s9000_s1] sm:$0xff] }
 0x5ec   :  { %v4109_v59 = vpop.eup %4108  ;;  %v2890_v6 = vadd.f32 1.0, %v4107_v52  ;;  %v8598_v52 = vld [vmem:[%s9000_s1 + $0x8] sm:$0xff]  ;;  %10731 = vst [vmem:[#allocation198_spill] sm:$0xff] %v8605_v18  ;;  %v395_v20 = vadd.f32 %v8605_v18, %v10732_v44 }
 0x5ed   :  { %4110 = vrcp.f32 %v8582_v29  ;;  %v2891_v37 = vadd.f32 1.0, %v4109_v59  ;;  %10729 = vst [vmem:[#allocation197_spill] sm:$0xff] %v8598_v52  ;;  %v396_v59 = vadd.f32 %v8598_v52, %v10730_v5  ;;  %vm2928_vm7 = vweird.f32 %v8582_v29 }
 0x5ee   :  { %4112 = vrcp.f32 %v2890_v6  ;;  %v2902_v39 = vand.u32 2147483647, %v2890_v6  ;;  %v2904_v54 = vand.u32 2147483648, %v2890_v6  ;;  %v3031_v52 = vadd.f32 %v2968_v51, %v395_v20 }
 0x5ef   :  { %4114 = vrcp.f32 %v2891_v37  ;;  %v3032_v11 = vadd.f32 %v2988_v33, %v396_v59  ;;  %v2917_v24 = vand.u32 2147483647, %v2891_v37  ;;  %v2919_v42 = vand.u32 2147483648, %v2891_v37 }
 0x5f0   :  { %4116 = vtanh.f32 %v2880_v58  ;;  %v3898_v58 = vmul.f32 -1.442695, %v3031_v52  ;;  %vm2898_vm0 = vweird.f32 %v2890_v6  ;;  %vm2913_vm2 = vweird.f32 %v2891_v37 }
 0x5f1   :  { %4118 = vpow2.f32 %v3900_v30  ;;  %v3899_v44 = vmul.f32 -1.442695, %v3032_v11  ;;  %v2905_v30 = vor.u32 1.1754944e-38, %v2904_v54  ;;  %vm2903_vm3 = vcmp.eq.f32.partialorder %v2902_v39, 8.507059e+37 }
 0x5f2   :  { %4120 = vpow2.f32 %v3898_v58  ;;  %v2920_v33 = vor.u32 1.1754944e-38, %v2919_v42  ;;  %vm2918_vm5 = vcmp.eq.f32.partialorder %v2917_v24, 8.507059e+37 }
 0x5f3   :  { %v8593_v26 = vpop.eup %4110  ;;  %4122 = vpow2.f32 %v3899_v44 }
 0x5f4   :  { %v4113_v55 = vpop.eup %4112  ;;  %v2924_v15 = vmul.f32 %v8593_v26, %v8582_v29  ;;  %vm2929_vm6 = vweird.f32 %v8593_v26 }
 0x5f5   :  { %v4115_v3 = vpop.eup %4114  ;;  %v2894_v49 = vmul.f32 %v4113_v55, %v2890_v6  ;;  %vm2899_vm14 = vweird.f32 %v4113_v55  ;;  %vm2930_vm8 = vmor %vm2928_vm7, %vm2929_vm6 }
 0x5f6   :  { %v2909_v40 = vmul.f32 %v4115_v3, %v2891_v37  ;;  %vm2914_vm15 = vweird.f32 %v4115_v3  ;;  %v2925_v18 = vsub.f32 1.0, %v2924_v15  ;;  %vm2900_vm1 = vmor %vm2898_vm0, %vm2899_vm14  ;;  %v8634_v15 = vld [vmem:[%s9000_s1 + $0x18] sm:$0xff] }
 0x5f7   :  { %v2895_v16 = vsub.f32 1.0, %v2894_v49  ;;  %v4117_v49 = vpop.eup %4116  ;;  %vm2915_vm4 = vmor %vm2913_vm2, %vm2914_vm15 }
 0x5f8   :  { %v2910_v5 = vsub.f32 1.0, %v2909_v40  ;;  %v4119_v40 = vpop.eup %4118  ;;  %v2926_v11 = vmul.f32 %v8593_v26, %v2925_v18 }
 0x5f9   :  { %v2896_v23 = vmul.f32 %v4113_v55, %v2895_v16  ;;  %v8613_v52 = vadd.f32 1.0, %v4119_v40 }
 0x5fa   :  { %v2911_v19 = vmul.f32 %v4115_v3, %v2910_v5  ;;  %v2927_v42 = vadd.f32 %v8593_v26, %v2926_v11  ;;  %v10733_v5 = vld [vmem:[#allocation170_spill] sm:$0xff] }
 0x5fb   :  { %v2897_v56 = vadd.f32 %v4113_v55, %v2896_v23  ;;  %4124 = vrcp.f32 %v8613_v52  ;;  %v398_v58 = vadd.f32 %v8634_v15, %v10733_v5  ;;  %v10749_v5 = vld [vmem:[#allocation46_spill] sm:$0xff] }
 0x5fc   :  { %v2912_v60 = vadd.f32 %v4115_v3, %v2911_v19  ;;  %v4121_v19 = vpop.eup %4120 }
 0x5fd   :  { %v2901_v51 = vsel %vm2900_vm1, %v4113_v55, %v2897_v56  ;;  %v4123_v56 = vpop.eup %4122  ;;  %v3044_v39 = vadd.f32 1.0, %v4121_v19  ;;  %v2931_v55 = vsel %vm2930_vm8, %v8593_v26, %v2927_v42 }
 0x5fe   :  { %v2906_v16 = vsel %vm2903_vm3, %v2905_v30, %v2901_v51  ;;  %v2916_v59 = vsel %vm2915_vm4, %v4115_v3, %v2912_v60  ;;  %v2934_v60 = vand.u32 2147483648, %v8582_v29  ;;  %v8622_v24 = vadd.f32 1.0, %v4123_v56  ;;  %v3028_v3 = vpop.f32.mrf.mxu1 }
 0x5ff   :  { %v2940_v23 = vmul.f32 %v4117_v49, %v2906_v16  ;;  %v2921_v6 = vsel %vm2918_vm5, %v2920_v33, %v2916_v59  ;;  %v3034_v30 = vadd.f32 %v3028_v3, %v398_v58  ;;  %v3058_v11 = vand.u32 2147483648, %v3044_v39  ;;  %v10747_v3 = vld [vmem:[#allocation44_spill] sm:$0xff]  ;;  %v10750_v58 = vld [vmem:[#allocation47_spill] sm:$0xff] }
 0x600   :  { %v2939_v54 = vmul.f32 %v2921_v6, %v7966_v57  ;;  %v2932_v57 = vand.u32 2147483647, %v8582_v29  ;;  %v2935_v18 = vor.u32 1.1754944e-38, %v2934_v60  ;;  %v4772_v6 = vld [vmem:[#allocation11 + $0x1e8] sm:$0xff]  ;;  %v3056_v19 = vand.u32 2147483647, %v3044_v39 }
 0x601   :  { %v8629_v20 = vpop.eup %4124  ;;  %v3073_v56 = vand.u32 2147483648, %v8622_v24  ;;  %v3071_v60 = vand.u32 2147483647, %v8622_v24  ;;  %vm3052_vm12 = vweird.f32 %v3044_v39  ;;  %vm3067_vm15 = vweird.f32 %v8622_v24 }
 0x602   :  { %v8616_v37 = vadd.f32 %v2940_v23, %v2939_v54  ;;  %vm2933_vm9 = vcmp.eq.f32.partialorder %v2932_v57, 8.507059e+37  ;;  %v3078_v16 = vmul.f32 %v8629_v20, %v8613_v52  ;;  %vm3057_vm0 = vcmp.eq.f32.partialorder %v3056_v19, 8.507059e+37  ;;  %v10762_v19 = vld [vmem:[#allocation61_spill] sm:$0xff] }
 0x603   :  { %v2936_v29 = vsel %vm2933_vm9, %v2935_v18, %v2931_v55  ;;  %vm3072_vm2 = vcmp.eq.f32.partialorder %v3071_v60, 8.507059e+37  ;;  %vm3083_vm3 = vweird.f32 %v8629_v20  ;;  %vm3082_vm4 = vweird.f32 %v8613_v52  ;;  %v10748_v18 = vld [vmem:[#allocation45_spill] sm:$0xff]  ;;  %v10765_v60 = vld [vmem:[#allocation64_spill] sm:$0xff] }
 0x604   :  { %4126 = vtanh.f32 %v8616_v37  ;;  %vm3084_vm5 = vmor %vm3082_vm4, %vm3083_vm3 }
 0x605   :  { %4128 = vrcp.f32 %v3044_v39 }
 0x606   :  { %4130 = vrcp.f32 %v8622_v24 }
 0x607   :  { %4132 = vtanh.f32 %v3034_v30  ;;  %v10753_v30 = vld [vmem:[#allocation52_spill] sm:$0xff] }
 0x60a   :  { %v4127_v44 = vpop.eup %4126 }
 0x60b   :  { %v4129_v49 = vpop.eup %4128  ;;  %v8638_v40 = vmul.f32 %v4127_v44, %v2936_v29  ;;  %v10751_v44 = vld [vmem:[#allocation48_spill] sm:$0xff]  ;;  %v4778_v29 = vld [vmem:[#allocation11 + $0x28] sm:$0xff] }
 0x60c   :  { %v4131_v26 = vpop.eup %4130  ;;  %v3048_v51 = vmul.f32 %v4129_v49, %v3044_v39  ;;  %vm3053_vm10 = vweird.f32 %v4129_v49 }
 0x60d   :  { %v3063_v33 = vmul.f32 %v4131_v26, %v8622_v24  ;;  %3114 = vmatmul.f32.vlgmr.msra.gmra.mxu2 %v8638_v40  ;;  %3134 = vmatmul.f32.vlgmr.msrb.gmra.mxu3 %v8638_v40  ;;  %vm3068_vm11 = vweird.f32 %v4131_v26  ;;  %vm3054_vm14 = vmor %vm3052_vm12, %vm3053_vm10  ;;  %v10746_v24 = vld [vmem:[#allocation43_spill] sm:$0xff] }
 0x60e   :  { %v3049_v59 = vsub.f32 1.0, %v3048_v51  ;;  %3154 = vmatmul.f32.vlgmr.msra.gmra.mxu0 %v8638_v40  ;;  %3174 = vmatmul.f32.vlgmr.msrb.gmra.mxu1 %v8638_v40  ;;  %vm3069_vm1 = vmor %vm3067_vm15, %vm3068_vm11  ;;  %v4779_v51 = vld [vmem:[#allocation11 + $0x8] sm:$0xff] }
 0x60f   :  { %v3064_v23 = vsub.f32 1.0, %v3063_v33  ;;  %3332 = vmatpush.msra.mxu2 %v8000_v34  ;;  %3352 = vmatpush.msrb.mxu3 %v4772_v6  ;;  %v3079_v34 = vsub.f32 1.0, %v3078_v16  ;;  %v10755_v33 = vld [vmem:[#allocation54_spill] sm:$0xff]  ;;  %v10756_v16 = vld [vmem:[#allocation55_spill] sm:$0xff] }
 0x610   :  { %v3050_v54 = vmul.f32 %v4129_v49, %v3049_v59  ;;  %3372 = vmatpush.msra.mxu0 %v8006_v41  ;;  %3392 = vmatpush.msrb.mxu1 %v8009_v32  ;;  %v3059_v41 = vor.u32 1.1754944e-38, %v3058_v11  ;;  %v10757_v59 = vld [vmem:[#allocation56_spill] sm:$0xff]  ;;  %v10758_v11 = vld [vmem:[#allocation57_spill] sm:$0xff]  ;;  %v10760_v6 = vld [vmem:[#allocation59_spill] sm:$0xff] }
 0x611   :  { %v3065_v42 = vmul.f32 %v4131_v26, %v3064_v23  ;;  %3333 = vmatpush.msra.mxu2 %v8016_v22  ;;  %3353 = vmatpush.msrb.mxu3 %v8019_v46  ;;  %v3074_v22 = vor.u32 1.1754944e-38, %v3073_v56  ;;  %v4133_v46 = vpop.eup %4132  ;;  %v10759_v23 = vld [vmem:[#allocation58_spill] sm:$0xff] }
 0x612   :  { %v3051_v57 = vadd.f32 %v4129_v49, %v3050_v54  ;;  %3373 = vmatpush.msra.mxu0 %v8025_v27  ;;  %3393 = vmatpush.msrb.mxu1 %v8028_v45  ;;  %v10761_v54 = vld [vmem:[#allocation60_spill] sm:$0xff]  ;;  %v10763_v56 = vld [vmem:[#allocation62_spill] sm:$0xff] }
 0x613   :  { %v3066_v55 = vadd.f32 %v4131_v26, %v3065_v42  ;;  %3334 = vmatpush.msra.mxu2 %v8031_v2  ;;  %3354 = vmatpush.msrb.mxu3 %v8034_v14  ;;  %v3080_v2 = vmul.f32 %v8629_v20, %v3079_v34  ;;  %v10764_v42 = vld [vmem:[#allocation63_spill] sm:$0xff]  ;;  %v10766_v34 = vld [vmem:[#allocation65_spill] sm:$0xff] }
 0x614   :  { %v3055_v32 = vsel %vm3054_vm14, %v4129_v49, %v3051_v57  ;;  %3374 = vmatpush.msra.mxu0 %v8037_v63  ;;  %3394 = vmatpush.msrb.mxu1 %v8040_v31  ;;  %v10752_v49 = vld [vmem:[#allocation50_spill] sm:$0xff] }
 0x615   :  { %v3060_v27 = vsel %vm3057_vm0, %v3059_v41, %v3055_v32  ;;  %v3070_v45 = vsel %vm3069_vm1, %v4131_v26, %v3066_v55  ;;  %3335 = vmatpush.msra.mxu2 %v8043_v13  ;;  %3355 = vmatpush.msrb.mxu3 %v8046_v47  ;;  %v3081_v13 = vadd.f32 %v8629_v20, %v3080_v2  ;;  %v3086_v47 = vand.u32 2147483647, %v8613_v52  ;;  %v10754_v26 = vld [vmem:[#allocation53_spill] sm:$0xff]  ;;  %v10767_v57 = vld [vmem:[#allocation66_spill] sm:$0xff]  ;;  %v10768_v41 = vld [vmem:[#allocation68_spill] sm:$0xff] }
 0x616   :  { %v3094_v14 = vmul.f32 %v4133_v46, %v3060_v27  ;;  %v3075_v39 = vsel %vm3072_vm2, %v3074_v22, %v3070_v45  ;;  %3375 = vmatpush.msra.mxu0 %v8051_v0  ;;  %3395 = vmatpush.msrb.mxu1 %v8054_v43  ;;  %v10769_v55 = vld [vmem:[#allocation70_spill] sm:$0xff]  ;;  %v10770_v32 = vld [vmem:[#allocation71_spill] sm:$0xff]  ;;  %v10771_v22 = vld [vmem:[#allocation72_spill] sm:$0xff] }
 0x617   :  { %v3093_v63 = vmul.f32 %v3075_v39, %v7990_v53  ;;  %3336 = vmatpush.msra.mxu2 %v8057_v9  ;;  %3356 = vmatpush.msrb.mxu3 %v8060_v4  ;;  %v3088_v53 = vand.u32 2147483648, %v8613_v52  ;;  %v3085_v0 = vsel %vm3084_vm5, %v8629_v20, %v3081_v13  ;;  %vm3087_vm6 = vcmp.eq.f32.partialorder %v3086_v47, 8.507059e+37  ;;  %v10734_v9 = vld [vmem:[#allocation140_spill] sm:$0xff]  ;;  %v10735_v4 = vld [vmem:[#allocation34_spill] sm:$0xff]  ;;  %v10772_v46 = vld [vmem:[#allocation73_spill] sm:$0xff] }
 0x618   :  { %3376 = vmatpush.msra.mxu0 %v8067_v50  ;;  %3396 = vmatpush.msrb.mxu1 %v8070_v36  ;;  %v4776_v52 = vld [vmem:[#allocation11 + $0x68] sm:$0xff]  ;;  %v10774_v45 = vld [vmem:[#allocation75_spill] sm:$0xff]  ;;  %v10775_v2 = vld [vmem:[#allocation76_spill] sm:$0xff] }
 0x619   :  { %v8673_v31 = vadd.f32 %v3094_v14, %v3093_v63  ;;  %3337 = vmatpush.msra.mxu2 %v8073_v35  ;;  %3357 = vmatpush.msrb.mxu3 %v8076_v8  ;;  %v3089_v43 = vor.u32 1.1754944e-38, %v3088_v53  ;;  %v10736_v35 = vld [vmem:[#allocation69_spill] sm:$0xff]  ;;  %v4773_v8 = vld [vmem:[#allocation11 + $0xc8] sm:$0xff]  ;;  %v10777_v39 = vld [vmem:[#allocation79_spill] sm:$0xff] }
 0x61a   :  { %3377 = vmatpush.msra.mxu0 %v8079_v48  ;;  %3397 = vmatpush.msrb.mxu1 %v8082_v62  ;;  %v10737_v62 = vld [vmem:[#allocation21_spill] sm:$0xff]  ;;  %v4777_v20 = vld [vmem:[#allocation11 + $0x48] sm:$0xff]  ;;  %v10778_v63 = vld [vmem:[#allocation80_spill] sm:$0xff] }
 0x61b   :  { %4134 = vtanh.f32 %v8673_v31  ;;  %3338 = vmatpush.msra.mxu2 %v8085_v17  ;;  %3358 = vmatpush.msrb.mxu3 %v8088_v21  ;;  %v3090_v36 = vsel %vm3087_vm6, %v3089_v43, %v3085_v0  ;;  %v10738_v17 = vld [vmem:[#allocation151_spill] sm:$0xff]  ;;  %v10739_v21 = vld [vmem:[#allocation28_spill] sm:$0xff]  ;;  %v10773_v27 = vld [vmem:[#allocation74_spill] sm:$0xff] }
 0x61c   :  { %3378 = vmatpush.msra.mxu0 %v8091_v25  ;;  %3398 = vmatpush.msrb.mxu1 %v8094_v61  ;;  %v4774_v25 = vld [vmem:[#allocation11 + $0xa8] sm:$0xff]  ;;  %v10740_v61 = vld [vmem:[#allocation33_spill] sm:$0xff]  ;;  %v10781_v47 = vld [vmem:[#allocation83_spill] sm:$0xff] }
 0x61d   :  { %3339 = vmatpush.msra.mxu2 %v8097_v28  ;;  %3359 = vmatpush.msrb.mxu3 %v8100_v10  ;;  %v10741_v28 = vld [vmem:[#allocation38_spill] sm:$0xff]  ;;  %v10742_v10 = vld [vmem:[#allocation39_spill] sm:$0xff]  ;;  %v10776_v14 = vld [vmem:[#allocation77_spill] sm:$0xff] }
 0x61e   :  { %3379 = vmatpush.msra.mxu0 %v8103_v38  ;;  %3399 = vmatpush.msrb.mxu1 %v8106_v7  ;;  %v4775_v38 = vld [vmem:[#allocation11 + $0x88] sm:$0xff]  ;;  %v10743_v7 = vld [vmem:[#allocation40_spill] sm:$0xff]  ;;  %v10779_v13 = vld [vmem:[#allocation81_spill] sm:$0xff] }
 0x61f   :  { %3340 = vmatpush.msra.mxu2 %v8109_v12  ;;  %3360 = vmatpush.msrb.mxu3 %v8112_v1  ;;  %v10744_v12 = vld [vmem:[#allocation41_spill] sm:$0xff]  ;;  %v10745_v1 = vld [vmem:[#allocation42_spill] sm:$0xff]  ;;  %v10782_v0 = vld [vmem:[#allocation84_spill] sm:$0xff] }
 0x620   :  { %3380 = vmatpush.msra.mxu0 %v10734_v9  ;;  %3400 = vmatpush.msrb.mxu1 %v10735_v4  ;;  %v10780_v53 = vld [vmem:[#allocation82_spill] sm:$0xff]  ;;  %v10783_v43 = vld [vmem:[#allocation85_spill] sm:$0xff]  ;;  %v10785_v4 = vld [vmem:[#allocation88_spill] sm:$0xff] }
 0x621   :  { %v4135_v50 = vpop.eup %4134  ;;  %3341 = vmatpush.msra.mxu2 %v10736_v35  ;;  %3361 = vmatpush.msrb.mxu3 %v4773_v8  ;;  %v10784_v9 = vld [vmem:[#allocation86_spill] sm:$0xff]  ;;  %v10788_v35 = vld [vmem:[#allocation91_spill] sm:$0xff]  ;;  %v10789_v8 = vld [vmem:[#allocation92_spill] sm:$0xff] }
 0x622   :  { %v3097_v48 = vmul.f32 %v4135_v50, %v3090_v36  ;;  %3381 = vmatpush.msra.mxu0 %v10737_v62  ;;  %3401 = vmatpush.msrb.mxu1 %v10738_v17  ;;  %v10786_v50 = vld [vmem:[#allocation89_spill] sm:$0xff]  ;;  %v10787_v36 = vld [vmem:[#allocation90_spill] sm:$0xff]  ;;  %v10792_v17 = vld [vmem:[#allocation95_spill] sm:$0xff] }
 0x623   :  { %3342 = vmatpush.msra.mxu2 %v10739_v21  ;;  %3362 = vmatpush.msrb.mxu3 %v4774_v25  ;;  %v10791_v62 = vld [vmem:[#allocation94_spill] sm:$0xff]  ;;  %v10793_v21 = vld [vmem:[#allocation96_spill] sm:$0xff]  ;;  %v10794_v25 = vld [vmem:[#allocation97_spill] sm:$0xff] }
 0x624   :  { %3382 = vmatpush.msra.mxu0 %v10740_v61  ;;  %3402 = vmatpush.msrb.mxu1 %v10741_v28  ;;  %v10795_v61 = vld [vmem:[#allocation98_spill] sm:$0xff]  ;;  %v10796_v28 = vld [vmem:[#allocation99_spill] sm:$0xff] }
 0x625   :  { %3194 = vmatmul.f32.vlgmr.msrb.gmra.mxu2 %v3097_v48  ;;  %3214 = vmatmul.f32.vlgmr.msra.gmra.mxu3 %v3097_v48 }
 0x626   :  { %3234 = vmatmul.f32.vlgmr.msrb.gmra.mxu0 %v3097_v48  ;;  %3254 = vmatmul.f32.vlgmr.msra.gmra.mxu1 %v3097_v48 }
 0x627   :  { %3343 = vmatpush.msra.mxu2 %v10742_v10  ;;  %3363 = vmatpush.msrb.mxu3 %v4775_v38  ;;  %v10797_v10 = vld [vmem:[#allocation101_spill] sm:$0xff]  ;;  %v10798_v38 = vld [vmem:[#allocation102_spill] sm:$0xff] }
 0x628   :  { %3383 = vmatpush.msra.mxu0 %v10743_v7  ;;  %3403 = vmatpush.msrb.mxu1 %v10744_v12  ;;  %v10799_v7 = vld [vmem:[#allocation103_spill] sm:$0xff]  ;;  %v10800_v12 = vld [vmem:[#allocation105_spill] sm:$0xff] }
 0x629   :  { %3344 = vmatpush.msra.mxu2 %v10745_v1  ;;  %3364 = vmatpush.msrb.mxu3 %v4776_v52  ;;  %v10801_v1 = vld [vmem:[#allocation106_spill] sm:$0xff]  ;;  %v10802_v52 = vld [vmem:[#allocation107_spill] sm:$0xff] }
 0x62a   :  { %3384 = vmatpush.msra.mxu0 %v10746_v24  ;;  %3404 = vmatpush.msrb.mxu1 %v10747_v3  ;;  %v10803_v24 = vld [vmem:[#allocation109_spill] sm:$0xff]  ;;  %v10804_v3 = vld [vmem:[#allocation110_spill] sm:$0xff] }
 0x62b   :  { %3345 = vmatpush.msra.mxu2 %v10748_v18  ;;  %3365 = vmatpush.msrb.mxu3 %v4777_v20  ;;  %v10805_v18 = vld [vmem:[#allocation111_spill] sm:$0xff]  ;;  %v10806_v20 = vld [vmem:[#allocation112_spill] sm:$0xff] }
 0x62c   :  { %3385 = vmatpush.msra.mxu0 %v10749_v5  ;;  %3405 = vmatpush.msrb.mxu1 %v10750_v58  ;;  %v10807_v5 = vld [vmem:[#allocation113_spill] sm:$0xff]  ;;  %v10808_v58 = vld [vmem:[#allocation114_spill] sm:$0xff] }
 0x62d   :  { %3346 = vmatpush.msra.mxu2 %v10751_v44  ;;  %3366 = vmatpush.msrb.mxu3 %v4778_v29  ;;  %v10809_v44 = vld [vmem:[#allocation115_spill] sm:$0xff]  ;;  %v10810_v29 = vld [vmem:[#allocation116_spill] sm:$0xff] }
 0x62e   :  { %3386 = vmatpush.msra.mxu0 %v10752_v49  ;;  %3406 = vmatpush.msrb.mxu1 %v10753_v30  ;;  %v10811_v49 = vld [vmem:[#allocation117_spill] sm:$0xff]  ;;  %v10812_v30 = vld [vmem:[#allocation118_spill] sm:$0xff] }
 0x62f   :  { %3347 = vmatpush.msra.mxu2 %v10754_v26  ;;  %3367 = vmatpush.msrb.mxu3 %v4779_v51  ;;  %v10813_v26 = vld [vmem:[#allocation119_spill] sm:$0xff]  ;;  %v10814_v51 = vld [vmem:[#allocation120_spill] sm:$0xff] }
 0x630   :  { %3387 = vmatpush.msra.mxu0 %v10755_v33  ;;  %3407 = vmatpush.msrb.mxu1 %v10756_v16  ;;  %v10815_v33 = vld [vmem:[#allocation122_spill] sm:$0xff]  ;;  %v10816_v16 = vld [vmem:[#allocation123_spill] sm:$0xff] }
 0x631   :  { %3348 = vmatmul.f32.vlgmr.msra.gmra.mxu2 %v3097_v48  ;;  %3368 = vmatmul.f32.vlgmr.msrb.gmra.mxu3 %v3097_v48 }
 0x632   :  { %3388 = vmatmul.f32.vlgmr.msra.gmra.mxu0 %v3097_v48  ;;  %3408 = vmatmul.f32.vlgmr.msrb.gmra.mxu1 %v3097_v48  ;;  %v10790_v48 = vld [vmem:[#allocation93_spill] sm:$0xff] }
 0x633   :  { %3479 = vmatpush.msrb.mxu2 %v10757_v59  ;;  %3499 = vmatpush.msra.mxu3 %v10758_v11  ;;  %v10817_v59 = vld [vmem:[#allocation125_spill] sm:$0xff]  ;;  %v10818_v11 = vld [vmem:[#allocation126_spill] sm:$0xff] }
 0x634   :  { %3519 = vmatpush.msrb.mxu0 %v10759_v23  ;;  %3539 = vmatpush.msra.mxu1 %v10760_v6  ;;  %v10819_v23 = vld [vmem:[#allocation130_spill] sm:$0xff]  ;;  %v10820_v6 = vld [vmem:[#allocation128_spill] sm:$0xff] }
 0x635   :  { %3480 = vmatpush.msrb.mxu2 %v10761_v54  ;;  %3500 = vmatpush.msra.mxu3 %v10762_v19  ;;  %v10821_v54 = vld [vmem:[#allocation129_spill] sm:$0xff]  ;;  %v10822_v19 = vld [vmem:[#allocation131_spill] sm:$0xff] }
 0x636   :  { %3520 = vmatpush.msrb.mxu0 %v10763_v56  ;;  %3540 = vmatpush.msra.mxu1 %v10764_v42  ;;  %v10823_v56 = vld [vmem:[#allocation135_spill] sm:$0xff]  ;;  %v10824_v42 = vld [vmem:[#allocation132_spill] sm:$0xff] }
 0x637   :  { %3481 = vmatpush.msrb.mxu2 %v10765_v60  ;;  %3501 = vmatpush.msra.mxu3 %v10766_v34  ;;  %v10825_v60 = vld [vmem:[#allocation134_spill] sm:$0xff]  ;;  %v10826_v34 = vld [vmem:[#allocation136_spill] sm:$0xff] }
 0x638   :  { %3521 = vmatpush.msrb.mxu0 %v10767_v57  ;;  %3541 = vmatpush.msra.mxu1 %v10768_v41  ;;  %v10827_v57 = vld [vmem:[#allocation139_spill] sm:$0xff]  ;;  %v10828_v41 = vld [vmem:[#allocation137_spill] sm:$0xff] }
 0x639   :  { %3482 = vmatpush.msrb.mxu2 %v10769_v55  ;;  %3502 = vmatpush.msra.mxu3 %v10770_v32  ;;  %v10829_v55 = vld [vmem:[#allocation138_spill] sm:$0xff]  ;;  %v10830_v32 = vld [vmem:[#allocation141_spill] sm:$0xff] }
 0x63a   :  { %3522 = vmatpush.msrb.mxu0 %v10771_v22  ;;  %3542 = vmatpush.msra.mxu1 %v10772_v46  ;;  %v10831_v22 = vld [vmem:[#allocation145_spill] sm:$0xff]  ;;  %v10832_v46 = vld [vmem:[#allocation142_spill] sm:$0xff] }
 0x63b   :  { %3483 = vmatpush.msrb.mxu2 %v10773_v27  ;;  %3503 = vmatpush.msra.mxu3 %v10774_v45  ;;  %v10833_v27 = vld [vmem:[#allocation144_spill] sm:$0xff]  ;;  %v10834_v45 = vld [vmem:[#allocation146_spill] sm:$0xff] }
 0x63c   :  { %3523 = vmatpush.msrb.mxu0 %v10775_v2  ;;  %3543 = vmatpush.msra.mxu1 %v10776_v14  ;;  %v10835_v2 = vld [vmem:[#allocation149_spill] sm:$0xff]  ;;  %v10836_v14 = vld [vmem:[#allocation147_spill] sm:$0xff] }
 0x63d   :  { %3484 = vmatpush.msrb.mxu2 %v10777_v39  ;;  %3504 = vmatpush.msra.mxu3 %v10778_v63  ;;  %v10837_v39 = vld [vmem:[#allocation148_spill] sm:$0xff]  ;;  %v10838_v63 = vld [vmem:[#allocation150_spill] sm:$0xff] }
 0x63e   :  { %3524 = vmatpush.msrb.mxu0 %v10779_v13  ;;  %3544 = vmatpush.msra.mxu1 %v10780_v53  ;;  %v10839_v13 = vld [vmem:[#allocation154_spill] sm:$0xff]  ;;  %v10840_v53 = vld [vmem:[#allocation152_spill] sm:$0xff] }
 0x63f   :  { %3485 = vmatpush.msrb.mxu2 %v10781_v47  ;;  %3505 = vmatpush.msra.mxu3 %v10782_v0  ;;  %v10841_v47 = vld [vmem:[#allocation153_spill] sm:$0xff]  ;;  %v10842_v0 = vld [vmem:[#allocation155_spill] sm:$0xff] }
 0x640   :  { %3525 = vmatpush.msrb.mxu0 %v10783_v43  ;;  %3545 = vmatpush.msra.mxu1 %v10784_v9  ;;  %v10843_v43 = vld [vmem:[#allocation158_spill] sm:$0xff]  ;;  %v10844_v9 = vld [vmem:[#allocation156_spill] sm:$0xff] }
 0x641   :  { %3486 = vmatpush.msrb.mxu2 %v10785_v4  ;;  %3506 = vmatpush.msra.mxu3 %v10786_v50  ;;  %v10845_v4 = vld [vmem:[#allocation157_spill] sm:$0xff]  ;;  %v10846_v50 = vld [vmem:[#allocation159_spill] sm:$0xff] }
 0x642   :  { %3526 = vmatpush.msrb.mxu0 %v10787_v36  ;;  %3546 = vmatpush.msra.mxu1 %v10788_v35  ;;  %v10847_v36 = vld [vmem:[#allocation162_spill] sm:$0xff]  ;;  %v10848_v35 = vld [vmem:[#allocation160_spill] sm:$0xff] }
 0x643   :  { %3487 = vmatpush.msrb.mxu2 %v10789_v8  ;;  %3507 = vmatpush.msra.mxu3 %v10790_v48  ;;  %v10849_v8 = vld [vmem:[#allocation161_spill] sm:$0xff]  ;;  %v10850_v48 = vld [vmem:[#allocation163_spill] sm:$0xff] }
 0x644   :  { %3527 = vmatpush.msrb.mxu0 %v10791_v62  ;;  %3547 = vmatpush.msra.mxu1 %v10792_v17  ;;  %v10851_v62 = vld [vmem:[#allocation167_spill] sm:$0xff]  ;;  %v10852_v17 = vld [vmem:[#allocation164_spill] sm:$0xff] }
 0x645   :  { %3488 = vmatpush.msrb.mxu2 %v10793_v21  ;;  %3508 = vmatpush.msra.mxu3 %v10794_v25  ;;  %v10853_v21 = vld [vmem:[#allocation165_spill] sm:$0xff]  ;;  %v10854_v25 = vld [vmem:[#allocation168_spill] sm:$0xff] }
 0x646   :  { %3528 = vmatpush.msrb.mxu0 %v10795_v61  ;;  %3548 = vmatpush.msra.mxu1 %v10796_v28  ;;  %v10855_v61 = vld [vmem:[#allocation35_spill] sm:$0xff]  ;;  %v10856_v28 = vld [vmem:[#allocation169_spill] sm:$0xff] }
 0x647   :  { %3489 = vmatpush.msrb.mxu2 %v10797_v10  ;;  %3509 = vmatpush.msra.mxu3 %v10798_v38  ;;  %v10857_v10 = vld [vmem:[#allocation78_spill] sm:$0xff]  ;;  %v10858_v38 = vld [vmem:[#allocation143_spill] sm:$0xff] }
 0x648   :  { %3529 = vmatpush.msrb.mxu0 %v10799_v7  ;;  %3549 = vmatpush.msra.mxu1 %v10800_v12  ;;  %v10859_v7 = vld [vmem:[#allocation172_spill] sm:$0xff]  ;;  %v10860_v12 = vld [vmem:[#allocation133_spill] sm:$0xff] }
 0x649   :  { %3490 = vmatpush.msrb.mxu2 %v10801_v1  ;;  %3510 = vmatpush.msra.mxu3 %v10802_v52  ;;  %v10861_v1 = vld [vmem:[#allocation104_spill] sm:$0xff]  ;;  %v10862_v52 = vld [vmem:[#allocation173_spill] sm:$0xff] }
 0x64a   :  { %3530 = vmatpush.msrb.mxu0 %v10803_v24  ;;  %3550 = vmatpush.msra.mxu1 %v10804_v3  ;;  %v10863_v24 = vld [vmem:[#allocation176_spill] sm:$0xff]  ;;  %v10864_v3 = vld [vmem:[#allocation174_spill] sm:$0xff] }
 0x64b   :  { %3491 = vmatpush.msrb.mxu2 %v10805_v18  ;;  %3511 = vmatpush.msra.mxu3 %v10806_v20  ;;  %v10865_v18 = vld [vmem:[#allocation175_spill] sm:$0xff]  ;;  %v10866_v20 = vld [vmem:[#allocation177_spill] sm:$0xff] }
 0x64c   :  { %3531 = vmatpush.msrb.mxu0 %v10807_v5  ;;  %3551 = vmatpush.msra.mxu1 %v10808_v58  ;;  %v10867_v5 = vld [vmem:[#allocation180_spill] sm:$0xff]  ;;  %v10868_v58 = vld [vmem:[#allocation178_spill] sm:$0xff] }
 0x64d   :  { %3492 = vmatpush.msrb.mxu2 %v10809_v44  ;;  %3512 = vmatpush.msra.mxu3 %v10810_v29  ;;  %v10869_v44 = vld [vmem:[#allocation179_spill] sm:$0xff]  ;;  %v10870_v29 = vld [vmem:[#allocation181_spill] sm:$0xff] }
 0x64e   :  { %3532 = vmatpush.msrb.mxu0 %v10811_v49  ;;  %3552 = vmatpush.msra.mxu1 %v10812_v30  ;;  %v10871_v49 = vld [vmem:[#allocation184_spill] sm:$0xff]  ;;  %v10872_v30 = vld [vmem:[#allocation182_spill] sm:$0xff] }
 0x64f   :  { %3493 = vmatpush.msrb.mxu2 %v10813_v26  ;;  %3513 = vmatpush.msra.mxu3 %v10814_v51  ;;  %v10873_v26 = vld [vmem:[#allocation183_spill] sm:$0xff]  ;;  %v10874_v51 = vld [vmem:[#allocation185_spill] sm:$0xff] }
 0x650   :  { %3533 = vmatpush.msrb.mxu0 %v10815_v33  ;;  %3553 = vmatpush.msra.mxu1 %v10816_v16  ;;  %v10875_v33 = vld [vmem:[#allocation188_spill] sm:$0xff]  ;;  %v10876_v16 = vld [vmem:[#allocation186_spill] sm:$0xff] }
 0x651   :  { %3494 = vmatpush.msrb.mxu2 %v10817_v59  ;;  %3514 = vmatpush.msra.mxu3 %v10818_v11  ;;  %v10877_v59 = vld [vmem:[#allocation187_spill] sm:$0xff]  ;;  %v10878_v11 = vld [vmem:[#allocation189_spill] sm:$0xff] }
 0x652   :  { %3534 = vmatpush.msrb.mxu0 %v10820_v6  ;;  %3554 = vmatpush.msra.mxu1 %v10821_v54  ;;  %v10880_v6 = vld [vmem:[#allocation190_spill] sm:$0xff]  ;;  %v10881_v54 = vld [vmem:[#allocation191_spill] sm:$0xff] }
 0x653   :  { %3559 = vmatpush.msra.mxu2 %v10819_v23  ;;  %3579 = vmatpush.msrb.mxu3 %v10822_v19  ;;  %v10879_v23 = vld [vmem:[#allocation192_spill] sm:$0xff]  ;;  %v10882_v19 = vld [vmem:[#allocation193_spill] sm:$0xff] }
 0x654   :  { %3599 = vmatpush.msra.mxu0 %v10824_v42  ;;  %3619 = vmatpush.msrb.mxu1 %v10825_v60  ;;  %v10884_v42 = vld [vmem:[#allocation195_spill] sm:$0xff] }
 0x655   :  { %3560 = vmatpush.msra.mxu2 %v10823_v56  ;;  %3580 = vmatpush.msrb.mxu3 %v10826_v34  ;;  %v10883_v56 = vld [vmem:[#allocation194_spill] sm:$0xff] }
 0x656   :  { %3600 = vmatpush.msra.mxu0 %v10828_v41  ;;  %3620 = vmatpush.msrb.mxu1 %v10829_v55 }
 0x657   :  { %3561 = vmatpush.msra.mxu2 %v10827_v57  ;;  %3581 = vmatpush.msrb.mxu3 %v10830_v32  ;;  %v10885_v32 = vld [vmem:[#allocation26_spill] sm:$0xff] }
 0x658   :  { %3601 = vmatpush.msra.mxu0 %v10832_v46  ;;  %3621 = vmatpush.msrb.mxu1 %v10833_v27 }
 0x659   :  { %3562 = vmatpush.msra.mxu2 %v10831_v22  ;;  %3582 = vmatpush.msrb.mxu3 %v10834_v45 }
 0x65a   :  { %3602 = vmatpush.msra.mxu0 %v10836_v14  ;;  %3622 = vmatpush.msrb.mxu1 %v10837_v39  ;;  %v10886_v39 = vld [vmem:[#allocation31_spill] sm:$0xff] }
 0x65b   :  { %3563 = vmatpush.msra.mxu2 %v10835_v2  ;;  %3583 = vmatpush.msrb.mxu3 %v10838_v63 }
 0x65c   :  { %3603 = vmatpush.msra.mxu0 %v10840_v53  ;;  %3623 = vmatpush.msrb.mxu1 %v10841_v47 }
 0x65d   :  { %3564 = vmatpush.msra.mxu2 %v10839_v13  ;;  %3584 = vmatpush.msrb.mxu3 %v10842_v0  ;;  %v10887_v13 = vld [vmem:[#allocation23_spill] sm:$0xff] }
 0x65e   :  { %3604 = vmatpush.msra.mxu0 %v10844_v9  ;;  %3624 = vmatpush.msrb.mxu1 %v10845_v4  ;;  %v10889_v9 = vld [vmem:[#allocation196_spill] sm:$0xff] }
 0x65f   :  { %3565 = vmatpush.msra.mxu2 %v10843_v43  ;;  %3585 = vmatpush.msrb.mxu3 %v10846_v50  ;;  %v10888_v43 = vld [vmem:[#allocation67_spill] sm:$0xff] }
 0x660   :  { %3605 = vmatpush.msra.mxu0 %v10848_v35  ;;  %3625 = vmatpush.msrb.mxu1 %v10849_v8  ;;  %v401_v4 = vadd.f32 %v10889_v9, %v10888_v43 }
 0x661   :  { %3566 = vmatpush.msra.mxu2 %v10847_v36  ;;  %3586 = vmatpush.msrb.mxu3 %v10850_v48 }
 0x662   :  { %3606 = vmatpush.msra.mxu0 %v10852_v17  ;;  %3626 = vmatpush.msrb.mxu1 %v10853_v21  ;;  %v10891_v17 = vld [vmem:[#allocation197_spill] sm:$0xff] }
 0x663   :  { %3567 = vmatpush.msra.mxu2 %v10851_v62  ;;  %3587 = vmatpush.msrb.mxu3 %v10854_v25  ;;  %v10890_v62 = vld [vmem:[#allocation127_spill] sm:$0xff]  ;;  %v10892_v25 = vld [vmem:[#allocation22_spill] sm:$0xff] }
 0x664   :  { %3607 = vmatpush.msra.mxu0 %v10856_v28  ;;  %3627 = vmatpush.msrb.mxu1 %v10857_v10  ;;  %v400_v21 = vadd.f32 %v10891_v17, %v10890_v62 }
 0x665   :  { %3568 = vmatpush.msra.mxu2 %v10855_v61  ;;  %3588 = vmatpush.msrb.mxu3 %v10858_v38  ;;  %v10893_v61 = vld [vmem:[#allocation198_spill] sm:$0xff] }
 0x666   :  { %3608 = vmatpush.msra.mxu0 %v10860_v12  ;;  %3628 = vmatpush.msrb.mxu1 %v10861_v1  ;;  %v399_v28 = vadd.f32 %v10893_v61, %v10892_v25 }
 0x667   :  { %3569 = vmatpush.msra.mxu2 %v10859_v7  ;;  %3589 = vmatpush.msrb.mxu3 %v10862_v52 }
 0x668   :  { %3609 = vmatpush.msra.mxu0 %v10864_v3  ;;  %3629 = vmatpush.msrb.mxu1 %v10865_v18 }
 0x669   :  { %3570 = vmatpush.msra.mxu2 %v10863_v24  ;;  %3590 = vmatpush.msrb.mxu3 %v10866_v20 }
 0x66a   :  { %3610 = vmatpush.msra.mxu0 %v10868_v58  ;;  %3630 = vmatpush.msrb.mxu1 %v10869_v44 }
 0x66b   :  { %3571 = vmatpush.msra.mxu2 %v10867_v5  ;;  %3591 = vmatpush.msrb.mxu3 %v10870_v29 }
 0x66c   :  { %3611 = vmatpush.msra.mxu0 %v10872_v30  ;;  %3631 = vmatpush.msrb.mxu1 %v10873_v26  ;;  %v10894_v30 = vld [vmem:[#allocation27_spill] sm:$0xff] }
 0x66d   :  { %3572 = vmatpush.msra.mxu2 %v10871_v49  ;;  %3592 = vmatpush.msrb.mxu3 %v10874_v51 }
 0x66e   :  { %3612 = vmatpush.msra.mxu0 %v10876_v16  ;;  %3632 = vmatpush.msrb.mxu1 %v10877_v59 }
 0x66f   :  { %3573 = vmatpush.msra.mxu2 %v10875_v33  ;;  %3593 = vmatpush.msrb.mxu3 %v10878_v11  ;;  %v10895_v11 = vld [vmem:[#allocation171_spill] sm:$0xff] }
 0x670   :  { %3613 = vmatpush.msra.mxu0 %v10880_v6  ;;  %3633 = vmatpush.msrb.mxu1 %v10881_v54 }
 0x671   :  { %3574 = vmatpush.msra.mxu2 %v10879_v23  ;;  %3594 = vmatpush.msrb.mxu3 %v10882_v19  ;;  %v402_v23 = vadd.f32 %v8634_v15, %v10895_v11 }
 0x672   :  { %3614 = vmatpush.msra.mxu0 %v10883_v56  ;;  %3634 = vmatpush.msrb.mxu1 %v10884_v42 }
 0x68b   :  { %v3155_v60 = vpop.f32.mrf.mxu0  ;;  %v3175_v50 = vpop.f32.mrf.mxu1 }
 0x690   :  { %v3115_v34 = vpop.f32.mrf.mxu2  ;;  %v3135_v57 = vpop.f32.mrf.mxu3 }
 0x6a3   :  { %v3235_v41 = vpop.f32.mrf.mxu0  ;;  %v3255_v3 = vpop.f32.mrf.mxu1 }
 0x6a4   :  { %v3236_v55 = vadd.f32 %v3235_v41, %v3155_v60  ;;  %v3256_v44 = vadd.f32 %v3255_v3, %v3175_v50 }
 0x6a6   :  { %v3260_v22 = vadd.f32 %v3236_v55, %v10885_v32  ;;  %v3261_v26 = vadd.f32 %v3256_v44, %v10894_v30 }
 0x6a8   :  { %v3903_v46 = vmul.f32 -1.442695, %v3260_v22  ;;  %v3195_v27 = vpop.f32.mrf.mxu2  ;;  %v3215_v45 = vpop.f32.mrf.mxu3 }
 0x6a9   :  { %v3196_v2 = vadd.f32 %v3195_v27, %v3115_v34  ;;  %v3216_v14 = vadd.f32 %v3215_v45, %v3135_v57 }
 0x6aa   :  { %4136 = vpow2.f32 %v3903_v46 }
 0x6ab   :  { %v3258_v63 = vadd.f32 %v3196_v2, %v10886_v39  ;;  %v3259_v53 = vadd.f32 %v3216_v14, %v10887_v13 }
 0x6ad   :  { %v3901_v47 = vmul.f32 -1.442695, %v3258_v63  ;;  %v3902_v0 = vmul.f32 -1.442695, %v3259_v53 }
 0x6af   :  { %4138 = vpow2.f32 %v3901_v47  ;;  %v3389_v36 = vpop.f32.mrf.mxu0  ;;  %v3409_v45 = vpop.f32.mrf.mxu1 }
 0x6b0   :  { %v4137_v35 = vpop.eup %4136  ;;  %4140 = vpow2.f32 %v3902_v0  ;;  %v3414_v8 = vadd.f32 %v3389_v36, %v401_v4  ;;  %v3415_v9 = vadd.f32 %v3409_v45, %v402_v23 }
 0x6b1   :  { %v8852_v48 = vadd.f32 1.0, %v4137_v35 }
 0x6b2   :  { %v3906_v10 = vmul.f32 -1.442695, %v3414_v8 }
 0x6b3   :  { %4142 = vrcp.f32 %v8852_v48  ;;  %vm3309_vm2 = vweird.f32 %v8852_v48 }
 0x6b4   :  { %v3349_v38 = vpop.f32.mrf.mxu2  ;;  %v3369_v7 = vpop.f32.mrf.mxu3  ;;  %4144 = vpow2.f32 %v3906_v10 }
 0x6b5   :  { %v4139_v12 = vpop.eup %4138  ;;  %v3412_v1 = vadd.f32 %v3349_v38, %v399_v28  ;;  %v3413_v52 = vadd.f32 %v3369_v7, %v400_v21  ;;  %v3315_v28 = vand.u32 2147483648, %v8852_v48 }
 0x6b6   :  { %v4141_v24 = vpop.eup %4140  ;;  %v3271_v18 = vadd.f32 1.0, %v4139_v12 }
 0x6b7   :  { %v3272_v20 = vadd.f32 1.0, %v4141_v24  ;;  %v3904_v5 = vmul.f32 -1.442695, %v3412_v1  ;;  %v3905_v58 = vmul.f32 -1.442695, %v3413_v52 }
 0x6b8   :  { %4146 = vrcp.f32 %v3271_v18  ;;  %v3283_v34 = vand.u32 2147483647, %v3271_v18  ;;  %v3285_v57 = vand.u32 2147483648, %v3271_v18  ;;  %vm3279_vm9 = vweird.f32 %v3271_v18 }
 0x6b9   :  { %4148 = vrcp.f32 %v3272_v20  ;;  %v8859_v29 = vpop.eup %4142  ;;  %v3300_v46 = vand.u32 2147483648, %v3272_v20  ;;  %v3298_v27 = vand.u32 2147483647, %v3272_v20  ;;  %vm3294_vm11 = vweird.f32 %v3272_v20 }
 0x6ba   :  { %4150 = vpow2.f32 %v3904_v5  ;;  %v4145_v49 = vpop.eup %4144  ;;  %v3305_v56 = vmul.f32 %v8859_v29, %v8852_v48  ;;  %v3286_v63 = vor.u32 1.1754944e-38, %v3285_v57  ;;  %vm3284_vm12 = vcmp.eq.f32.partialorder %v3283_v34, 8.507059e+37 }
 0x6bb   :  { %4152 = vpow2.f32 %v3905_v58  ;;  %v8864_v54 = vadd.f32 1.0, %v4145_v49  ;;  %v3301_v43 = vor.u32 1.1754944e-38, %v3300_v46  ;;  %vm3299_vm15 = vcmp.eq.f32.partialorder %v3298_v27, 8.507059e+37  ;;  %v3733_v27 = vld [vmem:[%s9006_s7 + $0x68] sm:$0xff] }
 0x6bc   :  { %4154 = vtanh.f32 %v3261_v26  ;;  %v3306_v2 = vsub.f32 1.0, %v3305_v56  ;;  %vm3310_vm0 = vweird.f32 %v8859_v29 }
 0x6bd   :  { %vm8899_vm5 = vmor %vm3309_vm2, %vm3310_vm0  ;;  %v3467_v45 = vand.u32 2147483647, %v8864_v54 }
 0x6be   :  { %v4147_v51 = vpop.eup %4146  ;;  %v3307_v35 = vmul.f32 %v8859_v29, %v3306_v2  ;;  %v3732_v2 = vld [vmem:[%s9006_s7 + $0x60] sm:$0xff] }
 0x6bf   :  { %v4149_v33 = vpop.eup %4148  ;;  %v3275_v16 = vmul.f32 %v4147_v51, %v3271_v18  ;;  %vm3280_vm7 = vweird.f32 %v4147_v51  ;;  %vm3468_vm0 = vcmp.eq.f32.partialorder %v3467_v45, 8.507059e+37 }
 0x6c0   :  { %v4151_v59 = vpop.eup %4150  ;;  %v3290_v6 = vmul.f32 %v4149_v33, %v3272_v20  ;;  %vm3295_vm8 = vweird.f32 %v4149_v33  ;;  %vm3281_vm10 = vmor %vm3279_vm9, %vm3280_vm7  ;;  %v3308_v52 = vadd.f32 %v8859_v29, %v3307_v35  ;;  %v3313_v20 = vand.u32 2147483647, %v8852_v48  ;;  %v3725_v35 = vld [vmem:[%s9006_s7 + $0x28] sm:$0xff] }
 0x6c1   :  { %v4153_v19 = vpop.eup %4152  ;;  %v3276_v42 = vsub.f32 1.0, %v3275_v16  ;;  %v8868_v60 = vadd.f32 1.0, %v4151_v59  ;;  %vm3296_vm14 = vmor %vm3294_vm11, %vm3295_vm8  ;;  %v3316_v48 = vor.u32 1.1754944e-38, %v3315_v28  ;;  %v10899_v28 = vld [vmem:[#allocation121_spill] sm:$0xff] }
 0x6c2   :  { %v3291_v41 = vsub.f32 1.0, %v3290_v6  ;;  %v8870_v55 = vadd.f32 1.0, %v4153_v19  ;;  %v4155_v47 = vpop.eup %4154  ;;  %v3312_v16 = vsel %vm8899_vm5, %v8859_v29, %v3308_v52 }
 0x6c3   :  { %v3277_v22 = vmul.f32 %v4147_v51, %v3276_v42  ;;  %4156 = vrcp.f32 %v8868_v60  ;;  %v3437_v1 = vand.u32 2147483647, %v8868_v60  ;;  %vm3433_vm3 = vweird.f32 %v8868_v60 }
 0x6c4   :  { %v3292_v15 = vmul.f32 %v4149_v33, %v3291_v41  ;;  %4158 = vrcp.f32 %v8864_v54  ;;  %v3454_v18 = vand.u32 2147483648, %v8870_v55  ;;  %v3452_v44 = vand.u32 2147483647, %v8870_v55 }
 0x6c5   :  { %v3278_v14 = vadd.f32 %v4147_v51, %v3277_v22  ;;  %4160 = vrcp.f32 %v8870_v55  ;;  %vm3438_vm7 = vcmp.eq.f32.partialorder %v3437_v1, 8.507059e+37  ;;  %vm3448_vm8 = vweird.f32 %v8870_v55  ;;  %v3735_v22 = vld [vmem:[%s9006_s7 + $0x78] sm:$0xff] }
 0x6c6   :  { %v3293_v53 = vadd.f32 %v4149_v33, %v3292_v15  ;;  %4162 = vtanh.f32 %v3415_v9  ;;  %v3455_v6 = vor.u32 1.1754944e-38, %v3454_v18  ;;  %vm3453_vm11 = vcmp.eq.f32.partialorder %v3452_v44, 8.507059e+37  ;;  %v3729_v9 = vld [vmem:[%s9006_s7 + $0x48] sm:$0xff] }
 0x6c7   :  { %v3282_v0 = vsel %vm3281_vm10, %v4147_v51, %v3278_v14  ;;  %vm3314_vm10 = vcmp.eq.f32.partialorder %v3313_v20, 8.507059e+37 }
 0x6c8   :  { %v3287_v4 = vsel %vm3284_vm12, %v3286_v63, %v3282_v0  ;;  %v3297_v50 = vsel %vm3296_vm14, %v4149_v33, %v3293_v53  ;;  %vm3463_vm14 = vweird.f32 %v8864_v54  ;;  %v3731_v53 = vld [vmem:[%s9006_s7 + $0x58] sm:$0xff] }
 0x6c9   :  { %v4157_v36 = vpop.eup %4156  ;;  %v3321_v8 = vmul.f32 %v4155_v47, %v3287_v4  ;;  %v3302_v62 = vsel %vm3299_vm15, %v3301_v43, %v3297_v50  ;;  %v3728_v4 = vld [vmem:[%s9006_s7 + $0x40] sm:$0xff]  ;;  %v3727_v50 = vld [vmem:[%s9006_s7 + $0x38] sm:$0xff] }
 0x6ca   :  { %v8877_v17 = vpop.eup %4158  ;;  %v3320_v21 = vmul.f32 %v3302_v62, %v8616_v37  ;;  %v3429_v25 = vmul.f32 %v4157_v36, %v8868_v60  ;;  %v3439_v37 = vand.u32 2147483648, %v8868_v60  ;;  %vm3434_vm1 = vweird.f32 %v4157_v36  ;;  %v3723_v62 = vld [vmem:[%s9006_s7 + $0x18] sm:$0xff] }
 0x6cb   :  { %v4161_v61 = vpop.eup %4160  ;;  %v3459_v12 = vmul.f32 %v8877_v17, %v8864_v54  ;;  %vm3435_vm6 = vmor %vm3433_vm3, %vm3434_vm1  ;;  %v3317_v60 = vsel %vm3314_vm10, %v3316_v48, %v3312_v16  ;;  %vm3464_vm12 = vweird.f32 %v8877_v17 }
 0x6cc   :  { %v3430_v10 = vsub.f32 1.0, %v3429_v25  ;;  %v3444_v38 = vmul.f32 %v4161_v61, %v8870_v55  ;;  %v8884_v7 = vadd.f32 %v3321_v8, %v3320_v21  ;;  %vm3449_vm4 = vweird.f32 %v4161_v61  ;;  %v4163_v26 = vpop.eup %4162  ;;  %v3734_v55 = vld [vmem:[%s9006_s7 + $0x70] sm:$0xff]  ;;  %vm3465_vm15 = vmor %vm3463_vm14, %vm3464_vm12  ;;  %v3724_v8 = vld [vmem:[%s9006_s7 + $0x20] sm:$0xff] }
 0x6cd   :  { %v3460_v51 = vsub.f32 1.0, %v3459_v12  ;;  %v3440_v33 = vor.u32 1.1754944e-38, %v3439_v37  ;;  %vm3450_vm9 = vmor %vm3448_vm8, %vm3449_vm4  ;;  %v3721_v21 = vld [vmem:[%s9006_s7 + $0x8] sm:$0xff]  ;;  %v3720_v25 = vld [vmem:[%s9006_s7] sm:$0xff] }
 0x6ce   :  { %v3431_v24 = vmul.f32 %v4157_v36, %v3430_v10  ;;  %v3445_v3 = vsub.f32 1.0, %v3444_v38  ;;  %4164 = vtanh.f32 %v8884_v7  ;;  %v10900_v10 = vld [vmem:[#allocation24_spill] sm:$0xff]  ;;  %v10901_v38 = vld [vmem:[#allocation29_spill] sm:$0xff] }
 0x6cf   :  { %v3461_v34 = vmul.f32 %v8877_v17, %v3460_v51  ;;  %v10902_v12 = vld [vmem:[#allocation37_spill] sm:$0xff] }
 0x6d0   :  { %v3432_v5 = vadd.f32 %v4157_v36, %v3431_v24  ;;  %v3446_v58 = vmul.f32 %v4161_v61, %v3445_v3 }
 0x6d1   :  { %v3462_v15 = vadd.f32 %v8877_v17, %v3461_v34 }
 0x6d2   :  { %v3436_v59 = vsel %vm3435_vm6, %v4157_v36, %v3432_v5  ;;  %v3447_v11 = vadd.f32 %v4161_v61, %v3446_v58  ;;  %v3726_v36 = vld [vmem:[%s9006_s7 + $0x30] sm:$0xff] }
 0x6d3   :  { %v3441_v23 = vsel %vm3438_vm7, %v3440_v33, %v3436_v59  ;;  %v3466_v14 = vsel %vm3465_vm15, %v8877_v17, %v3462_v15  ;;  %v3722_v17 = vld [vmem:[%s9006_s7 + $0x10] sm:$0xff] }
 0x6d4   :  { %v4165_v19 = vpop.eup %4164  ;;  %v3475_v56 = vmul.f32 %v4163_v26, %v3441_v23  ;;  %v3451_v42 = vsel %vm3450_vm9, %v4161_v61, %v3447_v11  ;;  %v10898_v61 = vld [vmem:[#allocation32_spill] sm:$0xff] }
 0x6d5   :  { %v3456_v57 = vsel %vm3453_vm11, %v3455_v6, %v3451_v42  ;;  %v3324_v41 = vmul.f32 %v4165_v19, %v3317_v60 }
 0x6d6   :  { %v3474_v29 = vmul.f32 %v3456_v57, %v8673_v31  ;;  %v3469_v31 = vand.u32 2147483648, %v8864_v54  ;;  %v3730_v54 = vld [vmem:[%s9006_s7 + $0x50] sm:$0xff]  ;;  %s4917_s7 = smov [#allocation16]  }
 0x6d7   :  { %3495 = vmatmul.f32.vlgmr.msrb.gmra.mxu2 %v3324_v41  ;;  %3515 = vmatmul.f32.vlgmr.msra.gmra.mxu3 %v3324_v41  ;;  %s3805_s8 = sshll.u32 %s4917_s7, 4  ;;  %s3806_s8 = int_to_ptr.vmem [resolvable:$true] %s3805_s8 }
 0x6d8   :  { %3535 = vmatmul.f32.vlgmr.msrb.gmra.mxu0 %v3324_v41  ;;  %3555 = vmatmul.f32.vlgmr.msra.gmra.mxu1 %v3324_v41  ;;  %v3476_v46 = vadd.f32 %v3475_v56, %v3474_v29  ;;  %v3470_v63 = vor.u32 1.1754944e-38, %v3469_v31 }
 0x6d9   :  { %3736 = vmatpush.msrb.mxu2 %v3735_v22 }
 0x6da   :  { %4166 = vtanh.f32 %v3476_v46  ;;  %v3471_v0 = vsel %vm3468_vm0, %v3470_v63, %v3466_v14 }
 0x6db   :  { %3737 = vmatpush.msrb.mxu2 %v3734_v55 }
 0x6dd   :  { %3738 = vmatpush.msrb.mxu2 %v3733_v27 }
 0x6df   :  { %3739 = vmatpush.msrb.mxu2 %v3732_v2 }
 0x6e0   :  { %v4167_v47 = vpop.eup %4166 }
 0x6e1   :  { %v3478_v43 = vmul.f32 %v4167_v47, %v3471_v0  ;;  %3740 = vmatpush.msrb.mxu2 %v3731_v53 }
 0x6e3   :  { %3575 = vmatmul.f32.vlgmr.msra.gmra.mxu2 %v3478_v43  ;;  %3595 = vmatmul.f32.vlgmr.msrb.gmra.mxu3 %v3478_v43 }
 0x6e4   :  { %3615 = vmatmul.f32.vlgmr.msra.gmra.mxu0 %v3478_v43  ;;  %3635 = vmatmul.f32.vlgmr.msrb.gmra.mxu1 %v3478_v43 }
 0x6e5   :  { %3741 = vmatpush.msrb.mxu2 %v3730_v54 }
 0x6e7   :  { %3742 = vmatpush.msrb.mxu2 %v3729_v9  ;;  %v3778_v9 = vld [vmem:[#allocation16 + $0x8] sm:$0xff] }
 0x6e9   :  { %3743 = vmatpush.msrb.mxu2 %v3728_v4 }
 0x6eb   :  { %3744 = vmatpush.msrb.mxu2 %v3727_v50 }
 0x6ed   :  { %3745 = vmatpush.msrb.mxu2 %v3726_v36 }
 0x6ef   :  { %3746 = vmatpush.msrb.mxu2 %v3725_v35 }
 0x6f1   :  { %3747 = vmatpush.msrb.mxu2 %v3724_v8 }
 0x6f3   :  { %3748 = vmatpush.msrb.mxu2 %v3723_v62 }
 0x6f5   :  { %3749 = vmatpush.msrb.mxu2 %v3722_v17 }
 0x6f7   :  { %3750 = vmatpush.msrb.mxu2 %v3721_v21 }
 0x6f9   :  { %3751 = vmatpush.msrb.mxu2 %v3720_v25 }
 0x6fa   :  { %3752 = vmatmul.f32.vlgmr.msrb.gmra.mxu2 %v10898_v61 }
 0x702   :  { %3755 = vmatmul.f32.gmra.mxu2 %v10899_v28 }
 0x70a   :  { %3758 = vmatmul.f32.gmra.mxu2 %v10900_v10 }
 0x712   :  { %3761 = vmatmul.f32.gmra.mxu2 %v10901_v38 }
 0x71a   :  { %3764 = vmatmul.f32.gmra.mxu2 %v10902_v12  ;;  %v3779_v12 = vld [vmem:[#allocation16 + $0x10] sm:$0xff] }
 0x722   :  { %3767 = vmatmul.f32.gmra.mxu2 %v8638_v40 }
 0x72a   :  { %3770 = vmatmul.f32.gmra.mxu2 %v3324_v41  ;;  %v3777_v41 = vld [vmem:[#allocation16] sm:$0xff] }
 0x755   :  { %v3536_v1 = vpop.f32.mrf.mxu0  ;;  %v3556_v33 = vpop.f32.mrf.mxu1 }
 0x75a   :  { %v3496_v37 = vpop.f32.mrf.mxu2  ;;  %v3516_v52 = vpop.f32.mrf.mxu3 }
 0x761   :  { %v3616_v24 = vpop.f32.mrf.mxu0  ;;  %v3636_v6 = vpop.f32.mrf.mxu1 }
 0x762   :  { %v3617_v3 = vadd.f32 %v3616_v24, %v3536_v1 }
 0x764   :  { %v3641_v18 = vadd.f32 %v3617_v3, %v10885_v32 }
 0x766   :  { %v3909_v20 = vmul.f32 -1.442695, %v3641_v18  ;;  %v3576_v5 = vpop.f32.mrf.mxu2  ;;  %v3596_v58 = vpop.f32.mrf.mxu3 }
 0x767   :  { %v3577_v44 = vadd.f32 %v3576_v5, %v3496_v37  ;;  %v3597_v49 = vadd.f32 %v3596_v58, %v3516_v52  ;;  %v3780_v5 = vld [vmem:[#allocation16 + $0x18] sm:$0xff] }
 0x768   :  { %4168 = vpow2.f32 %v3909_v20 }
 0x769   :  { %v3639_v26 = vadd.f32 %v3577_v44, %v10886_v39  ;;  %v3640_v51 = vadd.f32 %v3597_v49, %v10887_v13  ;;  %v3637_v39 = vadd.f32 %v3636_v6, %v3556_v33  ;;  %v3781_v49 = vld [vmem:[#allocation16 + $0x20] sm:$0xff]  ;;  %v3782_v33 = vld [vmem:[#allocation16 + $0x28] sm:$0xff] }
 0x76b   :  { %v3907_v40 = vmul.f32 -1.442695, %v3639_v26  ;;  %v3908_v16 = vmul.f32 -1.442695, %v3640_v51  ;;  %v3642_v42 = vadd.f32 %v3637_v39, %v10894_v30 }
 0x76d   :  { %4170 = vpow2.f32 %v3907_v40 }
 0x76e   :  { %v4169_v48 = vpop.eup %4168  ;;  %4172 = vpow2.f32 %v3908_v16 }
 0x76f   :  { %v8972_v59 = vadd.f32 1.0, %v4169_v48  ;;  %v3783_v48 = vld [vmem:[#allocation16 + $0x30] sm:$0xff] }
 0x771   :  { %4174 = vrcp.f32 %v8972_v59  ;;  %v3696_v10 = vand.u32 2147483648, %v8972_v59  ;;  %vm3690_vm10 = vweird.f32 %v8972_v59  ;;  %v3694_v1 = vand.u32 2147483647, %v8972_v59 }
 0x773   :  { %v4171_v11 = vpop.eup %4170  ;;  %vm3695_vm12 = vcmp.eq.f32.partialorder %v3694_v1, 8.507059e+37 }
 0x774   :  { %v4173_v32 = vpop.eup %4172  ;;  %v3652_v23 = vadd.f32 1.0, %v4171_v11 }
 0x775   :  { %v3653_v19 = vadd.f32 1.0, %v4173_v32  ;;  %v3784_v32 = vld [vmem:[#allocation16 + $0x38] sm:$0xff] }
 0x776   :  { %4176 = vrcp.f32 %v3652_v23  ;;  %v3666_v15 = vand.u32 2147483648, %v3652_v23  ;;  %v3664_v2 = vand.u32 2147483647, %v3652_v23  ;;  %vm3660_vm3 = vweird.f32 %v3652_v23 }
 0x777   :  { %4178 = vrcp.f32 %v3653_v19  ;;  %v8975_v56 = vpop.eup %4174  ;;  %v3681_v45 = vand.u32 2147483648, %v3653_v19  ;;  %v3679_v14 = vand.u32 2147483647, %v3653_v19  ;;  %vm3675_vm5 = vweird.f32 %v3653_v19 }
 0x778   :  { %v3686_v46 = vmul.f32 %v8975_v56, %v8972_v59  ;;  %4180 = vtanh.f32 %v3642_v42  ;;  %v3667_v47 = vor.u32 1.1754944e-38, %v3666_v15  ;;  %vm3665_vm7 = vcmp.eq.f32.partialorder %v3664_v2, 8.507059e+37 }
 0x779   :  { %v3682_v43 = vor.u32 1.1754944e-38, %v3681_v45  ;;  %vm3680_vm8 = vcmp.eq.f32.partialorder %v3679_v14, 8.507059e+37  ;;  %vm3691_vm9 = vweird.f32 %v8975_v56 }
 0x77a   :  { %v3687_v53 = vsub.f32 1.0, %v3686_v46  ;;  %vm3692_vm11 = vmor %vm3690_vm10, %vm3691_vm9 }
 0x77c   :  { %v4177_v13 = vpop.eup %4176  ;;  %v3688_v17 = vmul.f32 %v8975_v56, %v3687_v53 }
 0x77d   :  { %v4179_v60 = vpop.eup %4178  ;;  %v3656_v34 = vmul.f32 %v4177_v13, %v3652_v23  ;;  %v3753_v57 = vpop.f32.mrf.mxu2  ;;  %vm3661_vm1 = vweird.f32 %v4177_v13 }
 0x77e   :  { %v3671_v29 = vmul.f32 %v4179_v60, %v3653_v19  ;;  %v3785_v22 = vadd.f32 %v3777_v41, %v3753_v57  ;;  %vm3676_vm2 = vweird.f32 %v4179_v60  ;;  %vm3662_vm4 = vmor %vm3660_vm3, %vm3661_vm1  ;;  %v4181_v50 = vpop.eup %4180  ;;  %v3689_v28 = vadd.f32 %v8975_v56, %v3688_v17 }
 0x77f   :  { %v3657_v55 = vsub.f32 1.0, %v3656_v34  ;;  %vm3677_vm6 = vmor %vm3675_vm5, %vm3676_vm2 }
 0x780   :  { %v3672_v31 = vsub.f32 1.0, %v3671_v29  ;;  %3793 = vst.msk [vmem:[#allocation16] sm:$0xff] %vm447_vm13, %v3785_v22  ;;  %v3693_v52 = vsel %vm3692_vm11, %v8975_v56, %v3689_v28 }
 0x781   :  { %v3658_v27 = vmul.f32 %v4177_v13, %v3657_v55 }
 0x782   :  { %v3673_v30 = vmul.f32 %v4179_v60, %v3672_v31 }
 0x783   :  { %v3659_v63 = vadd.f32 %v4177_v13, %v3658_v27 }
 0x784   :  { %v3674_v0 = vadd.f32 %v4179_v60, %v3673_v30 }
 0x785   :  { %v3756_v54 = vpop.f32.mrf.mxu2  ;;  %v3663_v4 = vsel %vm3662_vm4, %v4177_v13, %v3659_v63 }
 0x786   :  { %v3786_v36 = vadd.f32 %v3778_v9, %v3756_v54  ;;  %v3668_v35 = vsel %vm3665_vm7, %v3667_v47, %v3663_v4  ;;  %v3678_v8 = vsel %vm3677_vm6, %v4179_v60, %v3674_v0 }
 0x787   :  { %v3683_v62 = vsel %vm3680_vm8, %v3682_v43, %v3678_v8  ;;  %v3702_v21 = vmul.f32 %v4181_v50, %v3668_v35 }
 0x788   :  { %3794 = vst.msk [vmem:[#allocation16 + $0x8] sm:$0xff] %vm447_vm13, %v3786_v36  ;;  %v3701_v25 = vmul.f32 %v3683_v62, %v8884_v7  ;;  %v3697_v7 = vor.u32 1.1754944e-38, %v3696_v10 }
 0x78a   :  { %v3703_v61 = vadd.f32 %v3702_v21, %v3701_v25  ;;  %v3698_v3 = vsel %vm3695_vm12, %v3697_v7, %v3693_v52 }
 0x78c   :  { %4182 = vtanh.f32 %v3703_v61 }
 0x78d   :  { %v3759_v38 = vpop.f32.mrf.mxu2 }
 0x78e   :  { %v3787_v37 = vadd.f32 %v3779_v12, %v3759_v38 }
 0x790   :  { %3795 = vst.msk [vmem:[#allocation16 + $0x10] sm:$0xff] %vm447_vm13, %v3787_v37 }
 0x792   :  { %v4183_v24 = vpop.eup %4182 }
 0x793   :  { %v3705_v18 = vmul.f32 %v4183_v24, %v3698_v3 }
 0x795   :  { %3773 = vmatmul.f32.gmra.mxu2 %v3705_v18  ;;  %v3762_v20 = vpop.f32.mrf.mxu2 }
 0x796   :  { %v3788_v58 = vadd.f32 %v3780_v5, %v3762_v20 }
 0x798   :  { %3796 = vst.msk [vmem:[#allocation16 + $0x18] sm:$0xff] %vm447_vm13, %v3788_v58 }
 0x79d   :  { %v3765_v44 = vpop.f32.mrf.mxu2 }
 0x79e   :  { %v3789_v26 = vadd.f32 %v3781_v49, %v3765_v44 }
 0x7a0   :  { %3797 = vst.msk [vmem:[#allocation16 + $0x20] sm:$0xff] %vm447_vm13, %v3789_v26 }
 0x7a5   :  { %v3768_v51 = vpop.f32.mrf.mxu2 }
 0x7a6   :  { %v3790_v40 = vadd.f32 %v3782_v33, %v3768_v51 }
 0x7a8   :  { %3798 = vst.msk [vmem:[#allocation16 + $0x28] sm:$0xff] %vm447_vm13, %v3790_v40 }
 0x7ad   :  { %v3771_v16 = vpop.f32.mrf.mxu2 }
 0x7ae   :  { %v3791_v59 = vadd.f32 %v3783_v48, %v3771_v16 }
 0x7b0   :  { %3799 = vst.msk [vmem:[#allocation16 + $0x30] sm:$0xff] %vm447_vm13, %v3791_v59 }
 0x818   :  { %v3774_v11 = vpop.f32.mrf.mxu2 }
 0x819   :  { %v3792_v23 = vadd.f32 %v3784_v32, %v3774_v11 }
 0x81b   :  { %3800 = vst.msk [vmem:[#allocation16 + $0x38] sm:$0xff] %vm447_vm13, %v3792_v23 }
 0x81c   :  { %3813 = dma.vmem_to_hbm [thread:$0]  %s3806_s8, 1024, %s3808_s5, [#allocation10], %s4918_s10, %s4918_s10, %s4919_s11  }
 0x81d   :  { %4906 = dma.done.wait [#allocation10], 1024  }
 0x81e   :  { %4907 = vsyncadd [#allocation10], 4294966272 }
 0x81f   :  { %3818 = vsyncpa [#allocation9], 1 }
 0x820   :  { %3819 = vsyncpa [#allocation12], 1 }
 0x821   :  { %3820 = vsyncpa [#allocation15], 1 }
 0x822   :  { %3821 = vsyncpa [#allocation10], 1 }

</bundles_post_ra>
